<compile_context>
chip_gen: v7x
topology: tpu7x:2x2x1
jax: 0.10.0
libtpu: 0.0.40
codegen_flags: <defaults>
</compile_context>

<pallas_src>
import jax
import jax.numpy as jnp
from jax import lax
from jax.experimental import pallas as pl
from jax.experimental.pallas import tpu as pltpu

LENET5_DEPS = [20, 50, 500]

NIMG = 8      # images per grid step (batch block)
C1K = 32      # conv1 im2col contraction lanes (25 real taps)
C1P = 128     # conv1 out-channel lanes (20 real)
C2K = 160     # conv2 contraction lanes per di tap: 5 dj * 32 channel lanes (100 real)
C2P = 128     # conv2 out-channel lanes (50 real)
P2C = 64      # pool2 channel lanes per spatial position (50 real)
FC1P = 512    # fc1 hidden lanes (500 real)
NCLS = 128    # logit lanes (10 real)
CHUNK = 144   # conv1 M-chunk (576 output rows / 4) -> 18-vreg register chunks


# ---------------------------------------------------------------------------
# Fused Pallas kernel: one grid step == NIMG images.
# ---------------------------------------------------------------------------
def _lenet5_fused_kernel(x_ref, w1_ref, b1_ref, w2_ref, b2_ref,
                         wfc1_ref, bfc1_ref, wfc2_ref, bfc2_ref,
                         out_ref, a1_ref, p1w_ref, a2_ref):
    f32 = jnp.float32
    w1 = w1_ref[...]            # (32, 128)
    b1 = b1_ref[...]            # (1, 128)
    b2 = b2_ref[...]            # (1, 128)

    @pl.loop(0, NIMG)
    def _per_image(img):
        # ---- conv1: one fat-K matmul per 144-row chunk (im2col from wrapper),
        #      register result, stored to the activation slab exactly once ----
        for c in range(576 // CHUNK):
            r0 = c * CHUNK
            lhs = x_ref[img, pl.ds(r0, CHUNK), :]                      # (144, 32)
            a1_ref[img, pl.ds(r0, CHUNK), :] = (
                jnp.dot(lhs, w1, preferred_element_type=f32) + b1)

        # ---- maxpool1 (24x24 -> 12x12) with strided reads, written dj-packed
        #      for conv2: p1w[pi*8+pj, dj*32+ch] = pool1[pi, pj+dj, ch] --------
        for pi in range(12):
            base = 48 * pi
            m = jnp.maximum(
                jnp.maximum(a1_ref[img, pl.ds(base,      12, stride=2), :],
                            a1_ref[img, pl.ds(base + 1,  12, stride=2), :]),
                jnp.maximum(a1_ref[img, pl.ds(base + 24, 12, stride=2), :],
                            a1_ref[img, pl.ds(base + 25, 12, stride=2), :]))
            for dj in range(5):
                p1w_ref[img, pl.ds(8 * pi, 8), pl.ds(32 * dj, 32)] = m[dj:dj + 8, :32]

        # ---- conv2: 5 contiguous-row matmuls over di, register accumulation,
        #      activation slab written once ---------------------------------
        acc = jnp.dot(p1w_ref[img, pl.ds(0, 64), :], w2_ref[0],
                      preferred_element_type=f32)
        for di in range(1, 5):
            acc = acc + jnp.dot(p1w_ref[img, pl.ds(8 * di, 64), :], w2_ref[di],
                                preferred_element_type=f32)
        row0 = pl.multiple_of(img * 64, 64)
        a2_ref[pl.ds(row0, 64), :] = acc + b2                          # rows img*64 + r*8+c

    # ---- maxpool2 + flatten + fc1 fused, batched over all NIMG images -------
    h = jnp.zeros((NIMG, FC1P), jnp.float32)
    for pr in range(4):
        for pc in range(4):
            q = 16 * pr + 2 * pc
            lhs = jnp.maximum(
                jnp.maximum(a2_ref[pl.ds(q,     NIMG, stride=64), :P2C],
                            a2_ref[pl.ds(q + 1, NIMG, stride=64), :P2C]),
                jnp.maximum(a2_ref[pl.ds(q + 8, NIMG, stride=64), :P2C],
                            a2_ref[pl.ds(q + 9, NIMG, stride=64), :P2C]))
            h = h + jnp.dot(lhs, wfc1_ref[4 * pr + pc], preferred_element_type=f32)
    h = jnp.maximum(h + bfc1_ref[...], 0.0)

    # ---- fc2: (NIMG, 512) x (512, 128) lane-dense output store --------------
    out_ref[...] = (jnp.dot(h, wfc2_ref[...], preferred_element_type=f32)
                    + bfc2_ref[...])


def _lenet5_pallas_call(steps):
    return pl.pallas_call(
        _lenet5_fused_kernel,
        out_shape=jax.ShapeDtypeStruct((steps * NIMG, NCLS), jnp.float32),
        grid=(steps,),
        in_specs=[
            pl.BlockSpec((NIMG, 576, C1K), lambda s: (s, 0, 0)),   # conv1 im2col input
            pl.BlockSpec((C1K, C1P), lambda s: (0, 0)),            # conv1 weights
            pl.BlockSpec((1, C1P), lambda s: (0, 0)),              # conv1 bias
            pl.BlockSpec((5, C2K, C2P), lambda s: (0, 0, 0)),      # conv2 weights (per di)
            pl.BlockSpec((1, C2P), lambda s: (0, 0)),              # conv2 bias
            pl.BlockSpec((16, P2C, FC1P), lambda s: (0, 0, 0)),    # fc1 weights (per pos)
            pl.BlockSpec((1, FC1P), lambda s: (0, 0)),             # fc1 bias
            pl.BlockSpec((FC1P, NCLS), lambda s: (0, 0)),          # fc2 weights
            pl.BlockSpec((1, NCLS), lambda s: (0, 0)),             # fc2 bias
        ],
        out_specs=pl.BlockSpec((NIMG, NCLS), lambda s: (s, 0)),
        scratch_shapes=[
            pltpu.VMEM((NIMG, 576, C1P), jnp.float32),   # conv1 activation slab
            pltpu.VMEM((NIMG, 96, C2K), jnp.float32),    # pool1 output, dj-packed
            pltpu.VMEM((NIMG * 64, C2P), jnp.float32),   # conv2 activation slab
        ],
        compiler_params=pltpu.CompilerParams(
            dimension_semantics=("parallel",),
            vmem_limit_bytes=40 * 1024 * 1024,
        ),
    )


# ---------------------------------------------------------------------------
# One-time parameter packing into padded / pre-transposed kernel layouts.
# ---------------------------------------------------------------------------
def pack_params(p):
    f32 = jnp.float32
    # conv1 (im2col form): w1p[di*5+dj, co] = conv1_w[co, 0, di, dj]
    w1 = p["conv1_w"].astype(f32).reshape(20, 25).T                       # (25, 20)
    w1p = jnp.zeros((C1K, C1P), f32).at[:25, :20].set(w1)
    b1p = jnp.zeros((1, C1P), f32).at[0, :20].set(p["conv1_b"].astype(f32))
    # conv2 (dj packed in lanes): w2p[di, dj*32+ci, co] = conv2_w[co, ci, di, dj]
    w2 = p["conv2_w"].astype(f32).transpose(2, 3, 1, 0)                   # (5,5,20,50)
    w2p = (jnp.zeros((5, 5, 32, C2P), f32)
           .at[:, :, :20, :50].set(w2)
           .reshape(5, C2K, C2P))
    b2p = jnp.zeros((1, C2P), f32).at[0, :50].set(p["conv2_b"].astype(f32))
    # fc1: wfc1p[pos, ch, j] = fc1_w[j, ch*16 + pos]  (pos = pr*4+pc)
    wfc1 = p["fc1_w"].astype(f32).reshape(500, 50, 16).transpose(2, 1, 0)  # (16,50,500)
    wfc1p = jnp.zeros((16, P2C, FC1P), f32).at[:, :50, :500].set(wfc1)
    bfc1p = jnp.zeros((1, FC1P), f32).at[0, :500].set(p["fc1_b"].astype(f32))
    # fc2: wfc2p[k, n] = fc2_w[n, k]
    wfc2p = jnp.zeros((FC1P, NCLS), f32).at[:500, :10].set(p["fc2_w"].astype(f32).T)
    bfc2p = jnp.zeros((1, NCLS), f32).at[0, :10].set(p["fc2_b"].astype(f32))
    return dict(w1p=w1p, b1p=b1p, w2p=w2p, b2p=b2p,
                wfc1p=wfc1p, bfc1p=bfc1p, wfc2p=wfc2p, bfc2p=bfc2p)


def init_params(key):
    ks = jax.random.split(key, 8)
    d0, d1, d2 = LENET5_DEPS
    return {
        "conv1_w": 0.1 * jax.random.normal(ks[0], (d0, 1, 5, 5), jnp.float32),
        "conv1_b": 0.1 * jax.random.normal(ks[1], (d0,), jnp.float32),
        "conv2_w": 0.05 * jax.random.normal(ks[2], (d1, d0, 5, 5), jnp.float32),
        "conv2_b": 0.1 * jax.random.normal(ks[3], (d1,), jnp.float32),
        "fc1_w": 0.02 * jax.random.normal(ks[4], (d2, d1 * 16), jnp.float32),
        "fc1_b": 0.1 * jax.random.normal(ks[5], (d2,), jnp.float32),
        "fc2_w": 0.05 * jax.random.normal(ks[6], (10, d2), jnp.float32),
        "fc2_b": 0.1 * jax.random.normal(ks[7], (10,), jnp.float32),
    }


# ---------------------------------------------------------------------------
# Forward: wrapper-side conv1 im2col + batch padding, one fused Pallas kernel,
# then slice the real logits out of the padded lanes/rows.
# ---------------------------------------------------------------------------
def _conv1_im2col(x):
    # x: (B, 1, 28, 28) -> (B, 576, C1K); lane p = di*5+dj holds x[b,0,oi+di,oj+dj]
    b = x.shape[0]
    img = x[:, 0, :, :]
    taps = [img[:, di:di + 24, dj:dj + 24] for di in range(5) for dj in range(5)]
    patches = jnp.stack(taps, axis=-1).reshape(b, 576, 25)
    return jnp.pad(patches, ((0, 0), (0, 0), (0, C1K - 25)))


@jax.jit
def lenet5_forward(packed, x):
    batch = x.shape[0]
    pad = (-batch) % NIMG
    steps = (batch + pad) // NIMG
    xi = _conv1_im2col(x.astype(jnp.float32))
    xi = jnp.pad(xi, ((0, pad), (0, 0), (0, 0)))
    out = _lenet5_pallas_call(steps)(
        xi, packed["w1p"], packed["b1p"], packed["w2p"], packed["b2p"],
        packed["wfc1p"], packed["bfc1p"], packed["wfc2p"], packed["bfc2p"])
    return out[:batch, :10]


# ---------------------------------------------------------------------------
# Plain-JAX reference (correctness check only).
# ---------------------------------------------------------------------------
def lenet5_reference(params, x):
    hi = lax.Precision.HIGHEST
    dn1 = lax.conv_dimension_numbers(x.shape, params["conv1_w"].shape,
                                     ("NCHW", "OIHW", "NCHW"))
    out = lax.conv_general_dilated(x, params["conv1_w"], (1, 1), "VALID",
                                   dimension_numbers=dn1, precision=hi)
    out = out + params["conv1_b"][None, :, None, None]
    out = lax.reduce_window(out, -jnp.inf, lax.max, (1, 1, 2, 2), (1, 1, 2, 2), "VALID")
    dn2 = lax.conv_dimension_numbers(out.shape, params["conv2_w"].shape,
                                     ("NCHW", "OIHW", "NCHW"))
    out = lax.conv_general_dilated(out, params["conv2_w"], (1, 1), "VALID",
                                   dimension_numbers=dn2, precision=hi)
    out = out + params["conv2_b"][None, :, None, None]
    out = lax.reduce_window(out, -jnp.inf, lax.max, (1, 1, 2, 2), (1, 1, 2, 2), "VALID")
    out = out.reshape(x.shape[0], -1)
    out = jnp.dot(out, params["fc1_w"].T, precision=hi) + params["fc1_b"]
    out = jnp.maximum(out, 0.0)
    out = jnp.dot(out, params["fc2_w"].T, precision=hi) + params["fc2_b"]
    return out


if __name__ == "__main__":
    key = jax.random.PRNGKey(0)
    k_param, k_x = jax.random.split(key)
    params = init_params(k_param)
    packed = pack_params(params)          # one-time weight packing (outside jit)

    # Input implied by the module (linear1 in_features = 50*16): 1x28x28, batch=2.
    x = jax.random.normal(k_x, (2, 1, 28, 28), jnp.float32)

    out = lenet5_forward(packed, x)
    jax.block_until_ready(out)
    assert out.shape == (2, 10)

    ref = lenet5_reference(params, x)
    err = float(jnp.max(jnp.abs(out - ref)))
    assert err < 5e-3, f"max abs error vs reference too large: {err}"

    print("KERNEL_OK")
</pallas_src>

<mosaic_0001>
module attributes {stable_mosaic.version = 11 : i64} {
  func.func @_lenet5_fused_kernel(%arg0: i32, %arg1: memref<8x576x32xf32, #tpu.memory_space<vmem>>, %arg2: memref<32x128xf32, #tpu.memory_space<vmem>>, %arg3: memref<1x128xf32, #tpu.memory_space<vmem>>, %arg4: memref<5x160x128xf32, #tpu.memory_space<vmem>>, %arg5: memref<1x128xf32, #tpu.memory_space<vmem>>, %arg6: memref<16x64x512xf32, #tpu.memory_space<vmem>>, %arg7: memref<1x512xf32, #tpu.memory_space<vmem>>, %arg8: memref<512x128xf32, #tpu.memory_space<vmem>>, %arg9: memref<1x128xf32, #tpu.memory_space<vmem>>, %arg10: memref<8x128xf32, #tpu.memory_space<vmem>>, %arg11: memref<8x576x128xf32, #tpu.memory_space<vmem>>, %arg12: memref<8x96x160xf32, #tpu.memory_space<vmem>>, %arg13: memref<512x128xf32, #tpu.memory_space<vmem>>) attributes {dimension_semantics = [#tpu.dimension_semantics<parallel>], iteration_bounds = array<i64: 1>, scalar_prefetch = 0 : i64, scratch_operands = 3 : i64, tpu.core_type = #tpu.core_type<tc>, window_params = [{transform_indices = @transform_0, window_bounds = array<i64: 8, 576, 32>}, {pipeline_mode = #tpu.pipeline_mode<synchronous>, transform_indices = @transform_1, window_bounds = array<i64: 32, 128>}, {pipeline_mode = #tpu.pipeline_mode<synchronous>, transform_indices = @transform_2, window_bounds = array<i64: 1, 128>}, {pipeline_mode = #tpu.pipeline_mode<synchronous>, transform_indices = @transform_3, window_bounds = array<i64: 5, 160, 128>}, {pipeline_mode = #tpu.pipeline_mode<synchronous>, transform_indices = @transform_4, window_bounds = array<i64: 1, 128>}, {pipeline_mode = #tpu.pipeline_mode<synchronous>, transform_indices = @transform_5, window_bounds = array<i64: 16, 64, 512>}, {pipeline_mode = #tpu.pipeline_mode<synchronous>, transform_indices = @transform_6, window_bounds = array<i64: 1, 512>}, {pipeline_mode = #tpu.pipeline_mode<synchronous>, transform_indices = @transform_7, window_bounds = array<i64: 512, 128>}, {pipeline_mode = #tpu.pipeline_mode<synchronous>, transform_indices = @transform_8, window_bounds = array<i64: 1, 128>}, {transform_indices = @transform_9, window_bounds = array<i64: 8, 128>}]} {
    %c0 = arith.constant 0 : index
    %c0_0 = arith.constant 0 : index
    %0 = vector.load %arg2[%c0, %c0_0] : memref<32x128xf32, #tpu.memory_space<vmem>>, vector<32x128xf32>
    %c0_1 = arith.constant 0 : index
    %c0_2 = arith.constant 0 : index
    %1 = vector.load %arg3[%c0_1, %c0_2] : memref<1x128xf32, #tpu.memory_space<vmem>>, vector<1x128xf32>
    %c0_3 = arith.constant 0 : index
    %c0_4 = arith.constant 0 : index
    %2 = vector.load %arg5[%c0_3, %c0_4] : memref<1x128xf32, #tpu.memory_space<vmem>>, vector<1x128xf32>
    %c0_i32 = arith.constant 0 : i32
    %c8_i32 = arith.constant 8 : i32
    %3 = arith.addi %c0_i32, %c8_i32 : i32
    %c1_i32 = arith.constant 1 : i32
    scf.for %arg14 = %c0_i32 to %3 step %c1_i32  : i32 {
      %c1_i32_145 = arith.constant 1 : i32
      %192 = arith.muli %arg14, %c1_i32_145 : i32
      %c0_i32_146 = arith.constant 0 : i32
      %193 = arith.addi %c0_i32_146, %192 : i32
      %194 = arith.index_cast %193 : i32 to index
      %c0_147 = arith.constant 0 : index
      %c0_148 = arith.constant 0 : index
      %195 = vector.load %arg1[%194, %c0_147, %c0_148] : memref<8x576x32xf32, #tpu.memory_space<vmem>>, vector<1x144x32xf32>
      %196 = vector.shape_cast %195 : vector<1x144x32xf32> to vector<144x32xf32>
      %cst_149 = arith.constant dense<0.000000e+00> : vector<144x128xf32>
      %197 = tpu.matmul %196, %0, %cst_149 {dimension_numbers = #tpu.dot_dimension_numbers<[1], [0], [0], [1], [0, 0, 1, 1], [], []>} : vector<144x32xf32>, vector<32x128xf32>, vector<144x128xf32> -> vector<144x128xf32>
      %198 = vector.broadcast %1 : vector<1x128xf32> to vector<144x128xf32>
      %199 = arith.addf %197, %198 : vector<144x128xf32>
      %200 = arith.index_cast %193 : i32 to index
      %c0_150 = arith.constant 0 : index
      %c0_151 = arith.constant 0 : index
      %201 = vector.load %arg11[%200, %c0_150, %c0_151] : memref<8x576x128xf32, #tpu.memory_space<vmem>>, vector<1x144x128xf32>
      %202 = vector.shape_cast %201 : vector<1x144x128xf32> to vector<144x128xf32>
      %203 = vector.shape_cast %199 : vector<144x128xf32> to vector<1x144x128xf32>
      tpu.vector_store %arg11[%200, %c0_150, %c0_151], %203 {strides = array<i32>} : memref<8x576x128xf32, #tpu.memory_space<vmem>>, vector<1x144x128xf32>,
      %204 = arith.index_cast %193 : i32 to index
      %c144 = arith.constant 144 : index
      %c0_152 = arith.constant 0 : index
      %205 = vector.load %arg1[%204, %c144, %c0_152] : memref<8x576x32xf32, #tpu.memory_space<vmem>>, vector<1x144x32xf32>
      %206 = vector.shape_cast %205 : vector<1x144x32xf32> to vector<144x32xf32>
      %cst_153 = arith.constant dense<0.000000e+00> : vector<144x128xf32>
      %207 = tpu.matmul %206, %0, %cst_153 {dimension_numbers = #tpu.dot_dimension_numbers<[1], [0], [0], [1], [0, 0, 1, 1], [], []>} : vector<144x32xf32>, vector<32x128xf32>, vector<144x128xf32> -> vector<144x128xf32>
      %208 = vector.broadcast %1 : vector<1x128xf32> to vector<144x128xf32>
      %209 = arith.addf %207, %208 : vector<144x128xf32>
      %210 = arith.index_cast %193 : i32 to index
      %c144_154 = arith.constant 144 : index
      %c0_155 = arith.constant 0 : index
      %211 = vector.load %arg11[%210, %c144_154, %c0_155] : memref<8x576x128xf32, #tpu.memory_space<vmem>>, vector<1x144x128xf32>
      %212 = vector.shape_cast %211 : vector<1x144x128xf32> to vector<144x128xf32>
      %213 = vector.shape_cast %209 : vector<144x128xf32> to vector<1x144x128xf32>
      tpu.vector_store %arg11[%210, %c144_154, %c0_155], %213 {strides = array<i32>} : memref<8x576x128xf32, #tpu.memory_space<vmem>>, vector<1x144x128xf32>,
      %214 = arith.index_cast %193 : i32 to index
      %c288 = arith.constant 288 : index
      %c0_156 = arith.constant 0 : index
      %215 = vector.load %arg1[%214, %c288, %c0_156] : memref<8x576x32xf32, #tpu.memory_space<vmem>>, vector<1x144x32xf32>
      %216 = vector.shape_cast %215 : vector<1x144x32xf32> to vector<144x32xf32>
      %cst_157 = arith.constant dense<0.000000e+00> : vector<144x128xf32>
      %217 = tpu.matmul %216, %0, %cst_157 {dimension_numbers = #tpu.dot_dimension_numbers<[1], [0], [0], [1], [0, 0, 1, 1], [], []>} : vector<144x32xf32>, vector<32x128xf32>, vector<144x128xf32> -> vector<144x128xf32>
      %218 = vector.broadcast %1 : vector<1x128xf32> to vector<144x128xf32>
      %219 = arith.addf %217, %218 : vector<144x128xf32>
      %220 = arith.index_cast %193 : i32 to index
      %c288_158 = arith.constant 288 : index
      %c0_159 = arith.constant 0 : index
      %221 = vector.load %arg11[%220, %c288_158, %c0_159] : memref<8x576x128xf32, #tpu.memory_space<vmem>>, vector<1x144x128xf32>
      %222 = vector.shape_cast %221 : vector<1x144x128xf32> to vector<144x128xf32>
      %223 = vector.shape_cast %219 : vector<144x128xf32> to vector<1x144x128xf32>
      tpu.vector_store %arg11[%220, %c288_158, %c0_159], %223 {strides = array<i32>} : memref<8x576x128xf32, #tpu.memory_space<vmem>>, vector<1x144x128xf32>,
      %224 = arith.index_cast %193 : i32 to index
      %c432 = arith.constant 432 : index
      %c0_160 = arith.constant 0 : index
      %225 = vector.load %arg1[%224, %c432, %c0_160] : memref<8x576x32xf32, #tpu.memory_space<vmem>>, vector<1x144x32xf32>
      %226 = vector.shape_cast %225 : vector<1x144x32xf32> to vector<144x32xf32>
      %cst_161 = arith.constant dense<0.000000e+00> : vector<144x128xf32>
      %227 = tpu.matmul %226, %0, %cst_161 {dimension_numbers = #tpu.dot_dimension_numbers<[1], [0], [0], [1], [0, 0, 1, 1], [], []>} : vector<144x32xf32>, vector<32x128xf32>, vector<144x128xf32> -> vector<144x128xf32>
      %228 = vector.broadcast %1 : vector<1x128xf32> to vector<144x128xf32>
      %229 = arith.addf %227, %228 : vector<144x128xf32>
      %230 = arith.index_cast %193 : i32 to index
      %c432_162 = arith.constant 432 : index
      %c0_163 = arith.constant 0 : index
      %231 = vector.load %arg11[%230, %c432_162, %c0_163] : memref<8x576x128xf32, #tpu.memory_space<vmem>>, vector<1x144x128xf32>
      %232 = vector.shape_cast %231 : vector<1x144x128xf32> to vector<144x128xf32>
      %233 = vector.shape_cast %229 : vector<144x128xf32> to vector<1x144x128xf32>
      tpu.vector_store %arg11[%230, %c432_162, %c0_163], %233 {strides = array<i32>} : memref<8x576x128xf32, #tpu.memory_space<vmem>>, vector<1x144x128xf32>,
      %234 = arith.index_cast %193 : i32 to index
      %c0_164 = arith.constant 0 : index
      %c0_165 = arith.constant 0 : index
      %235 = tpu.strided_load %arg11[%234, %c0_164, %c0_165] {strides = array<i32: 1, 2, 1>} : memref<8x576x128xf32, #tpu.memory_space<vmem>>, vector<1x12x128xf32>
      %236 = vector.shape_cast %235 : vector<1x12x128xf32> to vector<12x128xf32>
      %237 = arith.index_cast %193 : i32 to index
      %c1_166 = arith.constant 1 : index
      %c0_167 = arith.constant 0 : index
      %238 = tpu.strided_load %arg11[%237, %c1_166, %c0_167] {strides = array<i32: 1, 2, 1>} : memref<8x576x128xf32, #tpu.memory_space<vmem>>, vector<1x12x128xf32>
      %239 = vector.shape_cast %238 : vector<1x12x128xf32> to vector<12x128xf32>
      %240 = arith.maximumf %236, %239 : vector<12x128xf32>
      %241 = arith.index_cast %193 : i32 to index
      %c24_168 = arith.constant 24 : index
      %c0_169 = arith.constant 0 : index
      %242 = tpu.strided_load %arg11[%241, %c24_168, %c0_169] {strides = array<i32: 1, 2, 1>} : memref<8x576x128xf32, #tpu.memory_space<vmem>>, vector<1x12x128xf32>
      %243 = vector.shape_cast %242 : vector<1x12x128xf32> to vector<12x128xf32>
      %244 = arith.index_cast %193 : i32 to index
      %c25_170 = arith.constant 25 : index
      %c0_171 = arith.constant 0 : index
      %245 = tpu.strided_load %arg11[%244, %c25_170, %c0_171] {strides = array<i32: 1, 2, 1>} : memref<8x576x128xf32, #tpu.memory_space<vmem>>, vector<1x12x128xf32>
      %246 = vector.shape_cast %245 : vector<1x12x128xf32> to vector<12x128xf32>
      %247 = arith.maximumf %243, %246 : vector<12x128xf32>
      %248 = arith.maximumf %240, %247 : vector<12x128xf32>
      %249 = vector.extract_strided_slice %248 {offsets = [0, 0], sizes = [8, 32], strides = [1, 1]} : vector<12x128xf32> to vector<8x32xf32>
      %250 = arith.index_cast %193 : i32 to index
      %c0_172 = arith.constant 0 : index
      %c0_173 = arith.constant 0 : index
      %251 = vector.load %arg12[%250, %c0_172, %c0_173] : memref<8x96x160xf32, #tpu.memory_space<vmem>>, vector<1x8x32xf32>
      %252 = vector.shape_cast %251 : vector<1x8x32xf32> to vector<8x32xf32>
      %253 = vector.shape_cast %249 : vector<8x32xf32> to vector<1x8x32xf32>
      tpu.vector_store %arg12[%250, %c0_172, %c0_173], %253 {strides = array<i32>} : memref<8x96x160xf32, #tpu.memory_space<vmem>>, vector<1x8x32xf32>,
      %254 = vector.extract_strided_slice %248 {offsets = [1, 0], sizes = [8, 32], strides = [1, 1]} : vector<12x128xf32> to vector<8x32xf32>
      %255 = arith.index_cast %193 : i32 to index
      %c0_174 = arith.constant 0 : index
      %c32_175 = arith.constant 32 : index
      %256 = vector.load %arg12[%255, %c0_174, %c32_175] : memref<8x96x160xf32, #tpu.memory_space<vmem>>, vector<1x8x32xf32>
      %257 = vector.shape_cast %256 : vector<1x8x32xf32> to vector<8x32xf32>
      %258 = vector.shape_cast %254 : vector<8x32xf32> to vector<1x8x32xf32>
      tpu.vector_store %arg12[%255, %c0_174, %c32_175], %258 {strides = array<i32>} : memref<8x96x160xf32, #tpu.memory_space<vmem>>, vector<1x8x32xf32>,
      %259 = vector.extract_strided_slice %248 {offsets = [2, 0], sizes = [8, 32], strides = [1, 1]} : vector<12x128xf32> to vector<8x32xf32>
      %260 = arith.index_cast %193 : i32 to index
      %c0_176 = arith.constant 0 : index
      %c64 = arith.constant 64 : index
      %261 = vector.load %arg12[%260, %c0_176, %c64] : memref<8x96x160xf32, #tpu.memory_space<vmem>>, vector<1x8x32xf32>
      %262 = vector.shape_cast %261 : vector<1x8x32xf32> to vector<8x32xf32>
      %263 = vector.shape_cast %259 : vector<8x32xf32> to vector<1x8x32xf32>
      tpu.vector_store %arg12[%260, %c0_176, %c64], %263 {strides = array<i32>} : memref<8x96x160xf32, #tpu.memory_space<vmem>>, vector<1x8x32xf32>,
      %264 = vector.extract_strided_slice %248 {offsets = [3, 0], sizes = [8, 32], strides = [1, 1]} : vector<12x128xf32> to vector<8x32xf32>
      %265 = arith.index_cast %193 : i32 to index
      %c0_177 = arith.constant 0 : index
      %c96 = arith.constant 96 : index
      %266 = vector.load %arg12[%265, %c0_177, %c96] : memref<8x96x160xf32, #tpu.memory_space<vmem>>, vector<1x8x32xf32>
      %267 = vector.shape_cast %266 : vector<1x8x32xf32> to vector<8x32xf32>
      %268 = vector.shape_cast %264 : vector<8x32xf32> to vector<1x8x32xf32>
      tpu.vector_store %arg12[%265, %c0_177, %c96], %268 {strides = array<i32>} : memref<8x96x160xf32, #tpu.memory_space<vmem>>, vector<1x8x32xf32>,
      %269 = vector.extract_strided_slice %248 {offsets = [4, 0], sizes = [8, 32], strides = [1, 1]} : vector<12x128xf32> to vector<8x32xf32>
      %270 = arith.index_cast %193 : i32 to index
      %c0_178 = arith.constant 0 : index
      %c128 = arith.constant 128 : index
      %271 = vector.load %arg12[%270, %c0_178, %c128] : memref<8x96x160xf32, #tpu.memory_space<vmem>>, vector<1x8x32xf32>
      %272 = vector.shape_cast %271 : vector<1x8x32xf32> to vector<8x32xf32>
      %273 = vector.shape_cast %269 : vector<8x32xf32> to vector<1x8x32xf32>
      tpu.vector_store %arg12[%270, %c0_178, %c128], %273 {strides = array<i32>} : memref<8x96x160xf32, #tpu.memory_space<vmem>>, vector<1x8x32xf32>,
      %274 = arith.index_cast %193 : i32 to index
      %c48_179 = arith.constant 48 : index
      %c0_180 = arith.constant 0 : index
      %275 = tpu.strided_load %arg11[%274, %c48_179, %c0_180] {strides = array<i32: 1, 2, 1>} : memref<8x576x128xf32, #tpu.memory_space<vmem>>, vector<1x12x128xf32>
      %276 = vector.shape_cast %275 : vector<1x12x128xf32> to vector<12x128xf32>
      %277 = arith.index_cast %193 : i32 to index
      %c49_181 = arith.constant 49 : index
      %c0_182 = arith.constant 0 : index
      %278 = tpu.strided_load %arg11[%277, %c49_181, %c0_182] {strides = array<i32: 1, 2, 1>} : memref<8x576x128xf32, #tpu.memory_space<vmem>>, vector<1x12x128xf32>
      %279 = vector.shape_cast %278 : vector<1x12x128xf32> to vector<12x128xf32>
      %280 = arith.maximumf %276, %279 : vector<12x128xf32>
      %281 = arith.index_cast %193 : i32 to index
      %c72 = arith.constant 72 : index
      %c0_183 = arith.constant 0 : index
      %282 = tpu.strided_load %arg11[%281, %c72, %c0_183] {strides = array<i32: 1, 2, 1>} : memref<8x576x128xf32, #tpu.memory_space<vmem>>, vector<1x12x128xf32>
      %283 = vector.shape_cast %282 : vector<1x12x128xf32> to vector<12x128xf32>
      %284 = arith.index_cast %193 : i32 to index
      %c73 = arith.constant 73 : index
      %c0_184 = arith.constant 0 : index
      %285 = tpu.strided_load %arg11[%284, %c73, %c0_184] {strides = array<i32: 1, 2, 1>} : memref<8x576x128xf32, #tpu.memory_space<vmem>>, vector<1x12x128xf32>
      %286 = vector.shape_cast %285 : vector<1x12x128xf32> to vector<12x128xf32>
      %287 = arith.maximumf %283, %286 : vector<12x128xf32>
      %288 = arith.maximumf %280, %287 : vector<12x128xf32>
      %289 = vector.extract_strided_slice %288 {offsets = [0, 0], sizes = [8, 32], strides = [1, 1]} : vector<12x128xf32> to vector<8x32xf32>
      %290 = arith.index_cast %193 : i32 to index
      %c8_185 = arith.constant 8 : index
      %c0_186 = arith.constant 0 : index
      %291 = vector.load %arg12[%290, %c8_185, %c0_186] : memref<8x96x160xf32, #tpu.memory_space<vmem>>, vector<1x8x32xf32>
      %292 = vector.shape_cast %291 : vector<1x8x32xf32> to vector<8x32xf32>
      %293 = vector.shape_cast %289 : vector<8x32xf32> to vector<1x8x32xf32>
      tpu.vector_store %arg12[%290, %c8_185, %c0_186], %293 {strides = array<i32>} : memref<8x96x160xf32, #tpu.memory_space<vmem>>, vector<1x8x32xf32>,
      %294 = vector.extract_strided_slice %288 {offsets = [1, 0], sizes = [8, 32], strides = [1, 1]} : vector<12x128xf32> to vector<8x32xf32>
      %295 = arith.index_cast %193 : i32 to index
      %c8_187 = arith.constant 8 : index
      %c32_188 = arith.constant 32 : index
      %296 = vector.load %arg12[%295, %c8_187, %c32_188] : memref<8x96x160xf32, #tpu.memory_space<vmem>>, vector<1x8x32xf32>
      %297 = vector.shape_cast %296 : vector<1x8x32xf32> to vector<8x32xf32>
      %298 = vector.shape_cast %294 : vector<8x32xf32> to vector<1x8x32xf32>
      tpu.vector_store %arg12[%295, %c8_187, %c32_188], %298 {strides = array<i32>} : memref<8x96x160xf32, #tpu.memory_space<vmem>>, vector<1x8x32xf32>,
      %299 = vector.extract_strided_slice %288 {offsets = [2, 0], sizes = [8, 32], strides = [1, 1]} : vector<12x128xf32> to vector<8x32xf32>
      %300 = arith.index_cast %193 : i32 to index
      %c8_189 = arith.constant 8 : index
      %c64_190 = arith.constant 64 : index
      %301 = vector.load %arg12[%300, %c8_189, %c64_190] : memref<8x96x160xf32, #tpu.memory_space<vmem>>, vector<1x8x32xf32>
      %302 = vector.shape_cast %301 : vector<1x8x32xf32> to vector<8x32xf32>
      %303 = vector.shape_cast %299 : vector<8x32xf32> to vector<1x8x32xf32>
      tpu.vector_store %arg12[%300, %c8_189, %c64_190], %303 {strides = array<i32>} : memref<8x96x160xf32, #tpu.memory_space<vmem>>, vector<1x8x32xf32>,
      %304 = vector.extract_strided_slice %288 {offsets = [3, 0], sizes = [8, 32], strides = [1, 1]} : vector<12x128xf32> to vector<8x32xf32>
      %305 = arith.index_cast %193 : i32 to index
      %c8_191 = arith.constant 8 : index
      %c96_192 = arith.constant 96 : index
      %306 = vector.load %arg12[%305, %c8_191, %c96_192] : memref<8x96x160xf32, #tpu.memory_space<vmem>>, vector<1x8x32xf32>
      %307 = vector.shape_cast %306 : vector<1x8x32xf32> to vector<8x32xf32>
      %308 = vector.shape_cast %304 : vector<8x32xf32> to vector<1x8x32xf32>
      tpu.vector_store %arg12[%305, %c8_191, %c96_192], %308 {strides = array<i32>} : memref<8x96x160xf32, #tpu.memory_space<vmem>>, vector<1x8x32xf32>,
      %309 = vector.extract_strided_slice %288 {offsets = [4, 0], sizes = [8, 32], strides = [1, 1]} : vector<12x128xf32> to vector<8x32xf32>
      %310 = arith.index_cast %193 : i32 to index
      %c8_193 = arith.constant 8 : index
      %c128_194 = arith.constant 128 : index
      %311 = vector.load %arg12[%310, %c8_193, %c128_194] : memref<8x96x160xf32, #tpu.memory_space<vmem>>, vector<1x8x32xf32>
      %312 = vector.shape_cast %311 : vector<1x8x32xf32> to vector<8x32xf32>
      %313 = vector.shape_cast %309 : vector<8x32xf32> to vector<1x8x32xf32>
      tpu.vector_store %arg12[%310, %c8_193, %c128_194], %313 {strides = array<i32>} : memref<8x96x160xf32, #tpu.memory_space<vmem>>, vector<1x8x32xf32>,
      %314 = arith.index_cast %193 : i32 to index
      %c96_195 = arith.constant 96 : index
      %c0_196 = arith.constant 0 : index
      %315 = tpu.strided_load %arg11[%314, %c96_195, %c0_196] {strides = array<i32: 1, 2, 1>} : memref<8x576x128xf32, #tpu.memory_space<vmem>>, vector<1x12x128xf32>
      %316 = vector.shape_cast %315 : vector<1x12x128xf32> to vector<12x128xf32>
      %317 = arith.index_cast %193 : i32 to index
      %c97 = arith.constant 97 : index
      %c0_197 = arith.constant 0 : index
      %318 = tpu.strided_load %arg11[%317, %c97, %c0_197] {strides = array<i32: 1, 2, 1>} : memref<8x576x128xf32, #tpu.memory_space<vmem>>, vector<1x12x128xf32>
      %319 = vector.shape_cast %318 : vector<1x12x128xf32> to vector<12x128xf32>
      %320 = arith.maximumf %316, %319 : vector<12x128xf32>
      %321 = arith.index_cast %193 : i32 to index
      %c120 = arith.constant 120 : index
      %c0_198 = arith.constant 0 : index
      %322 = tpu.strided_load %arg11[%321, %c120, %c0_198] {strides = array<i32: 1, 2, 1>} : memref<8x576x128xf32, #tpu.memory_space<vmem>>, vector<1x12x128xf32>
      %323 = vector.shape_cast %322 : vector<1x12x128xf32> to vector<12x128xf32>
      %324 = arith.index_cast %193 : i32 to index
      %c121 = arith.constant 121 : index
      %c0_199 = arith.constant 0 : index
      %325 = tpu.strided_load %arg11[%324, %c121, %c0_199] {strides = array<i32: 1, 2, 1>} : memref<8x576x128xf32, #tpu.memory_space<vmem>>, vector<1x12x128xf32>
      %326 = vector.shape_cast %325 : vector<1x12x128xf32> to vector<12x128xf32>
      %327 = arith.maximumf %323, %326 : vector<12x128xf32>
      %328 = arith.maximumf %320, %327 : vector<12x128xf32>
      %329 = vector.extract_strided_slice %328 {offsets = [0, 0], sizes = [8, 32], strides = [1, 1]} : vector<12x128xf32> to vector<8x32xf32>
      %330 = arith.index_cast %193 : i32 to index
      %c16_200 = arith.constant 16 : index
      %c0_201 = arith.constant 0 : index
      %331 = vector.load %arg12[%330, %c16_200, %c0_201] : memref<8x96x160xf32, #tpu.memory_space<vmem>>, vector<1x8x32xf32>
      %332 = vector.shape_cast %331 : vector<1x8x32xf32> to vector<8x32xf32>
      %333 = vector.shape_cast %329 : vector<8x32xf32> to vector<1x8x32xf32>
      tpu.vector_store %arg12[%330, %c16_200, %c0_201], %333 {strides = array<i32>} : memref<8x96x160xf32, #tpu.memory_space<vmem>>, vector<1x8x32xf32>,
      %334 = vector.extract_strided_slice %328 {offsets = [1, 0], sizes = [8, 32], strides = [1, 1]} : vector<12x128xf32> to vector<8x32xf32>
      %335 = arith.index_cast %193 : i32 to index
      %c16_202 = arith.constant 16 : index
      %c32_203 = arith.constant 32 : index
      %336 = vector.load %arg12[%335, %c16_202, %c32_203] : memref<8x96x160xf32, #tpu.memory_space<vmem>>, vector<1x8x32xf32>
      %337 = vector.shape_cast %336 : vector<1x8x32xf32> to vector<8x32xf32>
      %338 = vector.shape_cast %334 : vector<8x32xf32> to vector<1x8x32xf32>
      tpu.vector_store %arg12[%335, %c16_202, %c32_203], %338 {strides = array<i32>} : memref<8x96x160xf32, #tpu.memory_space<vmem>>, vector<1x8x32xf32>,
      %339 = vector.extract_strided_slice %328 {offsets = [2, 0], sizes = [8, 32], strides = [1, 1]} : vector<12x128xf32> to vector<8x32xf32>
      %340 = arith.index_cast %193 : i32 to index
      %c16_204 = arith.constant 16 : index
      %c64_205 = arith.constant 64 : index
      %341 = vector.load %arg12[%340, %c16_204, %c64_205] : memref<8x96x160xf32, #tpu.memory_space<vmem>>, vector<1x8x32xf32>
      %342 = vector.shape_cast %341 : vector<1x8x32xf32> to vector<8x32xf32>
      %343 = vector.shape_cast %339 : vector<8x32xf32> to vector<1x8x32xf32>
      tpu.vector_store %arg12[%340, %c16_204, %c64_205], %343 {strides = array<i32>} : memref<8x96x160xf32, #tpu.memory_space<vmem>>, vector<1x8x32xf32>,
      %344 = vector.extract_strided_slice %328 {offsets = [3, 0], sizes = [8, 32], strides = [1, 1]} : vector<12x128xf32> to vector<8x32xf32>
      %345 = arith.index_cast %193 : i32 to index
      %c16_206 = arith.constant 16 : index
      %c96_207 = arith.constant 96 : index
      %346 = vector.load %arg12[%345, %c16_206, %c96_207] : memref<8x96x160xf32, #tpu.memory_space<vmem>>, vector<1x8x32xf32>
      %347 = vector.shape_cast %346 : vector<1x8x32xf32> to vector<8x32xf32>
      %348 = vector.shape_cast %344 : vector<8x32xf32> to vector<1x8x32xf32>
      tpu.vector_store %arg12[%345, %c16_206, %c96_207], %348 {strides = array<i32>} : memref<8x96x160xf32, #tpu.memory_space<vmem>>, vector<1x8x32xf32>,
      %349 = vector.extract_strided_slice %328 {offsets = [4, 0], sizes = [8, 32], strides = [1, 1]} : vector<12x128xf32> to vector<8x32xf32>
      %350 = arith.index_cast %193 : i32 to index
      %c16_208 = arith.constant 16 : index
      %c128_209 = arith.constant 128 : index
      %351 = vector.load %arg12[%350, %c16_208, %c128_209] : memref<8x96x160xf32, #tpu.memory_space<vmem>>, vector<1x8x32xf32>
      %352 = vector.shape_cast %351 : vector<1x8x32xf32> to vector<8x32xf32>
      %353 = vector.shape_cast %349 : vector<8x32xf32> to vector<1x8x32xf32>
      tpu.vector_store %arg12[%350, %c16_208, %c128_209], %353 {strides = array<i32>} : memref<8x96x160xf32, #tpu.memory_space<vmem>>, vector<1x8x32xf32>,
      %354 = arith.index_cast %193 : i32 to index
      %c144_210 = arith.constant 144 : index
      %c0_211 = arith.constant 0 : index
      %355 = tpu.strided_load %arg11[%354, %c144_210, %c0_211] {strides = array<i32: 1, 2, 1>} : memref<8x576x128xf32, #tpu.memory_space<vmem>>, vector<1x12x128xf32>
      %356 = vector.shape_cast %355 : vector<1x12x128xf32> to vector<12x128xf32>
      %357 = arith.index_cast %193 : i32 to index
      %c145 = arith.constant 145 : index
      %c0_212 = arith.constant 0 : index
      %358 = tpu.strided_load %arg11[%357, %c145, %c0_212] {strides = array<i32: 1, 2, 1>} : memref<8x576x128xf32, #tpu.memory_space<vmem>>, vector<1x12x128xf32>
      %359 = vector.shape_cast %358 : vector<1x12x128xf32> to vector<12x128xf32>
      %360 = arith.maximumf %356, %359 : vector<12x128xf32>
      %361 = arith.index_cast %193 : i32 to index
      %c168 = arith.constant 168 : index
      %c0_213 = arith.constant 0 : index
      %362 = tpu.strided_load %arg11[%361, %c168, %c0_213] {strides = array<i32: 1, 2, 1>} : memref<8x576x128xf32, #tpu.memory_space<vmem>>, vector<1x12x128xf32>
      %363 = vector.shape_cast %362 : vector<1x12x128xf32> to vector<12x128xf32>
      %364 = arith.index_cast %193 : i32 to index
      %c169 = arith.constant 169 : index
      %c0_214 = arith.constant 0 : index
      %365 = tpu.strided_load %arg11[%364, %c169, %c0_214] {strides = array<i32: 1, 2, 1>} : memref<8x576x128xf32, #tpu.memory_space<vmem>>, vector<1x12x128xf32>
      %366 = vector.shape_cast %365 : vector<1x12x128xf32> to vector<12x128xf32>
      %367 = arith.maximumf %363, %366 : vector<12x128xf32>
      %368 = arith.maximumf %360, %367 : vector<12x128xf32>
      %369 = vector.extract_strided_slice %368 {offsets = [0, 0], sizes = [8, 32], strides = [1, 1]} : vector<12x128xf32> to vector<8x32xf32>
      %370 = arith.index_cast %193 : i32 to index
      %c24_215 = arith.constant 24 : index
      %c0_216 = arith.constant 0 : index
      %371 = vector.load %arg12[%370, %c24_215, %c0_216] : memref<8x96x160xf32, #tpu.memory_space<vmem>>, vector<1x8x32xf32>
      %372 = vector.shape_cast %371 : vector<1x8x32xf32> to vector<8x32xf32>
      %373 = vector.shape_cast %369 : vector<8x32xf32> to vector<1x8x32xf32>
      tpu.vector_store %arg12[%370, %c24_215, %c0_216], %373 {strides = array<i32>} : memref<8x96x160xf32, #tpu.memory_space<vmem>>, vector<1x8x32xf32>,
      %374 = vector.extract_strided_slice %368 {offsets = [1, 0], sizes = [8, 32], strides = [1, 1]} : vector<12x128xf32> to vector<8x32xf32>
      %375 = arith.index_cast %193 : i32 to index
      %c24_217 = arith.constant 24 : index
      %c32_218 = arith.constant 32 : index
      %376 = vector.load %arg12[%375, %c24_217, %c32_218] : memref<8x96x160xf32, #tpu.memory_space<vmem>>, vector<1x8x32xf32>
      %377 = vector.shape_cast %376 : vector<1x8x32xf32> to vector<8x32xf32>
      %378 = vector.shape_cast %374 : vector<8x32xf32> to vector<1x8x32xf32>
      tpu.vector_store %arg12[%375, %c24_217, %c32_218], %378 {strides = array<i32>} : memref<8x96x160xf32, #tpu.memory_space<vmem>>, vector<1x8x32xf32>,
      %379 = vector.extract_strided_slice %368 {offsets = [2, 0], sizes = [8, 32], strides = [1, 1]} : vector<12x128xf32> to vector<8x32xf32>
      %380 = arith.index_cast %193 : i32 to index
      %c24_219 = arith.constant 24 : index
      %c64_220 = arith.constant 64 : index
      %381 = vector.load %arg12[%380, %c24_219, %c64_220] : memref<8x96x160xf32, #tpu.memory_space<vmem>>, vector<1x8x32xf32>
      %382 = vector.shape_cast %381 : vector<1x8x32xf32> to vector<8x32xf32>
      %383 = vector.shape_cast %379 : vector<8x32xf32> to vector<1x8x32xf32>
      tpu.vector_store %arg12[%380, %c24_219, %c64_220], %383 {strides = array<i32>} : memref<8x96x160xf32, #tpu.memory_space<vmem>>, vector<1x8x32xf32>,
      %384 = vector.extract_strided_slice %368 {offsets = [3, 0], sizes = [8, 32], strides = [1, 1]} : vector<12x128xf32> to vector<8x32xf32>
      %385 = arith.index_cast %193 : i32 to index
      %c24_221 = arith.constant 24 : index
      %c96_222 = arith.constant 96 : index
      %386 = vector.load %arg12[%385, %c24_221, %c96_222] : memref<8x96x160xf32, #tpu.memory_space<vmem>>, vector<1x8x32xf32>
      %387 = vector.shape_cast %386 : vector<1x8x32xf32> to vector<8x32xf32>
      %388 = vector.shape_cast %384 : vector<8x32xf32> to vector<1x8x32xf32>
      tpu.vector_store %arg12[%385, %c24_221, %c96_222], %388 {strides = array<i32>} : memref<8x96x160xf32, #tpu.memory_space<vmem>>, vector<1x8x32xf32>,
      %389 = vector.extract_strided_slice %368 {offsets = [4, 0], sizes = [8, 32], strides = [1, 1]} : vector<12x128xf32> to vector<8x32xf32>
      %390 = arith.index_cast %193 : i32 to index
      %c24_223 = arith.constant 24 : index
      %c128_224 = arith.constant 128 : index
      %391 = vector.load %arg12[%390, %c24_223, %c128_224] : memref<8x96x160xf32, #tpu.memory_space<vmem>>, vector<1x8x32xf32>
      %392 = vector.shape_cast %391 : vector<1x8x32xf32> to vector<8x32xf32>
      %393 = vector.shape_cast %389 : vector<8x32xf32> to vector<1x8x32xf32>
      tpu.vector_store %arg12[%390, %c24_223, %c128_224], %393 {strides = array<i32>} : memref<8x96x160xf32, #tpu.memory_space<vmem>>, vector<1x8x32xf32>,
      %394 = arith.index_cast %193 : i32 to index
      %c192 = arith.constant 192 : index
      %c0_225 = arith.constant 0 : index
      %395 = tpu.strided_load %arg11[%394, %c192, %c0_225] {strides = array<i32: 1, 2, 1>} : memref<8x576x128xf32, #tpu.memory_space<vmem>>, vector<1x12x128xf32>
      %396 = vector.shape_cast %395 : vector<1x12x128xf32> to vector<12x128xf32>
      %397 = arith.index_cast %193 : i32 to index
      %c193 = arith.constant 193 : index
      %c0_226 = arith.constant 0 : index
      %398 = tpu.strided_load %arg11[%397, %c193, %c0_226] {strides = array<i32: 1, 2, 1>} : memref<8x576x128xf32, #tpu.memory_space<vmem>>, vector<1x12x128xf32>
      %399 = vector.shape_cast %398 : vector<1x12x128xf32> to vector<12x128xf32>
      %400 = arith.maximumf %396, %399 : vector<12x128xf32>
      %401 = arith.index_cast %193 : i32 to index
      %c216 = arith.constant 216 : index
      %c0_227 = arith.constant 0 : index
      %402 = tpu.strided_load %arg11[%401, %c216, %c0_227] {strides = array<i32: 1, 2, 1>} : memref<8x576x128xf32, #tpu.memory_space<vmem>>, vector<1x12x128xf32>
      %403 = vector.shape_cast %402 : vector<1x12x128xf32> to vector<12x128xf32>
      %404 = arith.index_cast %193 : i32 to index
      %c217 = arith.constant 217 : index
      %c0_228 = arith.constant 0 : index
      %405 = tpu.strided_load %arg11[%404, %c217, %c0_228] {strides = array<i32: 1, 2, 1>} : memref<8x576x128xf32, #tpu.memory_space<vmem>>, vector<1x12x128xf32>
      %406 = vector.shape_cast %405 : vector<1x12x128xf32> to vector<12x128xf32>
      %407 = arith.maximumf %403, %406 : vector<12x128xf32>
      %408 = arith.maximumf %400, %407 : vector<12x128xf32>
      %409 = vector.extract_strided_slice %408 {offsets = [0, 0], sizes = [8, 32], strides = [1, 1]} : vector<12x128xf32> to vector<8x32xf32>
      %410 = arith.index_cast %193 : i32 to index
      %c32_229 = arith.constant 32 : index
      %c0_230 = arith.constant 0 : index
      %411 = vector.load %arg12[%410, %c32_229, %c0_230] : memref<8x96x160xf32, #tpu.memory_space<vmem>>, vector<1x8x32xf32>
      %412 = vector.shape_cast %411 : vector<1x8x32xf32> to vector<8x32xf32>
      %413 = vector.shape_cast %409 : vector<8x32xf32> to vector<1x8x32xf32>
      tpu.vector_store %arg12[%410, %c32_229, %c0_230], %413 {strides = array<i32>} : memref<8x96x160xf32, #tpu.memory_space<vmem>>, vector<1x8x32xf32>,
      %414 = vector.extract_strided_slice %408 {offsets = [1, 0], sizes = [8, 32], strides = [1, 1]} : vector<12x128xf32> to vector<8x32xf32>
      %415 = arith.index_cast %193 : i32 to index
      %c32_231 = arith.constant 32 : index
      %c32_232 = arith.constant 32 : index
      %416 = vector.load %arg12[%415, %c32_231, %c32_232] : memref<8x96x160xf32, #tpu.memory_space<vmem>>, vector<1x8x32xf32>
      %417 = vector.shape_cast %416 : vector<1x8x32xf32> to vector<8x32xf32>
      %418 = vector.shape_cast %414 : vector<8x32xf32> to vector<1x8x32xf32>
      tpu.vector_store %arg12[%415, %c32_231, %c32_232], %418 {strides = array<i32>} : memref<8x96x160xf32, #tpu.memory_space<vmem>>, vector<1x8x32xf32>,
      %419 = vector.extract_strided_slice %408 {offsets = [2, 0], sizes = [8, 32], strides = [1, 1]} : vector<12x128xf32> to vector<8x32xf32>
      %420 = arith.index_cast %193 : i32 to index
      %c32_233 = arith.constant 32 : index
      %c64_234 = arith.constant 64 : index
      %421 = vector.load %arg12[%420, %c32_233, %c64_234] : memref<8x96x160xf32, #tpu.memory_space<vmem>>, vector<1x8x32xf32>
      %422 = vector.shape_cast %421 : vector<1x8x32xf32> to vector<8x32xf32>
      %423 = vector.shape_cast %419 : vector<8x32xf32> to vector<1x8x32xf32>
      tpu.vector_store %arg12[%420, %c32_233, %c64_234], %423 {strides = array<i32>} : memref<8x96x160xf32, #tpu.memory_space<vmem>>, vector<1x8x32xf32>,
      %424 = vector.extract_strided_slice %408 {offsets = [3, 0], sizes = [8, 32], strides = [1, 1]} : vector<12x128xf32> to vector<8x32xf32>
      %425 = arith.index_cast %193 : i32 to index
      %c32_235 = arith.constant 32 : index
      %c96_236 = arith.constant 96 : index
      %426 = vector.load %arg12[%425, %c32_235, %c96_236] : memref<8x96x160xf32, #tpu.memory_space<vmem>>, vector<1x8x32xf32>
      %427 = vector.shape_cast %426 : vector<1x8x32xf32> to vector<8x32xf32>
      %428 = vector.shape_cast %424 : vector<8x32xf32> to vector<1x8x32xf32>
      tpu.vector_store %arg12[%425, %c32_235, %c96_236], %428 {strides = array<i32>} : memref<8x96x160xf32, #tpu.memory_space<vmem>>, vector<1x8x32xf32>,
      %429 = vector.extract_strided_slice %408 {offsets = [4, 0], sizes = [8, 32], strides = [1, 1]} : vector<12x128xf32> to vector<8x32xf32>
      %430 = arith.index_cast %193 : i32 to index
      %c32_237 = arith.constant 32 : index
      %c128_238 = arith.constant 128 : index
      %431 = vector.load %arg12[%430, %c32_237, %c128_238] : memref<8x96x160xf32, #tpu.memory_space<vmem>>, vector<1x8x32xf32>
      %432 = vector.shape_cast %431 : vector<1x8x32xf32> to vector<8x32xf32>
      %433 = vector.shape_cast %429 : vector<8x32xf32> to vector<1x8x32xf32>
      tpu.vector_store %arg12[%430, %c32_237, %c128_238], %433 {strides = array<i32>} : memref<8x96x160xf32, #tpu.memory_space<vmem>>, vector<1x8x32xf32>,
      %434 = arith.index_cast %193 : i32 to index
      %c240 = arith.constant 240 : index
      %c0_239 = arith.constant 0 : index
      %435 = tpu.strided_load %arg11[%434, %c240, %c0_239] {strides = array<i32: 1, 2, 1>} : memref<8x576x128xf32, #tpu.memory_space<vmem>>, vector<1x12x128xf32>
      %436 = vector.shape_cast %435 : vector<1x12x128xf32> to vector<12x128xf32>
      %437 = arith.index_cast %193 : i32 to index
      %c241 = arith.constant 241 : index
      %c0_240 = arith.constant 0 : index
      %438 = tpu.strided_load %arg11[%437, %c241, %c0_240] {strides = array<i32: 1, 2, 1>} : memref<8x576x128xf32, #tpu.memory_space<vmem>>, vector<1x12x128xf32>
      %439 = vector.shape_cast %438 : vector<1x12x128xf32> to vector<12x128xf32>
      %440 = arith.maximumf %436, %439 : vector<12x128xf32>
      %441 = arith.index_cast %193 : i32 to index
      %c264 = arith.constant 264 : index
      %c0_241 = arith.constant 0 : index
      %442 = tpu.strided_load %arg11[%441, %c264, %c0_241] {strides = array<i32: 1, 2, 1>} : memref<8x576x128xf32, #tpu.memory_space<vmem>>, vector<1x12x128xf32>
      %443 = vector.shape_cast %442 : vector<1x12x128xf32> to vector<12x128xf32>
      %444 = arith.index_cast %193 : i32 to index
      %c265 = arith.constant 265 : index
      %c0_242 = arith.constant 0 : index
      %445 = tpu.strided_load %arg11[%444, %c265, %c0_242] {strides = array<i32: 1, 2, 1>} : memref<8x576x128xf32, #tpu.memory_space<vmem>>, vector<1x12x128xf32>
      %446 = vector.shape_cast %445 : vector<1x12x128xf32> to vector<12x128xf32>
      %447 = arith.maximumf %443, %446 : vector<12x128xf32>
      %448 = arith.maximumf %440, %447 : vector<12x128xf32>
      %449 = vector.extract_strided_slice %448 {offsets = [0, 0], sizes = [8, 32], strides = [1, 1]} : vector<12x128xf32> to vector<8x32xf32>
      %450 = arith.index_cast %193 : i32 to index
      %c40_243 = arith.constant 40 : index
      %c0_244 = arith.constant 0 : index
      %451 = vector.load %arg12[%450, %c40_243, %c0_244] : memref<8x96x160xf32, #tpu.memory_space<vmem>>, vector<1x8x32xf32>
      %452 = vector.shape_cast %451 : vector<1x8x32xf32> to vector<8x32xf32>
      %453 = vector.shape_cast %449 : vector<8x32xf32> to vector<1x8x32xf32>
      tpu.vector_store %arg12[%450, %c40_243, %c0_244], %453 {strides = array<i32>} : memref<8x96x160xf32, #tpu.memory_space<vmem>>, vector<1x8x32xf32>,
      %454 = vector.extract_strided_slice %448 {offsets = [1, 0], sizes = [8, 32], strides = [1, 1]} : vector<12x128xf32> to vector<8x32xf32>
      %455 = arith.index_cast %193 : i32 to index
      %c40_245 = arith.constant 40 : index
      %c32_246 = arith.constant 32 : index
      %456 = vector.load %arg12[%455, %c40_245, %c32_246] : memref<8x96x160xf32, #tpu.memory_space<vmem>>, vector<1x8x32xf32>
      %457 = vector.shape_cast %456 : vector<1x8x32xf32> to vector<8x32xf32>
      %458 = vector.shape_cast %454 : vector<8x32xf32> to vector<1x8x32xf32>
      tpu.vector_store %arg12[%455, %c40_245, %c32_246], %458 {strides = array<i32>} : memref<8x96x160xf32, #tpu.memory_space<vmem>>, vector<1x8x32xf32>,
      %459 = vector.extract_strided_slice %448 {offsets = [2, 0], sizes = [8, 32], strides = [1, 1]} : vector<12x128xf32> to vector<8x32xf32>
      %460 = arith.index_cast %193 : i32 to index
      %c40_247 = arith.constant 40 : index
      %c64_248 = arith.constant 64 : index
      %461 = vector.load %arg12[%460, %c40_247, %c64_248] : memref<8x96x160xf32, #tpu.memory_space<vmem>>, vector<1x8x32xf32>
      %462 = vector.shape_cast %461 : vector<1x8x32xf32> to vector<8x32xf32>
      %463 = vector.shape_cast %459 : vector<8x32xf32> to vector<1x8x32xf32>
      tpu.vector_store %arg12[%460, %c40_247, %c64_248], %463 {strides = array<i32>} : memref<8x96x160xf32, #tpu.memory_space<vmem>>, vector<1x8x32xf32>,
      %464 = vector.extract_strided_slice %448 {offsets = [3, 0], sizes = [8, 32], strides = [1, 1]} : vector<12x128xf32> to vector<8x32xf32>
      %465 = arith.index_cast %193 : i32 to index
      %c40_249 = arith.constant 40 : index
      %c96_250 = arith.constant 96 : index
      %466 = vector.load %arg12[%465, %c40_249, %c96_250] : memref<8x96x160xf32, #tpu.memory_space<vmem>>, vector<1x8x32xf32>
      %467 = vector.shape_cast %466 : vector<1x8x32xf32> to vector<8x32xf32>
      %468 = vector.shape_cast %464 : vector<8x32xf32> to vector<1x8x32xf32>
      tpu.vector_store %arg12[%465, %c40_249, %c96_250], %468 {strides = array<i32>} : memref<8x96x160xf32, #tpu.memory_space<vmem>>, vector<1x8x32xf32>,
      %469 = vector.extract_strided_slice %448 {offsets = [4, 0], sizes = [8, 32], strides = [1, 1]} : vector<12x128xf32> to vector<8x32xf32>
      %470 = arith.index_cast %193 : i32 to index
      %c40_251 = arith.constant 40 : index
      %c128_252 = arith.constant 128 : index
      %471 = vector.load %arg12[%470, %c40_251, %c128_252] : memref<8x96x160xf32, #tpu.memory_space<vmem>>, vector<1x8x32xf32>
      %472 = vector.shape_cast %471 : vector<1x8x32xf32> to vector<8x32xf32>
      %473 = vector.shape_cast %469 : vector<8x32xf32> to vector<1x8x32xf32>
      tpu.vector_store %arg12[%470, %c40_251, %c128_252], %473 {strides = array<i32>} : memref<8x96x160xf32, #tpu.memory_space<vmem>>, vector<1x8x32xf32>,
      %474 = arith.index_cast %193 : i32 to index
      %c288_253 = arith.constant 288 : index
      %c0_254 = arith.constant 0 : index
      %475 = tpu.strided_load %arg11[%474, %c288_253, %c0_254] {strides = array<i32: 1, 2, 1>} : memref<8x576x128xf32, #tpu.memory_space<vmem>>, vector<1x12x128xf32>
      %476 = vector.shape_cast %475 : vector<1x12x128xf32> to vector<12x128xf32>
      %477 = arith.index_cast %193 : i32 to index
      %c289 = arith.constant 289 : index
      %c0_255 = arith.constant 0 : index
      %478 = tpu.strided_load %arg11[%477, %c289, %c0_255] {strides = array<i32: 1, 2, 1>} : memref<8x576x128xf32, #tpu.memory_space<vmem>>, vector<1x12x128xf32>
      %479 = vector.shape_cast %478 : vector<1x12x128xf32> to vector<12x128xf32>
      %480 = arith.maximumf %476, %479 : vector<12x128xf32>
      %481 = arith.index_cast %193 : i32 to index
      %c312 = arith.constant 312 : index
      %c0_256 = arith.constant 0 : index
      %482 = tpu.strided_load %arg11[%481, %c312, %c0_256] {strides = array<i32: 1, 2, 1>} : memref<8x576x128xf32, #tpu.memory_space<vmem>>, vector<1x12x128xf32>
      %483 = vector.shape_cast %482 : vector<1x12x128xf32> to vector<12x128xf32>
      %484 = arith.index_cast %193 : i32 to index
      %c313 = arith.constant 313 : index
      %c0_257 = arith.constant 0 : index
      %485 = tpu.strided_load %arg11[%484, %c313, %c0_257] {strides = array<i32: 1, 2, 1>} : memref<8x576x128xf32, #tpu.memory_space<vmem>>, vector<1x12x128xf32>
      %486 = vector.shape_cast %485 : vector<1x12x128xf32> to vector<12x128xf32>
      %487 = arith.maximumf %483, %486 : vector<12x128xf32>
      %488 = arith.maximumf %480, %487 : vector<12x128xf32>
      %489 = vector.extract_strided_slice %488 {offsets = [0, 0], sizes = [8, 32], strides = [1, 1]} : vector<12x128xf32> to vector<8x32xf32>
      %490 = arith.index_cast %193 : i32 to index
      %c48_258 = arith.constant 48 : index
      %c0_259 = arith.constant 0 : index
      %491 = vector.load %arg12[%490, %c48_258, %c0_259] : memref<8x96x160xf32, #tpu.memory_space<vmem>>, vector<1x8x32xf32>
      %492 = vector.shape_cast %491 : vector<1x8x32xf32> to vector<8x32xf32>
      %493 = vector.shape_cast %489 : vector<8x32xf32> to vector<1x8x32xf32>
      tpu.vector_store %arg12[%490, %c48_258, %c0_259], %493 {strides = array<i32>} : memref<8x96x160xf32, #tpu.memory_space<vmem>>, vector<1x8x32xf32>,
      %494 = vector.extract_strided_slice %488 {offsets = [1, 0], sizes = [8, 32], strides = [1, 1]} : vector<12x128xf32> to vector<8x32xf32>
      %495 = arith.index_cast %193 : i32 to index
      %c48_260 = arith.constant 48 : index
      %c32_261 = arith.constant 32 : index
      %496 = vector.load %arg12[%495, %c48_260, %c32_261] : memref<8x96x160xf32, #tpu.memory_space<vmem>>, vector<1x8x32xf32>
      %497 = vector.shape_cast %496 : vector<1x8x32xf32> to vector<8x32xf32>
      %498 = vector.shape_cast %494 : vector<8x32xf32> to vector<1x8x32xf32>
      tpu.vector_store %arg12[%495, %c48_260, %c32_261], %498 {strides = array<i32>} : memref<8x96x160xf32, #tpu.memory_space<vmem>>, vector<1x8x32xf32>,
      %499 = vector.extract_strided_slice %488 {offsets = [2, 0], sizes = [8, 32], strides = [1, 1]} : vector<12x128xf32> to vector<8x32xf32>
      %500 = arith.index_cast %193 : i32 to index
      %c48_262 = arith.constant 48 : index
      %c64_263 = arith.constant 64 : index
      %501 = vector.load %arg12[%500, %c48_262, %c64_263] : memref<8x96x160xf32, #tpu.memory_space<vmem>>, vector<1x8x32xf32>
      %502 = vector.shape_cast %501 : vector<1x8x32xf32> to vector<8x32xf32>
      %503 = vector.shape_cast %499 : vector<8x32xf32> to vector<1x8x32xf32>
      tpu.vector_store %arg12[%500, %c48_262, %c64_263], %503 {strides = array<i32>} : memref<8x96x160xf32, #tpu.memory_space<vmem>>, vector<1x8x32xf32>,
      %504 = vector.extract_strided_slice %488 {offsets = [3, 0], sizes = [8, 32], strides = [1, 1]} : vector<12x128xf32> to vector<8x32xf32>
      %505 = arith.index_cast %193 : i32 to index
      %c48_264 = arith.constant 48 : index
      %c96_265 = arith.constant 96 : index
      %506 = vector.load %arg12[%505, %c48_264, %c96_265] : memref<8x96x160xf32, #tpu.memory_space<vmem>>, vector<1x8x32xf32>
      %507 = vector.shape_cast %506 : vector<1x8x32xf32> to vector<8x32xf32>
      %508 = vector.shape_cast %504 : vector<8x32xf32> to vector<1x8x32xf32>
      tpu.vector_store %arg12[%505, %c48_264, %c96_265], %508 {strides = array<i32>} : memref<8x96x160xf32, #tpu.memory_space<vmem>>, vector<1x8x32xf32>,
      %509 = vector.extract_strided_slice %488 {offsets = [4, 0], sizes = [8, 32], strides = [1, 1]} : vector<12x128xf32> to vector<8x32xf32>
      %510 = arith.index_cast %193 : i32 to index
      %c48_266 = arith.constant 48 : index
      %c128_267 = arith.constant 128 : index
      %511 = vector.load %arg12[%510, %c48_266, %c128_267] : memref<8x96x160xf32, #tpu.memory_space<vmem>>, vector<1x8x32xf32>
      %512 = vector.shape_cast %511 : vector<1x8x32xf32> to vector<8x32xf32>
      %513 = vector.shape_cast %509 : vector<8x32xf32> to vector<1x8x32xf32>
      tpu.vector_store %arg12[%510, %c48_266, %c128_267], %513 {strides = array<i32>} : memref<8x96x160xf32, #tpu.memory_space<vmem>>, vector<1x8x32xf32>,
      %514 = arith.index_cast %193 : i32 to index
      %c336 = arith.constant 336 : index
      %c0_268 = arith.constant 0 : index
      %515 = tpu.strided_load %arg11[%514, %c336, %c0_268] {strides = array<i32: 1, 2, 1>} : memref<8x576x128xf32, #tpu.memory_space<vmem>>, vector<1x12x128xf32>
      %516 = vector.shape_cast %515 : vector<1x12x128xf32> to vector<12x128xf32>
      %517 = arith.index_cast %193 : i32 to index
      %c337 = arith.constant 337 : index
      %c0_269 = arith.constant 0 : index
      %518 = tpu.strided_load %arg11[%517, %c337, %c0_269] {strides = array<i32: 1, 2, 1>} : memref<8x576x128xf32, #tpu.memory_space<vmem>>, vector<1x12x128xf32>
      %519 = vector.shape_cast %518 : vector<1x12x128xf32> to vector<12x128xf32>
      %520 = arith.maximumf %516, %519 : vector<12x128xf32>
      %521 = arith.index_cast %193 : i32 to index
      %c360 = arith.constant 360 : index
      %c0_270 = arith.constant 0 : index
      %522 = tpu.strided_load %arg11[%521, %c360, %c0_270] {strides = array<i32: 1, 2, 1>} : memref<8x576x128xf32, #tpu.memory_space<vmem>>, vector<1x12x128xf32>
      %523 = vector.shape_cast %522 : vector<1x12x128xf32> to vector<12x128xf32>
      %524 = arith.index_cast %193 : i32 to index
      %c361 = arith.constant 361 : index
      %c0_271 = arith.constant 0 : index
      %525 = tpu.strided_load %arg11[%524, %c361, %c0_271] {strides = array<i32: 1, 2, 1>} : memref<8x576x128xf32, #tpu.memory_space<vmem>>, vector<1x12x128xf32>
      %526 = vector.shape_cast %525 : vector<1x12x128xf32> to vector<12x128xf32>
      %527 = arith.maximumf %523, %526 : vector<12x128xf32>
      %528 = arith.maximumf %520, %527 : vector<12x128xf32>
      %529 = vector.extract_strided_slice %528 {offsets = [0, 0], sizes = [8, 32], strides = [1, 1]} : vector<12x128xf32> to vector<8x32xf32>
      %530 = arith.index_cast %193 : i32 to index
      %c56_272 = arith.constant 56 : index
      %c0_273 = arith.constant 0 : index
      %531 = vector.load %arg12[%530, %c56_272, %c0_273] : memref<8x96x160xf32, #tpu.memory_space<vmem>>, vector<1x8x32xf32>
      %532 = vector.shape_cast %531 : vector<1x8x32xf32> to vector<8x32xf32>
      %533 = vector.shape_cast %529 : vector<8x32xf32> to vector<1x8x32xf32>
      tpu.vector_store %arg12[%530, %c56_272, %c0_273], %533 {strides = array<i32>} : memref<8x96x160xf32, #tpu.memory_space<vmem>>, vector<1x8x32xf32>,
      %534 = vector.extract_strided_slice %528 {offsets = [1, 0], sizes = [8, 32], strides = [1, 1]} : vector<12x128xf32> to vector<8x32xf32>
      %535 = arith.index_cast %193 : i32 to index
      %c56_274 = arith.constant 56 : index
      %c32_275 = arith.constant 32 : index
      %536 = vector.load %arg12[%535, %c56_274, %c32_275] : memref<8x96x160xf32, #tpu.memory_space<vmem>>, vector<1x8x32xf32>
      %537 = vector.shape_cast %536 : vector<1x8x32xf32> to vector<8x32xf32>
      %538 = vector.shape_cast %534 : vector<8x32xf32> to vector<1x8x32xf32>
      tpu.vector_store %arg12[%535, %c56_274, %c32_275], %538 {strides = array<i32>} : memref<8x96x160xf32, #tpu.memory_space<vmem>>, vector<1x8x32xf32>,
      %539 = vector.extract_strided_slice %528 {offsets = [2, 0], sizes = [8, 32], strides = [1, 1]} : vector<12x128xf32> to vector<8x32xf32>
      %540 = arith.index_cast %193 : i32 to index
      %c56_276 = arith.constant 56 : index
      %c64_277 = arith.constant 64 : index
      %541 = vector.load %arg12[%540, %c56_276, %c64_277] : memref<8x96x160xf32, #tpu.memory_space<vmem>>, vector<1x8x32xf32>
      %542 = vector.shape_cast %541 : vector<1x8x32xf32> to vector<8x32xf32>
      %543 = vector.shape_cast %539 : vector<8x32xf32> to vector<1x8x32xf32>
      tpu.vector_store %arg12[%540, %c56_276, %c64_277], %543 {strides = array<i32>} : memref<8x96x160xf32, #tpu.memory_space<vmem>>, vector<1x8x32xf32>,
      %544 = vector.extract_strided_slice %528 {offsets = [3, 0], sizes = [8, 32], strides = [1, 1]} : vector<12x128xf32> to vector<8x32xf32>
      %545 = arith.index_cast %193 : i32 to index
      %c56_278 = arith.constant 56 : index
      %c96_279 = arith.constant 96 : index
      %546 = vector.load %arg12[%545, %c56_278, %c96_279] : memref<8x96x160xf32, #tpu.memory_space<vmem>>, vector<1x8x32xf32>
      %547 = vector.shape_cast %546 : vector<1x8x32xf32> to vector<8x32xf32>
      %548 = vector.shape_cast %544 : vector<8x32xf32> to vector<1x8x32xf32>
      tpu.vector_store %arg12[%545, %c56_278, %c96_279], %548 {strides = array<i32>} : memref<8x96x160xf32, #tpu.memory_space<vmem>>, vector<1x8x32xf32>,
      %549 = vector.extract_strided_slice %528 {offsets = [4, 0], sizes = [8, 32], strides = [1, 1]} : vector<12x128xf32> to vector<8x32xf32>
      %550 = arith.index_cast %193 : i32 to index
      %c56_280 = arith.constant 56 : index
      %c128_281 = arith.constant 128 : index
      %551 = vector.load %arg12[%550, %c56_280, %c128_281] : memref<8x96x160xf32, #tpu.memory_space<vmem>>, vector<1x8x32xf32>
      %552 = vector.shape_cast %551 : vector<1x8x32xf32> to vector<8x32xf32>
      %553 = vector.shape_cast %549 : vector<8x32xf32> to vector<1x8x32xf32>
      tpu.vector_store %arg12[%550, %c56_280, %c128_281], %553 {strides = array<i32>} : memref<8x96x160xf32, #tpu.memory_space<vmem>>, vector<1x8x32xf32>,
      %554 = arith.index_cast %193 : i32 to index
      %c384 = arith.constant 384 : index
      %c0_282 = arith.constant 0 : index
      %555 = tpu.strided_load %arg11[%554, %c384, %c0_282] {strides = array<i32: 1, 2, 1>} : memref<8x576x128xf32, #tpu.memory_space<vmem>>, vector<1x12x128xf32>
      %556 = vector.shape_cast %555 : vector<1x12x128xf32> to vector<12x128xf32>
      %557 = arith.index_cast %193 : i32 to index
      %c385 = arith.constant 385 : index
      %c0_283 = arith.constant 0 : index
      %558 = tpu.strided_load %arg11[%557, %c385, %c0_283] {strides = array<i32: 1, 2, 1>} : memref<8x576x128xf32, #tpu.memory_space<vmem>>, vector<1x12x128xf32>
      %559 = vector.shape_cast %558 : vector<1x12x128xf32> to vector<12x128xf32>
      %560 = arith.maximumf %556, %559 : vector<12x128xf32>
      %561 = arith.index_cast %193 : i32 to index
      %c408 = arith.constant 408 : index
      %c0_284 = arith.constant 0 : index
      %562 = tpu.strided_load %arg11[%561, %c408, %c0_284] {strides = array<i32: 1, 2, 1>} : memref<8x576x128xf32, #tpu.memory_space<vmem>>, vector<1x12x128xf32>
      %563 = vector.shape_cast %562 : vector<1x12x128xf32> to vector<12x128xf32>
      %564 = arith.index_cast %193 : i32 to index
      %c409 = arith.constant 409 : index
      %c0_285 = arith.constant 0 : index
      %565 = tpu.strided_load %arg11[%564, %c409, %c0_285] {strides = array<i32: 1, 2, 1>} : memref<8x576x128xf32, #tpu.memory_space<vmem>>, vector<1x12x128xf32>
      %566 = vector.shape_cast %565 : vector<1x12x128xf32> to vector<12x128xf32>
      %567 = arith.maximumf %563, %566 : vector<12x128xf32>
      %568 = arith.maximumf %560, %567 : vector<12x128xf32>
      %569 = vector.extract_strided_slice %568 {offsets = [0, 0], sizes = [8, 32], strides = [1, 1]} : vector<12x128xf32> to vector<8x32xf32>
      %570 = arith.index_cast %193 : i32 to index
      %c64_286 = arith.constant 64 : index
      %c0_287 = arith.constant 0 : index
      %571 = vector.load %arg12[%570, %c64_286, %c0_287] : memref<8x96x160xf32, #tpu.memory_space<vmem>>, vector<1x8x32xf32>
      %572 = vector.shape_cast %571 : vector<1x8x32xf32> to vector<8x32xf32>
      %573 = vector.shape_cast %569 : vector<8x32xf32> to vector<1x8x32xf32>
      tpu.vector_store %arg12[%570, %c64_286, %c0_287], %573 {strides = array<i32>} : memref<8x96x160xf32, #tpu.memory_space<vmem>>, vector<1x8x32xf32>,
      %574 = vector.extract_strided_slice %568 {offsets = [1, 0], sizes = [8, 32], strides = [1, 1]} : vector<12x128xf32> to vector<8x32xf32>
      %575 = arith.index_cast %193 : i32 to index
      %c64_288 = arith.constant 64 : index
      %c32_289 = arith.constant 32 : index
      %576 = vector.load %arg12[%575, %c64_288, %c32_289] : memref<8x96x160xf32, #tpu.memory_space<vmem>>, vector<1x8x32xf32>
      %577 = vector.shape_cast %576 : vector<1x8x32xf32> to vector<8x32xf32>
      %578 = vector.shape_cast %574 : vector<8x32xf32> to vector<1x8x32xf32>
      tpu.vector_store %arg12[%575, %c64_288, %c32_289], %578 {strides = array<i32>} : memref<8x96x160xf32, #tpu.memory_space<vmem>>, vector<1x8x32xf32>,
      %579 = vector.extract_strided_slice %568 {offsets = [2, 0], sizes = [8, 32], strides = [1, 1]} : vector<12x128xf32> to vector<8x32xf32>
      %580 = arith.index_cast %193 : i32 to index
      %c64_290 = arith.constant 64 : index
      %c64_291 = arith.constant 64 : index
      %581 = vector.load %arg12[%580, %c64_290, %c64_291] : memref<8x96x160xf32, #tpu.memory_space<vmem>>, vector<1x8x32xf32>
      %582 = vector.shape_cast %581 : vector<1x8x32xf32> to vector<8x32xf32>
      %583 = vector.shape_cast %579 : vector<8x32xf32> to vector<1x8x32xf32>
      tpu.vector_store %arg12[%580, %c64_290, %c64_291], %583 {strides = array<i32>} : memref<8x96x160xf32, #tpu.memory_space<vmem>>, vector<1x8x32xf32>,
      %584 = vector.extract_strided_slice %568 {offsets = [3, 0], sizes = [8, 32], strides = [1, 1]} : vector<12x128xf32> to vector<8x32xf32>
      %585 = arith.index_cast %193 : i32 to index
      %c64_292 = arith.constant 64 : index
      %c96_293 = arith.constant 96 : index
      %586 = vector.load %arg12[%585, %c64_292, %c96_293] : memref<8x96x160xf32, #tpu.memory_space<vmem>>, vector<1x8x32xf32>
      %587 = vector.shape_cast %586 : vector<1x8x32xf32> to vector<8x32xf32>
      %588 = vector.shape_cast %584 : vector<8x32xf32> to vector<1x8x32xf32>
      tpu.vector_store %arg12[%585, %c64_292, %c96_293], %588 {strides = array<i32>} : memref<8x96x160xf32, #tpu.memory_space<vmem>>, vector<1x8x32xf32>,
      %589 = vector.extract_strided_slice %568 {offsets = [4, 0], sizes = [8, 32], strides = [1, 1]} : vector<12x128xf32> to vector<8x32xf32>
      %590 = arith.index_cast %193 : i32 to index
      %c64_294 = arith.constant 64 : index
      %c128_295 = arith.constant 128 : index
      %591 = vector.load %arg12[%590, %c64_294, %c128_295] : memref<8x96x160xf32, #tpu.memory_space<vmem>>, vector<1x8x32xf32>
      %592 = vector.shape_cast %591 : vector<1x8x32xf32> to vector<8x32xf32>
      %593 = vector.shape_cast %589 : vector<8x32xf32> to vector<1x8x32xf32>
      tpu.vector_store %arg12[%590, %c64_294, %c128_295], %593 {strides = array<i32>} : memref<8x96x160xf32, #tpu.memory_space<vmem>>, vector<1x8x32xf32>,
      %594 = arith.index_cast %193 : i32 to index
      %c432_296 = arith.constant 432 : index
      %c0_297 = arith.constant 0 : index
      %595 = tpu.strided_load %arg11[%594, %c432_296, %c0_297] {strides = array<i32: 1, 2, 1>} : memref<8x576x128xf32, #tpu.memory_space<vmem>>, vector<1x12x128xf32>
      %596 = vector.shape_cast %595 : vector<1x12x128xf32> to vector<12x128xf32>
      %597 = arith.index_cast %193 : i32 to index
      %c433 = arith.constant 433 : index
      %c0_298 = arith.constant 0 : index
      %598 = tpu.strided_load %arg11[%597, %c433, %c0_298] {strides = array<i32: 1, 2, 1>} : memref<8x576x128xf32, #tpu.memory_space<vmem>>, vector<1x12x128xf32>
      %599 = vector.shape_cast %598 : vector<1x12x128xf32> to vector<12x128xf32>
      %600 = arith.maximumf %596, %599 : vector<12x128xf32>
      %601 = arith.index_cast %193 : i32 to index
      %c456 = arith.constant 456 : index
      %c0_299 = arith.constant 0 : index
      %602 = tpu.strided_load %arg11[%601, %c456, %c0_299] {strides = array<i32: 1, 2, 1>} : memref<8x576x128xf32, #tpu.memory_space<vmem>>, vector<1x12x128xf32>
      %603 = vector.shape_cast %602 : vector<1x12x128xf32> to vector<12x128xf32>
      %604 = arith.index_cast %193 : i32 to index
      %c457 = arith.constant 457 : index
      %c0_300 = arith.constant 0 : index
      %605 = tpu.strided_load %arg11[%604, %c457, %c0_300] {strides = array<i32: 1, 2, 1>} : memref<8x576x128xf32, #tpu.memory_space<vmem>>, vector<1x12x128xf32>
      %606 = vector.shape_cast %605 : vector<1x12x128xf32> to vector<12x128xf32>
      %607 = arith.maximumf %603, %606 : vector<12x128xf32>
      %608 = arith.maximumf %600, %607 : vector<12x128xf32>
      %609 = vector.extract_strided_slice %608 {offsets = [0, 0], sizes = [8, 32], strides = [1, 1]} : vector<12x128xf32> to vector<8x32xf32>
      %610 = arith.index_cast %193 : i32 to index
      %c72_301 = arith.constant 72 : index
      %c0_302 = arith.constant 0 : index
      %611 = vector.load %arg12[%610, %c72_301, %c0_302] : memref<8x96x160xf32, #tpu.memory_space<vmem>>, vector<1x8x32xf32>
      %612 = vector.shape_cast %611 : vector<1x8x32xf32> to vector<8x32xf32>
      %613 = vector.shape_cast %609 : vector<8x32xf32> to vector<1x8x32xf32>
      tpu.vector_store %arg12[%610, %c72_301, %c0_302], %613 {strides = array<i32>} : memref<8x96x160xf32, #tpu.memory_space<vmem>>, vector<1x8x32xf32>,
      %614 = vector.extract_strided_slice %608 {offsets = [1, 0], sizes = [8, 32], strides = [1, 1]} : vector<12x128xf32> to vector<8x32xf32>
      %615 = arith.index_cast %193 : i32 to index
      %c72_303 = arith.constant 72 : index
      %c32_304 = arith.constant 32 : index
      %616 = vector.load %arg12[%615, %c72_303, %c32_304] : memref<8x96x160xf32, #tpu.memory_space<vmem>>, vector<1x8x32xf32>
      %617 = vector.shape_cast %616 : vector<1x8x32xf32> to vector<8x32xf32>
      %618 = vector.shape_cast %614 : vector<8x32xf32> to vector<1x8x32xf32>
      tpu.vector_store %arg12[%615, %c72_303, %c32_304], %618 {strides = array<i32>} : memref<8x96x160xf32, #tpu.memory_space<vmem>>, vector<1x8x32xf32>,
      %619 = vector.extract_strided_slice %608 {offsets = [2, 0], sizes = [8, 32], strides = [1, 1]} : vector<12x128xf32> to vector<8x32xf32>
      %620 = arith.index_cast %193 : i32 to index
      %c72_305 = arith.constant 72 : index
      %c64_306 = arith.constant 64 : index
      %621 = vector.load %arg12[%620, %c72_305, %c64_306] : memref<8x96x160xf32, #tpu.memory_space<vmem>>, vector<1x8x32xf32>
      %622 = vector.shape_cast %621 : vector<1x8x32xf32> to vector<8x32xf32>
      %623 = vector.shape_cast %619 : vector<8x32xf32> to vector<1x8x32xf32>
      tpu.vector_store %arg12[%620, %c72_305, %c64_306], %623 {strides = array<i32>} : memref<8x96x160xf32, #tpu.memory_space<vmem>>, vector<1x8x32xf32>,
      %624 = vector.extract_strided_slice %608 {offsets = [3, 0], sizes = [8, 32], strides = [1, 1]} : vector<12x128xf32> to vector<8x32xf32>
      %625 = arith.index_cast %193 : i32 to index
      %c72_307 = arith.constant 72 : index
      %c96_308 = arith.constant 96 : index
      %626 = vector.load %arg12[%625, %c72_307, %c96_308] : memref<8x96x160xf32, #tpu.memory_space<vmem>>, vector<1x8x32xf32>
      %627 = vector.shape_cast %626 : vector<1x8x32xf32> to vector<8x32xf32>
      %628 = vector.shape_cast %624 : vector<8x32xf32> to vector<1x8x32xf32>
      tpu.vector_store %arg12[%625, %c72_307, %c96_308], %628 {strides = array<i32>} : memref<8x96x160xf32, #tpu.memory_space<vmem>>, vector<1x8x32xf32>,
      %629 = vector.extract_strided_slice %608 {offsets = [4, 0], sizes = [8, 32], strides = [1, 1]} : vector<12x128xf32> to vector<8x32xf32>
      %630 = arith.index_cast %193 : i32 to index
      %c72_309 = arith.constant 72 : index
      %c128_310 = arith.constant 128 : index
      %631 = vector.load %arg12[%630, %c72_309, %c128_310] : memref<8x96x160xf32, #tpu.memory_space<vmem>>, vector<1x8x32xf32>
      %632 = vector.shape_cast %631 : vector<1x8x32xf32> to vector<8x32xf32>
      %633 = vector.shape_cast %629 : vector<8x32xf32> to vector<1x8x32xf32>
      tpu.vector_store %arg12[%630, %c72_309, %c128_310], %633 {strides = array<i32>} : memref<8x96x160xf32, #tpu.memory_space<vmem>>, vector<1x8x32xf32>,
      %634 = arith.index_cast %193 : i32 to index
      %c480 = arith.constant 480 : index
      %c0_311 = arith.constant 0 : index
      %635 = tpu.strided_load %arg11[%634, %c480, %c0_311] {strides = array<i32: 1, 2, 1>} : memref<8x576x128xf32, #tpu.memory_space<vmem>>, vector<1x12x128xf32>
      %636 = vector.shape_cast %635 : vector<1x12x128xf32> to vector<12x128xf32>
      %637 = arith.index_cast %193 : i32 to index
      %c481 = arith.constant 481 : index
      %c0_312 = arith.constant 0 : index
      %638 = tpu.strided_load %arg11[%637, %c481, %c0_312] {strides = array<i32: 1, 2, 1>} : memref<8x576x128xf32, #tpu.memory_space<vmem>>, vector<1x12x128xf32>
      %639 = vector.shape_cast %638 : vector<1x12x128xf32> to vector<12x128xf32>
      %640 = arith.maximumf %636, %639 : vector<12x128xf32>
      %641 = arith.index_cast %193 : i32 to index
      %c504 = arith.constant 504 : index
      %c0_313 = arith.constant 0 : index
      %642 = tpu.strided_load %arg11[%641, %c504, %c0_313] {strides = array<i32: 1, 2, 1>} : memref<8x576x128xf32, #tpu.memory_space<vmem>>, vector<1x12x128xf32>
      %643 = vector.shape_cast %642 : vector<1x12x128xf32> to vector<12x128xf32>
      %644 = arith.index_cast %193 : i32 to index
      %c505 = arith.constant 505 : index
      %c0_314 = arith.constant 0 : index
      %645 = tpu.strided_load %arg11[%644, %c505, %c0_314] {strides = array<i32: 1, 2, 1>} : memref<8x576x128xf32, #tpu.memory_space<vmem>>, vector<1x12x128xf32>
      %646 = vector.shape_cast %645 : vector<1x12x128xf32> to vector<12x128xf32>
      %647 = arith.maximumf %643, %646 : vector<12x128xf32>
      %648 = arith.maximumf %640, %647 : vector<12x128xf32>
      %649 = vector.extract_strided_slice %648 {offsets = [0, 0], sizes = [8, 32], strides = [1, 1]} : vector<12x128xf32> to vector<8x32xf32>
      %650 = arith.index_cast %193 : i32 to index
      %c80 = arith.constant 80 : index
      %c0_315 = arith.constant 0 : index
      %651 = vector.load %arg12[%650, %c80, %c0_315] : memref<8x96x160xf32, #tpu.memory_space<vmem>>, vector<1x8x32xf32>
      %652 = vector.shape_cast %651 : vector<1x8x32xf32> to vector<8x32xf32>
      %653 = vector.shape_cast %649 : vector<8x32xf32> to vector<1x8x32xf32>
      tpu.vector_store %arg12[%650, %c80, %c0_315], %653 {strides = array<i32>} : memref<8x96x160xf32, #tpu.memory_space<vmem>>, vector<1x8x32xf32>,
      %654 = vector.extract_strided_slice %648 {offsets = [1, 0], sizes = [8, 32], strides = [1, 1]} : vector<12x128xf32> to vector<8x32xf32>
      %655 = arith.index_cast %193 : i32 to index
      %c80_316 = arith.constant 80 : index
      %c32_317 = arith.constant 32 : index
      %656 = vector.load %arg12[%655, %c80_316, %c32_317] : memref<8x96x160xf32, #tpu.memory_space<vmem>>, vector<1x8x32xf32>
      %657 = vector.shape_cast %656 : vector<1x8x32xf32> to vector<8x32xf32>
      %658 = vector.shape_cast %654 : vector<8x32xf32> to vector<1x8x32xf32>
      tpu.vector_store %arg12[%655, %c80_316, %c32_317], %658 {strides = array<i32>} : memref<8x96x160xf32, #tpu.memory_space<vmem>>, vector<1x8x32xf32>,
      %659 = vector.extract_strided_slice %648 {offsets = [2, 0], sizes = [8, 32], strides = [1, 1]} : vector<12x128xf32> to vector<8x32xf32>
      %660 = arith.index_cast %193 : i32 to index
      %c80_318 = arith.constant 80 : index
      %c64_319 = arith.constant 64 : index
      %661 = vector.load %arg12[%660, %c80_318, %c64_319] : memref<8x96x160xf32, #tpu.memory_space<vmem>>, vector<1x8x32xf32>
      %662 = vector.shape_cast %661 : vector<1x8x32xf32> to vector<8x32xf32>
      %663 = vector.shape_cast %659 : vector<8x32xf32> to vector<1x8x32xf32>
      tpu.vector_store %arg12[%660, %c80_318, %c64_319], %663 {strides = array<i32>} : memref<8x96x160xf32, #tpu.memory_space<vmem>>, vector<1x8x32xf32>,
      %664 = vector.extract_strided_slice %648 {offsets = [3, 0], sizes = [8, 32], strides = [1, 1]} : vector<12x128xf32> to vector<8x32xf32>
      %665 = arith.index_cast %193 : i32 to index
      %c80_320 = arith.constant 80 : index
      %c96_321 = arith.constant 96 : index
      %666 = vector.load %arg12[%665, %c80_320, %c96_321] : memref<8x96x160xf32, #tpu.memory_space<vmem>>, vector<1x8x32xf32>
      %667 = vector.shape_cast %666 : vector<1x8x32xf32> to vector<8x32xf32>
      %668 = vector.shape_cast %664 : vector<8x32xf32> to vector<1x8x32xf32>
      tpu.vector_store %arg12[%665, %c80_320, %c96_321], %668 {strides = array<i32>} : memref<8x96x160xf32, #tpu.memory_space<vmem>>, vector<1x8x32xf32>,
      %669 = vector.extract_strided_slice %648 {offsets = [4, 0], sizes = [8, 32], strides = [1, 1]} : vector<12x128xf32> to vector<8x32xf32>
      %670 = arith.index_cast %193 : i32 to index
      %c80_322 = arith.constant 80 : index
      %c128_323 = arith.constant 128 : index
      %671 = vector.load %arg12[%670, %c80_322, %c128_323] : memref<8x96x160xf32, #tpu.memory_space<vmem>>, vector<1x8x32xf32>
      %672 = vector.shape_cast %671 : vector<1x8x32xf32> to vector<8x32xf32>
      %673 = vector.shape_cast %669 : vector<8x32xf32> to vector<1x8x32xf32>
      tpu.vector_store %arg12[%670, %c80_322, %c128_323], %673 {strides = array<i32>} : memref<8x96x160xf32, #tpu.memory_space<vmem>>, vector<1x8x32xf32>,
      %674 = arith.index_cast %193 : i32 to index
      %c528 = arith.constant 528 : index
      %c0_324 = arith.constant 0 : index
      %675 = tpu.strided_load %arg11[%674, %c528, %c0_324] {strides = array<i32: 1, 2, 1>} : memref<8x576x128xf32, #tpu.memory_space<vmem>>, vector<1x12x128xf32>
      %676 = vector.shape_cast %675 : vector<1x12x128xf32> to vector<12x128xf32>
      %677 = arith.index_cast %193 : i32 to index
      %c529 = arith.constant 529 : index
      %c0_325 = arith.constant 0 : index
      %678 = tpu.strided_load %arg11[%677, %c529, %c0_325] {strides = array<i32: 1, 2, 1>} : memref<8x576x128xf32, #tpu.memory_space<vmem>>, vector<1x12x128xf32>
      %679 = vector.shape_cast %678 : vector<1x12x128xf32> to vector<12x128xf32>
      %680 = arith.maximumf %676, %679 : vector<12x128xf32>
      %681 = arith.index_cast %193 : i32 to index
      %c552 = arith.constant 552 : index
      %c0_326 = arith.constant 0 : index
      %682 = tpu.strided_load %arg11[%681, %c552, %c0_326] {strides = array<i32: 1, 2, 1>} : memref<8x576x128xf32, #tpu.memory_space<vmem>>, vector<1x12x128xf32>
      %683 = vector.shape_cast %682 : vector<1x12x128xf32> to vector<12x128xf32>
      %684 = arith.index_cast %193 : i32 to index
      %c553 = arith.constant 553 : index
      %c0_327 = arith.constant 0 : index
      %685 = tpu.strided_load %arg11[%684, %c553, %c0_327] {strides = array<i32: 1, 2, 1>} : memref<8x576x128xf32, #tpu.memory_space<vmem>>, vector<1x12x128xf32>
      %686 = vector.shape_cast %685 : vector<1x12x128xf32> to vector<12x128xf32>
      %687 = arith.maximumf %683, %686 : vector<12x128xf32>
      %688 = arith.maximumf %680, %687 : vector<12x128xf32>
      %689 = vector.extract_strided_slice %688 {offsets = [0, 0], sizes = [8, 32], strides = [1, 1]} : vector<12x128xf32> to vector<8x32xf32>
      %690 = arith.index_cast %193 : i32 to index
      %c88 = arith.constant 88 : index
      %c0_328 = arith.constant 0 : index
      %691 = vector.load %arg12[%690, %c88, %c0_328] : memref<8x96x160xf32, #tpu.memory_space<vmem>>, vector<1x8x32xf32>
      %692 = vector.shape_cast %691 : vector<1x8x32xf32> to vector<8x32xf32>
      %693 = vector.shape_cast %689 : vector<8x32xf32> to vector<1x8x32xf32>
      tpu.vector_store %arg12[%690, %c88, %c0_328], %693 {strides = array<i32>} : memref<8x96x160xf32, #tpu.memory_space<vmem>>, vector<1x8x32xf32>,
      %694 = vector.extract_strided_slice %688 {offsets = [1, 0], sizes = [8, 32], strides = [1, 1]} : vector<12x128xf32> to vector<8x32xf32>
      %695 = arith.index_cast %193 : i32 to index
      %c88_329 = arith.constant 88 : index
      %c32_330 = arith.constant 32 : index
      %696 = vector.load %arg12[%695, %c88_329, %c32_330] : memref<8x96x160xf32, #tpu.memory_space<vmem>>, vector<1x8x32xf32>
      %697 = vector.shape_cast %696 : vector<1x8x32xf32> to vector<8x32xf32>
      %698 = vector.shape_cast %694 : vector<8x32xf32> to vector<1x8x32xf32>
      tpu.vector_store %arg12[%695, %c88_329, %c32_330], %698 {strides = array<i32>} : memref<8x96x160xf32, #tpu.memory_space<vmem>>, vector<1x8x32xf32>,
      %699 = vector.extract_strided_slice %688 {offsets = [2, 0], sizes = [8, 32], strides = [1, 1]} : vector<12x128xf32> to vector<8x32xf32>
      %700 = arith.index_cast %193 : i32 to index
      %c88_331 = arith.constant 88 : index
      %c64_332 = arith.constant 64 : index
      %701 = vector.load %arg12[%700, %c88_331, %c64_332] : memref<8x96x160xf32, #tpu.memory_space<vmem>>, vector<1x8x32xf32>
      %702 = vector.shape_cast %701 : vector<1x8x32xf32> to vector<8x32xf32>
      %703 = vector.shape_cast %699 : vector<8x32xf32> to vector<1x8x32xf32>
      tpu.vector_store %arg12[%700, %c88_331, %c64_332], %703 {strides = array<i32>} : memref<8x96x160xf32, #tpu.memory_space<vmem>>, vector<1x8x32xf32>,
      %704 = vector.extract_strided_slice %688 {offsets = [3, 0], sizes = [8, 32], strides = [1, 1]} : vector<12x128xf32> to vector<8x32xf32>
      %705 = arith.index_cast %193 : i32 to index
      %c88_333 = arith.constant 88 : index
      %c96_334 = arith.constant 96 : index
      %706 = vector.load %arg12[%705, %c88_333, %c96_334] : memref<8x96x160xf32, #tpu.memory_space<vmem>>, vector<1x8x32xf32>
      %707 = vector.shape_cast %706 : vector<1x8x32xf32> to vector<8x32xf32>
      %708 = vector.shape_cast %704 : vector<8x32xf32> to vector<1x8x32xf32>
      tpu.vector_store %arg12[%705, %c88_333, %c96_334], %708 {strides = array<i32>} : memref<8x96x160xf32, #tpu.memory_space<vmem>>, vector<1x8x32xf32>,
      %709 = vector.extract_strided_slice %688 {offsets = [4, 0], sizes = [8, 32], strides = [1, 1]} : vector<12x128xf32> to vector<8x32xf32>
      %710 = arith.index_cast %193 : i32 to index
      %c88_335 = arith.constant 88 : index
      %c128_336 = arith.constant 128 : index
      %711 = vector.load %arg12[%710, %c88_335, %c128_336] : memref<8x96x160xf32, #tpu.memory_space<vmem>>, vector<1x8x32xf32>
      %712 = vector.shape_cast %711 : vector<1x8x32xf32> to vector<8x32xf32>
      %713 = vector.shape_cast %709 : vector<8x32xf32> to vector<1x8x32xf32>
      tpu.vector_store %arg12[%710, %c88_335, %c128_336], %713 {strides = array<i32>} : memref<8x96x160xf32, #tpu.memory_space<vmem>>, vector<1x8x32xf32>,
      %714 = arith.index_cast %193 : i32 to index
      %c0_337 = arith.constant 0 : index
      %c0_338 = arith.constant 0 : index
      %715 = vector.load %arg12[%714, %c0_337, %c0_338] : memref<8x96x160xf32, #tpu.memory_space<vmem>>, vector<1x64x160xf32>
      %716 = vector.shape_cast %715 : vector<1x64x160xf32> to vector<64x160xf32>
      %c0_339 = arith.constant 0 : index
      %c0_340 = arith.constant 0 : index
      %c0_341 = arith.constant 0 : index
      %717 = vector.load %arg4[%c0_339, %c0_340, %c0_341] : memref<5x160x128xf32, #tpu.memory_space<vmem>>, vector<1x160x128xf32>
      %718 = vector.shape_cast %717 : vector<1x160x128xf32> to vector<160x128xf32>
      %cst_342 = arith.constant dense<0.000000e+00> : vector<64x128xf32>
      %719 = tpu.matmul %716, %718, %cst_342 {dimension_numbers = #tpu.dot_dimension_numbers<[1], [0], [0], [1], [0, 0, 1, 1], [], []>} : vector<64x160xf32>, vector<160x128xf32>, vector<64x128xf32> -> vector<64x128xf32>
      %720 = arith.index_cast %193 : i32 to index
      %c8_343 = arith.constant 8 : index
      %c0_344 = arith.constant 0 : index
      %721 = vector.load %arg12[%720, %c8_343, %c0_344] : memref<8x96x160xf32, #tpu.memory_space<vmem>>, vector<1x64x160xf32>
      %722 = vector.shape_cast %721 : vector<1x64x160xf32> to vector<64x160xf32>
      %c1_345 = arith.constant 1 : index
      %c0_346 = arith.constant 0 : index
      %c0_347 = arith.constant 0 : index
      %723 = vector.load %arg4[%c1_345, %c0_346, %c0_347] : memref<5x160x128xf32, #tpu.memory_space<vmem>>, vector<1x160x128xf32>
      %724 = vector.shape_cast %723 : vector<1x160x128xf32> to vector<160x128xf32>
      %cst_348 = arith.constant dense<0.000000e+00> : vector<64x128xf32>
      %725 = tpu.matmul %722, %724, %cst_348 {dimension_numbers = #tpu.dot_dimension_numbers<[1], [0], [0], [1], [0, 0, 1, 1], [], []>} : vector<64x160xf32>, vector<160x128xf32>, vector<64x128xf32> -> vector<64x128xf32>
      %726 = arith.addf %719, %725 : vector<64x128xf32>
      %727 = arith.index_cast %193 : i32 to index
      %c16_349 = arith.constant 16 : index
      %c0_350 = arith.constant 0 : index
      %728 = vector.load %arg12[%727, %c16_349, %c0_350] : memref<8x96x160xf32, #tpu.memory_space<vmem>>, vector<1x64x160xf32>
      %729 = vector.shape_cast %728 : vector<1x64x160xf32> to vector<64x160xf32>
      %c2_351 = arith.constant 2 : index
      %c0_352 = arith.constant 0 : index
      %c0_353 = arith.constant 0 : index
      %730 = vector.load %arg4[%c2_351, %c0_352, %c0_353] : memref<5x160x128xf32, #tpu.memory_space<vmem>>, vector<1x160x128xf32>
      %731 = vector.shape_cast %730 : vector<1x160x128xf32> to vector<160x128xf32>
      %cst_354 = arith.constant dense<0.000000e+00> : vector<64x128xf32>
      %732 = tpu.matmul %729, %731, %cst_354 {dimension_numbers = #tpu.dot_dimension_numbers<[1], [0], [0], [1], [0, 0, 1, 1], [], []>} : vector<64x160xf32>, vector<160x128xf32>, vector<64x128xf32> -> vector<64x128xf32>
      %733 = arith.addf %726, %732 : vector<64x128xf32>
      %734 = arith.index_cast %193 : i32 to index
      %c24_355 = arith.constant 24 : index
      %c0_356 = arith.constant 0 : index
      %735 = vector.load %arg12[%734, %c24_355, %c0_356] : memref<8x96x160xf32, #tpu.memory_space<vmem>>, vector<1x64x160xf32>
      %736 = vector.shape_cast %735 : vector<1x64x160xf32> to vector<64x160xf32>
      %c3_357 = arith.constant 3 : index
      %c0_358 = arith.constant 0 : index
      %c0_359 = arith.constant 0 : index
      %737 = vector.load %arg4[%c3_357, %c0_358, %c0_359] : memref<5x160x128xf32, #tpu.memory_space<vmem>>, vector<1x160x128xf32>
      %738 = vector.shape_cast %737 : vector<1x160x128xf32> to vector<160x128xf32>
      %cst_360 = arith.constant dense<0.000000e+00> : vector<64x128xf32>
      %739 = tpu.matmul %736, %738, %cst_360 {dimension_numbers = #tpu.dot_dimension_numbers<[1], [0], [0], [1], [0, 0, 1, 1], [], []>} : vector<64x160xf32>, vector<160x128xf32>, vector<64x128xf32> -> vector<64x128xf32>
      %740 = arith.addf %733, %739 : vector<64x128xf32>
      %741 = arith.index_cast %193 : i32 to index
      %c32_361 = arith.constant 32 : index
      %c0_362 = arith.constant 0 : index
      %742 = vector.load %arg12[%741, %c32_361, %c0_362] : memref<8x96x160xf32, #tpu.memory_space<vmem>>, vector<1x64x160xf32>
      %743 = vector.shape_cast %742 : vector<1x64x160xf32> to vector<64x160xf32>
      %c4_363 = arith.constant 4 : index
      %c0_364 = arith.constant 0 : index
      %c0_365 = arith.constant 0 : index
      %744 = vector.load %arg4[%c4_363, %c0_364, %c0_365] : memref<5x160x128xf32, #tpu.memory_space<vmem>>, vector<1x160x128xf32>
      %745 = vector.shape_cast %744 : vector<1x160x128xf32> to vector<160x128xf32>
      %cst_366 = arith.constant dense<0.000000e+00> : vector<64x128xf32>
      %746 = tpu.matmul %743, %745, %cst_366 {dimension_numbers = #tpu.dot_dimension_numbers<[1], [0], [0], [1], [0, 0, 1, 1], [], []>} : vector<64x160xf32>, vector<160x128xf32>, vector<64x128xf32> -> vector<64x128xf32>
      %747 = arith.addf %740, %746 : vector<64x128xf32>
      %c64_i32 = arith.constant 64 : i32
      %748 = arith.muli %193, %c64_i32 : i32
      %749 = tpu.assume_multiple %748, 64 : i32
      %750 = vector.broadcast %2 : vector<1x128xf32> to vector<64x128xf32>
      %751 = arith.addf %747, %750 : vector<64x128xf32>
      %752 = arith.index_cast %749 : i32 to index
      %c0_367 = arith.constant 0 : index
      %753 = vector.load %arg13[%752, %c0_367] : memref<512x128xf32, #tpu.memory_space<vmem>>, vector<64x128xf32>
      tpu.vector_store %arg13[%752, %c0_367], %751 {strides = array<i32>} : memref<512x128xf32, #tpu.memory_space<vmem>>, vector<64x128xf32>,
    }
    %c8_i32_5 = arith.constant 8 : i32
    %cst = arith.constant 0.000000e+00 : f32
    %4 = vector.broadcast %cst : f32 to vector<8x512xf32>
    %c0_6 = arith.constant 0 : index
    %c0_7 = arith.constant 0 : index
    %5 = tpu.strided_load %arg13[%c0_6, %c0_7] {strides = array<i32: 64, 1>} : memref<512x128xf32, #tpu.memory_space<vmem>>, vector<8x64xf32>
    %c1 = arith.constant 1 : index
    %c0_8 = arith.constant 0 : index
    %6 = tpu.strided_load %arg13[%c1, %c0_8] {strides = array<i32: 64, 1>} : memref<512x128xf32, #tpu.memory_space<vmem>>, vector<8x64xf32>
    %7 = arith.maximumf %5, %6 : vector<8x64xf32>
    %c8 = arith.constant 8 : index
    %c0_9 = arith.constant 0 : index
    %8 = tpu.strided_load %arg13[%c8, %c0_9] {strides = array<i32: 64, 1>} : memref<512x128xf32, #tpu.memory_space<vmem>>, vector<8x64xf32>
    %c9 = arith.constant 9 : index
    %c0_10 = arith.constant 0 : index
    %9 = tpu.strided_load %arg13[%c9, %c0_10] {strides = array<i32: 64, 1>} : memref<512x128xf32, #tpu.memory_space<vmem>>, vector<8x64xf32>
    %10 = arith.maximumf %8, %9 : vector<8x64xf32>
    %11 = arith.maximumf %7, %10 : vector<8x64xf32>
    %c0_11 = arith.constant 0 : index
    %c0_12 = arith.constant 0 : index
    %c0_13 = arith.constant 0 : index
    %12 = vector.load %arg6[%c0_11, %c0_12, %c0_13] : memref<16x64x512xf32, #tpu.memory_space<vmem>>, vector<1x64x512xf32>
    %13 = vector.shape_cast %12 : vector<1x64x512xf32> to vector<64x512xf32>
    %cst_14 = arith.constant dense<0.000000e+00> : vector<8x512xf32>
    %14 = tpu.matmul %11, %13, %cst_14 {dimension_numbers = #tpu.dot_dimension_numbers<[1], [0], [0], [1], [0, 0, 1, 1], [], []>} : vector<8x64xf32>, vector<64x512xf32>, vector<8x512xf32> -> vector<8x512xf32>
    %15 = arith.addf %4, %14 : vector<8x512xf32>
    %c2 = arith.constant 2 : index
    %c0_15 = arith.constant 0 : index
    %16 = tpu.strided_load %arg13[%c2, %c0_15] {strides = array<i32: 64, 1>} : memref<512x128xf32, #tpu.memory_space<vmem>>, vector<8x64xf32>
    %c3 = arith.constant 3 : index
    %c0_16 = arith.constant 0 : index
    %17 = tpu.strided_load %arg13[%c3, %c0_16] {strides = array<i32: 64, 1>} : memref<512x128xf32, #tpu.memory_space<vmem>>, vector<8x64xf32>
    %18 = arith.maximumf %16, %17 : vector<8x64xf32>
    %c10 = arith.constant 10 : index
    %c0_17 = arith.constant 0 : index
    %19 = tpu.strided_load %arg13[%c10, %c0_17] {strides = array<i32: 64, 1>} : memref<512x128xf32, #tpu.memory_space<vmem>>, vector<8x64xf32>
    %c11 = arith.constant 11 : index
    %c0_18 = arith.constant 0 : index
    %20 = tpu.strided_load %arg13[%c11, %c0_18] {strides = array<i32: 64, 1>} : memref<512x128xf32, #tpu.memory_space<vmem>>, vector<8x64xf32>
    %21 = arith.maximumf %19, %20 : vector<8x64xf32>
    %22 = arith.maximumf %18, %21 : vector<8x64xf32>
    %c1_19 = arith.constant 1 : index
    %c0_20 = arith.constant 0 : index
    %c0_21 = arith.constant 0 : index
    %23 = vector.load %arg6[%c1_19, %c0_20, %c0_21] : memref<16x64x512xf32, #tpu.memory_space<vmem>>, vector<1x64x512xf32>
    %24 = vector.shape_cast %23 : vector<1x64x512xf32> to vector<64x512xf32>
    %cst_22 = arith.constant dense<0.000000e+00> : vector<8x512xf32>
    %25 = tpu.matmul %22, %24, %cst_22 {dimension_numbers = #tpu.dot_dimension_numbers<[1], [0], [0], [1], [0, 0, 1, 1], [], []>} : vector<8x64xf32>, vector<64x512xf32>, vector<8x512xf32> -> vector<8x512xf32>
    %26 = arith.addf %15, %25 : vector<8x512xf32>
    %c4 = arith.constant 4 : index
    %c0_23 = arith.constant 0 : index
    %27 = tpu.strided_load %arg13[%c4, %c0_23] {strides = array<i32: 64, 1>} : memref<512x128xf32, #tpu.memory_space<vmem>>, vector<8x64xf32>
    %c5 = arith.constant 5 : index
    %c0_24 = arith.constant 0 : index
    %28 = tpu.strided_load %arg13[%c5, %c0_24] {strides = array<i32: 64, 1>} : memref<512x128xf32, #tpu.memory_space<vmem>>, vector<8x64xf32>
    %29 = arith.maximumf %27, %28 : vector<8x64xf32>
    %c12 = arith.constant 12 : index
    %c0_25 = arith.constant 0 : index
    %30 = tpu.strided_load %arg13[%c12, %c0_25] {strides = array<i32: 64, 1>} : memref<512x128xf32, #tpu.memory_space<vmem>>, vector<8x64xf32>
    %c13 = arith.constant 13 : index
    %c0_26 = arith.constant 0 : index
    %31 = tpu.strided_load %arg13[%c13, %c0_26] {strides = array<i32: 64, 1>} : memref<512x128xf32, #tpu.memory_space<vmem>>, vector<8x64xf32>
    %32 = arith.maximumf %30, %31 : vector<8x64xf32>
    %33 = arith.maximumf %29, %32 : vector<8x64xf32>
    %c2_27 = arith.constant 2 : index
    %c0_28 = arith.constant 0 : index
    %c0_29 = arith.constant 0 : index
    %34 = vector.load %arg6[%c2_27, %c0_28, %c0_29] : memref<16x64x512xf32, #tpu.memory_space<vmem>>, vector<1x64x512xf32>
    %35 = vector.shape_cast %34 : vector<1x64x512xf32> to vector<64x512xf32>
    %cst_30 = arith.constant dense<0.000000e+00> : vector<8x512xf32>
    %36 = tpu.matmul %33, %35, %cst_30 {dimension_numbers = #tpu.dot_dimension_numbers<[1], [0], [0], [1], [0, 0, 1, 1], [], []>} : vector<8x64xf32>, vector<64x512xf32>, vector<8x512xf32> -> vector<8x512xf32>
    %37 = arith.addf %26, %36 : vector<8x512xf32>
    %c6 = arith.constant 6 : index
    %c0_31 = arith.constant 0 : index
    %38 = tpu.strided_load %arg13[%c6, %c0_31] {strides = array<i32: 64, 1>} : memref<512x128xf32, #tpu.memory_space<vmem>>, vector<8x64xf32>
    %c7 = arith.constant 7 : index
    %c0_32 = arith.constant 0 : index
    %39 = tpu.strided_load %arg13[%c7, %c0_32] {strides = array<i32: 64, 1>} : memref<512x128xf32, #tpu.memory_space<vmem>>, vector<8x64xf32>
    %40 = arith.maximumf %38, %39 : vector<8x64xf32>
    %c14 = arith.constant 14 : index
    %c0_33 = arith.constant 0 : index
    %41 = tpu.strided_load %arg13[%c14, %c0_33] {strides = array<i32: 64, 1>} : memref<512x128xf32, #tpu.memory_space<vmem>>, vector<8x64xf32>
    %c15 = arith.constant 15 : index
    %c0_34 = arith.constant 0 : index
    %42 = tpu.strided_load %arg13[%c15, %c0_34] {strides = array<i32: 64, 1>} : memref<512x128xf32, #tpu.memory_space<vmem>>, vector<8x64xf32>
    %43 = arith.maximumf %41, %42 : vector<8x64xf32>
    %44 = arith.maximumf %40, %43 : vector<8x64xf32>
    %c3_35 = arith.constant 3 : index
    %c0_36 = arith.constant 0 : index
    %c0_37 = arith.constant 0 : index
    %45 = vector.load %arg6[%c3_35, %c0_36, %c0_37] : memref<16x64x512xf32, #tpu.memory_space<vmem>>, vector<1x64x512xf32>
    %46 = vector.shape_cast %45 : vector<1x64x512xf32> to vector<64x512xf32>
    %cst_38 = arith.constant dense<0.000000e+00> : vector<8x512xf32>
    %47 = tpu.matmul %44, %46, %cst_38 {dimension_numbers = #tpu.dot_dimension_numbers<[1], [0], [0], [1], [0, 0, 1, 1], [], []>} : vector<8x64xf32>, vector<64x512xf32>, vector<8x512xf32> -> vector<8x512xf32>
    %48 = arith.addf %37, %47 : vector<8x512xf32>
    %c16 = arith.constant 16 : index
    %c0_39 = arith.constant 0 : index
    %49 = tpu.strided_load %arg13[%c16, %c0_39] {strides = array<i32: 64, 1>} : memref<512x128xf32, #tpu.memory_space<vmem>>, vector<8x64xf32>
    %c17 = arith.constant 17 : index
    %c0_40 = arith.constant 0 : index
    %50 = tpu.strided_load %arg13[%c17, %c0_40] {strides = array<i32: 64, 1>} : memref<512x128xf32, #tpu.memory_space<vmem>>, vector<8x64xf32>
    %51 = arith.maximumf %49, %50 : vector<8x64xf32>
    %c24 = arith.constant 24 : index
    %c0_41 = arith.constant 0 : index
    %52 = tpu.strided_load %arg13[%c24, %c0_41] {strides = array<i32: 64, 1>} : memref<512x128xf32, #tpu.memory_space<vmem>>, vector<8x64xf32>
    %c25 = arith.constant 25 : index
    %c0_42 = arith.constant 0 : index
    %53 = tpu.strided_load %arg13[%c25, %c0_42] {strides = array<i32: 64, 1>} : memref<512x128xf32, #tpu.memory_space<vmem>>, vector<8x64xf32>
    %54 = arith.maximumf %52, %53 : vector<8x64xf32>
    %55 = arith.maximumf %51, %54 : vector<8x64xf32>
    %c4_43 = arith.constant 4 : index
    %c0_44 = arith.constant 0 : index
    %c0_45 = arith.constant 0 : index
    %56 = vector.load %arg6[%c4_43, %c0_44, %c0_45] : memref<16x64x512xf32, #tpu.memory_space<vmem>>, vector<1x64x512xf32>
    %57 = vector.shape_cast %56 : vector<1x64x512xf32> to vector<64x512xf32>
    %cst_46 = arith.constant dense<0.000000e+00> : vector<8x512xf32>
    %58 = tpu.matmul %55, %57, %cst_46 {dimension_numbers = #tpu.dot_dimension_numbers<[1], [0], [0], [1], [0, 0, 1, 1], [], []>} : vector<8x64xf32>, vector<64x512xf32>, vector<8x512xf32> -> vector<8x512xf32>
    %59 = arith.addf %48, %58 : vector<8x512xf32>
    %c18 = arith.constant 18 : index
    %c0_47 = arith.constant 0 : index
    %60 = tpu.strided_load %arg13[%c18, %c0_47] {strides = array<i32: 64, 1>} : memref<512x128xf32, #tpu.memory_space<vmem>>, vector<8x64xf32>
    %c19 = arith.constant 19 : index
    %c0_48 = arith.constant 0 : index
    %61 = tpu.strided_load %arg13[%c19, %c0_48] {strides = array<i32: 64, 1>} : memref<512x128xf32, #tpu.memory_space<vmem>>, vector<8x64xf32>
    %62 = arith.maximumf %60, %61 : vector<8x64xf32>
    %c26 = arith.constant 26 : index
    %c0_49 = arith.constant 0 : index
    %63 = tpu.strided_load %arg13[%c26, %c0_49] {strides = array<i32: 64, 1>} : memref<512x128xf32, #tpu.memory_space<vmem>>, vector<8x64xf32>
    %c27 = arith.constant 27 : index
    %c0_50 = arith.constant 0 : index
    %64 = tpu.strided_load %arg13[%c27, %c0_50] {strides = array<i32: 64, 1>} : memref<512x128xf32, #tpu.memory_space<vmem>>, vector<8x64xf32>
    %65 = arith.maximumf %63, %64 : vector<8x64xf32>
    %66 = arith.maximumf %62, %65 : vector<8x64xf32>
    %c5_51 = arith.constant 5 : index
    %c0_52 = arith.constant 0 : index
    %c0_53 = arith.constant 0 : index
    %67 = vector.load %arg6[%c5_51, %c0_52, %c0_53] : memref<16x64x512xf32, #tpu.memory_space<vmem>>, vector<1x64x512xf32>
    %68 = vector.shape_cast %67 : vector<1x64x512xf32> to vector<64x512xf32>
    %cst_54 = arith.constant dense<0.000000e+00> : vector<8x512xf32>
    %69 = tpu.matmul %66, %68, %cst_54 {dimension_numbers = #tpu.dot_dimension_numbers<[1], [0], [0], [1], [0, 0, 1, 1], [], []>} : vector<8x64xf32>, vector<64x512xf32>, vector<8x512xf32> -> vector<8x512xf32>
    %70 = arith.addf %59, %69 : vector<8x512xf32>
    %c20 = arith.constant 20 : index
    %c0_55 = arith.constant 0 : index
    %71 = tpu.strided_load %arg13[%c20, %c0_55] {strides = array<i32: 64, 1>} : memref<512x128xf32, #tpu.memory_space<vmem>>, vector<8x64xf32>
    %c21 = arith.constant 21 : index
    %c0_56 = arith.constant 0 : index
    %72 = tpu.strided_load %arg13[%c21, %c0_56] {strides = array<i32: 64, 1>} : memref<512x128xf32, #tpu.memory_space<vmem>>, vector<8x64xf32>
    %73 = arith.maximumf %71, %72 : vector<8x64xf32>
    %c28 = arith.constant 28 : index
    %c0_57 = arith.constant 0 : index
    %74 = tpu.strided_load %arg13[%c28, %c0_57] {strides = array<i32: 64, 1>} : memref<512x128xf32, #tpu.memory_space<vmem>>, vector<8x64xf32>
    %c29 = arith.constant 29 : index
    %c0_58 = arith.constant 0 : index
    %75 = tpu.strided_load %arg13[%c29, %c0_58] {strides = array<i32: 64, 1>} : memref<512x128xf32, #tpu.memory_space<vmem>>, vector<8x64xf32>
    %76 = arith.maximumf %74, %75 : vector<8x64xf32>
    %77 = arith.maximumf %73, %76 : vector<8x64xf32>
    %c6_59 = arith.constant 6 : index
    %c0_60 = arith.constant 0 : index
    %c0_61 = arith.constant 0 : index
    %78 = vector.load %arg6[%c6_59, %c0_60, %c0_61] : memref<16x64x512xf32, #tpu.memory_space<vmem>>, vector<1x64x512xf32>
    %79 = vector.shape_cast %78 : vector<1x64x512xf32> to vector<64x512xf32>
    %cst_62 = arith.constant dense<0.000000e+00> : vector<8x512xf32>
    %80 = tpu.matmul %77, %79, %cst_62 {dimension_numbers = #tpu.dot_dimension_numbers<[1], [0], [0], [1], [0, 0, 1, 1], [], []>} : vector<8x64xf32>, vector<64x512xf32>, vector<8x512xf32> -> vector<8x512xf32>
    %81 = arith.addf %70, %80 : vector<8x512xf32>
    %c22 = arith.constant 22 : index
    %c0_63 = arith.constant 0 : index
    %82 = tpu.strided_load %arg13[%c22, %c0_63] {strides = array<i32: 64, 1>} : memref<512x128xf32, #tpu.memory_space<vmem>>, vector<8x64xf32>
    %c23 = arith.constant 23 : index
    %c0_64 = arith.constant 0 : index
    %83 = tpu.strided_load %arg13[%c23, %c0_64] {strides = array<i32: 64, 1>} : memref<512x128xf32, #tpu.memory_space<vmem>>, vector<8x64xf32>
    %84 = arith.maximumf %82, %83 : vector<8x64xf32>
    %c30 = arith.constant 30 : index
    %c0_65 = arith.constant 0 : index
    %85 = tpu.strided_load %arg13[%c30, %c0_65] {strides = array<i32: 64, 1>} : memref<512x128xf32, #tpu.memory_space<vmem>>, vector<8x64xf32>
    %c31 = arith.constant 31 : index
    %c0_66 = arith.constant 0 : index
    %86 = tpu.strided_load %arg13[%c31, %c0_66] {strides = array<i32: 64, 1>} : memref<512x128xf32, #tpu.memory_space<vmem>>, vector<8x64xf32>
    %87 = arith.maximumf %85, %86 : vector<8x64xf32>
    %88 = arith.maximumf %84, %87 : vector<8x64xf32>
    %c7_67 = arith.constant 7 : index
    %c0_68 = arith.constant 0 : index
    %c0_69 = arith.constant 0 : index
    %89 = vector.load %arg6[%c7_67, %c0_68, %c0_69] : memref<16x64x512xf32, #tpu.memory_space<vmem>>, vector<1x64x512xf32>
    %90 = vector.shape_cast %89 : vector<1x64x512xf32> to vector<64x512xf32>
    %cst_70 = arith.constant dense<0.000000e+00> : vector<8x512xf32>
    %91 = tpu.matmul %88, %90, %cst_70 {dimension_numbers = #tpu.dot_dimension_numbers<[1], [0], [0], [1], [0, 0, 1, 1], [], []>} : vector<8x64xf32>, vector<64x512xf32>, vector<8x512xf32> -> vector<8x512xf32>
    %92 = arith.addf %81, %91 : vector<8x512xf32>
    %c32 = arith.constant 32 : index
    %c0_71 = arith.constant 0 : index
    %93 = tpu.strided_load %arg13[%c32, %c0_71] {strides = array<i32: 64, 1>} : memref<512x128xf32, #tpu.memory_space<vmem>>, vector<8x64xf32>
    %c33 = arith.constant 33 : index
    %c0_72 = arith.constant 0 : index
    %94 = tpu.strided_load %arg13[%c33, %c0_72] {strides = array<i32: 64, 1>} : memref<512x128xf32, #tpu.memory_space<vmem>>, vector<8x64xf32>
    %95 = arith.maximumf %93, %94 : vector<8x64xf32>
    %c40 = arith.constant 40 : index
    %c0_73 = arith.constant 0 : index
    %96 = tpu.strided_load %arg13[%c40, %c0_73] {strides = array<i32: 64, 1>} : memref<512x128xf32, #tpu.memory_space<vmem>>, vector<8x64xf32>
    %c41 = arith.constant 41 : index
    %c0_74 = arith.constant 0 : index
    %97 = tpu.strided_load %arg13[%c41, %c0_74] {strides = array<i32: 64, 1>} : memref<512x128xf32, #tpu.memory_space<vmem>>, vector<8x64xf32>
    %98 = arith.maximumf %96, %97 : vector<8x64xf32>
    %99 = arith.maximumf %95, %98 : vector<8x64xf32>
    %c8_75 = arith.constant 8 : index
    %c0_76 = arith.constant 0 : index
    %c0_77 = arith.constant 0 : index
    %100 = vector.load %arg6[%c8_75, %c0_76, %c0_77] : memref<16x64x512xf32, #tpu.memory_space<vmem>>, vector<1x64x512xf32>
    %101 = vector.shape_cast %100 : vector<1x64x512xf32> to vector<64x512xf32>
    %cst_78 = arith.constant dense<0.000000e+00> : vector<8x512xf32>
    %102 = tpu.matmul %99, %101, %cst_78 {dimension_numbers = #tpu.dot_dimension_numbers<[1], [0], [0], [1], [0, 0, 1, 1], [], []>} : vector<8x64xf32>, vector<64x512xf32>, vector<8x512xf32> -> vector<8x512xf32>
    %103 = arith.addf %92, %102 : vector<8x512xf32>
    %c34 = arith.constant 34 : index
    %c0_79 = arith.constant 0 : index
    %104 = tpu.strided_load %arg13[%c34, %c0_79] {strides = array<i32: 64, 1>} : memref<512x128xf32, #tpu.memory_space<vmem>>, vector<8x64xf32>
    %c35 = arith.constant 35 : index
    %c0_80 = arith.constant 0 : index
    %105 = tpu.strided_load %arg13[%c35, %c0_80] {strides = array<i32: 64, 1>} : memref<512x128xf32, #tpu.memory_space<vmem>>, vector<8x64xf32>
    %106 = arith.maximumf %104, %105 : vector<8x64xf32>
    %c42 = arith.constant 42 : index
    %c0_81 = arith.constant 0 : index
    %107 = tpu.strided_load %arg13[%c42, %c0_81] {strides = array<i32: 64, 1>} : memref<512x128xf32, #tpu.memory_space<vmem>>, vector<8x64xf32>
    %c43 = arith.constant 43 : index
    %c0_82 = arith.constant 0 : index
    %108 = tpu.strided_load %arg13[%c43, %c0_82] {strides = array<i32: 64, 1>} : memref<512x128xf32, #tpu.memory_space<vmem>>, vector<8x64xf32>
    %109 = arith.maximumf %107, %108 : vector<8x64xf32>
    %110 = arith.maximumf %106, %109 : vector<8x64xf32>
    %c9_83 = arith.constant 9 : index
    %c0_84 = arith.constant 0 : index
    %c0_85 = arith.constant 0 : index
    %111 = vector.load %arg6[%c9_83, %c0_84, %c0_85] : memref<16x64x512xf32, #tpu.memory_space<vmem>>, vector<1x64x512xf32>
    %112 = vector.shape_cast %111 : vector<1x64x512xf32> to vector<64x512xf32>
    %cst_86 = arith.constant dense<0.000000e+00> : vector<8x512xf32>
    %113 = tpu.matmul %110, %112, %cst_86 {dimension_numbers = #tpu.dot_dimension_numbers<[1], [0], [0], [1], [0, 0, 1, 1], [], []>} : vector<8x64xf32>, vector<64x512xf32>, vector<8x512xf32> -> vector<8x512xf32>
    %114 = arith.addf %103, %113 : vector<8x512xf32>
    %c36 = arith.constant 36 : index
    %c0_87 = arith.constant 0 : index
    %115 = tpu.strided_load %arg13[%c36, %c0_87] {strides = array<i32: 64, 1>} : memref<512x128xf32, #tpu.memory_space<vmem>>, vector<8x64xf32>
    %c37 = arith.constant 37 : index
    %c0_88 = arith.constant 0 : index
    %116 = tpu.strided_load %arg13[%c37, %c0_88] {strides = array<i32: 64, 1>} : memref<512x128xf32, #tpu.memory_space<vmem>>, vector<8x64xf32>
    %117 = arith.maximumf %115, %116 : vector<8x64xf32>
    %c44 = arith.constant 44 : index
    %c0_89 = arith.constant 0 : index
    %118 = tpu.strided_load %arg13[%c44, %c0_89] {strides = array<i32: 64, 1>} : memref<512x128xf32, #tpu.memory_space<vmem>>, vector<8x64xf32>
    %c45 = arith.constant 45 : index
    %c0_90 = arith.constant 0 : index
    %119 = tpu.strided_load %arg13[%c45, %c0_90] {strides = array<i32: 64, 1>} : memref<512x128xf32, #tpu.memory_space<vmem>>, vector<8x64xf32>
    %120 = arith.maximumf %118, %119 : vector<8x64xf32>
    %121 = arith.maximumf %117, %120 : vector<8x64xf32>
    %c10_91 = arith.constant 10 : index
    %c0_92 = arith.constant 0 : index
    %c0_93 = arith.constant 0 : index
    %122 = vector.load %arg6[%c10_91, %c0_92, %c0_93] : memref<16x64x512xf32, #tpu.memory_space<vmem>>, vector<1x64x512xf32>
    %123 = vector.shape_cast %122 : vector<1x64x512xf32> to vector<64x512xf32>
    %cst_94 = arith.constant dense<0.000000e+00> : vector<8x512xf32>
    %124 = tpu.matmul %121, %123, %cst_94 {dimension_numbers = #tpu.dot_dimension_numbers<[1], [0], [0], [1], [0, 0, 1, 1], [], []>} : vector<8x64xf32>, vector<64x512xf32>, vector<8x512xf32> -> vector<8x512xf32>
    %125 = arith.addf %114, %124 : vector<8x512xf32>
    %c38 = arith.constant 38 : index
    %c0_95 = arith.constant 0 : index
    %126 = tpu.strided_load %arg13[%c38, %c0_95] {strides = array<i32: 64, 1>} : memref<512x128xf32, #tpu.memory_space<vmem>>, vector<8x64xf32>
    %c39 = arith.constant 39 : index
    %c0_96 = arith.constant 0 : index
    %127 = tpu.strided_load %arg13[%c39, %c0_96] {strides = array<i32: 64, 1>} : memref<512x128xf32, #tpu.memory_space<vmem>>, vector<8x64xf32>
    %128 = arith.maximumf %126, %127 : vector<8x64xf32>
    %c46 = arith.constant 46 : index
    %c0_97 = arith.constant 0 : index
    %129 = tpu.strided_load %arg13[%c46, %c0_97] {strides = array<i32: 64, 1>} : memref<512x128xf32, #tpu.memory_space<vmem>>, vector<8x64xf32>
    %c47 = arith.constant 47 : index
    %c0_98 = arith.constant 0 : index
    %130 = tpu.strided_load %arg13[%c47, %c0_98] {strides = array<i32: 64, 1>} : memref<512x128xf32, #tpu.memory_space<vmem>>, vector<8x64xf32>
    %131 = arith.maximumf %129, %130 : vector<8x64xf32>
    %132 = arith.maximumf %128, %131 : vector<8x64xf32>
    %c11_99 = arith.constant 11 : index
    %c0_100 = arith.constant 0 : index
    %c0_101 = arith.constant 0 : index
    %133 = vector.load %arg6[%c11_99, %c0_100, %c0_101] : memref<16x64x512xf32, #tpu.memory_space<vmem>>, vector<1x64x512xf32>
    %134 = vector.shape_cast %133 : vector<1x64x512xf32> to vector<64x512xf32>
    %cst_102 = arith.constant dense<0.000000e+00> : vector<8x512xf32>
    %135 = tpu.matmul %132, %134, %cst_102 {dimension_numbers = #tpu.dot_dimension_numbers<[1], [0], [0], [1], [0, 0, 1, 1], [], []>} : vector<8x64xf32>, vector<64x512xf32>, vector<8x512xf32> -> vector<8x512xf32>
    %136 = arith.addf %125, %135 : vector<8x512xf32>
    %c48 = arith.constant 48 : index
    %c0_103 = arith.constant 0 : index
    %137 = tpu.strided_load %arg13[%c48, %c0_103] {strides = array<i32: 64, 1>} : memref<512x128xf32, #tpu.memory_space<vmem>>, vector<8x64xf32>
    %c49 = arith.constant 49 : index
    %c0_104 = arith.constant 0 : index
    %138 = tpu.strided_load %arg13[%c49, %c0_104] {strides = array<i32: 64, 1>} : memref<512x128xf32, #tpu.memory_space<vmem>>, vector<8x64xf32>
    %139 = arith.maximumf %137, %138 : vector<8x64xf32>
    %c56 = arith.constant 56 : index
    %c0_105 = arith.constant 0 : index
    %140 = tpu.strided_load %arg13[%c56, %c0_105] {strides = array<i32: 64, 1>} : memref<512x128xf32, #tpu.memory_space<vmem>>, vector<8x64xf32>
    %c57 = arith.constant 57 : index
    %c0_106 = arith.constant 0 : index
    %141 = tpu.strided_load %arg13[%c57, %c0_106] {strides = array<i32: 64, 1>} : memref<512x128xf32, #tpu.memory_space<vmem>>, vector<8x64xf32>
    %142 = arith.maximumf %140, %141 : vector<8x64xf32>
    %143 = arith.maximumf %139, %142 : vector<8x64xf32>
    %c12_107 = arith.constant 12 : index
    %c0_108 = arith.constant 0 : index
    %c0_109 = arith.constant 0 : index
    %144 = vector.load %arg6[%c12_107, %c0_108, %c0_109] : memref<16x64x512xf32, #tpu.memory_space<vmem>>, vector<1x64x512xf32>
    %145 = vector.shape_cast %144 : vector<1x64x512xf32> to vector<64x512xf32>
    %cst_110 = arith.constant dense<0.000000e+00> : vector<8x512xf32>
    %146 = tpu.matmul %143, %145, %cst_110 {dimension_numbers = #tpu.dot_dimension_numbers<[1], [0], [0], [1], [0, 0, 1, 1], [], []>} : vector<8x64xf32>, vector<64x512xf32>, vector<8x512xf32> -> vector<8x512xf32>
    %147 = arith.addf %136, %146 : vector<8x512xf32>
    %c50 = arith.constant 50 : index
    %c0_111 = arith.constant 0 : index
    %148 = tpu.strided_load %arg13[%c50, %c0_111] {strides = array<i32: 64, 1>} : memref<512x128xf32, #tpu.memory_space<vmem>>, vector<8x64xf32>
    %c51 = arith.constant 51 : index
    %c0_112 = arith.constant 0 : index
    %149 = tpu.strided_load %arg13[%c51, %c0_112] {strides = array<i32: 64, 1>} : memref<512x128xf32, #tpu.memory_space<vmem>>, vector<8x64xf32>
    %150 = arith.maximumf %148, %149 : vector<8x64xf32>
    %c58 = arith.constant 58 : index
    %c0_113 = arith.constant 0 : index
    %151 = tpu.strided_load %arg13[%c58, %c0_113] {strides = array<i32: 64, 1>} : memref<512x128xf32, #tpu.memory_space<vmem>>, vector<8x64xf32>
    %c59 = arith.constant 59 : index
    %c0_114 = arith.constant 0 : index
    %152 = tpu.strided_load %arg13[%c59, %c0_114] {strides = array<i32: 64, 1>} : memref<512x128xf32, #tpu.memory_space<vmem>>, vector<8x64xf32>
    %153 = arith.maximumf %151, %152 : vector<8x64xf32>
    %154 = arith.maximumf %150, %153 : vector<8x64xf32>
    %c13_115 = arith.constant 13 : index
    %c0_116 = arith.constant 0 : index
    %c0_117 = arith.constant 0 : index
    %155 = vector.load %arg6[%c13_115, %c0_116, %c0_117] : memref<16x64x512xf32, #tpu.memory_space<vmem>>, vector<1x64x512xf32>
    %156 = vector.shape_cast %155 : vector<1x64x512xf32> to vector<64x512xf32>
    %cst_118 = arith.constant dense<0.000000e+00> : vector<8x512xf32>
    %157 = tpu.matmul %154, %156, %cst_118 {dimension_numbers = #tpu.dot_dimension_numbers<[1], [0], [0], [1], [0, 0, 1, 1], [], []>} : vector<8x64xf32>, vector<64x512xf32>, vector<8x512xf32> -> vector<8x512xf32>
    %158 = arith.addf %147, %157 : vector<8x512xf32>
    %c52 = arith.constant 52 : index
    %c0_119 = arith.constant 0 : index
    %159 = tpu.strided_load %arg13[%c52, %c0_119] {strides = array<i32: 64, 1>} : memref<512x128xf32, #tpu.memory_space<vmem>>, vector<8x64xf32>
    %c53 = arith.constant 53 : index
    %c0_120 = arith.constant 0 : index
    %160 = tpu.strided_load %arg13[%c53, %c0_120] {strides = array<i32: 64, 1>} : memref<512x128xf32, #tpu.memory_space<vmem>>, vector<8x64xf32>
    %161 = arith.maximumf %159, %160 : vector<8x64xf32>
    %c60 = arith.constant 60 : index
    %c0_121 = arith.constant 0 : index
    %162 = tpu.strided_load %arg13[%c60, %c0_121] {strides = array<i32: 64, 1>} : memref<512x128xf32, #tpu.memory_space<vmem>>, vector<8x64xf32>
    %c61 = arith.constant 61 : index
    %c0_122 = arith.constant 0 : index
    %163 = tpu.strided_load %arg13[%c61, %c0_122] {strides = array<i32: 64, 1>} : memref<512x128xf32, #tpu.memory_space<vmem>>, vector<8x64xf32>
    %164 = arith.maximumf %162, %163 : vector<8x64xf32>
    %165 = arith.maximumf %161, %164 : vector<8x64xf32>
    %c14_123 = arith.constant 14 : index
    %c0_124 = arith.constant 0 : index
    %c0_125 = arith.constant 0 : index
    %166 = vector.load %arg6[%c14_123, %c0_124, %c0_125] : memref<16x64x512xf32, #tpu.memory_space<vmem>>, vector<1x64x512xf32>
    %167 = vector.shape_cast %166 : vector<1x64x512xf32> to vector<64x512xf32>
    %cst_126 = arith.constant dense<0.000000e+00> : vector<8x512xf32>
    %168 = tpu.matmul %165, %167, %cst_126 {dimension_numbers = #tpu.dot_dimension_numbers<[1], [0], [0], [1], [0, 0, 1, 1], [], []>} : vector<8x64xf32>, vector<64x512xf32>, vector<8x512xf32> -> vector<8x512xf32>
    %169 = arith.addf %158, %168 : vector<8x512xf32>
    %c54 = arith.constant 54 : index
    %c0_127 = arith.constant 0 : index
    %170 = tpu.strided_load %arg13[%c54, %c0_127] {strides = array<i32: 64, 1>} : memref<512x128xf32, #tpu.memory_space<vmem>>, vector<8x64xf32>
    %c55 = arith.constant 55 : index
    %c0_128 = arith.constant 0 : index
    %171 = tpu.strided_load %arg13[%c55, %c0_128] {strides = array<i32: 64, 1>} : memref<512x128xf32, #tpu.memory_space<vmem>>, vector<8x64xf32>
    %172 = arith.maximumf %170, %171 : vector<8x64xf32>
    %c62 = arith.constant 62 : index
    %c0_129 = arith.constant 0 : index
    %173 = tpu.strided_load %arg13[%c62, %c0_129] {strides = array<i32: 64, 1>} : memref<512x128xf32, #tpu.memory_space<vmem>>, vector<8x64xf32>
    %c63 = arith.constant 63 : index
    %c0_130 = arith.constant 0 : index
    %174 = tpu.strided_load %arg13[%c63, %c0_130] {strides = array<i32: 64, 1>} : memref<512x128xf32, #tpu.memory_space<vmem>>, vector<8x64xf32>
    %175 = arith.maximumf %173, %174 : vector<8x64xf32>
    %176 = arith.maximumf %172, %175 : vector<8x64xf32>
    %c15_131 = arith.constant 15 : index
    %c0_132 = arith.constant 0 : index
    %c0_133 = arith.constant 0 : index
    %177 = vector.load %arg6[%c15_131, %c0_132, %c0_133] : memref<16x64x512xf32, #tpu.memory_space<vmem>>, vector<1x64x512xf32>
    %178 = vector.shape_cast %177 : vector<1x64x512xf32> to vector<64x512xf32>
    %cst_134 = arith.constant dense<0.000000e+00> : vector<8x512xf32>
    %179 = tpu.matmul %176, %178, %cst_134 {dimension_numbers = #tpu.dot_dimension_numbers<[1], [0], [0], [1], [0, 0, 1, 1], [], []>} : vector<8x64xf32>, vector<64x512xf32>, vector<8x512xf32> -> vector<8x512xf32>
    %180 = arith.addf %169, %179 : vector<8x512xf32>
    %c0_135 = arith.constant 0 : index
    %c0_136 = arith.constant 0 : index
    %181 = vector.load %arg7[%c0_135, %c0_136] : memref<1x512xf32, #tpu.memory_space<vmem>>, vector<1x512xf32>
    %182 = vector.broadcast %181 : vector<1x512xf32> to vector<8x512xf32>
    %183 = arith.addf %180, %182 : vector<8x512xf32>
    %cst_137 = arith.constant 0.000000e+00 : f32
    %184 = vector.broadcast %cst_137 : f32 to vector<8x512xf32>
    %185 = arith.maximumf %183, %184 : vector<8x512xf32>
    %c0_138 = arith.constant 0 : index
    %c0_139 = arith.constant 0 : index
    %186 = vector.load %arg8[%c0_138, %c0_139] : memref<512x128xf32, #tpu.memory_space<vmem>>, vector<512x128xf32>
    %cst_140 = arith.constant dense<0.000000e+00> : vector<8x128xf32>
    %187 = tpu.matmul %185, %186, %cst_140 {dimension_numbers = #tpu.dot_dimension_numbers<[1], [0], [0], [1], [0, 0, 1, 1], [], []>} : vector<8x512xf32>, vector<512x128xf32>, vector<8x128xf32> -> vector<8x128xf32>
    %c0_141 = arith.constant 0 : index
    %c0_142 = arith.constant 0 : index
    %188 = vector.load %arg9[%c0_141, %c0_142] : memref<1x128xf32, #tpu.memory_space<vmem>>, vector<1x128xf32>
    %189 = vector.broadcast %188 : vector<1x128xf32> to vector<8x128xf32>
    %190 = arith.addf %187, %189 : vector<8x128xf32>
    %c0_143 = arith.constant 0 : index
    %c0_144 = arith.constant 0 : index
    %191 = vector.load %arg10[%c0_143, %c0_144] : memref<8x128xf32, #tpu.memory_space<vmem>>, vector<8x128xf32>
    tpu.vector_store %arg10[%c0_143, %c0_144], %190 {strides = array<i32>} : memref<8x128xf32, #tpu.memory_space<vmem>>, vector<8x128xf32>,
    return
  }
  func.func @transform_0(%arg0: i32) -> (i32, i32, i32) {
    %c0_i32 = arith.constant 0 : i32
    %c0_i32_0 = arith.constant 0 : i32
    %c0_i32_1 = arith.constant 0 : i32
    return %arg0, %c0_i32, %c0_i32_0 : i32, i32, i32
  }
  func.func @transform_1(%arg0: i32) -> (i32, i32) {
    %c0_i32 = arith.constant 0 : i32
    %c0_i32_0 = arith.constant 0 : i32
    %c0_i32_1 = arith.constant 0 : i32
    return %c0_i32, %c0_i32_0 : i32, i32
  }
  func.func @transform_2(%arg0: i32) -> (i32, i32) {
    %c0_i32 = arith.constant 0 : i32
    %c0_i32_0 = arith.constant 0 : i32
    %c0_i32_1 = arith.constant 0 : i32
    return %c0_i32, %c0_i32_0 : i32, i32
  }
  func.func @transform_3(%arg0: i32) -> (i32, i32, i32) {
    %c0_i32 = arith.constant 0 : i32
    %c0_i32_0 = arith.constant 0 : i32
    %c0_i32_1 = arith.constant 0 : i32
    %c0_i32_2 = arith.constant 0 : i32
    return %c0_i32, %c0_i32_0, %c0_i32_1 : i32, i32, i32
  }
  func.func @transform_4(%arg0: i32) -> (i32, i32) {
    %c0_i32 = arith.constant 0 : i32
    %c0_i32_0 = arith.constant 0 : i32
    %c0_i32_1 = arith.constant 0 : i32
    return %c0_i32, %c0_i32_0 : i32, i32
  }
  func.func @transform_5(%arg0: i32) -> (i32, i32, i32) {
    %c0_i32 = arith.constant 0 : i32
    %c0_i32_0 = arith.constant 0 : i32
    %c0_i32_1 = arith.constant 0 : i32
    %c0_i32_2 = arith.constant 0 : i32
    return %c0_i32, %c0_i32_0, %c0_i32_1 : i32, i32, i32
  }
  func.func @transform_6(%arg0: i32) -> (i32, i32) {
    %c0_i32 = arith.constant 0 : i32
    %c0_i32_0 = arith.constant 0 : i32
    %c0_i32_1 = arith.constant 0 : i32
    return %c0_i32, %c0_i32_0 : i32, i32
  }
  func.func @transform_7(%arg0: i32) -> (i32, i32) {
    %c0_i32 = arith.constant 0 : i32
    %c0_i32_0 = arith.constant 0 : i32
    %c0_i32_1 = arith.constant 0 : i32
    return %c0_i32, %c0_i32_0 : i32, i32
  }
  func.func @transform_8(%arg0: i32) -> (i32, i32) {
    %c0_i32 = arith.constant 0 : i32
    %c0_i32_0 = arith.constant 0 : i32
    %c0_i32_1 = arith.constant 0 : i32
    return %c0_i32, %c0_i32_0 : i32, i32
  }
  func.func @transform_9(%arg0: i32) -> (i32, i32) {
    %c0_i32 = arith.constant 0 : i32
    %c0_i32_0 = arith.constant 0 : i32
    return %arg0, %c0_i32 : i32, i32
  }
}

</mosaic_0001>

<bundles_post_ra>
// kernel: lenet5_forward.1
= control target key start
LH: loop header
LB: loop body
LE: loop exit
PB: predicated region body
PF: predicated region fallthrough
CT: control target
= control target key end

     0   :  { %s8763_s21 = smov 0   ;;  %s11916_s0 = inlined_call_operand.vmem [shape: f32[8,576,32], index: 0, kind: input, shape index: {}]   ;;  %s11917_s1 = inlined_call_operand.vmem [shape: f32[32,128], index: 1, kind: input, shape index: {}]   ;;  %s11918_s2 = inlined_call_operand.vmem [shape: f32[1,128], index: 2, kind: input, shape index: {}]   ;;  %s11919_s3 = inlined_call_operand.vmem [shape: f32[5,160,128], index: 3, kind: input, shape index: {}]   ;;  %s11920_s4 = inlined_call_operand.vmem [shape: f32[1,128], index: 4, kind: input, shape index: {}]   ;;  %s11921_s5 = inlined_call_operand.vmem [shape: f32[16,64,512], index: 5, kind: input, shape index: {}]   ;;  %s11922_s6 = inlined_call_operand.vmem [shape: f32[1,512], index: 6, kind: input, shape index: {}]   ;;  %s11923_s7 = inlined_call_operand.vmem [shape: f32[512,128], index: 7, kind: input, shape index: {}]   ;;  %s11924_s8 = inlined_call_operand.vmem [shape: f32[1,128], index: 8, kind: input, shape index: {}]   ;;  %s11925_s9 = inlined_call_operand.vmem [shape: f32[8,128], index: 9, kind: output, shape index: {}]  }
   0x1   :  { %v8736_v0 = vld [vmem:[%s11917_s1] sm:$0xff]  ;;  %v8741_v1 = vld [vmem:[%s11917_s1 + $0x8] sm:$0xff]  ;;  %v8746_v2 = vld [vmem:[%s11917_s1 + $0x10] sm:$0xff] }
   0x2   :  { %v8751_v3 = vld [vmem:[%s11917_s1 + $0x18] sm:$0xff]  ;;  %v8756_v4 = vld [vmem:[%s11918_s2] ss:$0 sm:$0xff] }
   0x3   :  { %v8761_v5 = vld [vmem:[%s11920_s4] ss:$0 sm:$0xff] }
   0x4 LB: > { %v8770_v6 = vpack.c.bf16 %v8741_v1, %v8736_v0  ;;  %v8774_v7 = vpack.c.bf16 %v8751_v3, %v8746_v2  ;;  %s44_s1 = smul.u32 576, %s8676_s21  ;;  %vm70_vm0 = vcmask 261120   ;;  %vm1088_vm1 = vcmask 1043456   ;;  %s8679_s14 = smov 96   ;;  %s8676_s21 = sphi %s8763_s21, %s43_s21  }
   0x5   : > { %vm1079_vm2 = vcmask 1044480   ;;  %vm1061_vm3 = vcmask 1046528   ;;  %vm1070_vm4 = vcmask 1045504   ;;  %s8680_s15 = smov 32   ;;  %s8681_s20 = smov 64   ;;  %vm1068_vm5 = vcmask 523520  }
   0x6   : > { %7835 = vmatprep.subr.bf16.mxu0 %v8770_v6  ;;  %8592 = vmatprep.subr.bf16.mxu1 %v8770_v6  ;;  %s8788_s22 = scalar_lea.vmem %s11916_s0, %s44_s1  ;;  %s9005_s29 = scalar_lea.vmem [#allocation2], %s44_s1  ;;  %vm1077_vm6 = vcmask 785920   ;;  %vm1086_vm7 = vcmask 1048320  }
   0x7   : > { %7837 = vmatpush3.bf16.msra.mxu0 %v8770_v6  ;;  %8594 = vmatpush3.bf16.msra.mxu1 %v8770_v6  ;;  %v46_v8 = vld [vmem:[%s8788_s22] sm:$0xff]  ;;  %v47_v10 = vld [vmem:[%s8788_s22 + $0x8] sm:$0xff]  ;;  %v48_v12 = vld [vmem:[%s8788_s22 + $0x10] sm:$0xff]  ;;  %s7535_s1 = smul.u32 192, %s8676_s21 }
   0x8   : > { %7839 = vmatprep.subr.bf16.mxu0 %v8774_v7  ;;  %8593 = vmatprep.subr.bf16.mxu1 %v8774_v7  ;;  %v54_v9 = vld [vmem:[%s8788_s22 + $0x40] sm:$0xff]  ;;  %v55_v11 = vld [vmem:[%s8788_s22 + $0x48] sm:$0xff]  ;;  %v56_v13 = vld [vmem:[%s8788_s22 + $0x50] sm:$0xff] }
   0x9   : > { %7702 = vmatprep.mubr.msk.f32.mxu0 %vm70_vm0, %v46_v8  ;;  %7714 = vmatprep.mubr.msk.f32.mxu1 %vm70_vm0, %v54_v9  ;;  %v49_v14 = vld [vmem:[%s8788_s22 + $0x18] sm:$0xff]  ;;  %v50_v16 = vld [vmem:[%s8788_s22 + $0x20] sm:$0xff]  ;;  %v51_v18 = vld [vmem:[%s8788_s22 + $0x28] sm:$0xff]  ;;  %s9090_s13 = scalar_lea.vmem [#allocation3], %s7535_s1 }
   0xa   : > { %v57_v15 = vld [vmem:[%s8788_s22 + $0x58] sm:$0xff]  ;;  %v58_v17 = vld [vmem:[%s8788_s22 + $0x60] sm:$0xff]  ;;  %v59_v19 = vld [vmem:[%s8788_s22 + $0x68] sm:$0xff] }
   0xb   : > { %7841 = vmatpush3.bf16.msra.mxu0 %v8774_v7  ;;  %8595 = vmatpush3.bf16.msra.mxu1 %v8774_v7  ;;  %v52_v20 = vld [vmem:[%s8788_s22 + $0x30] sm:$0xff]  ;;  %v53_v22 = vld [vmem:[%s8788_s22 + $0x38] sm:$0xff]  ;;  %v62_v24 = vld [vmem:[%s8788_s22 + $0x80] sm:$0xff] }
   0xc   : > { %7843 = vmatprep.subr.bf16.mxu1 %v8770_v6  ;;  %7851 = vmatprep.subr.bf16.mxu0 %v8770_v6  ;;  %v60_v21 = vld [vmem:[%s8788_s22 + $0x70] sm:$0xff]  ;;  %v61_v23 = vld [vmem:[%s8788_s22 + $0x78] sm:$0xff]  ;;  %v544_v25 = vld [vmem:[%s8788_s22 + $0x120] sm:$0xff] }
   0xd   : > { %v63_v26 = vld [vmem:[%s8788_s22 + $0x88] sm:$0xff]  ;;  %v299_v28 = vld [vmem:[%s8788_s22 + $0x90] sm:$0xff]  ;;  %v300_v30 = vld [vmem:[%s8788_s22 + $0x98] sm:$0xff] }
   0xe   : > { %7703 = vmatmul.mubr.msk.f32.vlgmr.msra.gmra.mrb[0].mxu0 %vm70_vm0, %v47_v10  ;;  %7715 = vmatmul.mubr.msk.f32.vlgmr.msra.gmra.mrb[0].mxu1 %vm70_vm0, %v55_v11  ;;  %v545_v27 = vld [vmem:[%s8788_s22 + $0x128] sm:$0xff]  ;;  %v546_v29 = vld [vmem:[%s8788_s22 + $0x130] sm:$0xff]  ;;  %v547_v31 = vld [vmem:[%s8788_s22 + $0x138] sm:$0xff] }
   0xf   : > { %7845 = vmatpush3.bf16.msra.mxu1 %v8770_v6  ;;  %7705 = vmatprep.mubr.msk.f32.mxu0 %vm70_vm0, %v48_v12  ;;  %v301_v32 = vld [vmem:[%s8788_s22 + $0xa0] sm:$0xff]  ;;  %v302_v34 = vld [vmem:[%s8788_s22 + $0xa8] sm:$0xff]  ;;  %v303_v36 = vld [vmem:[%s8788_s22 + $0xb0] sm:$0xff] }
  0x10   : > { %7717 = vmatprep.mubr.msk.f32.mxu1 %vm70_vm0, %v56_v13  ;;  %7853 = vmatpush3.bf16.msra.mxu0 %v8770_v6  ;;  %v548_v33 = vld [vmem:[%s8788_s22 + $0x140] sm:$0xff]  ;;  %v549_v35 = vld [vmem:[%s8788_s22 + $0x148] sm:$0xff]  ;;  %v550_v37 = vld [vmem:[%s8788_s22 + $0x150] sm:$0xff] }
  0x11   : > { %7847 = vmatprep.subr.bf16.mxu1 %v8774_v7  ;;  %7855 = vmatprep.subr.bf16.mxu0 %v8774_v7  ;;  %v304_v38 = vld [vmem:[%s8788_s22 + $0xb8] sm:$0xff]  ;;  %v305_v40 = vld [vmem:[%s8788_s22 + $0xc0] sm:$0xff]  ;;  %v306_v42 = vld [vmem:[%s8788_s22 + $0xc8] sm:$0xff] }
  0x12   : > { %7706 = vmatmul.mubr.msk.f32.gmra.mrb[2].mxu0 %vm70_vm0, %v49_v14  ;;  %7718 = vmatmul.mubr.msk.f32.gmra.mrb[2].mxu1 %vm70_vm0, %v57_v15  ;;  %v551_v39 = vld [vmem:[%s8788_s22 + $0x158] sm:$0xff]  ;;  %v552_v41 = vld [vmem:[%s8788_s22 + $0x160] sm:$0xff]  ;;  %v553_v43 = vld [vmem:[%s8788_s22 + $0x168] sm:$0xff] }
  0x13   : > { %7708 = vmatprep.mubr.msk.f32.mxu0 %vm70_vm0, %v50_v16  ;;  %7720 = vmatprep.mubr.msk.f32.mxu1 %vm70_vm0, %v58_v17  ;;  %v307_v44 = vld [vmem:[%s8788_s22 + $0xd0] sm:$0xff]  ;;  %v308_v46 = vld [vmem:[%s8788_s22 + $0xd8] sm:$0xff]  ;;  %v309_v48 = vld [vmem:[%s8788_s22 + $0xe0] sm:$0xff] }
  0x14   : > { %7849 = vmatpush3.bf16.msra.mxu1 %v8774_v7  ;;  %7857 = vmatpush3.bf16.msra.mxu0 %v8774_v7  ;;  %v554_v45 = vld [vmem:[%s8788_s22 + $0x170] sm:$0xff]  ;;  %v555_v47 = vld [vmem:[%s8788_s22 + $0x178] sm:$0xff]  ;;  %v556_v49 = vld [vmem:[%s8788_s22 + $0x180] sm:$0xff] }
  0x15   : > { %7859 = vmatprep.subr.bf16.mxu1 %v8770_v6  ;;  %v310_v50 = vld [vmem:[%s8788_s22 + $0xe8] sm:$0xff]  ;;  %v311_v52 = vld [vmem:[%s8788_s22 + $0xf0] sm:$0xff]  ;;  %v312_v54 = vld [vmem:[%s8788_s22 + $0xf8] sm:$0xff] }
  0x16   : > { %7709 = vmatmul.mubr.msk.f32.gmra.mrb[4].mxu0 %vm70_vm0, %v51_v18  ;;  %7721 = vmatmul.mubr.msk.f32.gmra.mrb[4].mxu1 %vm70_vm0, %v59_v19  ;;  %v557_v51 = vld [vmem:[%s8788_s22 + $0x188] sm:$0xff]  ;;  %v558_v53 = vld [vmem:[%s8788_s22 + $0x190] sm:$0xff]  ;;  %v559_v55 = vld [vmem:[%s8788_s22 + $0x198] sm:$0xff] }
  0x17   : > { %7711 = vmatprep.mubr.msk.f32.mxu0 %vm70_vm0, %v52_v20  ;;  %7723 = vmatprep.mubr.msk.f32.mxu1 %vm70_vm0, %v60_v21  ;;  %v313_v56 = vld [vmem:[%s8788_s22 + $0x100] sm:$0xff]  ;;  %v314_v58 = vld [vmem:[%s8788_s22 + $0x108] sm:$0xff]  ;;  %v315_v60 = vld [vmem:[%s8788_s22 + $0x110] sm:$0xff] }
  0x18   : > { %v560_v57 = vld [vmem:[%s8788_s22 + $0x1a0] sm:$0xff]  ;;  %v561_v59 = vld [vmem:[%s8788_s22 + $0x1a8] sm:$0xff]  ;;  %v316_v61 = vld [vmem:[%s8788_s22 + $0x118] sm:$0xff] }
  0x19   : > { %v789_v62 = vld [vmem:[%s8788_s22 + $0x1b0] sm:$0xff]  ;;  %v790_v63 = vld [vmem:[%s8788_s22 + $0x1b8] sm:$0xff]  ;;  %v795_v10 = vld [vmem:[%s8788_s22 + $0x1e0] sm:$0xff] }
  0x1a   : > { %7712 = vmatmul.mubr.msk.f32.gmra.mrb[6].mxu0 %vm70_vm0, %v53_v22  ;;  %7724 = vmatmul.mubr.msk.f32.gmra.mrb[6].mxu1 %vm70_vm0, %v61_v23  ;;  %v793_v8 = vld [vmem:[%s8788_s22 + $0x1d0] sm:$0xff]  ;;  %v794_v9 = vld [vmem:[%s8788_s22 + $0x1d8] sm:$0xff]  ;;  %v796_v11 = vld [vmem:[%s8788_s22 + $0x1e8] sm:$0xff] }
  0x1b   : > { %7726 = vmatprep.mubr.msk.f32.mxu1 %vm70_vm0, %v62_v24  ;;  %7772 = vmatprep.mubr.msk.f32.mxu0 %vm70_vm0, %v544_v25  ;;  %v797_v12 = vld [vmem:[%s8788_s22 + $0x1f0] sm:$0xff]  ;;  %v798_v13 = vld [vmem:[%s8788_s22 + $0x1f8] sm:$0xff]  ;;  %v799_v14 = vld [vmem:[%s8788_s22 + $0x200] sm:$0xff]  ;;  %v8678_v25 = vmov 0.0|0.0  }
  0x1c   : > { %v800_v15 = vld [vmem:[%s8788_s22 + $0x208] sm:$0xff]  ;;  %v801_v16 = vld [vmem:[%s8788_s22 + $0x210] sm:$0xff]  ;;  %v802_v17 = vld [vmem:[%s8788_s22 + $0x218] sm:$0xff]  ;;  %7866 = vmatprep.subr.bf16.mxu0 %v8678_v25 }
  0x1d   : > { %v803_v18 = vld [vmem:[%s8788_s22 + $0x220] sm:$0xff]  ;;  %v804_v19 = vld [vmem:[%s8788_s22 + $0x228] sm:$0xff]  ;;  %v805_v20 = vld [vmem:[%s8788_s22 + $0x230] sm:$0xff] }
  0x1e   : > { %7727 = vmatmul.mubr.msk.f32.gmra.mrb[8].mxu1 %vm70_vm0, %v63_v26  ;;  %7773 = vmatmul.mubr.msk.f32.vlgmr.msra.gmra.mrb[8].mxu0 %vm70_vm0, %v545_v27  ;;  %v806_v21 = vld [vmem:[%s8788_s22 + $0x238] sm:$0xff]  ;;  %v6900_v22 = vld [vmem:[%s11919_s3 + $0xa0] sm:$0xff]  ;;  %v6901_v23 = vld [vmem:[%s11919_s3 + $0xa8] sm:$0xff] }
  0x1f   : > { %7737 = vmatprep.mubr.msk.f32.mxu1 %vm70_vm0, %v299_v28  ;;  %7775 = vmatprep.mubr.msk.f32.mxu0 %vm70_vm0, %v546_v29  ;;  %v6902_v24 = vld [vmem:[%s11919_s3 + $0xb0] sm:$0xff]  ;;  %v7867_v26 = vpack.c.bf16 %v6901_v23, %v6900_v22  ;;  %v6903_v27 = vld [vmem:[%s11919_s3 + $0xb8] sm:$0xff]  ;;  %v6904_v29 = vld [vmem:[%s11919_s3 + $0xc0] sm:$0xff] }
  0x20   : > { %v7870_v28 = vpack.c.bf16 %v6903_v27, %v6902_v24 }
  0x21   : > { %7868 = vmatpush1.bf16.msra.mxu0 %v7867_v26 }
  0x22   : > { %7738 = vmatmul.mubr.msk.f32.vlgmr.msra.gmra.mrb[10].mxu1 %vm70_vm0, %v300_v30  ;;  %7776 = vmatmul.mubr.msk.f32.gmra.mrb[10].mxu0 %vm70_vm0, %v547_v31  ;;  %v6905_v30 = vld [vmem:[%s11919_s3 + $0xc8] sm:$0xff] }
  0x23   : > { %7740 = vmatprep.mubr.msk.f32.mxu1 %vm70_vm0, %v301_v32  ;;  %7778 = vmatprep.mubr.msk.f32.mxu0 %vm70_vm0, %v548_v33  ;;  %v7873_v31 = vpack.c.bf16 %v6905_v30, %v6904_v29  ;;  %v6906_v32 = vld [vmem:[%s11919_s3 + $0xd0] sm:$0xff]  ;;  %v6907_v33 = vld [vmem:[%s11919_s3 + $0xd8] sm:$0xff] }
  0x24   : > { %7861 = vmatpush3.bf16.msra.mxu1 %v8770_v6  ;;  %v791_v6 = vld [vmem:[%s8788_s22 + $0x1c0] sm:$0xff]  ;;  %7869 = vmatprep.subr.bf16.mxu0 %v8678_v25 }
  0x25   : > { %7863 = vmatprep.subr.bf16.mxu1 %v8774_v7  ;;  %7871 = vmatpush1.bf16.msra.mxu0 %v7870_v28 }
  0x26   : > { %7741 = vmatmul.mubr.msk.f32.gmra.mrb[12].mxu1 %vm70_vm0, %v302_v34  ;;  %7779 = vmatmul.mubr.msk.f32.gmra.mrb[12].mxu0 %vm70_vm0, %v549_v35  ;;  %v7876_v34 = vpack.c.bf16 %v6907_v33, %v6906_v32  ;;  %v6908_v35 = vld [vmem:[%s11919_s3 + $0xe0] sm:$0xff] }
  0x27   : > { %7743 = vmatprep.mubr.msk.f32.mxu1 %vm70_vm0, %v303_v36  ;;  %7781 = vmatprep.mubr.msk.f32.mxu0 %vm70_vm0, %v550_v37  ;;  %v6909_v36 = vld [vmem:[%s11919_s3 + $0xe8] sm:$0xff] }
  0x28   : > { %7865 = vmatpush3.bf16.msra.mxu1 %v8774_v7  ;;  %v792_v7 = vld [vmem:[%s8788_s22 + $0x1c8] sm:$0xff]  ;;  %7872 = vmatprep.subr.bf16.mxu0 %v8678_v25  ;;  %v7879_v37 = vpack.c.bf16 %v6909_v36, %v6908_v35 }
  0x29   : > { %7896 = vmatprep.subr.bf16.mxu1 %v8678_v25  ;;  %7874 = vmatpush1.bf16.msra.mxu0 %v7873_v31 }
  0x2a   : > { %7744 = vmatmul.mubr.msk.f32.gmra.mrb[14].mxu1 %vm70_vm0, %v304_v38  ;;  %7782 = vmatmul.mubr.msk.f32.gmra.mrb[14].mxu0 %vm70_vm0, %v551_v39  ;;  %v6910_v38 = vld [vmem:[%s11919_s3 + $0xf0] sm:$0xff]  ;;  %v6911_v39 = vld [vmem:[%s11919_s3 + $0xf8] sm:$0xff] }
  0x2b   : > { %7746 = vmatprep.mubr.msk.f32.mxu1 %vm70_vm0, %v305_v40  ;;  %7784 = vmatprep.mubr.msk.f32.mxu0 %vm70_vm0, %v552_v41  ;;  %v7882_v40 = vpack.c.bf16 %v6911_v39, %v6910_v38  ;;  %v6912_v41 = vld [vmem:[%s11919_s3 + $0x100] sm:$0xff] }
  0x2c   : > { %7875 = vmatprep.subr.bf16.mxu0 %v8678_v25 }
  0x2d   : > { %7877 = vmatpush1.bf16.msra.mxu0 %v7876_v34 }
  0x2e   : > { %7747 = vmatmul.mubr.msk.f32.gmra.mrb[16].mxu1 %vm70_vm0, %v306_v42  ;;  %7785 = vmatmul.mubr.msk.f32.gmra.mrb[16].mxu0 %vm70_vm0, %v553_v43  ;;  %v6913_v42 = vld [vmem:[%s11919_s3 + $0x108] sm:$0xff] }
  0x2f   : > { %7749 = vmatprep.mubr.msk.f32.mxu1 %vm70_vm0, %v307_v44  ;;  %7787 = vmatprep.mubr.msk.f32.mxu0 %vm70_vm0, %v554_v45  ;;  %v7885_v43 = vpack.c.bf16 %v6913_v42, %v6912_v41 }
  0x30   : > { %7878 = vmatprep.subr.bf16.mxu0 %v8678_v25 }
  0x31   : > { %7880 = vmatpush1.bf16.msra.mxu0 %v7879_v37 }
  0x32   : > { %7750 = vmatmul.mubr.msk.f32.gmra.mrb[18].mxu1 %vm70_vm0, %v308_v46  ;;  %7788 = vmatmul.mubr.msk.f32.gmra.mrb[18].mxu0 %vm70_vm0, %v555_v47 }
  0x33   : > { %7752 = vmatprep.mubr.msk.f32.mxu1 %vm70_vm0, %v309_v48  ;;  %7790 = vmatprep.mubr.msk.f32.mxu0 %vm70_vm0, %v556_v49 }
  0x34   : > { %7881 = vmatprep.subr.bf16.mxu0 %v8678_v25 }
  0x35   : > { %7883 = vmatpush1.bf16.msra.mxu0 %v7882_v40 }
  0x36   : > { %7753 = vmatmul.mubr.msk.f32.gmra.mrb[20].mxu1 %vm70_vm0, %v310_v50  ;;  %7791 = vmatmul.mubr.msk.f32.gmra.mrb[20].mxu0 %vm70_vm0, %v557_v51 }
  0x37   : > { %7755 = vmatprep.mubr.msk.f32.mxu1 %vm70_vm0, %v311_v52  ;;  %7793 = vmatprep.mubr.msk.f32.mxu0 %vm70_vm0, %v558_v53 }
  0x38   : > { %7884 = vmatprep.subr.bf16.mxu0 %v8678_v25 }
  0x39   : > { %7886 = vmatpush1.bf16.msra.mxu0 %v7885_v43 }
  0x3a   : > { %7756 = vmatmul.mubr.msk.f32.gmra.mrb[22].mxu1 %vm70_vm0, %v312_v54  ;;  %7794 = vmatmul.mubr.msk.f32.gmra.mrb[22].mxu0 %vm70_vm0, %v559_v55 }
  0x3b   : > { %7758 = vmatprep.mubr.msk.f32.mxu1 %vm70_vm0, %v313_v56  ;;  %7796 = vmatprep.mubr.msk.f32.mxu0 %vm70_vm0, %v560_v57 }
  0x3c   : > { %7887 = vmatprep.subr.bf16.mxu0 %v8678_v25 }
  0x3e   : > { %7759 = vmatmul.mubr.msk.f32.gmra.mrb[24].mxu1 %vm70_vm0, %v314_v58  ;;  %7797 = vmatmul.mubr.msk.f32.gmra.mrb[24].mxu0 %vm70_vm0, %v561_v59 }
  0x3f   : > { %7761 = vmatprep.mubr.msk.f32.mxu1 %vm70_vm0, %v315_v60 }
  0x42   : > { %7762 = vmatmul.mubr.msk.f32.gmra.mrb[26].mxu1 %vm70_vm0, %v316_v61 }
  0x43   : > { %7807 = vmatprep.mubr.msk.f32.mxu1 %vm70_vm0, %v789_v62 }
  0x46   : > { %7808 = vmatmul.mubr.msk.f32.vlgmr.msra.gmra.mrb[28].mxu1 %vm70_vm0, %v790_v63 }
  0x47   : > { %7810 = vmatprep.mubr.msk.f32.mxu1 %vm70_vm0, %v791_v6 }
  0x4a   : > { %7811 = vmatmul.mubr.msk.f32.gmra.mrb[30].mxu1 %vm70_vm0, %v792_v7 }
  0x4b   : > { %7813 = vmatprep.mubr.msk.f32.mxu1 %vm70_vm0, %v793_v8 }
  0x4e   : > { %7814 = vmatmul.mubr.msk.f32.gmra.mrb[32].mxu1 %vm70_vm0, %v794_v9 }
  0x4f   : > { %7816 = vmatprep.mubr.msk.f32.mxu1 %vm70_vm0, %v795_v10 }
  0x52   : > { %7817 = vmatmul.mubr.msk.f32.gmra.mrb[34].mxu1 %vm70_vm0, %v796_v11 }
  0x53   : > { %7819 = vmatprep.mubr.msk.f32.mxu1 %vm70_vm0, %v797_v12 }
  0x56   : > { %7820 = vmatmul.mubr.msk.f32.gmra.mrb[36].mxu1 %vm70_vm0, %v798_v13 }
  0x57   : > { %7822 = vmatprep.mubr.msk.f32.mxu1 %vm70_vm0, %v799_v14 }
  0x5a   : > { %7823 = vmatmul.mubr.msk.f32.gmra.mrb[38].mxu1 %vm70_vm0, %v800_v15 }
  0x5b   : > { %7825 = vmatprep.mubr.msk.f32.mxu1 %vm70_vm0, %v801_v16 }
  0x5e   : > { %7826 = vmatmul.mubr.msk.f32.gmra.mrb[40].mxu1 %vm70_vm0, %v802_v17 }
  0x5f   : > { %7828 = vmatprep.mubr.msk.f32.mxu1 %vm70_vm0, %v803_v18 }
  0x62   : > { %7829 = vmatmul.mubr.msk.f32.gmra.mrb[42].mxu1 %vm70_vm0, %v804_v19 }
  0x63   : > { %7831 = vmatprep.mubr.msk.f32.mxu1 %vm70_vm0, %v805_v20 }
  0x66   : > { %7832 = vmatmul.mubr.msk.f32.gmra.mrb[44].mxu1 %vm70_vm0, %v806_v21 }
  0xe1   : > { %v7716_v44 = vpop.f32.mrb[0].mxu1  ;;  %v7704_v45 = vpop.f32.mrb[0].mxu0 }
  0xe2   : > { %v237_v46 = vadd.f32 %v7716_v44, %v8756_v4  ;;  %v231_v47 = vpop.f32.mrb[1].mxu1  ;;  %v197_v48 = vadd.f32 %v7704_v45, %v8756_v4  ;;  %v191_v49 = vpop.f32.mrb[1].mxu0 }
  0xe3   : > { %v232_v50 = vadd.f32 %v8756_v4, %v231_v47  ;;  %v192_v51 = vadd.f32 %v8756_v4, %v191_v49 }
  0xe4   : > { %290 = vst [vmem:[%s9005_s29 + $0x48] sm:$0xff] %v237_v46  ;;  %282 = vst [vmem:[%s9005_s29 + $0x8] sm:$0xff] %v197_v48 }
  0xe5   : > { %289 = vst [vmem:[%s9005_s29 + $0x40] sm:$0xff] %v232_v50  ;;  %v7719_v52 = vpop.f32.mrb[2].mxu1  ;;  %281 = vst [vmem:[%s9005_s29] sm:$0xff] %v192_v51  ;;  %v7707_v53 = vpop.f32.mrb[2].mxu0 }
  0xe6   : > { %v247_v54 = vadd.f32 %v7719_v52, %v8756_v4  ;;  %v241_v55 = vpop.f32.mrb[3].mxu1  ;;  %v207_v56 = vadd.f32 %v7707_v53, %v8756_v4  ;;  %v201_v57 = vpop.f32.mrb[3].mxu0 }
  0xe7   : > { %v242_v58 = vadd.f32 %v8756_v4, %v241_v55  ;;  %v202_v59 = vadd.f32 %v8756_v4, %v201_v57 }
  0xe8   : > { %292 = vst [vmem:[%s9005_s29 + $0x58] sm:$0xff] %v247_v54  ;;  %284 = vst [vmem:[%s9005_s29 + $0x18] sm:$0xff] %v207_v56  ;;  %v6914_v56 = vld [vmem:[%s11919_s3 + $0x110] sm:$0xff] }
  0xe9   : > { %291 = vst [vmem:[%s9005_s29 + $0x50] sm:$0xff] %v242_v58  ;;  %283 = vst [vmem:[%s9005_s29 + $0x10] sm:$0xff] %v202_v59  ;;  %v7710_v60 = vpop.f32.mrb[4].mxu0  ;;  %v7722_v61 = vpop.f32.mrb[4].mxu1 }
  0xea   : > { %v217_v62 = vadd.f32 %v7710_v60, %v8756_v4  ;;  %v257_v63 = vadd.f32 %v7722_v61, %v8756_v4  ;;  %v211_v6 = vpop.f32.mrb[5].mxu0  ;;  %v251_v7 = vpop.f32.mrb[5].mxu1 }
  0xeb   : > { %v212_v8 = vadd.f32 %v8756_v4, %v211_v6  ;;  %v252_v9 = vadd.f32 %v8756_v4, %v251_v7 }
  0xec   : > { %286 = vst [vmem:[%s9005_s29 + $0x28] sm:$0xff] %v217_v62  ;;  %294 = vst [vmem:[%s9005_s29 + $0x68] sm:$0xff] %v257_v63  ;;  %v6813_v12 = vld [vmem:[%s9005_s29 + $0x40] ss:$2 sm:$0xf]  ;;  %v6915_v63 = vld [vmem:[%s11919_s3 + $0x118] sm:$0xff] }
  0xed   : > { %285 = vst [vmem:[%s9005_s29 + $0x20] sm:$0xff] %v212_v8  ;;  %293 = vst [vmem:[%s9005_s29 + $0x60] sm:$0xff] %v252_v9  ;;  %v7713_v10 = vpop.f32.mrb[6].mxu0  ;;  %v7725_v11 = vpop.f32.mrb[6].mxu1  ;;  %v1034_v13 = vld [vmem:[%s9005_s29] ss:$2 sm:$0xff] }
  0xee   : > { %v6805_v14 = vld [vmem:[%s9005_s29 + $0x1] ss:$2 sm:$0xff]  ;;  %v227_v15 = vadd.f32 %v7713_v10, %v8756_v4  ;;  %v267_v16 = vadd.f32 %v7725_v11, %v8756_v4  ;;  %v221_v17 = vpop.f32.mrb[7].mxu0  ;;  %v261_v18 = vpop.f32.mrb[7].mxu1  ;;  %v7888_v10 = vpack.c.bf16 %v6915_v63, %v6914_v56 }
  0xef   : > { %v6815_v19 = vld [vmem:[%s9005_s29 + $0x41] ss:$2 sm:$0xf]  ;;  %v222_v20 = vadd.f32 %v8756_v4, %v221_v17  ;;  %v262_v21 = vadd.f32 %v8756_v4, %v261_v18  ;;  %v6817_v22 = vld [vmem:[%s9005_s29 + $0x58] ss:$2 sm:$0xf]  ;;  %v1041_v37 = vmax.f32 %v1034_v13, %v6805_v14 }
  0xf0   : > { %v6819_v23 = vld [vmem:[%s9005_s29 + $0x59] ss:$2 sm:$0xf]  ;;  %v6804_v24 = vld [vmem:[%s9005_s29 + $0x10] ss:$2 sm:$0xf]  ;;  %v1103_v27 = vmax.f32 %v6813_v12, %v6815_v19  ;;  %7889 = vmatpush1.bf16.msra.mxu0 %v7888_v10 }
  0xf1   : > { %v6806_v26 = vld [vmem:[%s9005_s29 + $0x11] ss:$2 sm:$0xf]  ;;  %288 = vst [vmem:[%s9005_s29 + $0x38] sm:$0xff] %v227_v15  ;;  %296 = vst [vmem:[%s9005_s29 + $0x78] sm:$0xff] %v267_v16  ;;  %v1113_v28 = vmax.f32 %v6817_v22, %v6819_v23  ;;  %v7728_v29 = vpop.f32.mrb[8].mxu1  ;;  %7890 = vmatprep.subr.bf16.mxu0 %v8678_v25 }
  0xf2   : > { %287 = vst [vmem:[%s9005_s29 + $0x30] sm:$0xff] %v222_v20  ;;  %295 = vst [vmem:[%s9005_s29 + $0x70] sm:$0xff] %v262_v21  ;;  %v7774_v30 = vpop.f32.mrb[8].mxu0  ;;  %v1042_v31 = vmax.f32 %v6804_v24, %v6806_v26  ;;  %v277_v32 = vadd.f32 %v7728_v29, %v8756_v4  ;;  %v271_v33 = vpop.f32.mrb[9].mxu1  ;;  %v6816_v48 = vld [vmem:[%s9005_s29 + $0x48] ss:$2 sm:$0xff] }
  0xf3   : > { %v688_v34 = vadd.f32 %v7774_v30, %v8756_v4  ;;  %v682_v35 = vpop.f32.mrb[9].mxu0  ;;  %v9046_v36 = vmax.f32 %v1103_v27, %v1113_v28  ;;  %v6808_v38 = vld [vmem:[%s9005_s29 + $0x28] ss:$2 sm:$0xf]  ;;  %v272_v40 = vadd.f32 %v8756_v4, %v271_v33  ;;  %v6818_v54 = vld [vmem:[%s9005_s29 + $0x49] ss:$2 sm:$0xff] }
  0xf4   : > { %v6810_v39 = vld [vmem:[%s9005_s29 + $0x29] ss:$2 sm:$0xf]  ;;  %v683_v41 = vadd.f32 %v8756_v4, %v682_v35  ;;  %v6807_v43 = vld [vmem:[%s9005_s29 + $0x18] ss:$2 sm:$0xff]  ;;  %298 = vst [vmem:[%s9005_s29 + $0x88] sm:$0xff] %v277_v32  ;;  %v1112_v14 = vmax.f32 %v6816_v48, %v6818_v54 }
  0xf5   : > { %v1052_v42 = vmax.f32 %v6808_v38, %v6810_v39  ;;  %v6809_v44 = vld [vmem:[%s9005_s29 + $0x19] ss:$2 sm:$0xff]  ;;  %772 = vst [vmem:[%s9005_s29 + $0x128] sm:$0xff] %v688_v34  ;;  %297 = vst [vmem:[%s9005_s29 + $0x80] sm:$0xff] %v272_v40  ;;  %v7739_v46 = vpop.f32.mrb[10].mxu1  ;;  %v7777_v47 = vpop.f32.mrb[10].mxu0 }
  0xf6   : > { %v1051_v45 = vmax.f32 %v6807_v43, %v6809_v44  ;;  %771 = vst [vmem:[%s9005_s29 + $0x120] sm:$0xff] %v683_v41  ;;  %v443_v50 = vadd.f32 %v7739_v46, %v8756_v4  ;;  %v437_v51 = vpop.f32.mrb[11].mxu1  ;;  %v698_v52 = vadd.f32 %v7777_v47, %v8756_v4  ;;  %v692_v53 = vpop.f32.mrb[11].mxu0  ;;  %v1134_v55 = vrot.slane %v9046_v36, 3  ;;  %v9074_v61 = vld [vmem:[%s9005_s29 + $0x60] ss:$2 sm:$0xff] }
  0xf7   : > { %v9059_v49 = vmax.f32 %v1042_v31, %v1052_v42  ;;  %v438_v58 = vadd.f32 %v8756_v4, %v437_v51  ;;  %v693_v59 = vadd.f32 %v8756_v4, %v692_v53  ;;  %v1141_v60 = vrot.slane %v9046_v36, 4  ;;  %v9077_v62 = vld [vmem:[%s9005_s29 + $0x61] ss:$2 sm:$0xff] }
  0xf8   : > { %v9068_v57 = vmax.f32 %v1041_v37, %v1051_v45  ;;  %527 = vst [vmem:[%s9005_s29 + $0x98] sm:$0xff] %v443_v50  ;;  %774 = vst [vmem:[%s9005_s29 + $0x138] sm:$0xff] %v698_v52  ;;  %v1120_v8 = vrot.slane %v9046_v36, 1  ;;  %v1127_v22 = vrot.slane %v9046_v36, 2  ;;  %v1153_v29 = vmax.f32 %v9074_v61, %v9077_v62 }
  0xf9   : > { %v6812_v6 = vld [vmem:[%s9005_s29 + $0x30] ss:$2 sm:$0xff]  ;;  %v6814_v7 = vld [vmem:[%s9005_s29 + $0x31] ss:$2 sm:$0xff]  ;;  %v1090_v9 = vrot.slane %v9059_v49, 4  ;;  %526 = vst [vmem:[%s9005_s29 + $0x90] sm:$0xff] %v438_v58 }
  0xfa   : > { %1058 = vst.msk [vmem:[%s9090_s13] sm:$0xff] %vm70_vm0, %v9068_v57  ;;  %773 = vst [vmem:[%s9005_s29 + $0x130] sm:$0xff] %v693_v59  ;;  %v7742_v11 = vpop.f32.mrb[12].mxu1  ;;  %v7780_v12 = vpop.f32.mrb[12].mxu0  ;;  %v1102_v13 = vmax.f32 %v6812_v6, %v6814_v7  ;;  %v1089_v16 = vrot.slane %v9068_v57, 4 }
  0xfb   : > { %v6821_v15 = vld [vmem:[%s9005_s29 + $0x70] ss:$2 sm:$0xf]  ;;  %v453_v17 = vadd.f32 %v7742_v11, %v8756_v4  ;;  %v708_v18 = vadd.f32 %v7780_v12, %v8756_v4  ;;  %v447_v19 = vpop.f32.mrb[13].mxu1  ;;  %v702_v20 = vpop.f32.mrb[13].mxu0 }
  0xfc   : > { %v6823_v21 = vld [vmem:[%s9005_s29 + $0x71] ss:$2 sm:$0xf]  ;;  %v448_v23 = vadd.f32 %v8756_v4, %v447_v19  ;;  %v703_v24 = vadd.f32 %v8756_v4, %v702_v20  ;;  %v1114_v26 = vmax.f32 %v1102_v13, %v1112_v14  ;;  %v6825_v27 = vld [vmem:[%s9005_s29 + $0x88] ss:$2 sm:$0xf]  ;;  %v1091_v34 = vsel %vm1088_vm1, %v1089_v16, %v1090_v9 }
  0xfd   : > { %v6827_v28 = vld [vmem:[%s9005_s29 + $0x89] ss:$2 sm:$0xf]  ;;  %529 = vst [vmem:[%s9005_s29 + $0xa8] sm:$0xff] %v453_v17  ;;  %776 = vst [vmem:[%s9005_s29 + $0x148] sm:$0xff] %v708_v18  ;;  %v1154_v30 = vmax.f32 %v6821_v15, %v6823_v21  ;;  %v7745_v35 = vpop.f32.mrb[14].mxu1 }
  0xfe   : > { %v6824_v31 = vld [vmem:[%s9005_s29 + $0x78] ss:$2 sm:$0xff]  ;;  %v6826_v32 = vld [vmem:[%s9005_s29 + $0x79] ss:$2 sm:$0xff]  ;;  %v1164_v33 = vmax.f32 %v6825_v27, %v6827_v28  ;;  %528 = vst [vmem:[%s9005_s29 + $0xa0] sm:$0xff] %v448_v23  ;;  %775 = vst [vmem:[%s9005_s29 + $0x140] sm:$0xff] %v703_v24  ;;  %v463_v42 = vadd.f32 %v7745_v35, %v8756_v4 }
  0xff   : > { %v1133_v37 = vrot.slane %v1114_v26, 3  ;;  %v1140_v38 = vrot.slane %v1114_v26, 4  ;;  %1116 = vst.msk [vmem:[%s9090_s13 + $0x10] sm:$0xff] %vm70_vm0, %v1114_v26  ;;  %v1119_v39 = vrot.slane %v1114_v26, 1  ;;  %v7783_v40 = vpop.f32.mrb[14].mxu0  ;;  %v1163_v41 = vmax.f32 %v6824_v31, %v6826_v32  ;;  %1093 = vst.msk [vmem:[%s9090_s13 + $0x8] sm:$0xff] %vm70_vm0, %v1091_v34 }
 0x100   : > { %v457_v43 = vpop.f32.mrb[15].mxu1  ;;  %v718_v44 = vadd.f32 %v7783_v40, %v8756_v4  ;;  %v712_v45 = vpop.f32.mrb[15].mxu0  ;;  %v9123_v46 = vmax.f32 %v1154_v30, %v1164_v33  ;;  %v1126_v47 = vrot.slane %v1114_v26, 2  ;;  %v9132_v53 = vld [vmem:[%s9005_s29 + $0x120] ss:$2 sm:$0xff]  ;;  %531 = vst [vmem:[%s9005_s29 + $0xb8] sm:$0xff] %v463_v42 }
 0x101   : > { %v458_v48 = vadd.f32 %v8756_v4, %v457_v43  ;;  %v1135_v50 = vsel %vm1079_vm2, %v1133_v37, %v1134_v55  ;;  %v1142_v51 = vsel %vm1088_vm1, %v1140_v38, %v1141_v60  ;;  %v1121_v52 = vsel %vm1061_vm3, %v1119_v39, %v1120_v8  ;;  %v9146_v58 = vld [vmem:[%s9005_s29 + $0x130] ss:$2 sm:$0xf]  ;;  %v7748_v59 = vpop.f32.mrb[16].mxu1  ;;  %v7786_v60 = vpop.f32.mrb[16].mxu0  ;;  %v9169_v18 = vld [vmem:[%s11919_s3 + $0x120] sm:$0xff] }
 0x102   : > { %1144 = vst.msk [vmem:[%s9090_s13 + $0x18] sm:$0xff] %vm70_vm0, %v1142_v51  ;;  %1136 = vrot.lane.b32.xlu1 %v1135_v50, %s8679_s14  ;;  %1122 = vrot.lane.b32.xlu0 %v1121_v52, %s8680_s15  ;;  %778 = vst [vmem:[%s9005_s29 + $0x158] sm:$0xff] %v718_v44  ;;  %v713_v36 = vadd.f32 %v8756_v4, %v712_v45  ;;  %v9141_v54 = vmax.f32 %v1153_v29, %v1163_v41  ;;  %v1171_v55 = vrot.slane %v9123_v46, 1  ;;  %v467_v8 = vpop.f32.mrb[17].mxu1  ;;  %v722_v10 = vpop.f32.mrb[17].mxu0 }
 0x103   : > { %v1192_v56 = vrot.slane %v9123_v46, 4  ;;  %530 = vst [vmem:[%s9005_s29 + $0xb0] sm:$0xff] %v458_v48  ;;  %v1128_v61 = vsel %vm1070_vm4, %v1126_v47, %v1127_v22  ;;  %v1185_v62 = vrot.slane %v9123_v46, 3  ;;  %v1178_v63 = vrot.slane %v9123_v46, 2  ;;  %v6854_v6 = vld [vmem:[%s9005_s29 + $0x121] ss:$2 sm:$0xff] }
 0x104   : > { %v473_v7 = vadd.f32 %v7748_v59, %v8756_v4  ;;  %777 = vst [vmem:[%s9005_s29 + $0x150] sm:$0xff] %v713_v36  ;;  %v728_v9 = vadd.f32 %v7786_v60, %v8756_v4  ;;  %v1170_v11 = vrot.slane %v9141_v54, 1  ;;  %v1191_v12 = vrot.slane %v9141_v54, 4  ;;  %1167 = vst.msk [vmem:[%s9090_s13 + $0x20] sm:$0xff] %vm70_vm0, %v9141_v54  ;;  %v9174_v19 = vld [vmem:[%s11919_s3 + $0x128] sm:$0xff]  ;;  %v9191_v28 = vld [vmem:[%s11919_s3 + $0x130] sm:$0xff] }
 0x105   : > { %v468_v13 = vadd.f32 %v8756_v4, %v467_v8  ;;  %v723_v14 = vadd.f32 %v8756_v4, %v722_v10  ;;  %v1184_v15 = vrot.slane %v9141_v54, 3  ;;  %v1177_v16 = vrot.slane %v9141_v54, 2  ;;  %v6855_v17 = vld [vmem:[%s9005_s29 + $0x131] ss:$2 sm:$0xf]  ;;  %v7751_v29 = vpop.f32.mrb[18].mxu1 }
 0x106   : > { %533 = vst [vmem:[%s9005_s29 + $0xc8] sm:$0xff] %v473_v7  ;;  %780 = vst [vmem:[%s9005_s29 + $0x168] sm:$0xff] %v728_v9  ;;  %v1172_v20 = vsel %vm1061_vm3, %v1170_v11, %v1171_v55  ;;  %v1193_v21 = vsel %vm1088_vm1, %v1191_v12, %v1192_v56  ;;  %1129 = vrot.lane.b32.xlu0 %v1128_v61, %s8681_s20  ;;  %v1656_v22 = vld [vmem:[%s9090_s13 + $0x8] sm:$0xff]  ;;  %v1357_v23 = vmax.f32 %v9132_v53, %v6854_v6  ;;  %v7789_v30 = vpop.f32.mrb[18].mxu0  ;;  %v477_v37 = vpop.f32.mrb[19].mxu1 }
 0x107   : > { %v6856_v24 = vld [vmem:[%s9005_s29 + $0x138] ss:$2 sm:$0xff]  ;;  %v6857_v26 = vld [vmem:[%s9005_s29 + $0x148] ss:$2 sm:$0xf]  ;;  %532 = vst [vmem:[%s9005_s29 + $0xc0] sm:$0xff] %v468_v13  ;;  %1173 = vrot.lane.b32.xlu1 %v1172_v20, %s8680_s15  ;;  %6928 = vmatprep.mubr.msk.f32.mxu1 %vm70_vm0, %v1656_v22  ;;  %v1358_v31 = vmax.f32 %v9146_v58, %v6855_v17  ;;  %v483_v34 = vadd.f32 %v7751_v29, %v8756_v4 }
 0x108   : > { %v9186_v27 = vld [vmem:[%s9005_s29 + $0x90] ss:$2 sm:$0xff]  ;;  %779 = vst [vmem:[%s9005_s29 + $0x160] sm:$0xff] %v723_v14  ;;  %1195 = vst.msk [vmem:[%s9090_s13 + $0x28] sm:$0xff] %vm70_vm0, %v1193_v21  ;;  %v6858_v32 = vld [vmem:[%s9005_s29 + $0x139] ss:$2 sm:$0xff]  ;;  %v738_v35 = vadd.f32 %v7789_v30, %v8756_v4  ;;  %v1179_v39 = vsel %vm1070_vm4, %v1177_v16, %v1178_v63  ;;  %v478_v43 = vadd.f32 %v8756_v4, %v477_v37 }
 0x109   : > { %v9202_v33 = vld [vmem:[%s9005_s29 + $0x91] ss:$2 sm:$0xff]  ;;  %v732_v38 = vpop.f32.mrb[19].mxu0  ;;  %v6859_v40 = vld [vmem:[%s9005_s29 + $0x149] ss:$2 sm:$0xf]  ;;  %v1367_v41 = vmax.f32 %v6856_v24, %v6858_v32  ;;  %v1186_v50 = vsel %vm1079_vm2, %v1184_v15, %v1185_v62  ;;  %v7891_v54 = vpack.c.bf16 %v9174_v19, %v9169_v18 }
 0x10a   : > { %v9211_v42 = vld [vmem:[%s11919_s3 + $0x138] sm:$0xff]  ;;  %v733_v44 = vadd.f32 %v8756_v4, %v732_v38  ;;  %v1368_v46 = vmax.f32 %v6857_v26, %v6859_v40  ;;  %v6829_v47 = vld [vmem:[%s9005_s29 + $0xa0] ss:$2 sm:$0xf]  ;;  %v1080_v48 = vrot.slane %v9068_v57, 3  ;;  %535 = vst [vmem:[%s9005_s29 + $0xd8] sm:$0xff] %v483_v34  ;;  %1180 = vrot.lane.b32.xlu0 %v1179_v39, %s8681_s20  ;;  %v1204_v58 = vmax.f32 %v9186_v27, %v9202_v33 }
 0x10b   : > { %v1658_v45 = vld [vmem:[%s9090_s13 + $0x18] sm:$0xff]  ;;  %782 = vst [vmem:[%s9005_s29 + $0x178] sm:$0xff] %v738_v35  ;;  %v1369_v51 = vmax.f32 %v1357_v23, %v1367_v41  ;;  %v6831_v52 = vld [vmem:[%s9005_s29 + $0xa1] ss:$2 sm:$0xf]  ;;  %v1081_v36 = vrot.slane %v9059_v49, 3  ;;  %1187 = vrot.lane.b32.xlu1 %v1186_v50, %s8679_s14  ;;  %v7894_v62 = vpack.c.bf16 %v9211_v42, %v9191_v28  ;;  %7892 = vmatpush1.bf16.msra.mxu0 %v7891_v54 }
 0x10c   : > { %6920 = vmatprep.mubr.msk.f32.mxu0 %vm70_vm0, %v1658_v45  ;;  %v6832_v53 = vld [vmem:[%s9005_s29 + $0xa8] ss:$2 sm:$0xff]  ;;  %534 = vst [vmem:[%s9005_s29 + $0xd0] sm:$0xff] %v478_v43  ;;  %781 = vst [vmem:[%s9005_s29 + $0x170] sm:$0xff] %v733_v44  ;;  %v7754_v55 = vpop.f32.mrb[20].mxu1  ;;  %v1370_v56 = vmax.f32 %v1358_v31, %v1368_v46  ;;  %v1205_v59 = vmax.f32 %v6829_v47, %v6831_v52  ;;  %v7792_v10 = vpop.f32.mrb[20].mxu0  ;;  %7893 = vmatprep.subr.bf16.mxu0 %v8678_v25 }
 0x10d   : > { %v6833_v60 = vld [vmem:[%s9005_s29 + $0xb8] ss:$2 sm:$0xf]  ;;  %v6834_v61 = vld [vmem:[%s9005_s29 + $0xa9] ss:$2 sm:$0xff]  ;;  %v493_v63 = vadd.f32 %v7754_v55, %v8756_v4  ;;  %v487_v6 = vpop.f32.mrb[21].mxu1  ;;  %v748_v26 = vadd.f32 %v7792_v10, %v8756_v4 }
 0x10e   : > { %v1374_v7 = vrot.slane %v1369_v51, 1  ;;  %v1395_v8 = vrot.slane %v1369_v51, 4  ;;  %1371 = vst.msk [vmem:[%s9090_s13 + $0x60] sm:$0xff] %vm70_vm0, %v1369_v51  ;;  %v1381_v9 = vrot.slane %v1369_v51, 2  ;;  %v488_v11 = vadd.f32 %v8756_v4, %v487_v6  ;;  %v742_v20 = vpop.f32.mrb[21].mxu0  ;;  %v7757_v24 = vpop.f32.mrb[22].mxu1 }
 0x10f   : > { %v1375_v12 = vrot.slane %v1370_v56, 1  ;;  %v1396_v13 = vrot.slane %v1370_v56, 4  ;;  %v1382_v14 = vrot.slane %v1370_v56, 2  ;;  %v6835_v15 = vld [vmem:[%s9005_s29 + $0xb9] ss:$2 sm:$0xf]  ;;  %v1214_v18 = vmax.f32 %v6832_v53, %v6834_v61  ;;  %7895 = vmatpush1.bf16.msra.mxu0 %v7894_v62 }
 0x110   : > { %537 = vst [vmem:[%s9005_s29 + $0xe8] sm:$0xff] %v493_v63  ;;  %v1388_v16 = vrot.slane %v1369_v51, 3  ;;  %v1389_v17 = vrot.slane %v1370_v56, 3  ;;  %v1215_v19 = vmax.f32 %v6833_v60, %v6835_v15  ;;  %536 = vst [vmem:[%s9005_s29 + $0xe0] sm:$0xff] %v488_v11  ;;  %v7795_v27 = vpop.f32.mrb[22].mxu0  ;;  %v503_v28 = vadd.f32 %v7757_v24, %v8756_v4  ;;  %v497_v29 = vpop.f32.mrb[23].mxu1  ;;  %7926 = vmatprep.subr.bf16.mxu0 %v8678_v25 }
 0x111   : > { %v1376_v21 = vsel %vm1061_vm3, %v1374_v7, %v1375_v12  ;;  %v1397_v22 = vsel %vm1088_vm1, %v1395_v8, %v1396_v13  ;;  %v1383_v23 = vsel %vm1070_vm4, %v1381_v9, %v1382_v14  ;;  %v1216_v31 = vmax.f32 %v1204_v58, %v1214_v18  ;;  %v752_v32 = vpop.f32.mrb[23].mxu0  ;;  %v9256_v33 = vld [vmem:[%s9005_s29 + $0x150] ss:$2 sm:$0xff]  ;;  %v9259_v34 = vld [vmem:[%s9005_s29 + $0x151] ss:$2 sm:$0xff]  ;;  %784 = vst [vmem:[%s9005_s29 + $0x188] sm:$0xff] %v748_v26 }
 0x112   : > { %1399 = vst.msk [vmem:[%s9090_s13 + $0x68] sm:$0xff] %vm70_vm0, %v1397_v22  ;;  %1377 = vrot.lane.b32.xlu1 %v1376_v21, %s8680_s15  ;;  %1384 = vrot.lane.b32.xlu0 %v1383_v23, %s8681_s20  ;;  %v1390_v30 = vsel %vm1079_vm2, %v1388_v16, %v1389_v17  ;;  %v498_v35 = vadd.f32 %v8756_v4, %v497_v29  ;;  %v6861_v40 = vld [vmem:[%s9005_s29 + $0x160] ss:$2 sm:$0xf]  ;;  %v7760_v52 = vpop.f32.mrb[24].mxu1  ;;  %v7798_v55 = vpop.f32.mrb[24].mxu0 }
 0x113   : > { %v1217_v37 = vmax.f32 %v1205_v59, %v1215_v19  ;;  %v743_v38 = vadd.f32 %v8756_v4, %v742_v20  ;;  %v758_v39 = vadd.f32 %v7795_v27, %v8756_v4  ;;  %v6863_v41 = vld [vmem:[%s9005_s29 + $0x161] ss:$2 sm:$0xf]  ;;  %v6865_v42 = vld [vmem:[%s9005_s29 + $0x178] ss:$2 sm:$0xf]  ;;  %v513_v56 = vadd.f32 %v7760_v52, %v8756_v4 }
 0x114   : > { %539 = vst [vmem:[%s9005_s29 + $0xf8] sm:$0xff] %v503_v28  ;;  %v1221_v43 = vrot.slane %v1216_v31, 1  ;;  %v1242_v44 = vrot.slane %v1216_v31, 4  ;;  %1218 = vst.msk [vmem:[%s9090_s13 + $0x30] sm:$0xff] %vm70_vm0, %v1216_v31  ;;  %v1228_v45 = vrot.slane %v1216_v31, 2  ;;  %v1235_v46 = vrot.slane %v1216_v31, 3 }
 0x115   : > { %v6864_v47 = vld [vmem:[%s9005_s29 + $0x168] ss:$2 sm:$0xff]  ;;  %538 = vst [vmem:[%s9005_s29 + $0xf0] sm:$0xff] %v498_v35  ;;  %v1222_v50 = vrot.slane %v1217_v37, 1  ;;  %v1243_v51 = vrot.slane %v1217_v37, 4  ;;  %v1229_v53 = vrot.slane %v1217_v37, 2  ;;  %v753_v59 = vadd.f32 %v8756_v4, %v752_v32 }
 0x116   : > { %v1236_v54 = vrot.slane %v1217_v37, 3  ;;  %783 = vst [vmem:[%s9005_s29 + $0x180] sm:$0xff] %v743_v38  ;;  %786 = vst [vmem:[%s9005_s29 + $0x198] sm:$0xff] %v758_v39  ;;  %1391 = vrot.lane.b32.xlu1 %v1390_v30, %s8679_s14  ;;  %v507_v58 = vpop.f32.mrb[25].mxu1  ;;  %v768_v60 = vadd.f32 %v7798_v55, %v8756_v4  ;;  %v1408_v61 = vmax.f32 %v9256_v33, %v9259_v34  ;;  %v6866_v62 = vld [vmem:[%s9005_s29 + $0x169] ss:$2 sm:$0xff] }
 0x117   : > { %v6867_v63 = vld [vmem:[%s9005_s29 + $0x179] ss:$2 sm:$0xf]  ;;  %v6836_v6 = vld [vmem:[%s9005_s29 + $0xc0] ss:$2 sm:$0xff]  ;;  %v1223_v7 = vsel %vm1061_vm3, %v1221_v43, %v1222_v50  ;;  %v1244_v8 = vsel %vm1088_vm1, %v1242_v44, %v1243_v51  ;;  %v508_v9 = vadd.f32 %v8756_v4, %v507_v58  ;;  %v762_v10 = vpop.f32.mrb[25].mxu0  ;;  %v1409_v13 = vmax.f32 %v6861_v40, %v6863_v41 }
 0x118   : > { %v6837_v11 = vld [vmem:[%s9005_s29 + $0xd0] ss:$2 sm:$0xf]  ;;  %v6838_v12 = vld [vmem:[%s9005_s29 + $0xc1] ss:$2 sm:$0xff]  ;;  %1246 = vst.msk [vmem:[%s9090_s13 + $0x38] sm:$0xff] %vm70_vm0, %v1244_v8  ;;  %1224 = vrot.lane.b32.xlu0 %v1223_v7, %s8680_s15  ;;  %v1418_v14 = vmax.f32 %v6864_v47, %v6866_v62  ;;  %v1419_v15 = vmax.f32 %v6865_v42, %v6867_v63  ;;  %v1230_v18 = vsel %vm1070_vm4, %v1228_v45, %v1229_v53 }
 0x119   : > { %541 = vst [vmem:[%s9005_s29 + $0x108] sm:$0xff] %v513_v56  ;;  %785 = vst [vmem:[%s9005_s29 + $0x190] sm:$0xff] %v753_v59  ;;  %v6839_v16 = vld [vmem:[%s9005_s29 + $0xd1] ss:$2 sm:$0xf]  ;;  %v1237_v19 = vsel %vm1079_vm2, %v1235_v46, %v1236_v54  ;;  %v7763_v20 = vpop.f32.mrb[26].mxu1  ;;  %v763_v21 = vadd.f32 %v8756_v4, %v762_v10  ;;  %v9309_v24 = vsel %vm1079_vm2, %v1080_v48, %v1081_v36 }
 0x11a   : > { %788 = vst [vmem:[%s9005_s29 + $0x1a8] sm:$0xff] %v768_v60  ;;  %v6840_v17 = vld [vmem:[%s9005_s29 + $0xd8] ss:$2 sm:$0xff]  ;;  %540 = vst [vmem:[%s9005_s29 + $0x100] sm:$0xff] %v508_v9  ;;  %v6842_v23 = vld [vmem:[%s9005_s29 + $0xd9] ss:$2 sm:$0xff]  ;;  %v523_v26 = vadd.f32 %v7763_v20, %v8756_v4  ;;  %v9313_v28 = vmax.f32 %v1408_v61, %v1418_v14  ;;  %v9315_v29 = vmax.f32 %v1409_v13, %v1419_v15 }
 0x11b   : > { %v6841_v22 = vld [vmem:[%s9005_s29 + $0xe8] ss:$2 sm:$0xf]  ;;  %1231 = vrot.lane.b32.xlu1 %v1230_v18, %s8681_s20  ;;  %v517_v27 = vpop.f32.mrb[27].mxu1  ;;  %v1265_v31 = vmax.f32 %v6840_v17, %v6842_v23  ;;  %787 = vst [vmem:[%s9005_s29 + $0x1a0] sm:$0xff] %v763_v21  ;;  %v1255_v33 = vmax.f32 %v6836_v6, %v6838_v12  ;;  %v1256_v34 = vmax.f32 %v6837_v11, %v6839_v16  ;;  %v1671_v45 = vld [vmem:[%s11919_s3] sm:$0xff] }
 0x11c   : > { %v6843_v30 = vld [vmem:[%s9005_s29 + $0xe9] ss:$2 sm:$0xf]  ;;  %v518_v32 = vadd.f32 %v8756_v4, %v517_v27  ;;  %1238 = vrot.lane.b32.xlu0 %v1237_v19, %s8679_s14  ;;  %543 = vst [vmem:[%s9005_s29 + $0x118] sm:$0xff] %v523_v26  ;;  %v1425_v36 = vrot.slane %v9313_v28, 1  ;;  %v1426_v35 = vrot.slane %v9315_v29, 1 }
 0x11d   : > { %v1266_v48 = vmax.f32 %v6841_v22, %v6843_v30  ;;  %v1446_v37 = vrot.slane %v9313_v28, 4  ;;  %v1447_v38 = vrot.slane %v9315_v29, 4  ;;  %1422 = vst.msk [vmem:[%s9090_s13 + $0x70] sm:$0xff] %vm70_vm0, %v9313_v28  ;;  %v1267_v39 = vmax.f32 %v1255_v33, %v1265_v31  ;;  %v7809_v44 = vpop.f32.mrb[28].mxu1  ;;  %v6844_v52 = vld [vmem:[%s9005_s29 + $0xf0] ss:$2 sm:$0xff] }
 0x11e   : > { %542 = vst [vmem:[%s9005_s29 + $0x110] sm:$0xff] %v518_v32  ;;  %v1427_v41 = vsel %vm1061_vm3, %v1425_v36, %v1426_v35  ;;  %v1432_v43 = vrot.slane %v9313_v28, 2  ;;  %v6846_v53 = vld [vmem:[%s9005_s29 + $0xf1] ss:$2 sm:$0xff]  ;;  %v927_v54 = vpop.f32.mrb[29].mxu1  ;;  %v1672_v55 = vld [vmem:[%s11919_s3 + $0x8] sm:$0xff]  ;;  %v933_v14 = vadd.f32 %v7809_v44, %v8756_v4 }
 0x11f   : > { %v1268_v40 = vmax.f32 %v1256_v34, %v1266_v48  ;;  %v1448_v42 = vsel %vm1088_vm1, %v1446_v37, %v1447_v38  ;;  %v1272_v46 = vrot.slane %v1267_v39, 1  ;;  %v1293_v50 = vrot.slane %v1267_v39, 4  ;;  %1269 = vst.msk [vmem:[%s9090_s13 + $0x40] sm:$0xff] %vm70_vm0, %v1267_v39  ;;  %v9347_v61 = vld [vmem:[%s9005_s29 + $0x180] ss:$2 sm:$0xff]  ;;  %v1673_v63 = vld [vmem:[%s11919_s3 + $0x10] sm:$0xff] }
 0x120   : > { %1450 = vst.msk [vmem:[%s9090_s13 + $0x78] sm:$0xff] %vm70_vm0, %v1448_v42  ;;  %1428 = vrot.lane.b32.xlu0 %v1427_v41, %s8680_s15  ;;  %v1279_v56 = vrot.slane %v1267_v39, 2  ;;  %v1286_v59 = vrot.slane %v1267_v39, 3  ;;  %v6870_v62 = vld [vmem:[%s9005_s29 + $0x181] ss:$2 sm:$0xff]  ;;  %v1674_v6 = vld [vmem:[%s11919_s3 + $0x18] sm:$0xff]  ;;  %v928_v19 = vadd.f32 %v8756_v4, %v927_v54  ;;  %v7897_v20 = vpack.c.bf16 %v1672_v55, %v1671_v45 }
 0x121   : > { %v1273_v47 = vrot.slane %v1268_v40, 1  ;;  %v1294_v51 = vrot.slane %v1268_v40, 4  ;;  %v1280_v58 = vrot.slane %v1268_v40, 2  ;;  %v1287_v60 = vrot.slane %v1268_v40, 3  ;;  %v9370_v15 = vld [vmem:[%s11919_s3 + $0x20] sm:$0xff]  ;;  %v9375_v16 = vld [vmem:[%s11919_s3 + $0x28] sm:$0xff] }
 0x122   : > { %v6845_v9 = vld [vmem:[%s9005_s29 + $0x100] ss:$2 sm:$0xf]  ;;  %v6847_v10 = vld [vmem:[%s9005_s29 + $0x101] ss:$2 sm:$0xf]  ;;  %v1306_v21 = vmax.f32 %v6844_v52, %v6846_v53  ;;  %v1459_v33 = vmax.f32 %v9347_v61, %v6870_v62  ;;  %7898 = vmatpush1.bf16.msra.mxu1 %v7897_v20  ;;  %v7900_v36 = vpack.c.bf16 %v1674_v6, %v1673_v63 }
 0x123   : > { %v1274_v7 = vsel %vm1061_vm3, %v1272_v46, %v1273_v47  ;;  %v1295_v8 = vsel %vm1088_vm1, %v1293_v50, %v1294_v51  ;;  %v1281_v11 = vsel %vm1070_vm4, %v1279_v56, %v1280_v58  ;;  %v6869_v12 = vld [vmem:[%s9005_s29 + $0x190] ss:$2 sm:$0xf]  ;;  %v6871_v13 = vld [vmem:[%s9005_s29 + $0x191] ss:$2 sm:$0xf]  ;;  %v1307_v22 = vmax.f32 %v6845_v9, %v6847_v10  ;;  %7899 = vmatprep.subr.bf16.mxu1 %v8678_v25 }
 0x124   : > { %1297 = vst.msk [vmem:[%s9090_s13 + $0x48] sm:$0xff] %vm70_vm0, %v1295_v8  ;;  %1275 = vrot.lane.b32.xlu1 %v1274_v7, %s8680_s15  ;;  %v6849_v17 = vld [vmem:[%s9005_s29 + $0x118] ss:$2 sm:$0xf]  ;;  %1282 = vrot.lane.b32.xlu0 %v1281_v11, %s8681_s20  ;;  %v1288_v31 = vsel %vm1079_vm2, %v1286_v59, %v1287_v60  ;;  %v1433_v37 = vrot.slane %v9315_v29, 2  ;;  %v1460_v38 = vmax.f32 %v6869_v12, %v6871_v13  ;;  %v7812_v41 = vpop.f32.mrb[30].mxu1 }
 0x125   : > { %v6851_v18 = vld [vmem:[%s9005_s29 + $0x119] ss:$2 sm:$0xf]  ;;  %v6848_v23 = vld [vmem:[%s9005_s29 + $0x108] ss:$2 sm:$0xff]  ;;  %1017 = vst [vmem:[%s9005_s29 + $0x1b8] sm:$0xff] %v933_v14  ;;  %v943_v45 = vadd.f32 %v7812_v41, %v8756_v4  ;;  %v7903_v47 = vpack.c.bf16 %v9375_v16, %v9370_v15 }
 0x126   : > { %v6850_v26 = vld [vmem:[%s9005_s29 + $0x109] ss:$2 sm:$0xff]  ;;  %v1317_v27 = vmax.f32 %v6849_v17, %v6851_v18  ;;  %v6872_v30 = vld [vmem:[%s9005_s29 + $0x198] ss:$2 sm:$0xff]  ;;  %v6874_v48 = vld [vmem:[%s9005_s29 + $0x199] ss:$2 sm:$0xff]  ;;  %7901 = vmatpush1.bf16.msra.mxu1 %v7900_v36  ;;  %v1434_v14 = vsel %vm1070_vm4, %v1432_v43, %v1433_v37 }
 0x127   : > { %v1316_v32 = vmax.f32 %v6848_v23, %v6850_v26  ;;  %v6873_v34 = vld [vmem:[%s9005_s29 + $0x1a8] ss:$2 sm:$0xf]  ;;  %1016 = vst [vmem:[%s9005_s29 + $0x1b0] sm:$0xff] %v928_v19  ;;  %v1469_v40 = vmax.f32 %v6872_v30, %v6874_v48  ;;  %v937_v46 = vpop.f32.mrb[31].mxu1  ;;  %1019 = vst [vmem:[%s9005_s29 + $0x1c8] sm:$0xff] %v943_v45  ;;  %7902 = vmatprep.subr.bf16.mxu1 %v8678_v25 }
 0x128   : > { %1289 = vrot.lane.b32.xlu1 %v1288_v31, %s8679_s14  ;;  %v1319_v35 = vmax.f32 %v1307_v22, %v1317_v27  ;;  %v6875_v39 = vld [vmem:[%s9005_s29 + $0x1a9] ss:$2 sm:$0xf]  ;;  %v7815_v54 = vpop.f32.mrb[32].mxu1  ;;  %v938_v63 = vadd.f32 %v8756_v4, %v937_v46  ;;  %v1439_v15 = vrot.slane %v9313_v28, 3  ;;  %v1440_v16 = vrot.slane %v9315_v29, 3 }
 0x129   : > { %v1318_v42 = vmax.f32 %v1306_v21, %v1316_v32  ;;  %v1470_v44 = vmax.f32 %v6873_v34, %v6875_v39  ;;  %v947_v60 = vpop.f32.mrb[33].mxu1  ;;  %v9400_v61 = vmax.f32 %v1459_v33, %v1469_v40  ;;  %v953_v6 = vadd.f32 %v7815_v54, %v8756_v4  ;;  %v1677_v28 = vld [vmem:[%s11919_s3 + $0x30] sm:$0xff]  ;;  %v1678_v29 = vld [vmem:[%s11919_s3 + $0x38] sm:$0xff]  ;;  %v1679_v31 = vld [vmem:[%s11919_s3 + $0x40] sm:$0xff] }
 0x12a   : > { %v1331_v50 = vrot.slane %v1319_v35, 2  ;;  %v1345_v51 = vrot.slane %v1319_v35, 4  ;;  %v1324_v52 = vrot.slane %v1319_v35, 1  ;;  %v1338_v53 = vrot.slane %v1319_v35, 3  ;;  %v7818_v7 = vpop.f32.mrb[34].mxu1  ;;  %1018 = vst [vmem:[%s9005_s29 + $0x1c0] sm:$0xff] %v938_v63  ;;  %7904 = vmatpush1.bf16.msra.mxu1 %v7903_v47 }
 0x12b   : > { %v1330_v55 = vrot.slane %v1318_v42, 2  ;;  %v1344_v56 = vrot.slane %v1318_v42, 4  ;;  %1320 = vst.msk [vmem:[%s9090_s13 + $0x50] sm:$0xff] %vm70_vm0, %v1318_v42  ;;  %v1323_v58 = vrot.slane %v1318_v42, 1  ;;  %v1337_v59 = vrot.slane %v1318_v42, 3  ;;  %v957_v11 = vpop.f32.mrb[35].mxu1  ;;  %7905 = vmatprep.subr.bf16.mxu1 %v8678_v25 }
 0x12c   : > { %v9402_v62 = vmax.f32 %v1460_v38, %v1470_v44  ;;  %v1497_v12 = vrot.slane %v9400_v61, 4  ;;  %1473 = vst.msk [vmem:[%s9090_s13 + $0x80] sm:$0xff] %vm70_vm0, %v9400_v61  ;;  %1021 = vst [vmem:[%s9005_s29 + $0x1d8] sm:$0xff] %v953_v6  ;;  %v7821_v17 = vpop.f32.mrb[36].mxu1  ;;  %v948_v20 = vadd.f32 %v8756_v4, %v947_v60  ;;  %v963_v21 = vadd.f32 %v7818_v7, %v8756_v4  ;;  %v1680_v32 = vld [vmem:[%s11919_s3 + $0x48] sm:$0xff]  ;;  %v1681_v42 = vld [vmem:[%s11919_s3 + $0x50] sm:$0xff] }
 0x12d   : > { %v1332_v8 = vsel %vm1070_vm4, %v1330_v55, %v1331_v50  ;;  %v1346_v9 = vsel %vm1088_vm1, %v1344_v56, %v1345_v51  ;;  %v1325_v10 = vsel %vm1061_vm3, %v1323_v58, %v1324_v52  ;;  %v1339_v18 = vsel %vm1079_vm2, %v1337_v59, %v1338_v53  ;;  %v967_v22 = vpop.f32.mrb[37].mxu1  ;;  %v1682_v44 = vld [vmem:[%s11919_s3 + $0x58] sm:$0xff] }
 0x12e   : > { %1348 = vst.msk [vmem:[%s9090_s13 + $0x58] sm:$0xff] %vm70_vm0, %v1346_v9  ;;  %1333 = vrot.lane.b32.xlu1 %v1332_v8, %s8681_s20  ;;  %1326 = vrot.lane.b32.xlu0 %v1325_v10, %s8680_s15  ;;  %v1498_v13 = vrot.slane %v9402_v62, 4  ;;  %v1476_v43 = vrot.slane %v9400_v61, 1  ;;  %v1477_v23 = vrot.slane %v9402_v62, 1  ;;  %v958_v26 = vadd.f32 %v8756_v4, %v957_v11  ;;  %1020 = vst [vmem:[%s9005_s29 + $0x1d0] sm:$0xff] %v948_v20  ;;  %v7824_v36 = vpop.f32.mrb[38].mxu1 }
 0x12f   : > { %v973_v27 = vadd.f32 %v7821_v17, %v8756_v4  ;;  %1023 = vst [vmem:[%s9005_s29 + $0x1e8] sm:$0xff] %v963_v21  ;;  %v968_v30 = vadd.f32 %v8756_v4, %v967_v22  ;;  %v1062_v33 = vrot.slane %v9068_v57, 1  ;;  %v1063_v34 = vrot.slane %v9059_v49, 1  ;;  %v6876_v48 = vld [vmem:[%s9005_s29 + $0x1b0] ss:$2 sm:$0xff]  ;;  %v977_v41 = vpop.f32.mrb[39].mxu1 }
 0x130   : > { %v1499_v19 = vsel %vm1088_vm1, %v1497_v12, %v1498_v13  ;;  %1022 = vst [vmem:[%s9005_s29 + $0x1e0] sm:$0xff] %v958_v26  ;;  %v7906_v35 = vpack.c.bf16 %v1678_v29, %v1677_v28  ;;  %v1483_v37 = vrot.slane %v9400_v61, 2  ;;  %v1484_v38 = vrot.slane %v9402_v62, 2  ;;  %v6878_v39 = vld [vmem:[%s9005_s29 + $0x1b1] ss:$2 sm:$0xff] }
 0x131   : > { %1501 = vst.msk [vmem:[%s9090_s13 + $0x88] sm:$0xff] %vm70_vm0, %v1499_v19  ;;  %1025 = vst [vmem:[%s9005_s29 + $0x1f8] sm:$0xff] %v973_v27  ;;  %v983_v40 = vadd.f32 %v7824_v36, %v8756_v4  ;;  %v1478_v45 = vsel %vm1061_vm3, %v1476_v43, %v1477_v23  ;;  %v1441_v46 = vsel %vm1079_vm2, %v1439_v15, %v1440_v16  ;;  %v6877_v47 = vld [vmem:[%s9005_s29 + $0x1c0] ss:$2 sm:$0xf]  ;;  %v1071_v58 = vrot.slane %v9068_v57, 2 }
 0x132   : > { %1435 = vrot.lane.b32.xlu1 %v1434_v14, %s8681_s20  ;;  %1340 = vrot.lane.b32.xlu0 %v1339_v18, %s8679_s14  ;;  %1024 = vst [vmem:[%s9005_s29 + $0x1f0] sm:$0xff] %v968_v30  ;;  %v6879_v50 = vld [vmem:[%s9005_s29 + $0x1c1] ss:$2 sm:$0xf]  ;;  %v978_v51 = vadd.f32 %v8756_v4, %v977_v41  ;;  %v7909_v52 = vpack.c.bf16 %v1680_v32, %v1679_v31  ;;  %v1072_v59 = vrot.slane %v9059_v49, 2  ;;  %v7827_v63 = vpop.f32.mrb[40].mxu1 }
 0x133   : > { %7907 = vmatpush1.bf16.msra.mxu1 %v7906_v35  ;;  %v1511_v53 = vmax.f32 %v6877_v47, %v6879_v50  ;;  %v6881_v54 = vld [vmem:[%s9005_s29 + $0x1d8] ss:$2 sm:$0xf]  ;;  %v6883_v55 = vld [vmem:[%s9005_s29 + $0x1d9] ss:$2 sm:$0xf]  ;;  %v1064_v56 = vsel %vm1061_vm3, %v1062_v33, %v1063_v34  ;;  %v1510_v8 = vmax.f32 %v6876_v48, %v6878_v39  ;;  %v993_v9 = vadd.f32 %v7827_v63, %v8756_v4 }
 0x134   : > { %1027 = vst [vmem:[%s9005_s29 + $0x208] sm:$0xff] %v983_v40  ;;  %v1521_v60 = vmax.f32 %v6881_v54, %v6883_v55  ;;  %1026 = vst [vmem:[%s9005_s29 + $0x200] sm:$0xff] %v978_v51  ;;  %7908 = vmatprep.subr.bf16.mxu1 %v8678_v25  ;;  %v1490_v6 = vrot.slane %v9400_v61, 3  ;;  %v1491_v7 = vrot.slane %v9402_v62, 3  ;;  %v987_v10 = vpop.f32.mrb[41].mxu1  ;;  %v1485_v11 = vsel %vm1070_vm4, %v1483_v37, %v1484_v38  ;;  %v1683_v62 = vld [vmem:[%s11919_s3 + $0x60] sm:$0xff] }
 0x135   : > { %v6880_v57 = vld [vmem:[%s9005_s29 + $0x1c8] ss:$2 sm:$0xff]  ;;  %v6882_v49 = vld [vmem:[%s9005_s29 + $0x1c9] ss:$2 sm:$0xff]  ;;  %v988_v13 = vadd.f32 %v8756_v4, %v987_v10  ;;  %v7912_v61 = vpack.c.bf16 %v1682_v44, %v1681_v42  ;;  %1029 = vst [vmem:[%s9005_s29 + $0x218] sm:$0xff] %v993_v9  ;;  %v7830_v19 = vpop.f32.mrb[42].mxu1  ;;  %v1073_v31 = vsel %vm1070_vm4, %v1071_v58, %v1072_v59 }
 0x136   : > { %1479 = vrot.lane.b32.xlu1 %v1478_v45, %s8680_s15  ;;  %1442 = vrot.lane.b32.xlu0 %v1441_v46, %s8679_s14  ;;  %v9491_v12 = vmax.f32 %v1511_v53, %v1521_v60  ;;  %v1520_v14 = vmax.f32 %v6880_v57, %v6882_v49  ;;  %v1684_v16 = vld [vmem:[%s11919_s3 + $0x68] sm:$0xff]  ;;  %v1685_v21 = vld [vmem:[%s11919_s3 + $0x70] sm:$0xff]  ;;  %v1003_v23 = vadd.f32 %v7830_v19, %v8756_v4  ;;  %v997_v26 = vpop.f32.mrb[43].mxu1 }
 0x137   : > { %7910 = vmatpush1.bf16.msra.mxu1 %v7909_v52  ;;  %v6884_v15 = vld [vmem:[%s9005_s29 + $0x1e0] ss:$2 sm:$0xff]  ;;  %1028 = vst [vmem:[%s9005_s29 + $0x210] sm:$0xff] %v988_v13  ;;  %v6886_v20 = vld [vmem:[%s9005_s29 + $0x1e1] ss:$2 sm:$0xff]  ;;  %v1686_v22 = vld [vmem:[%s11919_s3 + $0x78] sm:$0xff]  ;;  %v1492_v30 = vsel %vm1079_vm2, %v1490_v6, %v1491_v7  ;;  %v998_v32 = vadd.f32 %v8756_v4, %v997_v26  ;;  %v7915_v48 = vpack.c.bf16 %v1684_v16, %v1683_v62 }
 0x138   : > { %v1528_v17 = vrot.slane %v9491_v12, 1  ;;  %v1549_v18 = vrot.slane %v9491_v12, 4  ;;  %7911 = vmatprep.subr.bf16.mxu1 %v8678_v25  ;;  %v1522_v28 = vmax.f32 %v1510_v8, %v1520_v14  ;;  %v1535_v29 = vrot.slane %v9491_v12, 2  ;;  %1031 = vst [vmem:[%s9005_s29 + $0x228] sm:$0xff] %v1003_v23  ;;  %v1688_v58 = vld [vmem:[%s11919_s3 + $0x88] sm:$0xff]  ;;  %v1690_v8 = vld [vmem:[%s11919_s3 + $0x98] sm:$0xff] }
 0x139   : > { %v1542_v43 = vrot.slane %v9491_v12, 3  ;;  %v6885_v27 = vld [vmem:[%s9005_s29 + $0x1f0] ss:$2 sm:$0xf]  ;;  %1030 = vst [vmem:[%s9005_s29 + $0x220] sm:$0xff] %v998_v32  ;;  %v7833_v40 = vpop.f32.mrb[44].mxu1  ;;  %v1561_v41 = vmax.f32 %v6884_v15, %v6886_v20  ;;  %v7918_v51 = vpack.c.bf16 %v1686_v22, %v1685_v21 }
 0x13a   : > { %1486 = vrot.lane.b32.xlu0 %v1485_v11, %s8681_s20  ;;  %1065 = vrot.lane.b32.xlu1 %v1064_v56, %s8680_s15  ;;  %v6887_v33 = vld [vmem:[%s9005_s29 + $0x1f1] ss:$2 sm:$0xf]  ;;  %v1527_v36 = vrot.slane %v1522_v28, 1  ;;  %v1548_v35 = vrot.slane %v1522_v28, 4  ;;  %1524 = vst.msk [vmem:[%s9090_s13 + $0x90] sm:$0xff] %vm70_vm0, %v1522_v28  ;;  %v1013_v52 = vadd.f32 %v7833_v40, %v8756_v4 }
 0x13b   : > { %v6889_v34 = vld [vmem:[%s9005_s29 + $0x208] ss:$2 sm:$0xf]  ;;  %7913 = vmatpush1.bf16.msra.mxu1 %v7912_v61  ;;  %v1534_v37 = vrot.slane %v1522_v28, 2  ;;  %v1541_v38 = vrot.slane %v1522_v28, 3  ;;  %v1562_v42 = vmax.f32 %v6885_v27, %v6887_v33  ;;  %v1007_v50 = vpop.f32.mrb[45].mxu1 }
 0x13c   : > { %v6888_v39 = vld [vmem:[%s9005_s29 + $0x1f8] ss:$2 sm:$0xff]  ;;  %v6890_v44 = vld [vmem:[%s9005_s29 + $0x1f9] ss:$2 sm:$0xff]  ;;  %7914 = vmatprep.subr.bf16.mxu1 %v8678_v25  ;;  %v1529_v46 = vsel %vm1061_vm3, %v1527_v36, %v1528_v17  ;;  %v1550_v47 = vsel %vm1088_vm1, %v1548_v35, %v1549_v18  ;;  %v1008_v53 = vadd.f32 %v8756_v4, %v1007_v50  ;;  %1033 = vst [vmem:[%s9005_s29 + $0x238] sm:$0xff] %v1013_v52 }
 0x13d   : > { %v6891_v45 = vld [vmem:[%s9005_s29 + $0x209] ss:$2 sm:$0xf]  ;;  %1552 = vst.msk [vmem:[%s9090_s13 + $0x98] sm:$0xff] %vm70_vm0, %v1550_v47  ;;  %v1571_v54 = vmax.f32 %v6888_v39, %v6890_v44  ;;  %v1687_v56 = vld [vmem:[%s11919_s3 + $0x80] sm:$0xff]  ;;  %v1536_v59 = vsel %vm1070_vm4, %v1534_v37, %v1535_v29  ;;  %v1543_v60 = vsel %vm1079_vm2, %v1541_v38, %v1542_v43 }
 0x13e   : > { %1493 = vrot.lane.b32.xlu0 %v1492_v30, %s8679_s14  ;;  %1074 = vrot.lane.b32.xlu1 %v1073_v31, %s8681_s20  ;;  %v1572_v55 = vmax.f32 %v6889_v34, %v6891_v45  ;;  %1032 = vst [vmem:[%s9005_s29 + $0x230] sm:$0xff] %v1008_v53  ;;  %v7921_v7 = vpack.c.bf16 %v1688_v58, %v1687_v56  ;;  %v6892_v49 = vld [vmem:[%s9005_s29 + $0x210] ss:$2 sm:$0xff] }
 0x13f   : > { %7916 = vmatpush1.bf16.msra.mxu1 %v7915_v48  ;;  %v1573_v63 = vmax.f32 %v1561_v41, %v1571_v54  ;;  %v6894_v14 = vld [vmem:[%s9005_s29 + $0x211] ss:$2 sm:$0xff]  ;;  %v6936_v52 = vld [vmem:[%s11919_s3 + $0x140] sm:$0xff]  ;;  %v6937_v53 = vld [vmem:[%s11919_s3 + $0x148] sm:$0xff] }
 0x140   : > { %v1574_v6 = vmax.f32 %v1562_v42, %v1572_v55  ;;  %7917 = vmatprep.subr.bf16.mxu1 %v8678_v25  ;;  %v6893_v17 = vld [vmem:[%s9005_s29 + $0x220] ss:$2 sm:$0xf]  ;;  %v6895_v18 = vld [vmem:[%s9005_s29 + $0x221] ss:$2 sm:$0xf]  ;;  %v1612_v21 = vmax.f32 %v6892_v49, %v6894_v14  ;;  %v7927_v55 = vpack.c.bf16 %v6937_v53, %v6936_v52 }
 0x141   : > { %v1578_v9 = vrot.slane %v1573_v63, 1  ;;  %v1599_v11 = vrot.slane %v1573_v63, 4  ;;  %1575 = vst.msk [vmem:[%s9090_s13 + $0xa0] sm:$0xff] %vm70_vm0, %v1573_v63  ;;  %v1585_v12 = vrot.slane %v1573_v63, 2  ;;  %v1592_v61 = vrot.slane %v1573_v63, 3  ;;  %v6938_v56 = vld [vmem:[%s11919_s3 + $0x150] sm:$0xff] }
 0x142   : > { %1083 = vrot.lane.b32.xlu0 %v9309_v24, %s8679_s14  ;;  %1530 = vrot.lane.b32.xlu1 %v1529_v46, %s8680_s15  ;;  %v1689_v24 = vld [vmem:[%s11919_s3 + $0x90] sm:$0xff]  ;;  %v1579_v10 = vrot.slane %v1574_v6, 1  ;;  %v1600_v57 = vrot.slane %v1574_v6, 4  ;;  %v1586_v13 = vrot.slane %v1574_v6, 2  ;;  %v1593_v62 = vrot.slane %v1574_v6, 3  ;;  %v6939_v58 = vld [vmem:[%s11919_s3 + $0x158] sm:$0xff] }
 0x143   : > { %7919 = vmatpush1.bf16.msra.mxu1 %v7918_v51  ;;  %v7924_v20 = vpack.c.bf16 %v1690_v8, %v1689_v24  ;;  %v1613_v22 = vmax.f32 %v6893_v17, %v6895_v18  ;;  %v6897_v29 = vld [vmem:[%s9005_s29 + $0x238] ss:$2 sm:$0xf]  ;;  %v6899_v26 = vld [vmem:[%s9005_s29 + $0x239] ss:$2 sm:$0xf] }
 0x144   : > { %v1580_v15 = vsel %vm1061_vm3, %v1578_v9, %v1579_v10  ;;  %v1601_v16 = vsel %vm1088_vm1, %v1599_v11, %v1600_v57  ;;  %7920 = vmatprep.subr.bf16.mxu1 %v8678_v25  ;;  %v1587_v19 = vsel %vm1070_vm4, %v1585_v12, %v1586_v13  ;;  %v1594_v43 = vsel %vm1079_vm2, %v1592_v61, %v1593_v62  ;;  %v9624_v6 = vld [vmem:[%s9090_s13 + $0x28] sm:$0xff]  ;;  %v6940_v24 = vld [vmem:[%s11919_s3 + $0x160] sm:$0xff]  ;;  %v9644_v11 = vld [vmem:[%s9090_s13 + $0x38] sm:$0xff] }
 0x145   : > { %1603 = vst.msk [vmem:[%s9090_s13 + $0xa8] sm:$0xff] %vm70_vm0, %v1601_v16  ;;  %v6896_v28 = vld [vmem:[%s9005_s29 + $0x228] ss:$2 sm:$0xff]  ;;  %v6898_v23 = vld [vmem:[%s9005_s29 + $0x229] ss:$2 sm:$0xff]  ;;  %v1623_v30 = vmax.f32 %v6897_v29, %v6899_v26  ;;  %v6943_v13 = vld [vmem:[%s11919_s3 + $0x178] sm:$0xff] }
 0x146   : > { %1537 = vrot.lane.b32.xlu0 %v1536_v59, %s8681_s20  ;;  %1544 = vrot.lane.b32.xlu1 %v1543_v60, %s8679_s14  ;;  %v1622_v27 = vmax.f32 %v6896_v28, %v6898_v23  ;;  %v6941_v8 = vld [vmem:[%s11919_s3 + $0x168] sm:$0xff]  ;;  %v6942_v12 = vld [vmem:[%s11919_s3 + $0x170] sm:$0xff] }
 0x147   : > { %7922 = vmatpush1.bf16.msra.mxu1 %v7921_v7  ;;  %v1625_v32 = vmax.f32 %v1613_v22, %v1623_v30  ;;  %v7930_v7 = vpack.c.bf16 %v6939_v58, %v6938_v56  ;;  %v7933_v57 = vpack.c.bf16 %v6941_v8, %v6940_v24  ;;  %v7936_v62 = vpack.c.bf16 %v6943_v13, %v6942_v12  ;;  %v6945_v16 = vld [vmem:[%s11919_s3 + $0x188] sm:$0xff]  ;;  %v9767_v58 = vld [vmem:[%s9090_s13 + $0x78] sm:$0xff]  ;;  %v6964_v8 = vld [vmem:[%s11919_s3 + $0x1e0] sm:$0xff] }
 0x148   : > { %7923 = vmatprep.subr.bf16.mxu1 %v8678_v25  ;;  %v1624_v31 = vmax.f32 %v1612_v21, %v1622_v27  ;;  %v6949_v23 = vld [vmem:[%s11919_s3 + $0x1a8] sm:$0xff] }
 0x149   : > { %v1630_v34 = vrot.slane %v1625_v32, 1  ;;  %v1651_v36 = vrot.slane %v1625_v32, 4  ;;  %v1637_v37 = vrot.slane %v1625_v32, 2  ;;  %v1644_v39 = vrot.slane %v1625_v32, 3  ;;  %v9695_v26 = vld [vmem:[%s9090_s13 + $0x48] sm:$0xff]  ;;  %v6951_v32 = vld [vmem:[%s11919_s3 + $0x1b8] sm:$0xff] }
 0x14a   : > { %1581 = vrot.lane.b32.xlu0 %v1580_v15, %s8680_s15  ;;  %1588 = vrot.lane.b32.xlu1 %v1587_v19, %s8681_s20  ;;  %v1629_v33 = vrot.slane %v1624_v31, 1  ;;  %v1650_v48 = vrot.slane %v1624_v31, 4  ;;  %1626 = vst.msk [vmem:[%s9090_s13 + $0xb0] sm:$0xff] %vm70_vm0, %v1624_v31  ;;  %v1636_v35 = vrot.slane %v1624_v31, 2  ;;  %v1643_v38 = vrot.slane %v1624_v31, 3  ;;  %v6944_v15 = vld [vmem:[%s11919_s3 + $0x180] sm:$0xff] }
 0x14b   : > { %7925 = vmatpush1.bf16.msra.mxu1 %v7924_v20  ;;  %v7939_v17 = vpack.c.bf16 %v6945_v16, %v6944_v15  ;;  %v6946_v19 = vld [vmem:[%s11919_s3 + $0x190] sm:$0xff]  ;;  %v6947_v20 = vld [vmem:[%s11919_s3 + $0x198] sm:$0xff]  ;;  %v9753_v53 = vld [vmem:[%s9090_s13 + $0x68] sm:$0xff] }
 0x14c   : > { %7956 = vmatprep.subr.bf16.mxu1 %v8678_v25  ;;  %v1631_v40 = vsel %vm1061_vm3, %v1629_v33, %v1630_v34  ;;  %v1652_v41 = vsel %vm1088_vm1, %v1650_v48, %v1651_v36  ;;  %v1638_v42 = vsel %vm1070_vm4, %v1636_v35, %v1637_v37  ;;  %v1645_v44 = vsel %vm1079_vm2, %v1643_v38, %v1644_v39  ;;  %v6950_v31 = vld [vmem:[%s11919_s3 + $0x1b0] sm:$0xff]  ;;  %v6952_v36 = vld [vmem:[%s11919_s3 + $0x1c0] sm:$0xff]  ;;  %v6953_v35 = vld [vmem:[%s11919_s3 + $0x1c8] sm:$0xff] }
 0x14d   : > { %1654 = vst.msk [vmem:[%s9090_s13 + $0xb8] sm:$0xff] %vm70_vm0, %v1652_v41  ;;  %v7942_v22 = vpack.c.bf16 %v6947_v20, %v6946_v19  ;;  %v7948_v48 = vpack.c.bf16 %v6951_v32, %v6950_v31  ;;  %v9724_v38 = vld [vmem:[%s9090_s13 + $0x58] sm:$0xff]  ;;  %v7951_v41 = vpack.c.bf16 %v6953_v35, %v6952_v36  ;;  %v9778_v24 = vld [vmem:[%s9090_s13 + $0x88] sm:$0xff]  ;;  %v6966_v15 = vld [vmem:[%s11919_s3 + $0x1f0] sm:$0xff] }
 0x14e   : > { %1595 = vrot.lane.b32.xlu0 %v1594_v43, %s8679_s14  ;;  %1632 = vrot.lane.b32.xlu1 %v1631_v40, %s8680_s15  ;;  %v6948_v43 = vld [vmem:[%s11919_s3 + $0x1a0] sm:$0xff]  ;;  %v6967_v16 = vld [vmem:[%s11919_s3 + $0x1f8] sm:$0xff] }
 0x14f   : > { %v7945_v30 = vpack.c.bf16 %v6949_v23, %v6948_v43  ;;  %v6968_v43 = vld [vmem:[%s11919_s3 + $0x200] sm:$0xff]  ;;  %v8669_v23 = vld [vmem:[%s9090_s13 + $0x18] sm:$0xff]  ;;  %v6997_v31 = vld [vmem:[%s11919_s3 + $0x2a8] sm:$0xff] }
 0x150   : > { %v6970_v36 = vld [vmem:[%s11919_s3 + $0x210] sm:$0xff]  ;;  %v6971_v35 = vld [vmem:[%s11919_s3 + $0x218] sm:$0xff] }
 0x152   : > { %1639 = vrot.lane.b32.xlu0 %v1638_v42, %s8681_s20  ;;  %1646 = vrot.lane.b32.xlu1 %v1645_v44, %s8679_s14  ;;  %v6954_v42 = vld [vmem:[%s11919_s3 + $0x1d0] sm:$0xff]  ;;  %v6955_v44 = vld [vmem:[%s11919_s3 + $0x1d8] sm:$0xff] }
 0x174   : > { %v1137_v45 = vpop.permute.xlu1 %1136  ;;  %v1123_v46 = vpop.permute.xlu0 %1122 }
 0x175   : > { %1125 = vst.msk [vmem:[%s9090_s13 + $0x10] sm:$0xff] %vm1068_vm5, %v1123_v46 }
 0x178   : > { %v1130_v47 = vpop.permute.xlu0 %1129 }
 0x179   : > { %v1174_v50 = vpop.permute.xlu1 %1173  ;;  %1132 = vst.msk [vmem:[%s9090_s13 + $0x10] sm:$0xff] %vm1077_vm6, %v1130_v47  ;;  %v7954_v47 = vpack.c.bf16 %v6955_v44, %v6954_v42  ;;  %v6972_v44 = vld [vmem:[%s11919_s3 + $0x220] sm:$0xff] }
 0x17a   : > { %1176 = vst.msk [vmem:[%s9090_s13 + $0x20] sm:$0xff] %vm1068_vm5, %v1174_v50 }
 0x17b   : > { %1139 = vst.msk [vmem:[%s9090_s13 + $0x10] sm:$0xff] %vm1086_vm7, %v1137_v45 }
 0x17c   : > { %v1181_v51 = vpop.permute.xlu0 %1180 }
 0x17d   : > { %v1188_v54 = vpop.permute.xlu1 %1187  ;;  %1183 = vst.msk [vmem:[%s9090_s13 + $0x20] sm:$0xff] %vm1077_vm6, %v1181_v51 }
 0x17e   : > { %1190 = vst.msk [vmem:[%s9090_s13 + $0x20] sm:$0xff] %vm1086_vm7, %v1188_v54 }
 0x182   : > { %v9620_v59 = vld [vmem:[%s9090_s13 + $0x10] sm:$0xff] }
 0x183   : > { %1803 = vmatmul.mubr.f32.vlgmr.msra.gmra.mrb[26].mxu0 %v9620_v59 }
 0x184   : > { %v1378_v60 = vpop.permute.xlu1 %1377  ;;  %v1385_v63 = vpop.permute.xlu0 %1384  ;;  %6921 = vmatprep.mubr.msk.f32.mxu0 %vm70_vm0, %v9624_v6  ;;  %7928 = vmatpush1.bf16.msra.mxu0 %v7927_v55 }
 0x185   : > { %1380 = vst.msk [vmem:[%s9090_s13 + $0x60] sm:$0xff] %vm1068_vm5, %v1378_v60  ;;  %7929 = vmatprep.subr.bf16.mxu0 %v8678_v25  ;;  %v9640_v9 = vld [vmem:[%s9090_s13 + $0x20] sm:$0xff] }
 0x186   : > { %1387 = vst.msk [vmem:[%s9090_s13 + $0x60] sm:$0xff] %vm1077_vm6, %v1385_v63 }
 0x187   : > { %1808 = vmatmul.mubr.f32.gmra.mrb[28].mxu0 %v9640_v9 }
 0x188   : > { %v1392_v10 = vpop.permute.xlu1 %1391  ;;  %6922 = vmatprep.mubr.msk.f32.mxu0 %vm70_vm0, %v9644_v11  ;;  %7931 = vmatpush1.bf16.msra.mxu0 %v7930_v7 }
 0x189   : > { %1394 = vst.msk [vmem:[%s9090_s13 + $0x60] sm:$0xff] %vm1086_vm7, %v1392_v10  ;;  %7932 = vmatprep.subr.bf16.mxu0 %v8678_v25  ;;  %v6965_v10 = vld [vmem:[%s11919_s3 + $0x1e8] sm:$0xff] }
 0x18a   : > { %v1225_v49 = vpop.permute.xlu0 %1224 }
 0x18b   : > { %1227 = vst.msk [vmem:[%s9090_s13 + $0x30] sm:$0xff] %vm1068_vm5, %v1225_v49  ;;  %v6993_v49 = vld [vmem:[%s11919_s3 + $0x288] sm:$0xff] }
 0x18c   : > { %7934 = vmatpush1.bf16.msra.mxu0 %v7933_v57  ;;  %v6992_v57 = vld [vmem:[%s11919_s3 + $0x280] sm:$0xff] }
 0x18d   : > { %v1232_v61 = vpop.permute.xlu1 %1231  ;;  %7935 = vmatprep.subr.bf16.mxu0 %v8678_v25 }
 0x18e   : > { %1234 = vst.msk [vmem:[%s9090_s13 + $0x30] sm:$0xff] %vm1077_vm6, %v1232_v61  ;;  %v1239_v14 = vpop.permute.xlu0 %1238 }
 0x18f   : > { %1241 = vst.msk [vmem:[%s9090_s13 + $0x30] sm:$0xff] %vm1086_vm7, %v1239_v14  ;;  %v7987_v14 = vpack.c.bf16 %v6993_v49, %v6992_v57  ;;  %v6977_v57 = vld [vmem:[%s11919_s3 + $0x248] sm:$0xff]  ;;  %v7004_v49 = vld [vmem:[%s11919_s3 + $0x2e0] sm:$0xff] }
 0x190   : > { %7937 = vmatpush1.bf16.msra.mxu0 %v7936_v62  ;;  %v9759_v56 = vld [vmem:[%s9090_s13 + $0x60] sm:$0xff]  ;;  %v7957_v62 = vpack.c.bf16 %v6965_v10, %v6964_v8 }
 0x191   : > { %7938 = vmatprep.subr.bf16.mxu0 %v8678_v25  ;;  %v6976_v10 = vld [vmem:[%s11919_s3 + $0x240] sm:$0xff] }
 0x192   : > { %v1429_v18 = vpop.permute.xlu0 %1428 }
 0x193   : > { %1431 = vst.msk [vmem:[%s9090_s13 + $0x70] sm:$0xff] %vm1068_vm5, %v1429_v18  ;;  %v6995_v18 = vld [vmem:[%s11919_s3 + $0x298] sm:$0xff] }
 0x194   : > { %7940 = vmatpush1.bf16.msra.mxu0 %v7939_v17  ;;  %v6994_v17 = vld [vmem:[%s11919_s3 + $0x290] sm:$0xff] }
 0x195   : > { %7941 = vmatprep.subr.bf16.mxu0 %v8678_v25 }
 0x196   : > { %v1276_v21 = vpop.permute.xlu1 %1275  ;;  %v1283_v28 = vpop.permute.xlu0 %1282  ;;  %v9682_v29 = vld [vmem:[%s9090_s13 + $0x30] sm:$0xff] }
 0x197   : > { %1278 = vst.msk [vmem:[%s9090_s13 + $0x40] sm:$0xff] %vm1068_vm5, %v1276_v21  ;;  %1813 = vmatmul.mubr.f32.gmra.mrb[30].mxu0 %v9682_v29 }
 0x198   : > { %1285 = vst.msk [vmem:[%s9090_s13 + $0x40] sm:$0xff] %vm1077_vm6, %v1283_v28  ;;  %6923 = vmatprep.mubr.msk.f32.mxu0 %vm70_vm0, %v9695_v26  ;;  %7943 = vmatpush1.bf16.msra.mxu0 %v7942_v22  ;;  %v7960_v22 = vpack.c.bf16 %v6967_v16, %v6966_v15  ;;  %v7990_v28 = vpack.c.bf16 %v6995_v18, %v6994_v17  ;;  %v6979_v15 = vld [vmem:[%s11919_s3 + $0x258] sm:$0xff]  ;;  %v7006_v16 = vld [vmem:[%s11919_s3 + $0x2f0] sm:$0xff] }
 0x199   : > { %7944 = vmatprep.subr.bf16.mxu0 %v8678_v25  ;;  %v7007_v17 = vld [vmem:[%s11919_s3 + $0x2f8] sm:$0xff] }
 0x19a   : > { %v1290_v27 = vpop.permute.xlu1 %1289  ;;  %v1966_v18 = vld [vmem:[%s9090_s13 + $0x98] sm:$0xff] }
 0x19b   : > { %1292 = vst.msk [vmem:[%s9090_s13 + $0x40] sm:$0xff] %vm1086_vm7, %v1290_v27  ;;  %v6969_v27 = vld [vmem:[%s11919_s3 + $0x208] sm:$0xff] }
 0x19c   : > { %7946 = vmatpush1.bf16.msra.mxu0 %v7945_v30  ;;  %v6996_v30 = vld [vmem:[%s11919_s3 + $0x2a0] sm:$0xff] }
 0x19d   : > { %7947 = vmatprep.subr.bf16.mxu0 %v8678_v25 }
 0x1a0   : > { %v1334_v33 = vpop.permute.xlu1 %1333  ;;  %v1327_v34 = vpop.permute.xlu0 %1326  ;;  %7949 = vmatpush1.bf16.msra.mxu0 %v7948_v48  ;;  %v6998_v48 = vld [vmem:[%s11919_s3 + $0x2b0] sm:$0xff] }
 0x1a1   : > { %1329 = vst.msk [vmem:[%s9090_s13 + $0x50] sm:$0xff] %vm1068_vm5, %v1327_v34  ;;  %7950 = vmatprep.subr.bf16.mxu0 %v8678_v25  ;;  %v7993_v34 = vpack.c.bf16 %v6997_v31, %v6996_v30  ;;  %v7010_v31 = vld [vmem:[%s11919_s3 + $0x310] sm:$0xff] }
 0x1a2   : > { %1336 = vst.msk [vmem:[%s9090_s13 + $0x50] sm:$0xff] %vm1077_vm6, %v1334_v33  ;;  %v9720_v37 = vld [vmem:[%s9090_s13 + $0x40] sm:$0xff]  ;;  %v7963_v33 = vpack.c.bf16 %v6969_v27, %v6968_v43  ;;  %v6981_v43 = vld [vmem:[%s11919_s3 + $0x268] sm:$0xff] }
 0x1a3   : > { %1818 = vmatmul.mubr.f32.gmra.mrb[32].mxu0 %v9720_v37 }
 0x1a4   : > { %6924 = vmatprep.mubr.msk.f32.mxu0 %vm70_vm0, %v9724_v38  ;;  %v1436_v39 = vpop.permute.xlu1 %1435  ;;  %v1341_v40 = vpop.permute.xlu0 %1340  ;;  %7952 = vmatpush1.bf16.msra.mxu0 %v7951_v41  ;;  %v7000_v41 = vld [vmem:[%s11919_s3 + $0x2c0] sm:$0xff] }
 0x1a5   : > { %1438 = vst.msk [vmem:[%s9090_s13 + $0x70] sm:$0xff] %vm1077_vm6, %v1436_v39  ;;  %7953 = vmatprep.subr.bf16.mxu0 %v8678_v25 }
 0x1a6   : > { %1343 = vst.msk [vmem:[%s9090_s13 + $0x50] sm:$0xff] %vm1086_vm7, %v1341_v40  ;;  %v7966_v40 = vpack.c.bf16 %v6971_v35, %v6970_v36 }
 0x1a8   : > { %v1480_v45 = vpop.permute.xlu1 %1479  ;;  %v1443_v46 = vpop.permute.xlu0 %1442  ;;  %7955 = vmatpush1.bf16.msra.mxu0 %v7954_v47 }
 0x1a9   : > { %1482 = vst.msk [vmem:[%s9090_s13 + $0x80] sm:$0xff] %vm1068_vm5, %v1480_v45  ;;  %7986 = vmatprep.subr.bf16.mxu0 %v8678_v25  ;;  %v6973_v45 = vld [vmem:[%s11919_s3 + $0x228] sm:$0xff] }
 0x1aa   : > { %1445 = vst.msk [vmem:[%s9090_s13 + $0x70] sm:$0xff] %vm1086_vm7, %v1443_v46 }
 0x1ac   : > { %v1487_v50 = vpop.permute.xlu0 %1486  ;;  %v1066_v51 = vpop.permute.xlu1 %1065 }
 0x1ad   : > { %v9745_v52 = vld [vmem:[%s9090_s13 + $0x50] sm:$0xff]  ;;  %1489 = vst.msk [vmem:[%s9090_s13 + $0x80] sm:$0xff] %vm1077_vm6, %v1487_v50  ;;  %v7969_v50 = vpack.c.bf16 %v6973_v45, %v6972_v44 }
 0x1ae   : > { %1069 = vst.msk [vmem:[%s9090_s13] sm:$0xff] %vm1068_vm5, %v1066_v51  ;;  %1823 = vmatmul.mubr.f32.gmra.mrb[34].mxu0 %v9745_v52  ;;  %v6974_v51 = vld [vmem:[%s11919_s3 + $0x230] sm:$0xff] }
 0x1af   : > { %6925 = vmatprep.mubr.msk.f32.mxu0 %vm70_vm0, %v9753_v53 }
 0x1b0   : > { %v1494_v54 = vpop.permute.xlu0 %1493  ;;  %v1075_v55 = vpop.permute.xlu1 %1074 }
 0x1b1   : > { %1496 = vst.msk [vmem:[%s9090_s13 + $0x80] sm:$0xff] %vm1086_vm7, %v1494_v54  ;;  %v9772_v63 = vld [vmem:[%s9090_s13 + $0x70] sm:$0xff]  ;;  %v6975_v54 = vld [vmem:[%s11919_s3 + $0x238] sm:$0xff] }
 0x1b2   : > { %1078 = vst.msk [vmem:[%s9090_s13] sm:$0xff] %vm1077_vm6, %v1075_v55  ;;  %1828 = vmatmul.mubr.f32.gmra.mrb[36].mxu0 %v9759_v56  ;;  %v7002_v55 = vld [vmem:[%s11919_s3 + $0x2d0] sm:$0xff] }
 0x1b3   : > { %6926 = vmatprep.mubr.msk.f32.mxu0 %vm70_vm0, %v9767_v58 }
 0x1b4   : > { %v1084_v60 = vpop.permute.xlu0 %1083  ;;  %v1531_v7 = vpop.permute.xlu1 %1530 }
 0x1b5   : > { %1087 = vst.msk [vmem:[%s9090_s13] sm:$0xff] %vm1086_vm7, %v1084_v60  ;;  %v7003_v60 = vld [vmem:[%s11919_s3 + $0x2d8] sm:$0xff] }
 0x1b6   : > { %1833 = vmatmul.mubr.f32.gmra.mrb[38].mxu0 %v9772_v63  ;;  %1533 = vst.msk [vmem:[%s9090_s13 + $0x90] sm:$0xff] %vm1068_vm5, %v1531_v7  ;;  %v7972_v7 = vpack.c.bf16 %v6975_v54, %v6974_v51  ;;  %v8002_v8 = vpack.c.bf16 %v7003_v60, %v7002_v55 }
 0x1b7   : > { %6927 = vmatprep.mubr.msk.f32.mxu0 %vm70_vm0, %v9778_v24 }
 0x1b8   : > { %v9797_v12 = vld [vmem:[%s9090_s13 + $0x80] sm:$0xff]  ;;  %v1538_v13 = vpop.permute.xlu0 %1537  ;;  %v1545_v61 = vpop.permute.xlu1 %1544 }
 0x1b9   : > { %1540 = vst.msk [vmem:[%s9090_s13 + $0x90] sm:$0xff] %vm1077_vm6, %v1538_v13  ;;  %v7005_v13 = vld [vmem:[%s11919_s3 + $0x2e8] sm:$0xff] }
 0x1ba   : > { %1838 = vmatmul.mubr.f32.gmra.mrb[40].mxu0 %v9797_v12  ;;  %1547 = vst.msk [vmem:[%s9090_s13 + $0x90] sm:$0xff] %vm1086_vm7, %v1545_v61  ;;  %v7975_v61 = vpack.c.bf16 %v6977_v57, %v6976_v10 }
 0x1bb   : > { %6956 = vmatprep.mubr.msk.f32.mxu0 %vm70_vm0, %v9624_v6 }
 0x1bc   : > { %v1655_v19 = vld [vmem:[%s9090_s13] sm:$0xff]  ;;  %v1582_v20 = vpop.permute.xlu0 %1581  ;;  %v1589_v21 = vpop.permute.xlu1 %1588 }
 0x1bd   : > { %1911 = vmatmul.mubr.f32.vlgmr.msra.gmra.mrb[46].mxu1 %v1655_v19  ;;  %1584 = vst.msk [vmem:[%s9090_s13 + $0xa0] sm:$0xff] %vm1068_vm5, %v1582_v20  ;;  %v8008_v20 = vpack.c.bf16 %v7007_v17, %v7006_v16 }
 0x1be   : > { %2077 = vmatmul.mubr.f32.vlgmr.msra.gmra.mrb[42].mxu0 %v9640_v9  ;;  %7958 = vmatpush1.bf16.msra.mxu1 %v7957_v62  ;;  %1591 = vst.msk [vmem:[%s9090_s13 + $0xa0] sm:$0xff] %vm1077_vm6, %v1589_v21  ;;  %v8005_v62 = vpack.c.bf16 %v7005_v13, %v7004_v49  ;;  %v7008_v21 = vld [vmem:[%s11919_s3 + $0x300] sm:$0xff] }
 0x1bf   : > { %7988 = vmatpush1.bf16.msra.mxu0 %v7987_v14  ;;  %6929 = vmatprep.mubr.msk.f32.mxu1 %vm70_vm0, %v8669_v23  ;;  %v6978_v14 = vld [vmem:[%s11919_s3 + $0x250] sm:$0xff] }
 0x1c0   : > { %6957 = vmatprep.mubr.msk.f32.mxu0 %vm70_vm0, %v9644_v11  ;;  %7959 = vmatprep.subr.bf16.mxu1 %v8678_v25  ;;  %v1596_v32 = vpop.permute.xlu0 %1595  ;;  %v7978_v19 = vpack.c.bf16 %v6979_v15, %v6978_v14 }
 0x1c1   : > { %7989 = vmatprep.subr.bf16.mxu0 %v8678_v25  ;;  %1916 = vmatmul.mubr.f32.gmra.mrb[48].mxu1 %v9620_v59  ;;  %1598 = vst.msk [vmem:[%s9090_s13 + $0xa0] sm:$0xff] %vm1086_vm7, %v1596_v32  ;;  %v6999_v59 = vld [vmem:[%s11919_s3 + $0x2b8] sm:$0xff]  ;;  %v1965_v23 = vld [vmem:[%s9090_s13 + $0x90] sm:$0xff] }
 0x1c2   : > { %2082 = vmatmul.mubr.f32.gmra.mrb[44].mxu0 %v9682_v29  ;;  %7961 = vmatpush1.bf16.msra.mxu1 %v7960_v22  ;;  %v7996_v39 = vpack.c.bf16 %v6999_v59, %v6998_v48  ;;  %v7009_v22 = vld [vmem:[%s11919_s3 + $0x308] sm:$0xff]  ;;  %v7011_v32 = vld [vmem:[%s11919_s3 + $0x318] sm:$0xff] }
 0x1c3   : > { %7991 = vmatpush1.bf16.msra.mxu0 %v7990_v28  ;;  %6930 = vmatprep.mubr.msk.f32.mxu1 %vm70_vm0, %v9624_v6  ;;  %v1633_v6 = vpop.permute.xlu1 %1632  ;;  %v6980_v28 = vld [vmem:[%s11919_s3 + $0x260] sm:$0xff]  ;;  %v8011_v27 = vpack.c.bf16 %v7009_v22, %v7008_v21 }
 0x1c4   : > { %6958 = vmatprep.mubr.msk.f32.mxu0 %vm70_vm0, %v9695_v26  ;;  %7962 = vmatprep.subr.bf16.mxu1 %v8678_v25  ;;  %1635 = vst.msk [vmem:[%s9090_s13 + $0xb0] sm:$0xff] %vm1068_vm5, %v1633_v6  ;;  %v1640_v42 = vpop.permute.xlu0 %1639  ;;  %v7981_v30 = vpack.c.bf16 %v6981_v43, %v6980_v28 }
 0x1c5   : > { %7992 = vmatprep.subr.bf16.mxu0 %v8678_v25  ;;  %1921 = vmatmul.mubr.f32.gmra.mrb[50].mxu1 %v9640_v9  ;;  %v7001_v9 = vld [vmem:[%s11919_s3 + $0x2c8] sm:$0xff]  ;;  %1642 = vst.msk [vmem:[%s9090_s13 + $0xb0] sm:$0xff] %vm1077_vm6, %v1640_v42 }
 0x1c6   : > { %2087 = vmatmul.mubr.f32.gmra.mrb[46].mxu0 %v9720_v37  ;;  %7964 = vmatpush1.bf16.msra.mxu1 %v7963_v33  ;;  %v7999_v47 = vpack.c.bf16 %v7001_v9, %v7000_v41  ;;  %v6982_v33 = vld [vmem:[%s11919_s3 + $0x270] sm:$0xff] }
 0x1c7   : > { %7994 = vmatpush1.bf16.msra.mxu0 %v7993_v34  ;;  %6931 = vmatprep.mubr.msk.f32.mxu1 %vm70_vm0, %v9644_v11  ;;  %v1647_v46 = vpop.permute.xlu1 %1646  ;;  %v6983_v34 = vld [vmem:[%s11919_s3 + $0x278] sm:$0xff] }
 0x1c8   : > { %6959 = vmatprep.mubr.msk.f32.mxu0 %vm70_vm0, %v9724_v38  ;;  %7965 = vmatprep.subr.bf16.mxu1 %v8678_v25  ;;  %1649 = vst.msk [vmem:[%s9090_s13 + $0xb0] sm:$0xff] %vm1086_vm7, %v1647_v46  ;;  %v7984_v48 = vpack.c.bf16 %v6983_v34, %v6982_v33 }
 0x1c9   : > { %7995 = vmatprep.subr.bf16.mxu0 %v8678_v25  ;;  %1926 = vmatmul.mubr.f32.gmra.mrb[52].mxu1 %v9682_v29 }
 0x1ca   : > { %2092 = vmatmul.mubr.f32.gmra.mrb[48].mxu0 %v9745_v52  ;;  %7967 = vmatpush1.bf16.msra.mxu1 %v7966_v40 }
 0x1cb   : > { %7997 = vmatpush1.bf16.msra.mxu0 %v7996_v39  ;;  %6932 = vmatprep.mubr.msk.f32.mxu1 %vm70_vm0, %v9695_v26 }
 0x1cc   : > { %6960 = vmatprep.mubr.msk.f32.mxu0 %vm70_vm0, %v9753_v53  ;;  %7998 = vmatprep.subr.bf16.mxu0 %v8678_v25 }
 0x1cd   : > { %7968 = vmatprep.subr.bf16.mxu1 %v8678_v25  ;;  %1931 = vmatmul.mubr.f32.gmra.mrb[54].mxu1 %v9720_v37 }
 0x1ce   : > { %2097 = vmatmul.mubr.f32.gmra.mrb[50].mxu0 %v9759_v56  ;;  %7970 = vmatpush1.bf16.msra.mxu1 %v7969_v50 }
 0x1cf   : > { %8000 = vmatpush1.bf16.msra.mxu0 %v7999_v47  ;;  %6933 = vmatprep.mubr.msk.f32.mxu1 %vm70_vm0, %v9724_v38 }
 0x1d0   : > { %6961 = vmatprep.mubr.msk.f32.mxu0 %vm70_vm0, %v9767_v58  ;;  %7971 = vmatprep.subr.bf16.mxu1 %v8678_v25 }
 0x1d1   : > { %8001 = vmatprep.subr.bf16.mxu0 %v8678_v25  ;;  %1936 = vmatmul.mubr.f32.gmra.mrb[56].mxu1 %v9745_v52 }
 0x1d2   : > { %2102 = vmatmul.mubr.f32.gmra.mrb[52].mxu0 %v9772_v63  ;;  %7973 = vmatpush1.bf16.msra.mxu1 %v7972_v7 }
 0x1d3   : > { %8003 = vmatpush1.bf16.msra.mxu0 %v8002_v8  ;;  %6934 = vmatprep.mubr.msk.f32.mxu1 %vm70_vm0, %v9753_v53 }
 0x1d4   : > { %6962 = vmatprep.mubr.msk.f32.mxu0 %vm70_vm0, %v9778_v24  ;;  %7974 = vmatprep.subr.bf16.mxu1 %v8678_v25 }
 0x1d5   : > { %8004 = vmatprep.subr.bf16.mxu0 %v8678_v25  ;;  %1941 = vmatmul.mubr.f32.gmra.mrb[58].mxu1 %v9759_v56 }
 0x1d6   : > { %2107 = vmatmul.mubr.f32.gmra.mrb[54].mxu0 %v9797_v12  ;;  %7976 = vmatpush1.bf16.msra.mxu1 %v7975_v61 }
 0x1d7   : > { %8006 = vmatpush1.bf16.msra.mxu0 %v8005_v62  ;;  %6935 = vmatprep.mubr.msk.f32.mxu1 %vm70_vm0, %v9767_v58 }
 0x1d8   : > { %6963 = vmatprep.mubr.msk.f32.mxu0 %vm70_vm0, %v1966_v18  ;;  %7977 = vmatprep.subr.bf16.mxu1 %v8678_v25 }
 0x1d9   : > { %8007 = vmatprep.subr.bf16.mxu0 %v8678_v25  ;;  %1946 = vmatmul.mubr.f32.gmra.mrb[60].mxu1 %v9772_v63 }
 0x1da   : > { %2112 = vmatmul.mubr.f32.gmra.mrb[56].mxu0 %v1965_v23  ;;  %7979 = vmatpush1.bf16.msra.mxu1 %v7978_v19 }
 0x1db   : > { %8009 = vmatpush1.bf16.msra.mxu0 %v8008_v20  ;;  %6984 = vmatprep.mubr.msk.f32.mxu1 %vm70_vm0, %v9644_v11  ;;  %v8014_v11 = vpack.c.bf16 %v7011_v32, %v7010_v31 }
 0x1dc   : > { %7012 = vmatprep.mubr.msk.f32.mxu0 %vm70_vm0, %v9695_v26  ;;  %7980 = vmatprep.subr.bf16.mxu1 %v8678_v25 }
 0x1dd   : > { %8010 = vmatprep.subr.bf16.mxu0 %v8678_v25 }
 0x1de   : > { %7982 = vmatpush1.bf16.msra.mxu1 %v7981_v30 }
 0x1df   : > { %8012 = vmatpush1.bf16.msra.mxu0 %v8011_v27  ;;  %7983 = vmatprep.subr.bf16.mxu1 %v8678_v25 }
 0x1e0   : > { %8013 = vmatprep.subr.bf16.mxu0 %v8678_v25  ;;  %v2312_v25 = vld [vmem:[%s9090_s13 + $0xa8] sm:$0xff] }
 0x1e2   : > { %7985 = vmatpush1.bf16.msra.mxu1 %v7984_v48 }
 0x1e3   : > { %8015 = vmatpush1.bf16.msra.mxu0 %v8014_v11 }
 0x1e5   : > { %2251 = vmatmul.mubr.f32.vlgmr.msra.gmra.mrb[62].mxu1 %v9682_v29  ;;  %v2311_v29 = vld [vmem:[%s9090_s13 + $0xa0] sm:$0xff] }
 0x1e6   : > { %2425 = vmatmul.mubr.f32.vlgmr.msra.gmra.mrb[58].mxu0 %v9720_v37  ;;  %6985 = vmatprep.mubr.msk.f32.mxu1 %vm70_vm0, %v9695_v26  ;;  %v2314_v26 = vld [vmem:[%s9090_s13 + $0xb8] sm:$0xff] }
 0x1e7   : > { %7013 = vmatprep.mubr.msk.f32.mxu0 %vm70_vm0, %v9724_v38 }
 0x1e9   : > { %2256 = vmatmul.mubr.f32.gmra.mrb[64].mxu1 %v9720_v37  ;;  %v2313_v37 = vld [vmem:[%s9090_s13 + $0xb0] sm:$0xff]  ;;  %s7020_s13 = sshll.u32 %s8676_s21, 6  ;;  %s43_s21 = sadd.s32 1, %s8676_s21  }
 0x1ea   : > { %2430 = vmatmul.mubr.f32.gmra.mrb[60].mxu0 %v9745_v52  ;;  %6986 = vmatprep.mubr.msk.f32.mxu1 %vm70_vm0, %v9724_v38  ;;  %s10032_s16 = scalar_lea.vmem [#allocation4], %s7020_s13  ;;  %p40_p0 = scmp.ge.s32.totalorder %s43_s21, 8  }
 0x1eb   : > { %7014 = vmatprep.mubr.msk.f32.mxu0 %vm70_vm0, %v9753_v53  ;;  %v7022_v0 = vld [vmem:[%s11921_s5 + $0x100] sm:$0xff] (%p40_p0)  ;;  %v8682_v2 = vmov (%p40_p0), 0.0   ;;  %vm2695_vm8 = vcmask (%p40_p0), 523264  }
 0x1ec   :  { %v7026_v1 = vld [vmem:[%s11921_s5 + $0x120] sm:$0xff] (%p40_p0) }
 0x1ed   : > { %2261 = vmatmul.mubr.f32.gmra.mrb[66].mxu1 %v9745_v52  ;;  %v8018_v4 = vpack.c.bf16 (%p40_p0), %v7026_v1, %v7022_v0 }
 0x1ee   : > { %2435 = vmatmul.mubr.f32.gmra.mrb[62].mxu0 %v9759_v56  ;;  %6987 = vmatprep.mubr.msk.f32.mxu1 %vm70_vm0, %v9753_v53 }
 0x1ef   : > { %7015 = vmatprep.mubr.msk.f32.mxu0 %vm70_vm0, %v9767_v58 }
 0x1f1   : > { %2266 = vmatmul.mubr.f32.gmra.mrb[68].mxu1 %v9759_v56 }
 0x1f2   : > { %2440 = vmatmul.mubr.f32.gmra.mrb[64].mxu0 %v9772_v63  ;;  %6988 = vmatprep.mubr.msk.f32.mxu1 %vm70_vm0, %v9767_v58 }
 0x1f3   : > { %7016 = vmatprep.mubr.msk.f32.mxu0 %vm70_vm0, %v9778_v24 }
 0x1f5   : > { %2271 = vmatmul.mubr.f32.gmra.mrb[70].mxu1 %v9772_v63 }
 0x1f6   : > { %2445 = vmatmul.mubr.f32.gmra.mrb[66].mxu0 %v9797_v12  ;;  %6989 = vmatprep.mubr.msk.f32.mxu1 %vm70_vm0, %v9778_v24 }
 0x1f7   : > { %7017 = vmatprep.mubr.msk.f32.mxu0 %vm70_vm0, %v1966_v18 }
 0x1f9   : > { %2276 = vmatmul.mubr.f32.gmra.mrb[72].mxu1 %v9797_v12 }
 0x1fa   : > { %2450 = vmatmul.mubr.f32.gmra.mrb[68].mxu0 %v1965_v23  ;;  %6990 = vmatprep.mubr.msk.f32.mxu1 %vm70_vm0, %v1966_v18 }
 0x1fb   : > { %7018 = vmatprep.mubr.msk.f32.mxu0 %vm70_vm0, %v2312_v25 }
 0x1fd   : > { %2281 = vmatmul.mubr.f32.gmra.mrb[74].mxu1 %v1965_v23 }
 0x1fe   : > { %2455 = vmatmul.mubr.f32.gmra.mrb[70].mxu0 %v2311_v29  ;;  %6991 = vmatprep.mubr.msk.f32.mxu1 %vm70_vm0, %v2312_v25 }
 0x1ff   : > { %7019 = vmatprep.mubr.msk.f32.mxu0 %vm70_vm0, %v2314_v26 }
 0x201   : > { %2286 = vmatmul.mubr.f32.gmra.mrb[76].mxu1 %v2311_v29 }
 0x202   : > { %2460 = vmatmul.mubr.f32.gmra.mrb[72].mxu0 %v2313_v37  ;;  %2834 = vmatprep.mubr.f32.mxu1 (%p40_p0), %v8682_v2 }
 0x203   :  { %2763 = vmatprep.mubr.f32.mxu0 (%p40_p0), %v8682_v2 }
 0x256   : > { %v1804_v38 = vpop.f32.mrb[26].mxu0 }
 0x257   : > { %v1806_v52 = vpop.f32.mrb[27].mxu0 }
 0x25a   : > { %v1809_v53 = vpop.f32.mrb[28].mxu0 }
 0x25b   : > { %v1811_v56 = vpop.f32.mrb[29].mxu0 }
 0x26a   : > { %v1814_v58 = vpop.f32.mrb[30].mxu0 }
 0x26b   : > { %v1816_v63 = vpop.f32.mrb[31].mxu0 }
 0x276   : > { %v1819_v24 = vpop.f32.mrb[32].mxu0 }
 0x277   : > { %v1821_v12 = vpop.f32.mrb[33].mxu0 }
 0x281   : > { %v1824_v59 = vpop.f32.mrb[34].mxu0 }
 0x282   : > { %v1826_v36 = vpop.f32.mrb[35].mxu0 }
 0x285   : > { %v1829_v35 = vpop.f32.mrb[36].mxu0 }
 0x286   : > { %v1831_v6 = vpop.f32.mrb[37].mxu0 }
 0x289   : > { %v1834_v39 = vpop.f32.mrb[38].mxu0 }
 0x28a   : > { %v1836_v40 = vpop.f32.mrb[39].mxu0 }
 0x28d   : > { %v1839_v41 = vpop.f32.mrb[40].mxu0 }
 0x28e   : > { %v1841_v42 = vpop.f32.mrb[41].mxu0 }
 0x290   : > { %v1912_v9 = vpop.f32.mrb[46].mxu1 }
 0x291   : > { %v2078_v44 = vpop.f32.mrb[42].mxu0  ;;  %v1913_v45 = vadd.f32 %v1912_v9, %v1804_v38  ;;  %v1914_v46 = vpop.f32.mrb[47].mxu1 }
 0x292   : > { %v2080_v47 = vpop.f32.mrb[43].mxu0 }
 0x293   : > { %v2117_v50 = vadd.f32 %v2078_v44, %v1913_v45 }
 0x294   : > { %v1917_v51 = vpop.f32.mrb[48].mxu1 }
 0x295   : > { %v2083_v54 = vpop.f32.mrb[44].mxu0  ;;  %v1918_v55 = vadd.f32 %v1917_v51, %v1809_v53  ;;  %v1919_v60 = vpop.f32.mrb[49].mxu1 }
 0x296   : > { %v2085_v7 = vpop.f32.mrb[45].mxu0 }
 0x297   : > { %v2118_v8 = vadd.f32 %v2083_v54, %v1918_v55 }
 0x298   : > { %v1922_v10 = vpop.f32.mrb[50].mxu1 }
 0x299   : > { %v2088_v57 = vpop.f32.mrb[46].mxu0  ;;  %v1923_v49 = vadd.f32 %v1922_v10, %v1814_v58  ;;  %v1924_v13 = vpop.f32.mrb[51].mxu1 }
 0x29a   : > { %v2090_v61 = vpop.f32.mrb[47].mxu0 }
 0x29b   : > { %v2119_v62 = vadd.f32 %v2088_v57, %v1923_v49 }
 0x29c   : > { %v1927_v14 = vpop.f32.mrb[52].mxu1 }
 0x29d   : > { %v2093_v15 = vpop.f32.mrb[48].mxu0  ;;  %v1928_v16 = vadd.f32 %v1927_v14, %v1819_v24  ;;  %v1929_v17 = vpop.f32.mrb[53].mxu1 }
 0x29e   : > { %v2095_v18 = vpop.f32.mrb[49].mxu0 }
 0x29f   : > { %v2120_v19 = vadd.f32 %v2093_v15, %v1928_v16 }
 0x2a0   : > { %v1932_v20 = vpop.f32.mrb[54].mxu1 }
 0x2a1   : > { %v2098_v21 = vpop.f32.mrb[50].mxu0  ;;  %v1933_v22 = vadd.f32 %v1932_v20, %v1824_v59  ;;  %v1934_v28 = vpop.f32.mrb[55].mxu1 }
 0x2a2   : > { %v2100_v43 = vpop.f32.mrb[51].mxu0 }
 0x2a3   : > { %v2121_v23 = vadd.f32 %v2098_v21, %v1933_v22 }
 0x2a4   : > { %v1937_v27 = vpop.f32.mrb[56].mxu1 }
 0x2a5   : > { %v2103_v30 = vpop.f32.mrb[52].mxu0  ;;  %v1938_v31 = vadd.f32 %v1937_v27, %v1829_v35  ;;  %v1939_v32 = vpop.f32.mrb[57].mxu1 }
 0x2a6   : > { %v2105_v33 = vpop.f32.mrb[53].mxu0 }
 0x2a7   : > { %v2122_v34 = vadd.f32 %v2103_v30, %v1938_v31 }
 0x2a8   : > { %v1942_v11 = vpop.f32.mrb[58].mxu1 }
 0x2a9   : > { %v2108_v48 = vpop.f32.mrb[54].mxu0  ;;  %v1943_v25 = vadd.f32 %v1942_v11, %v1834_v39  ;;  %v1944_v29 = vpop.f32.mrb[59].mxu1 }
 0x2aa   : > { %v2110_v26 = vpop.f32.mrb[55].mxu0 }
 0x2ab   : > { %v2123_v37 = vadd.f32 %v2108_v48, %v1943_v25 }
 0x2ac   : > { %v1947_v38 = vpop.f32.mrb[60].mxu1 }
 0x2ad   : > { %v2113_v52 = vpop.f32.mrb[56].mxu0  ;;  %v1948_v53 = vadd.f32 %v1947_v38, %v1839_v41  ;;  %v1949_v56 = vpop.f32.mrb[61].mxu1 }
 0x2ae   : > { %v2115_v58 = vpop.f32.mrb[57].mxu0 }
 0x2af   : > { %v2124_v63 = vadd.f32 %v2113_v52, %v1948_v53 }
 0x2b8   : > { %v2252_v24 = vpop.f32.mrb[62].mxu1 }
 0x2b9   : > { %v2426_v12 = vpop.f32.mrb[58].mxu0  ;;  %v2291_v59 = vadd.f32 %v2252_v24, %v2117_v50  ;;  %v2254_v36 = vpop.f32.mrb[63].mxu1  ;;  %v7025_v24 = vld [vmem:[%s11921_s5 + $0x118] sm:$0xff] (%p40_p0) }
 0x2ba   : > { %v2428_v35 = vpop.f32.mrb[59].mxu0  ;;  %v7028_v36 = vld [vmem:[%s11921_s5 + $0x130] sm:$0xff] (%p40_p0) }
 0x2bb   : > { %v2465_v6 = vadd.f32 %v2426_v12, %v2291_v59  ;;  %v7029_v59 = vld [vmem:[%s11921_s5 + $0x138] sm:$0xff] (%p40_p0)  ;;  %v7031_v35 = vld [vmem:[%s11921_s5 + $0x148] sm:$0xff] (%p40_p0) }
 0x2bc   : > { %v2257_v40 = vpop.f32.mrb[64].mxu1  ;;  %v8032_v3 = vpack.c.bf16 (%p40_p0), %v7029_v59, %v7025_v24 }
 0x2bd   : > { %v2431_v42 = vpop.f32.mrb[60].mxu0  ;;  %v2480_v39 = vadd.f32 %v8761_v5, %v2465_v6  ;;  %v2292_v9 = vadd.f32 %v2257_v40, %v2118_v8  ;;  %v2259_v44 = vpop.f32.mrb[65].mxu1  ;;  %v7035_v40 = vld [vmem:[%s11921_s5 + $0x168] sm:$0xff] (%p40_p0) }
 0x2be   : > { %v2433_v45 = vpop.f32.mrb[61].mxu0  ;;  %8033 = vmatprep.subr.bf16.mxu1 (%p40_p0), %v8032_v3 }
 0x2bf   : > { %2489 = vst [vmem:[%s10032_s16] sm:$0xff] %v2480_v39  ;;  %v2466_v41 = vadd.f32 %v2431_v42, %v2292_v9  ;;  %v7033_v42 = vld [vmem:[%s11921_s5 + $0x158] sm:$0xff] (%p40_p0)  ;;  %v8020_v9 = vpack.c.bf16 (%p40_p0), %v7035_v40, %v7031_v35  ;;  %v7030_v45 = vld [vmem:[%s11921_s5 + $0x140] sm:$0xff] (%p40_p0) }
 0x2c0   : > { %v2262_v46 = vpop.f32.mrb[66].mxu1  ;;  %v7037_v39 = vld [vmem:[%s11921_s5 + $0x178] sm:$0xff] (%p40_p0) }
 0x2c1   : > { %v2436_v47 = vpop.f32.mrb[62].mxu0  ;;  %v2481_v50 = vadd.f32 %v8761_v5, %v2466_v41  ;;  %v2293_v51 = vadd.f32 %v2262_v46, %v2119_v62  ;;  %v2264_v54 = vpop.f32.mrb[67].mxu1  ;;  %v8036_v44 = vpack.c.bf16 (%p40_p0), %v7037_v39, %v7033_v42  ;;  %v7034_v41 = vld [vmem:[%s11921_s5 + $0x160] sm:$0xff] (%p40_p0)  ;;  %v7032_v46 = vld [vmem:[%s11921_s5 + $0x150] sm:$0xff] (%p40_p0) }
 0x2c2   : > { %v2438_v55 = vpop.f32.mrb[63].mxu0  ;;  %v7043_v54 = vld [vmem:[%s11921_s5 + $0x1a8] sm:$0xff] (%p40_p0) }
 0x2c3   : > { %2490 = vst [vmem:[%s10032_s16 + $0x8] sm:$0xff] %v2481_v50  ;;  %v2467_v60 = vadd.f32 %v2436_v47, %v2293_v51  ;;  %v8022_v47 = vpack.c.bf16 (%p40_p0), %v7034_v41, %v7030_v45  ;;  %v7036_v50 = vld [vmem:[%s11921_s5 + $0x170] sm:$0xff] (%p40_p0)  ;;  %v7039_v51 = vld [vmem:[%s11921_s5 + $0x188] sm:$0xff] (%p40_p0) }
 0x2c4   : > { %v2267_v7 = vpop.f32.mrb[68].mxu1  ;;  %v8038_v55 = vpack.c.bf16 (%p40_p0), %v7036_v50, %v7032_v46 }
 0x2c5   : > { %v2441_v8 = vpop.f32.mrb[64].mxu0  ;;  %v2482_v10 = vadd.f32 %v8761_v5, %v2467_v60  ;;  %v2294_v57 = vadd.f32 %v2267_v7, %v2120_v19  ;;  %v2269_v49 = vpop.f32.mrb[69].mxu1  ;;  %v8024_v60 = vpack.c.bf16 (%p40_p0), %v7043_v54, %v7039_v51  ;;  %v7041_v7 = vld [vmem:[%s11921_s5 + $0x198] sm:$0xff] (%p40_p0) }
 0x2c6   : > { %v2443_v13 = vpop.f32.mrb[65].mxu0  ;;  %v7042_v49 = vld [vmem:[%s11921_s5 + $0x1a0] sm:$0xff] (%p40_p0) }
 0x2c7   : > { %2491 = vst [vmem:[%s10032_s16 + $0x10] sm:$0xff] %v2482_v10  ;;  %v2468_v61 = vadd.f32 %v2441_v8, %v2294_v57  ;;  %v7045_v8 = vld [vmem:[%s11921_s5 + $0x1b8] sm:$0xff] (%p40_p0)  ;;  %v7038_v10 = vld [vmem:[%s11921_s5 + $0x180] sm:$0xff] (%p40_p0)  ;;  %v7040_v13 = vld [vmem:[%s11921_s5 + $0x190] sm:$0xff] (%p40_p0) }
 0x2c8   : > { %v2272_v14 = vpop.f32.mrb[70].mxu1  ;;  %v8040_v57 = vpack.c.bf16 (%p40_p0), %v7045_v8, %v7041_v7 }
 0x2c9   : > { %v2446_v15 = vpop.f32.mrb[66].mxu0  ;;  %v2483_v16 = vadd.f32 %v8761_v5, %v2468_v61  ;;  %v2295_v62 = vadd.f32 %v2272_v14, %v2121_v23  ;;  %v2274_v17 = vpop.f32.mrb[71].mxu1  ;;  %v7044_v61 = vld [vmem:[%s11921_s5 + $0x1b0] sm:$0xff] (%p40_p0)  ;;  %v8026_v14 = vpack.c.bf16 (%p40_p0), %v7042_v49, %v7038_v10 }
 0x2ca   : > { %v2448_v18 = vpop.f32.mrb[67].mxu0  ;;  %v8042_v17 = vpack.c.bf16 (%p40_p0), %v7044_v61, %v7040_v13 }
 0x2cb   : > { %2492 = vst [vmem:[%s10032_s16 + $0x18] sm:$0xff] %v2483_v16  ;;  %v2469_v20 = vadd.f32 %v2446_v15, %v2295_v62  ;;  %v7047_v15 = vld [vmem:[%s11921_s5 + $0x1c8] sm:$0xff] (%p40_p0)  ;;  %v7049_v62 = vld [vmem:[%s11921_s5 + $0x1d8] sm:$0xff] (%p40_p0) }
 0x2cc   : > { %v2277_v21 = vpop.f32.mrb[72].mxu1  ;;  %v7051_v16 = vld [vmem:[%s11921_s5 + $0x1e8] sm:$0xff] (%p40_p0) }
 0x2cd   : > { %v2451_v22 = vpop.f32.mrb[68].mxu0  ;;  %v2484_v28 = vadd.f32 %v8761_v5, %v2469_v20  ;;  %v2296_v19 = vadd.f32 %v2277_v21, %v2122_v34  ;;  %v2279_v43 = vpop.f32.mrb[73].mxu1  ;;  %v8028_v18 = vpack.c.bf16 (%p40_p0), %v7051_v16, %v7047_v15  ;;  %v7053_v20 = vld [vmem:[%s11921_s5 + $0x1f8] sm:$0xff] (%p40_p0)  ;;  %v7046_v21 = vld [vmem:[%s11921_s5 + $0x1c0] sm:$0xff] (%p40_p0) }
 0x2ce   : > { %v2453_v27 = vpop.f32.mrb[69].mxu0  ;;  %v7052_v43 = vld [vmem:[%s11921_s5 + $0x1f0] sm:$0xff] (%p40_p0) }
 0x2cf   : > { %2493 = vst [vmem:[%s10032_s16 + $0x20] sm:$0xff] %v2484_v28  ;;  %v2470_v30 = vadd.f32 %v2451_v22, %v2296_v19  ;;  %v7050_v22 = vld [vmem:[%s11921_s5 + $0x1e0] sm:$0xff] (%p40_p0)  ;;  %v8044_v28 = vpack.c.bf16 (%p40_p0), %v7053_v20, %v7049_v62  ;;  %v7048_v19 = vld [vmem:[%s11921_s5 + $0x1d0] sm:$0xff] (%p40_p0)  ;;  %v2564_v27 = vld [vmem:[%s11921_s5 + $0x8] sm:$0xff] (%p40_p0) }
 0x2d0   : > { %v2282_v31 = vpop.f32.mrb[74].mxu1 }
 0x2d1   : > { %v2456_v32 = vpop.f32.mrb[70].mxu0  ;;  %v2485_v23 = vadd.f32 %v8761_v5, %v2470_v30  ;;  %v2297_v33 = vadd.f32 %v2282_v31, %v2123_v37  ;;  %v2284_v11 = vpop.f32.mrb[75].mxu1  ;;  %v7023_v37 = vld [vmem:[%s11921_s5 + $0x108] sm:$0xff] (%p40_p0)  ;;  %v2566_v31 = vld [vmem:[%s11921_s5 + $0x18] sm:$0xff] (%p40_p0) }
 0x2d2   : > { %v2458_v48 = vpop.f32.mrb[71].mxu0  ;;  %v2568_v30 = vld [vmem:[%s11921_s5 + $0x28] sm:$0xff] (%p40_p0) }
 0x2d3   : > { %2494 = vst [vmem:[%s10032_s16 + $0x28] sm:$0xff] %v2485_v23  ;;  %v2471_v25 = vadd.f32 %v2456_v32, %v2297_v33  ;;  %v2570_v32 = vld [vmem:[%s11921_s5 + $0x38] sm:$0xff] (%p40_p0)  ;;  %v8030_v23 = vpack.c.bf16 (%p40_p0), %v7050_v22, %v7046_v21  ;;  %v8046_v48 = vpack.c.bf16 (%p40_p0), %v7052_v43, %v7048_v19 }
 0x2d4   : > { %v2287_v29 = vpop.f32.mrb[76].mxu1 }
 0x2d5   : > { %v2461_v26 = vpop.f32.mrb[72].mxu0  ;;  %v2486_v38 = vadd.f32 %v8761_v5, %v2471_v25  ;;  %v2298_v34 = vadd.f32 %v2287_v29, %v2124_v63  ;;  %v2289_v52 = vpop.f32.mrb[77].mxu1  ;;  %42 = sbr.rel (!%p40_p0) target bundleno = 4 (0x4), region = 244  ;;  %v7027_v63 = vld [vmem:[%s11921_s5 + $0x128] sm:$0xff] (%p40_p0)  ;;  %v8048_v25 = vpack.c.bf16 (%p40_p0), %v2568_v30, %v2564_v27 }
 0x2d6   : > { %v2463_v53 = vpop.f32.mrb[73].mxu0  ;;  %v8016_v12 = vpack.c.bf16 (%p40_p0), %v7027_v63, %v7023_v37 }
 0x2d7   : > { %2495 = vst [vmem:[%s10032_s16 + $0x30] sm:$0xff] %v2486_v38  ;;  %v2472_v56 = vadd.f32 %v2461_v26, %v2298_v34  ;;  %v8064_v38 = vpack.c.bf16 (%p40_p0), %v2570_v32, %v2566_v31 }
 0x2d8   :  { %8017 = vmatprep.subr.bf16.mxu0 (%p40_p0), %v8016_v12 }
 0x2d9   : > { %v2487_v58 = vadd.f32 %v8761_v5, %v2472_v56  ;;  %v7024_v5 = vld [vmem:[%s11921_s5 + $0x110] sm:$0xff] (%p40_p0)  ;;  %8019 = vmatpush1.bf16.msra.mxu0 (%p40_p0), %v8018_v4 }
 0x2da   :  { %v8034_v6 = vpack.c.bf16 (%p40_p0), %v7028_v36, %v7024_v5  ;;  %8021 = vmatprep.subr.bf16.mxu0 (%p40_p0), %v8020_v9 }
 0x2db   : > { %2496 = vst [vmem:[%s10032_s16 + $0x38] sm:$0xff] %v2487_v58 }
 0x2dc   :  { %8035 = vmatpush1.bf16.msra.mxu1 %v8034_v6 }
 0x2dd   :  { %8037 = vmatprep.subr.bf16.mxu1 %v8036_v44  ;;  %8023 = vmatpush1.bf16.msra.mxu0 %v8022_v47 }
 0x2de   :  { %8025 = vmatprep.subr.bf16.mxu0 %v8024_v60 }
 0x2e0   :  { %8039 = vmatpush1.bf16.msra.mxu1 %v8038_v55 }
 0x2e1   :  { %8041 = vmatprep.subr.bf16.mxu1 %v8040_v57  ;;  %8027 = vmatpush1.bf16.msra.mxu0 %v8026_v14 }
 0x2e2   :  { %v2596_v33 = vld [vmem:[#allocation4 + $0x2] ss:$64 sm:$0x1]  ;;  %8029 = vmatprep.subr.bf16.mxu0 %v8028_v18  ;;  %v2612_v53 = vld [vmem:[#allocation4 + $0x3] ss:$64 sm:$0x1] }
 0x2e3   :  { %v2597_v11 = vld [vmem:[#allocation4 + $0x2] ss:$64 sm:$0x2]  ;;  %v2613_v56 = vld [vmem:[#allocation4 + $0x3] ss:$64 sm:$0x2] }
 0x2e4   :  { %8043 = vmatpush1.bf16.msra.mxu1 %v8042_v17  ;;  %v2598_v29 = vor.u32 %v2597_v11, %v2596_v33  ;;  %v2599_v26 = vld [vmem:[#allocation4 + $0x2] ss:$64 sm:$0x4]  ;;  %v2614_v37 = vor.u32 %v2613_v56, %v2612_v53  ;;  %v2615_v63 = vld [vmem:[#allocation4 + $0x3] ss:$64 sm:$0x4] }
 0x2e5   :  { %8045 = vmatprep.subr.bf16.mxu1 %v8044_v28  ;;  %v2601_v34 = vld [vmem:[#allocation4 + $0x2] ss:$64 sm:$0x8]  ;;  %8031 = vmatpush1.bf16.msra.mxu0 %v8030_v23  ;;  %v2617_v12 = vld [vmem:[#allocation4 + $0x3] ss:$64 sm:$0x8] }
 0x2e6   :  { %v2600_v52 = vor.u32 %v2599_v26, %v2598_v29  ;;  %8049 = vmatprep.subr.bf16.mxu0 %v8048_v25  ;;  %v2603_v24 = vld [vmem:[#allocation4 + $0x2] ss:$64 sm:$0x10]  ;;  %v2616_v59 = vor.u32 %v2615_v63, %v2614_v37  ;;  %v2619_v0 = vld [vmem:[#allocation4 + $0x3] ss:$64 sm:$0x10] }
 0x2e7   :  { %v2629_v1 = vld [vmem:[#allocation4 + $0xa] ss:$64 sm:$0x1]  ;;  %v2605_v5 = vld [vmem:[#allocation4 + $0x2] ss:$64 sm:$0x20] }
 0x2e8   :  { %8047 = vmatpush1.bf16.msra.mxu1 %v8046_v48  ;;  %v2602_v58 = vor.u32 %v2601_v34, %v2600_v52  ;;  %v2630_v3 = vld [vmem:[#allocation4 + $0xa] ss:$64 sm:$0x2]  ;;  %v2618_v36 = vor.u32 %v2617_v12, %v2616_v59  ;;  %v2621_v40 = vld [vmem:[#allocation4 + $0x3] ss:$64 sm:$0x20] }
 0x2e9   :  { %8065 = vmatprep.subr.bf16.mxu1 %v8064_v38  ;;  %v2631_v35 = vor.u32 %v2630_v3, %v2629_v1  ;;  %v2632_v6 = vld [vmem:[#allocation4 + $0xa] ss:$64 sm:$0x4]  ;;  %v2607_v45 = vld [vmem:[#allocation4 + $0x2] ss:$64 sm:$0x40] }
 0x2ea   :  { %v2604_v4 = vor.u32 %v2603_v24, %v2602_v58  ;;  %v2634_v42 = vld [vmem:[#allocation4 + $0xa] ss:$64 sm:$0x8]  ;;  %v2620_v39 = vor.u32 %v2619_v0, %v2618_v36  ;;  %v2645_v41 = vld [vmem:[#allocation4 + $0xb] ss:$64 sm:$0x1] }
 0x2eb   :  { %v2633_v9 = vor.u32 %v2632_v6, %v2631_v35  ;;  %v2636_v44 = vld [vmem:[#allocation4 + $0xa] ss:$64 sm:$0x10]  ;;  %v2646_v46 = vld [vmem:[#allocation4 + $0xb] ss:$64 sm:$0x2] }
 0x2ec   :  { %v2606_v47 = vor.u32 %v2605_v5, %v2604_v4  ;;  %v2622_v50 = vor.u32 %v2621_v40, %v2620_v39  ;;  %v2623_v51 = vld [vmem:[#allocation4 + $0x3] ss:$64 sm:$0x40]  ;;  %v2647_v55 = vor.u32 %v2646_v46, %v2645_v41  ;;  %v2648_v60 = vld [vmem:[#allocation4 + $0xb] ss:$64 sm:$0x4] }
 0x2ed   :  { %v2635_v54 = vor.u32 %v2634_v42, %v2633_v9  ;;  %v2638_v7 = vld [vmem:[#allocation4 + $0xa] ss:$64 sm:$0x20]  ;;  %v2650_v8 = vld [vmem:[#allocation4 + $0xb] ss:$64 sm:$0x8] }
 0x2ee   :  { %v2649_v57 = vor.u32 %v2648_v60, %v2647_v55  ;;  %v2640_v49 = vld [vmem:[#allocation4 + $0xa] ss:$64 sm:$0x40]  ;;  %v2652_v13 = vld [vmem:[#allocation4 + $0xb] ss:$64 sm:$0x10]  ;;  %v2608_v61 = vor.u32 %v2607_v45, %v2606_v47  ;;  %v2624_v15 = vor.u32 %v2623_v51, %v2622_v50 }
 0x2ef   :  { %v2637_v10 = vor.u32 %v2636_v44, %v2635_v54  ;;  %v2609_v14 = vld [vmem:[#allocation4 + $0x2] ss:$64 sm:$0x80]  ;;  %v2625_v17 = vld [vmem:[#allocation4 + $0x3] ss:$64 sm:$0x80] }
 0x2f0   :  { %v2651_v62 = vor.u32 %v2650_v8, %v2649_v57  ;;  %v2654_v18 = vld [vmem:[#allocation4 + $0xb] ss:$64 sm:$0x20]  ;;  %v2642_v22 = vld [vmem:[#allocation4 + $0xa] ss:$64 sm:$0x80]  ;;  %v2610_v19 = vor.u32 %v2609_v14, %v2608_v61  ;;  %v2626_v43 = vor.u32 %v2625_v17, %v2624_v15 }
 0x2f1   :  { %v2639_v16 = vor.u32 %v2638_v7, %v2637_v10  ;;  %v2656_v28 = vld [vmem:[#allocation4 + $0xb] ss:$64 sm:$0x40]  ;;  %v2563_v23 = vld [vmem:[%s11921_s5] sm:$0xff]  ;;  %v2565_v11 = vld [vmem:[%s11921_s5 + $0x10] sm:$0xff] }
 0x2f2   :  { %v2653_v21 = vor.u32 %v2652_v13, %v2651_v62  ;;  %v2658_v30 = vld [vmem:[#allocation4 + $0xb] ss:$64 sm:$0x80]  ;;  %v2567_v33 = vld [vmem:[%s11921_s5 + $0x20] sm:$0xff]  ;;  %v2627_v48 = vmax.f32 %v2610_v19, %v2626_v43  ;;  %v2569_v29 = vld [vmem:[%s11921_s5 + $0x30] sm:$0xff] }
 0x2f3   :  { %v2641_v20 = vor.u32 %v2640_v49, %v2639_v16  ;;  %v2572_v26 = vld [vmem:[%s11921_s5 + $0x48] sm:$0xff]  ;;  %v2574_v34 = vld [vmem:[%s11921_s5 + $0x58] sm:$0xff]  ;;  %v2497_v53 = vld [vmem:[#allocation4] ss:$64 sm:$0x1]  ;;  %v8050_v12 = vpack.c.bf16 %v2567_v33, %v2563_v23  ;;  %v8066_v59 = vpack.c.bf16 %v2569_v29, %v2565_v11 }
 0x2f4   :  { %v2655_v27 = vor.u32 %v2654_v18, %v2653_v21  ;;  %v2576_v38 = vld [vmem:[%s11921_s5 + $0x68] sm:$0xff]  ;;  %v2578_v52 = vld [vmem:[%s11921_s5 + $0x78] sm:$0xff]  ;;  %v2571_v58 = vld [vmem:[%s11921_s5 + $0x40] sm:$0xff] }
 0x2f5   :  { %v2643_v31 = vor.u32 %v2642_v22, %v2641_v20  ;;  %v2575_v37 = vld [vmem:[%s11921_s5 + $0x60] sm:$0xff]  ;;  %v2573_v0 = vld [vmem:[%s11921_s5 + $0x50] sm:$0xff]  ;;  %v2580_v3 = vld [vmem:[%s11921_s5 + $0x88] sm:$0xff]  ;;  %v8052_v36 = vpack.c.bf16 %v2576_v38, %v2572_v26  ;;  %v8068_v35 = vpack.c.bf16 %v2578_v52, %v2574_v34 }
 0x2f6   :  { %v2657_v32 = vor.u32 %v2656_v28, %v2655_v27  ;;  %v2498_v63 = vld [vmem:[#allocation4] ss:$64 sm:$0x2]  ;;  %v2577_v1 = vld [vmem:[%s11921_s5 + $0x70] sm:$0xff]  ;;  %v2584_v6 = vld [vmem:[%s11921_s5 + $0xa8] sm:$0xff]  ;;  %v8054_v54 = vpack.c.bf16 %v2575_v37, %v2571_v58 }
 0x2f7   :  { %v2500_v24 = vld [vmem:[#allocation4] ss:$64 sm:$0x4]  ;;  %v2499_v4 = vor.u32 %v2498_v63, %v2497_v53  ;;  %v2582_v40 = vld [vmem:[%s11921_s5 + $0x98] sm:$0xff]  ;;  %v2581_v46 = vld [vmem:[%s11921_s5 + $0x90] sm:$0xff]  ;;  %v8070_v55 = vpack.c.bf16 %v2577_v1, %v2573_v0  ;;  %v8056_v49 = vpack.c.bf16 %v2584_v6, %v2580_v3 }
 0x2f8   :  { %v2659_v25 = vor.u32 %v2658_v30, %v2657_v32  ;;  %v2586_v42 = vld [vmem:[%s11921_s5 + $0xb8] sm:$0xff]  ;;  %v10213_v39 = vld [vmem:[%s11921_s5 + $0x80] sm:$0xff]  ;;  %v2585_v47 = vld [vmem:[%s11921_s5 + $0xb0] sm:$0xff] }
 0x2f9   :  { %v2583_v9 = vld [vmem:[%s11921_s5 + $0xa0] sm:$0xff]  ;;  %v2501_v44 = vor.u32 %v2500_v24, %v2499_v4  ;;  %v2588_v60 = vld [vmem:[%s11921_s5 + $0xc8] sm:$0xff]  ;;  %v2590_v8 = vld [vmem:[%s11921_s5 + $0xd8] sm:$0xff]  ;;  %v8072_v13 = vpack.c.bf16 %v2586_v42, %v2582_v40  ;;  %v8074_v30 = vpack.c.bf16 %v2585_v47, %v2581_v46 }
 0x2fa   :  { %v2660_v56 = vmax.f32 %v2643_v31, %v2659_v25  ;;  %v2502_v45 = vld [vmem:[#allocation4] ss:$64 sm:$0x8]  ;;  %v2513_v41 = vld [vmem:[#allocation4 + $0x1] ss:$64 sm:$0x1]  ;;  %v8058_v28 = vpack.c.bf16 %v2583_v9, %v10213_v39 }
 0x2fb   :  { %v2514_v50 = vld [vmem:[#allocation4 + $0x1] ss:$64 sm:$0x2]  ;;  %v2592_v7 = vld [vmem:[%s11921_s5 + $0xe8] sm:$0xff]  ;;  %v2594_v10 = vld [vmem:[%s11921_s5 + $0xf8] sm:$0xff]  ;;  %v2503_v61 = vor.u32 %v2502_v45, %v2501_v44 }
 0x2fc   :  { %v2661_v5 = vmax.f32 %v2627_v48, %v2660_v56  ;;  %v2516_v51 = vld [vmem:[#allocation4 + $0x1] ss:$64 sm:$0x4]  ;;  %v2515_v57 = vor.u32 %v2514_v50, %v2513_v41  ;;  %v2504_v14 = vld [vmem:[#allocation4] ss:$64 sm:$0x10]  ;;  %v8060_v48 = vpack.c.bf16 %v2592_v7, %v2588_v60  ;;  %v8076_v25 = vpack.c.bf16 %v2594_v10, %v2590_v8 }
 0x2fd   :  { %v2518_v15 = vld [vmem:[#allocation4 + $0x1] ss:$64 sm:$0x8]  ;;  %v2589_v17 = vld [vmem:[%s11921_s5 + $0xd0] sm:$0xff]  ;;  %v7059_v19 = vld [vmem:[%s11921_s5 + $0x208] sm:$0xff]  ;;  %v2505_v29 = vor.u32 %v2504_v14, %v2503_v61 }
 0x2fe   :  { %7054 = vmatmul.mubr.msk.f32.vlgmr.msra.gmra.mrb[0].mxu0 %vm2695_vm8, %v2661_v5  ;;  %7055 = vmatmul.mubr.msk.f32.vlgmr.msra.gmra.mrb[0].mxu1 %vm2695_vm8, %v2661_v5  ;;  %v2587_v16 = vld [vmem:[%s11921_s5 + $0xc0] sm:$0xff]  ;;  %v2593_v18 = vld [vmem:[%s11921_s5 + $0xf0] sm:$0xff]  ;;  %v2517_v20 = vor.u32 %v2516_v51, %v2515_v57  ;;  %v2530_v22 = vld [vmem:[#allocation4 + $0x8] ss:$64 sm:$0x1] }
 0x2ff   :  { %8051 = vmatpush1.bf16.msra.mxu0 %v8050_v12  ;;  %8067 = vmatpush1.bf16.msra.mxu1 %v8066_v59  ;;  %v2591_v62 = vld [vmem:[%s11921_s5 + $0xe0] sm:$0xff]  ;;  %v2531_v43 = vld [vmem:[#allocation4 + $0x8] ss:$64 sm:$0x2]  ;;  %v7061_v32 = vld [vmem:[%s11921_s5 + $0x218] sm:$0xff]  ;;  %v8078_v37 = vpack.c.bf16 %v2593_v18, %v2589_v17 }
 0x300   :  { %8053 = vmatprep.subr.bf16.mxu0 %v8052_v36  ;;  %8069 = vmatprep.subr.bf16.mxu1 %v8068_v35  ;;  %v2520_v21 = vld [vmem:[#allocation4 + $0x1] ss:$64 sm:$0x10]  ;;  %v2533_v27 = vld [vmem:[#allocation4 + $0x8] ss:$64 sm:$0x4]  ;;  %v2519_v33 = vor.u32 %v2518_v15, %v2517_v20  ;;  %v2532_v11 = vor.u32 %v2531_v43, %v2530_v22  ;;  %v8062_v58 = vpack.c.bf16 %v2591_v62, %v2587_v16 }
 0x301   :  { %2908 = vmatprep.mubr.f32.mxu0 %v8682_v2  ;;  %2979 = vmatprep.mubr.f32.mxu1 %v8682_v2  ;;  %v7063_v31 = vld [vmem:[%s11921_s5 + $0x228] sm:$0xff]  ;;  %v7065_v23 = vld [vmem:[%s11921_s5 + $0x238] sm:$0xff]  ;;  %v2506_v26 = vld [vmem:[#allocation4] ss:$64 sm:$0x20] }
 0x302   :  { %v2535_v38 = vld [vmem:[#allocation4 + $0x8] ss:$64 sm:$0x8]  ;;  %v2521_v34 = vor.u32 %v2520_v21, %v2519_v33  ;;  %v2522_v52 = vld [vmem:[#allocation4 + $0x1] ss:$64 sm:$0x20]  ;;  %v2534_v53 = vor.u32 %v2533_v27, %v2532_v11  ;;  %v8080_v12 = vpack.c.bf16 %v7063_v31, %v7059_v19  ;;  %v8096_v59 = vpack.c.bf16 %v7065_v23, %v7061_v32 }
 0x303   :  { %8055 = vmatpush1.bf16.msra.mxu0 %v8054_v54  ;;  %8071 = vmatpush1.bf16.msra.mxu1 %v8070_v55  ;;  %v2546_v56 = vld [vmem:[#allocation4 + $0x9] ss:$64 sm:$0x1]  ;;  %v2537_v63 = vld [vmem:[#allocation4 + $0x8] ss:$64 sm:$0x10]  ;;  %v2507_v3 = vor.u32 %v2506_v26, %v2505_v29 }
 0x304   :  { %8057 = vmatprep.subr.bf16.mxu0 %v8056_v49  ;;  %8073 = vmatprep.subr.bf16.mxu1 %v8072_v13  ;;  %v2547_v24 = vld [vmem:[#allocation4 + $0x9] ss:$64 sm:$0x2]  ;;  %v2536_v0 = vor.u32 %v2535_v38, %v2534_v53  ;;  %v2508_v4 = vld [vmem:[#allocation4] ss:$64 sm:$0x40]  ;;  %v2523_v5 = vor.u32 %v2522_v52, %v2521_v34 }
 0x305   :  { %v2549_v1 = vld [vmem:[#allocation4 + $0x9] ss:$64 sm:$0x4]  ;;  %v2539_v36 = vld [vmem:[#allocation4 + $0x8] ss:$64 sm:$0x20]  ;;  %v2548_v35 = vor.u32 %v2547_v24, %v2546_v56  ;;  %v2509_v41 = vor.u32 %v2508_v4, %v2507_v3 }
 0x306   :  { %v2524_v6 = vld [vmem:[#allocation4 + $0x1] ss:$64 sm:$0x40]  ;;  %v2538_v40 = vor.u32 %v2537_v63, %v2536_v0  ;;  %v2551_v42 = vld [vmem:[#allocation4 + $0x9] ss:$64 sm:$0x8] }
 0x307   :  { %8059 = vmatpush1.bf16.msra.mxu0 %v8058_v28  ;;  %8075 = vmatpush1.bf16.msra.mxu1 %v8074_v30  ;;  %v2550_v39 = vor.u32 %v2549_v1, %v2548_v35  ;;  %v2541_v44 = vld [vmem:[#allocation4 + $0x8] ss:$64 sm:$0x40]  ;;  %v2553_v45 = vld [vmem:[#allocation4 + $0x9] ss:$64 sm:$0x10]  ;;  %v2525_v47 = vor.u32 %v2524_v6, %v2523_v5 }
 0x308   :  { %8061 = vmatprep.subr.bf16.mxu0 %v8060_v48  ;;  %8077 = vmatprep.subr.bf16.mxu1 %v8076_v25  ;;  %v2540_v9 = vor.u32 %v2539_v36, %v2538_v40  ;;  %v2510_v46 = vld [vmem:[#allocation4] ss:$64 sm:$0x80]  ;;  %v2526_v51 = vld [vmem:[#allocation4 + $0x1] ss:$64 sm:$0x80] }
 0x309   :  { %v2552_v50 = vor.u32 %v2551_v42, %v2550_v39  ;;  %v2555_v54 = vld [vmem:[#allocation4 + $0x9] ss:$64 sm:$0x20]  ;;  %v2543_v7 = vld [vmem:[#allocation4 + $0x8] ss:$64 sm:$0x80]  ;;  %v2511_v10 = vor.u32 %v2510_v46, %v2509_v41  ;;  %v2527_v57 = vor.u32 %v2526_v51, %v2525_v47 }
 0x30a   :  { %v2542_v55 = vor.u32 %v2541_v44, %v2540_v9  ;;  %v2557_v8 = vld [vmem:[#allocation4 + $0x9] ss:$64 sm:$0x40]  ;;  %v7058_v15 = vld [vmem:[%s11921_s5 + $0x200] sm:$0xff]  ;;  %v7060_v62 = vld [vmem:[%s11921_s5 + $0x210] sm:$0xff] }
 0x30b   :  { %8063 = vmatpush1.bf16.msra.mxu0 %v8062_v58  ;;  %8079 = vmatpush1.bf16.msra.mxu1 %v8078_v37  ;;  %v2554_v60 = vor.u32 %v2553_v45, %v2552_v50  ;;  %v2559_v13 = vld [vmem:[#allocation4 + $0x9] ss:$64 sm:$0x80]  ;;  %v7062_v16 = vld [vmem:[%s11921_s5 + $0x220] sm:$0xff]  ;;  %v7064_v17 = vld [vmem:[%s11921_s5 + $0x230] sm:$0xff]  ;;  %v2528_v21 = vmax.f32 %v2511_v10, %v2527_v57 }
 0x30c   :  { %8081 = vmatprep.subr.bf16.mxu0 %v8080_v12  ;;  %8097 = vmatprep.subr.bf16.mxu1 %v8096_v59  ;;  %v2544_v61 = vor.u32 %v2543_v7, %v2542_v55  ;;  %v7067_v18 = vld [vmem:[%s11921_s5 + $0x248] sm:$0xff]  ;;  %v2987_v28 = vld [vmem:[#allocation4 + $0x4] ss:$64 sm:$0x1]  ;;  %v7069_v43 = vld [vmem:[%s11921_s5 + $0x258] sm:$0xff]  ;;  %v8082_v29 = vpack.c.bf16 %v7062_v16, %v7058_v15  ;;  %v8098_v26 = vpack.c.bf16 %v7064_v17, %v7060_v62 }
 0x30d   :  { %v2556_v49 = vor.u32 %v2555_v54, %v2554_v60  ;;  %v7071_v20 = vld [vmem:[%s11921_s5 + $0x268] sm:$0xff]  ;;  %v2988_v19 = vld [vmem:[#allocation4 + $0x4] ss:$64 sm:$0x2]  ;;  %v7073_v27 = vld [vmem:[%s11921_s5 + $0x278] sm:$0xff] }
 0x30e   :  { %v2989_v30 = vor.u32 %v2988_v19, %v2987_v28  ;;  %v2990_v31 = vld [vmem:[#allocation4 + $0x4] ss:$64 sm:$0x4]  ;;  %v7068_v11 = vld [vmem:[%s11921_s5 + $0x250] sm:$0xff]  ;;  %v7075_v38 = vld [vmem:[%s11921_s5 + $0x288] sm:$0xff]  ;;  %v8084_v37 = vpack.c.bf16 %v7071_v20, %v7067_v18  ;;  %v8100_v63 = vpack.c.bf16 %v7073_v27, %v7069_v43 }
 0x30f   :  { %v2558_v14 = vor.u32 %v2557_v8, %v2556_v49  ;;  %v7066_v23 = vld [vmem:[%s11921_s5 + $0x240] sm:$0xff]  ;;  %v7072_v48 = vld [vmem:[%s11921_s5 + $0x270] sm:$0xff]  ;;  %v7079_v34 = vld [vmem:[%s11921_s5 + $0x2a8] sm:$0xff] }
 0x310   :  { %v7070_v33 = vld [vmem:[%s11921_s5 + $0x260] sm:$0xff]  ;;  %v7077_v52 = vld [vmem:[%s11921_s5 + $0x298] sm:$0xff]  ;;  %v2991_v56 = vor.u32 %v2990_v31, %v2989_v30  ;;  %v7076_v5 = vld [vmem:[%s11921_s5 + $0x290] sm:$0xff]  ;;  %v8102_v42 = vpack.c.bf16 %v7072_v48, %v7068_v11  ;;  %v8088_v47 = vpack.c.bf16 %v7079_v34, %v7075_v38 }
 0x311   :  { %v2560_v22 = vor.u32 %v2559_v13, %v2558_v14  ;;  %v2992_v25 = vld [vmem:[#allocation4 + $0x4] ss:$64 sm:$0x8]  ;;  %v7081_v53 = vld [vmem:[%s11921_s5 + $0x2b8] sm:$0xff]  ;;  %v7080_v36 = vld [vmem:[%s11921_s5 + $0x2b0] sm:$0xff]  ;;  %v8086_v40 = vpack.c.bf16 %v7070_v33, %v7066_v23 }
 0x312   :  { %v3003_v24 = vld [vmem:[#allocation4 + $0x5] ss:$64 sm:$0x1]  ;;  %v2993_v1 = vor.u32 %v2992_v25, %v2991_v56  ;;  %v2994_v35 = vld [vmem:[#allocation4 + $0x4] ss:$64 sm:$0x10]  ;;  %v8104_v50 = vpack.c.bf16 %v7081_v53, %v7077_v52  ;;  %v8106_v62 = vpack.c.bf16 %v7080_v36, %v7076_v5 }
 0x313   :  { %v2561_v32 = vmax.f32 %v2544_v61, %v2560_v22  ;;  %v3004_v12 = vld [vmem:[#allocation4 + $0x5] ss:$64 sm:$0x2]  ;;  %v7083_v39 = vld [vmem:[%s11921_s5 + $0x2c8] sm:$0xff]  ;;  %v7085_v44 = vld [vmem:[%s11921_s5 + $0x2d8] sm:$0xff] }
 0x314   :  { %v10316_v59 = vld [vmem:[%s11921_s5 + $0x280] sm:$0xff]  ;;  %v3005_v3 = vor.u32 %v3004_v12, %v3003_v24  ;;  %v7087_v9 = vld [vmem:[%s11921_s5 + $0x2e8] sm:$0xff]  ;;  %v7089_v45 = vld [vmem:[%s11921_s5 + $0x2f8] sm:$0xff]  ;;  %v2995_v7 = vor.u32 %v2994_v35, %v2993_v1 }
 0x315   :  { %v2562_v58 = vmax.f32 %v2528_v21, %v2561_v32  ;;  %v10321_v0 = vld [vmem:[%s11921_s5 + $0x2a0] sm:$0xff]  ;;  %v3020_v51 = vld [vmem:[#allocation4 + $0xc] ss:$64 sm:$0x1]  ;;  %v7084_v61 = vld [vmem:[%s11921_s5 + $0x2d0] sm:$0xff]  ;;  %v8092_v43 = vpack.c.bf16 %v7087_v9, %v7083_v39  ;;  %v8108_v27 = vpack.c.bf16 %v7089_v45, %v7085_v44 }
 0x316   :  { %v3006_v4 = vld [vmem:[#allocation4 + $0x5] ss:$64 sm:$0x4]  ;;  %v3021_v54 = vld [vmem:[#allocation4 + $0xc] ss:$64 sm:$0x2]  ;;  %v8090_v13 = vpack.c.bf16 %v10321_v0, %v10316_v59 }
 0x317   :  { %7056 = vmatmul.mubr.msk.f32.vlgmr.msra.gmra.mrb[0].mxu0 %vm2695_vm8, %v2562_v58  ;;  %7057 = vmatmul.mubr.msk.f32.vlgmr.msra.gmra.mrb[0].mxu1 %vm2695_vm8, %v2562_v58  ;;  %v3008_v6 = vld [vmem:[#allocation4 + $0x5] ss:$64 sm:$0x8]  ;;  %v3007_v41 = vor.u32 %v3006_v4, %v3005_v3  ;;  %v2996_v8 = vld [vmem:[#allocation4 + $0x4] ss:$64 sm:$0x20]  ;;  %v3022_v57 = vor.u32 %v3021_v54, %v3020_v51 }
 0x318   :  { %8083 = vmatpush1.bf16.msra.mxu0 %v8082_v29  ;;  %8099 = vmatpush1.bf16.msra.mxu1 %v8098_v26  ;;  %v3010_v46 = vld [vmem:[#allocation4 + $0x5] ss:$64 sm:$0x10]  ;;  %v3023_v49 = vld [vmem:[#allocation4 + $0xc] ss:$64 sm:$0x4]  ;;  %v2997_v23 = vor.u32 %v2996_v8, %v2995_v7 }
 0x319   :  { %8085 = vmatprep.subr.bf16.mxu0 %v8084_v37  ;;  %8101 = vmatprep.subr.bf16.mxu1 %v8100_v63  ;;  %v7082_v55 = vld [vmem:[%s11921_s5 + $0x2c0] sm:$0xff]  ;;  %v3009_v10 = vor.u32 %v3008_v6, %v3007_v41  ;;  %v7088_v14 = vld [vmem:[%s11921_s5 + $0x2f0] sm:$0xff]  ;;  %v3025_v16 = vld [vmem:[#allocation4 + $0xc] ss:$64 sm:$0x8]  ;;  %v3024_v28 = vor.u32 %v3023_v49, %v3022_v57 }
 0x31a   :  { %v7086_v60 = vld [vmem:[%s11921_s5 + $0x2e0] sm:$0xff]  ;;  %3153 = vmatprep.mubr.f32.mxu0 %v8682_v2  ;;  %3224 = vmatprep.mubr.f32.mxu1 %v8682_v2  ;;  %v7093_v17 = vld [vmem:[%s11921_s5 + $0x308] sm:$0xff]  ;;  %v7095_v20 = vld [vmem:[%s11921_s5 + $0x318] sm:$0xff]  ;;  %v8110_v52 = vpack.c.bf16 %v7088_v14, %v7084_v61 }
 0x31b   :  { %v3012_v15 = vld [vmem:[#allocation4 + $0x5] ss:$64 sm:$0x20]  ;;  %v7097_v18 = vld [vmem:[%s11921_s5 + $0x328] sm:$0xff]  ;;  %v7099_v21 = vld [vmem:[%s11921_s5 + $0x338] sm:$0xff]  ;;  %v3011_v22 = vor.u32 %v3010_v46, %v3009_v10  ;;  %v3026_v48 = vor.u32 %v3025_v16, %v3024_v28  ;;  %v8094_v26 = vpack.c.bf16 %v7086_v60, %v7082_v55 }
 0x31c   :  { %8087 = vmatpush1.bf16.msra.mxu0 %v8086_v40  ;;  %8103 = vmatpush1.bf16.msra.mxu1 %v8102_v42  ;;  %v3027_v19 = vld [vmem:[#allocation4 + $0xc] ss:$64 sm:$0x10]  ;;  %v2998_v30 = vld [vmem:[#allocation4 + $0x4] ss:$64 sm:$0x40]  ;;  %v8112_v58 = vpack.c.bf16 %v7097_v18, %v7093_v17  ;;  %v8128_v37 = vpack.c.bf16 %v7099_v21, %v7095_v20 }
 0x31d   :  { %8089 = vmatprep.subr.bf16.mxu0 %v8088_v47  ;;  %8105 = vmatprep.subr.bf16.mxu1 %v8104_v50  ;;  %v3036_v31 = vld [vmem:[#allocation4 + $0xd] ss:$64 sm:$0x1]  ;;  %v3013_v33 = vor.u32 %v3012_v15, %v3011_v22  ;;  %v3014_v11 = vld [vmem:[#allocation4 + $0x5] ss:$64 sm:$0x40]  ;;  %v3028_v53 = vor.u32 %v3027_v19, %v3026_v48  ;;  %v2999_v12 = vor.u32 %v2998_v30, %v2997_v23 }
 0x31e   :  { %v3037_v32 = vld [vmem:[#allocation4 + $0xd] ss:$64 sm:$0x2]  ;;  %v3029_v38 = vld [vmem:[#allocation4 + $0xc] ss:$64 sm:$0x20] }
 0x31f   :  { %v3038_v25 = vor.u32 %v3037_v32, %v3036_v31  ;;  %v3039_v29 = vld [vmem:[#allocation4 + $0xd] ss:$64 sm:$0x4]  ;;  %v3031_v63 = vld [vmem:[#allocation4 + $0xc] ss:$64 sm:$0x40]  ;;  %v3015_v0 = vor.u32 %v3014_v11, %v3013_v33  ;;  %v3030_v1 = vor.u32 %v3029_v38, %v3028_v53 }
 0x320   :  { %v3041_v34 = vld [vmem:[#allocation4 + $0xd] ss:$64 sm:$0x8]  ;;  %8091 = vmatpush1.bf16.msra.mxu0 %v8090_v13  ;;  %8107 = vmatpush1.bf16.msra.mxu1 %v8106_v62  ;;  %v3000_v59 = vld [vmem:[#allocation4 + $0x4] ss:$64 sm:$0x80] }
 0x321   :  { %v3040_v56 = vor.u32 %v3039_v29, %v3038_v25  ;;  %8093 = vmatprep.subr.bf16.mxu0 %v8092_v43  ;;  %8109 = vmatprep.subr.bf16.mxu1 %v8108_v27  ;;  %v3043_v24 = vld [vmem:[#allocation4 + $0xd] ss:$64 sm:$0x10]  ;;  %v3016_v4 = vld [vmem:[#allocation4 + $0x5] ss:$64 sm:$0x80]  ;;  %v3032_v36 = vor.u32 %v3031_v63, %v3030_v1  ;;  %v3001_v42 = vor.u32 %v3000_v59, %v2999_v12 }
 0x322   :  { %v3045_v5 = vld [vmem:[#allocation4 + $0xd] ss:$64 sm:$0x20]  ;;  %v3033_v6 = vld [vmem:[#allocation4 + $0xc] ss:$64 sm:$0x80]  ;;  %v3017_v39 = vor.u32 %v3016_v4, %v3015_v0 }
 0x323   :  { %v3042_v3 = vor.u32 %v3041_v34, %v3040_v56  ;;  %v3047_v40 = vld [vmem:[#allocation4 + $0xd] ss:$64 sm:$0x40]  ;;  %v3034_v45 = vor.u32 %v3033_v6, %v3032_v36  ;;  %v7092_v46 = vld [vmem:[%s11921_s5 + $0x300] sm:$0xff]  ;;  %v7094_v50 = vld [vmem:[%s11921_s5 + $0x310] sm:$0xff] }
 0x324   :  { %8095 = vmatpush1.bf16.msra.mxu0 %v8094_v26  ;;  %8111 = vmatpush1.bf16.msra.mxu1 %v8110_v52  ;;  %v3049_v44 = vld [vmem:[#allocation4 + $0xd] ss:$64 sm:$0x80]  ;;  %v7096_v47 = vld [vmem:[%s11921_s5 + $0x320] sm:$0xff]  ;;  %v3018_v51 = vmax.f32 %v3001_v42, %v3017_v39  ;;  %v7098_v55 = vld [vmem:[%s11921_s5 + $0x330] sm:$0xff] }
 0x325   :  { %v3044_v35 = vor.u32 %v3043_v24, %v3042_v3  ;;  %8113 = vmatprep.subr.bf16.mxu0 %v8112_v58  ;;  %8129 = vmatprep.subr.bf16.mxu1 %v8128_v37  ;;  %v7101_v60 = vld [vmem:[%s11921_s5 + $0x348] sm:$0xff]  ;;  %v7103_v8 = vld [vmem:[%s11921_s5 + $0x358] sm:$0xff]  ;;  %v3236_v57 = vld [vmem:[#allocation4 + $0x6] ss:$64 sm:$0x1]  ;;  %v8114_v16 = vpack.c.bf16 %v7096_v47, %v7092_v46  ;;  %v8130_v62 = vpack.c.bf16 %v7098_v55, %v7094_v50 }
 0x326   :  { %v7105_v7 = vld [vmem:[%s11921_s5 + $0x368] sm:$0xff]  ;;  %v7107_v10 = vld [vmem:[%s11921_s5 + $0x378] sm:$0xff]  ;;  %v7100_v13 = vld [vmem:[%s11921_s5 + $0x340] sm:$0xff] }
 0x327   :  { %v3046_v9 = vor.u32 %v3045_v5, %v3044_v35  ;;  %v7104_v61 = vld [vmem:[%s11921_s5 + $0x360] sm:$0xff]  ;;  %v7102_v17 = vld [vmem:[%s11921_s5 + $0x350] sm:$0xff]  ;;  %v7109_v20 = vld [vmem:[%s11921_s5 + $0x388] sm:$0xff]  ;;  %v8116_v28 = vpack.c.bf16 %v7105_v7, %v7101_v60  ;;  %v8132_v19 = vpack.c.bf16 %v7107_v10, %v7103_v8 }
 0x328   :  { %v3237_v14 = vld [vmem:[#allocation4 + $0x6] ss:$64 sm:$0x2]  ;;  %v7106_v18 = vld [vmem:[%s11921_s5 + $0x370] sm:$0xff]  ;;  %v7113_v43 = vld [vmem:[%s11921_s5 + $0x3a8] sm:$0xff]  ;;  %v8118_v38 = vpack.c.bf16 %v7104_v61, %v7100_v13 }
 0x329   :  { %v3048_v41 = vor.u32 %v3047_v40, %v3046_v9  ;;  %v3239_v15 = vld [vmem:[#allocation4 + $0x6] ss:$64 sm:$0x4]  ;;  %v3238_v21 = vor.u32 %v3237_v14, %v3236_v57  ;;  %v7111_v27 = vld [vmem:[%s11921_s5 + $0x398] sm:$0xff]  ;;  %v7110_v48 = vld [vmem:[%s11921_s5 + $0x390] sm:$0xff]  ;;  %v8134_v34 = vpack.c.bf16 %v7106_v18, %v7102_v17  ;;  %v8120_v63 = vpack.c.bf16 %v7113_v43, %v7109_v20 }
 0x32a   :  { %v7115_v30 = vld [vmem:[%s11921_s5 + $0x3b8] sm:$0xff]  ;;  %v10422_v31 = vld [vmem:[%s11921_s5 + $0x380] sm:$0xff]  ;;  %v7114_v25 = vld [vmem:[%s11921_s5 + $0x3b0] sm:$0xff] }
 0x32b   :  { %v3050_v54 = vor.u32 %v3049_v44, %v3048_v41  ;;  %v7112_v32 = vld [vmem:[%s11921_s5 + $0x3a0] sm:$0xff]  ;;  %v3240_v23 = vor.u32 %v3239_v15, %v3238_v21  ;;  %v7117_v52 = vld [vmem:[%s11921_s5 + $0x3c8] sm:$0xff]  ;;  %v7119_v56 = vld [vmem:[%s11921_s5 + $0x3d8] sm:$0xff]  ;;  %v8136_v24 = vpack.c.bf16 %v7115_v30, %v7111_v27  ;;  %v8138_v44 = vpack.c.bf16 %v7114_v25, %v7110_v48 }
 0x32c   :  { %v3241_v33 = vld [vmem:[#allocation4 + $0x6] ss:$64 sm:$0x8]  ;;  %v3252_v11 = vld [vmem:[#allocation4 + $0x7] ss:$64 sm:$0x1]  ;;  %v8122_v40 = vpack.c.bf16 %v7112_v32, %v10422_v31 }
 0x32d   :  { %v3051_v49 = vmax.f32 %v3034_v45, %v3050_v54  ;;  %v3253_v29 = vld [vmem:[#allocation4 + $0x7] ss:$64 sm:$0x2]  ;;  %v7121_v53 = vld [vmem:[%s11921_s5 + $0x3e8] sm:$0xff]  ;;  %v7123_v58 = vld [vmem:[%s11921_s5 + $0x3f8] sm:$0xff]  ;;  %v3242_v12 = vor.u32 %v3241_v33, %v3240_v23 }
 0x32e   :  { %v3255_v26 = vld [vmem:[#allocation4 + $0x7] ss:$64 sm:$0x4]  ;;  %v3254_v37 = vor.u32 %v3253_v29, %v3252_v11  ;;  %v3243_v59 = vld [vmem:[#allocation4 + $0x6] ss:$64 sm:$0x10]  ;;  %v8140_v54 = vpack.c.bf16 %v7123_v58, %v7119_v56 }
 0x32f   :  { %v3052_v22 = vmax.f32 %v3018_v51, %v3051_v49  ;;  %v3257_v0 = vld [vmem:[#allocation4 + $0x7] ss:$64 sm:$0x8]  ;;  %v7118_v4 = vld [vmem:[%s11921_s5 + $0x3d0] sm:$0xff]  ;;  %v7127_v42 = vld [vmem:[%s11921_s5 + $0x408] sm:$0xff]  ;;  %v8124_v51 = vpack.c.bf16 %v7121_v53, %v7117_v52  ;;  %v3244_v55 = vor.u32 %v3243_v59, %v3242_v12 }
 0x330   :  { %v7116_v1 = vld [vmem:[%s11921_s5 + $0x3c0] sm:$0xff]  ;;  %v7122_v5 = vld [vmem:[%s11921_s5 + $0x3f0] sm:$0xff]  ;;  %v3256_v36 = vor.u32 %v3255_v26, %v3254_v37  ;;  %v3269_v6 = vld [vmem:[#allocation4 + $0xe] ss:$64 sm:$0x1] }
 0x331   :  { %7090 = vmatmul.mubr.msk.f32.vlgmr.msra.gmra.mrb[0].mxu0 %vm2695_vm8, %v3052_v22  ;;  %7091 = vmatmul.mubr.msk.f32.vlgmr.msra.gmra.mrb[0].mxu1 %vm2695_vm8, %v3052_v22  ;;  %v7120_v3 = vld [vmem:[%s11921_s5 + $0x3e0] sm:$0xff]  ;;  %v3270_v39 = vld [vmem:[#allocation4 + $0xe] ss:$64 sm:$0x2]  ;;  %v7129_v41 = vld [vmem:[%s11921_s5 + $0x418] sm:$0xff]  ;;  %v8142_v61 = vpack.c.bf16 %v7122_v5, %v7118_v4 }
 0x332   :  { %8115 = vmatpush1.bf16.msra.mxu0 %v8114_v16  ;;  %8131 = vmatpush1.bf16.msra.mxu1 %v8130_v62  ;;  %v3259_v35 = vld [vmem:[#allocation4 + $0x7] ss:$64 sm:$0x10]  ;;  %v3272_v9 = vld [vmem:[#allocation4 + $0xe] ss:$64 sm:$0x4]  ;;  %v3258_v47 = vor.u32 %v3257_v0, %v3256_v36  ;;  %v3271_v50 = vor.u32 %v3270_v39, %v3269_v6  ;;  %v8126_v13 = vpack.c.bf16 %v7120_v3, %v7116_v1 }
 0x333   :  { %8117 = vmatprep.subr.bf16.mxu0 %v8116_v28  ;;  %8133 = vmatprep.subr.bf16.mxu1 %v8132_v19  ;;  %v7131_v45 = vld [vmem:[%s11921_s5 + $0x428] sm:$0xff]  ;;  %v7133_v46 = vld [vmem:[%s11921_s5 + $0x438] sm:$0xff]  ;;  %v3245_v60 = vld [vmem:[#allocation4 + $0x6] ss:$64 sm:$0x20] }
 0x334   :  { %3402 = vmatprep.mubr.f32.mxu0 %v8682_v2  ;;  %3473 = vmatprep.mubr.f32.mxu1 %v8682_v2  ;;  %v3274_v7 = vld [vmem:[#allocation4 + $0xe] ss:$64 sm:$0x8]  ;;  %v3260_v8 = vor.u32 %v3259_v35, %v3258_v47  ;;  %v3261_v10 = vld [vmem:[#allocation4 + $0x7] ss:$64 sm:$0x20]  ;;  %v3273_v57 = vor.u32 %v3272_v9, %v3271_v50  ;;  %v8144_v16 = vpack.c.bf16 %v7131_v45, %v7127_v42 }
 0x335   :  { %v3285_v49 = vld [vmem:[#allocation4 + $0xf] ss:$64 sm:$0x1]  ;;  %v3276_v14 = vld [vmem:[#allocation4 + $0xe] ss:$64 sm:$0x10]  ;;  %v8160_v62 = vpack.c.bf16 %v7133_v46, %v7129_v41  ;;  %v3246_v20 = vor.u32 %v3245_v60, %v3244_v55 }
 0x336   :  { %8119 = vmatpush1.bf16.msra.mxu0 %v8118_v38  ;;  %8135 = vmatpush1.bf16.msra.mxu1 %v8134_v34  ;;  %v3286_v15 = vld [vmem:[#allocation4 + $0xf] ss:$64 sm:$0x2]  ;;  %v3275_v17 = vor.u32 %v3274_v7, %v3273_v57  ;;  %v3247_v21 = vld [vmem:[#allocation4 + $0x6] ss:$64 sm:$0x40]  ;;  %v3262_v22 = vor.u32 %v3261_v10, %v3260_v8 }
 0x337   :  { %8121 = vmatprep.subr.bf16.mxu0 %v8120_v63  ;;  %8137 = vmatprep.subr.bf16.mxu1 %v8136_v24  ;;  %v3288_v18 = vld [vmem:[#allocation4 + $0xf] ss:$64 sm:$0x4]  ;;  %v3278_v28 = vld [vmem:[#allocation4 + $0xe] ss:$64 sm:$0x20]  ;;  %v3287_v19 = vor.u32 %v3286_v15, %v3285_v49  ;;  %v3248_v11 = vor.u32 %v3247_v21, %v3246_v20 }
 0x338   :  { %v3263_v43 = vld [vmem:[#allocation4 + $0x7] ss:$64 sm:$0x40]  ;;  %v3277_v27 = vor.u32 %v3276_v14, %v3275_v17  ;;  %v3290_v30 = vld [vmem:[#allocation4 + $0xf] ss:$64 sm:$0x8] }
 0x339   :  { %v3289_v31 = vor.u32 %v3288_v18, %v3287_v19  ;;  %v3280_v23 = vld [vmem:[#allocation4 + $0xe] ss:$64 sm:$0x40]  ;;  %v3292_v33 = vld [vmem:[#allocation4 + $0xf] ss:$64 sm:$0x10]  ;;  %v3264_v25 = vor.u32 %v3263_v43, %v3262_v22 }
 0x33a   :  { %8123 = vmatpush1.bf16.msra.mxu0 %v8122_v40  ;;  %8139 = vmatpush1.bf16.msra.mxu1 %v8138_v44  ;;  %v3279_v32 = vor.u32 %v3278_v28, %v3277_v27  ;;  %v3249_v48 = vld [vmem:[#allocation4 + $0x6] ss:$64 sm:$0x80]  ;;  %v3265_v26 = vld [vmem:[#allocation4 + $0x7] ss:$64 sm:$0x80] }
 0x33b   :  { %8125 = vmatprep.subr.bf16.mxu0 %v8124_v51  ;;  %8141 = vmatprep.subr.bf16.mxu1 %v8140_v54  ;;  %v3291_v29 = vor.u32 %v3290_v30, %v3289_v31  ;;  %v3294_v38 = vld [vmem:[#allocation4 + $0xf] ss:$64 sm:$0x20]  ;;  %v3282_v53 = vld [vmem:[#allocation4 + $0xe] ss:$64 sm:$0x80]  ;;  %v3250_v58 = vor.u32 %v3249_v48, %v3248_v11  ;;  %v3266_v37 = vor.u32 %v3265_v26, %v3264_v25 }
 0x33c   :  { %v3281_v34 = vor.u32 %v3280_v23, %v3279_v32  ;;  %v3296_v56 = vld [vmem:[#allocation4 + $0xf] ss:$64 sm:$0x40]  ;;  %v7126_v0 = vld [vmem:[%s11921_s5 + $0x400] sm:$0xff]  ;;  %v7128_v3 = vld [vmem:[%s11921_s5 + $0x410] sm:$0xff] }
 0x33d   :  { %v3293_v52 = vor.u32 %v3292_v33, %v3291_v29  ;;  %v3298_v24 = vld [vmem:[#allocation4 + $0xf] ss:$64 sm:$0x80]  ;;  %v7130_v1 = vld [vmem:[%s11921_s5 + $0x420] sm:$0xff]  ;;  %v7132_v4 = vld [vmem:[%s11921_s5 + $0x430] sm:$0xff]  ;;  %v3267_v35 = vmax.f32 %v3250_v58, %v3266_v37 }
 0x33e   :  { %8127 = vmatpush1.bf16.msra.mxu0 %v8126_v13  ;;  %8143 = vmatpush1.bf16.msra.mxu1 %v8142_v61  ;;  %v3283_v12 = vor.u32 %v3282_v53, %v3281_v34  ;;  %v7135_v5 = vld [vmem:[%s11921_s5 + $0x448] sm:$0xff]  ;;  %v3485_v40 = vld [vmem:[#allocation4 + $0x10] ss:$64 sm:$0x1]  ;;  %v7137_v39 = vld [vmem:[%s11921_s5 + $0x458] sm:$0xff]  ;;  %v8146_v55 = vpack.c.bf16 %v7130_v1, %v7126_v0  ;;  %v8162_v60 = vpack.c.bf16 %v7132_v4, %v7128_v3 }
 0x33f   :  { %8145 = vmatprep.subr.bf16.mxu0 %v8144_v16  ;;  %8161 = vmatprep.subr.bf16.mxu1 %v8160_v62  ;;  %v3295_v63 = vor.u32 %v3294_v38, %v3293_v52  ;;  %v7139_v36 = vld [vmem:[%s11921_s5 + $0x468] sm:$0xff]  ;;  %v3486_v42 = vld [vmem:[#allocation4 + $0x10] ss:$64 sm:$0x2]  ;;  %v7141_v9 = vld [vmem:[%s11921_s5 + $0x478] sm:$0xff] }
 0x340   :  { %v3487_v44 = vor.u32 %v3486_v42, %v3485_v40  ;;  %v3488_v45 = vld [vmem:[#allocation4 + $0x10] ss:$64 sm:$0x4]  ;;  %v7134_v46 = vld [vmem:[%s11921_s5 + $0x440] sm:$0xff]  ;;  %v7143_v7 = vld [vmem:[%s11921_s5 + $0x488] sm:$0xff]  ;;  %v8148_v61 = vpack.c.bf16 %v7139_v36, %v7135_v5  ;;  %v8164_v14 = vpack.c.bf16 %v7141_v9, %v7137_v39 }
 0x341   :  { %v3297_v59 = vor.u32 %v3296_v56, %v3295_v63  ;;  %v7138_v47 = vld [vmem:[%s11921_s5 + $0x460] sm:$0xff]  ;;  %v7136_v50 = vld [vmem:[%s11921_s5 + $0x450] sm:$0xff]  ;;  %v7147_v8 = vld [vmem:[%s11921_s5 + $0x4a8] sm:$0xff] }
 0x342   :  { %v7140_v51 = vld [vmem:[%s11921_s5 + $0x470] sm:$0xff]  ;;  %v7145_v10 = vld [vmem:[%s11921_s5 + $0x498] sm:$0xff]  ;;  %v3489_v49 = vor.u32 %v3488_v45, %v3487_v44  ;;  %v10525_v62 = vld [vmem:[%s11921_s5 + $0x480] sm:$0xff]  ;;  %v8150_v27 = vpack.c.bf16 %v7138_v47, %v7134_v46  ;;  %v8152_v25 = vpack.c.bf16 %v7147_v8, %v7143_v7 }
 0x343   :  { %v3299_v6 = vor.u32 %v3298_v24, %v3297_v59  ;;  %v3490_v54 = vld [vmem:[#allocation4 + $0x10] ss:$64 sm:$0x8]  ;;  %v7149_v57 = vld [vmem:[%s11921_s5 + $0x4b8] sm:$0xff]  ;;  %v10530_v17 = vld [vmem:[%s11921_s5 + $0x4a0] sm:$0xff]  ;;  %v8166_v30 = vpack.c.bf16 %v7140_v51, %v7136_v50 }
 0x344   :  { %v3501_v15 = vld [vmem:[#allocation4 + $0x11] ss:$64 sm:$0x1]  ;;  %v3491_v18 = vor.u32 %v3490_v54, %v3489_v49  ;;  %v3492_v19 = vld [vmem:[#allocation4 + $0x10] ss:$64 sm:$0x10]  ;;  %v8168_v29 = vpack.c.bf16 %v7149_v57, %v7145_v10  ;;  %v8154_v24 = vpack.c.bf16 %v10530_v17, %v10525_v62 }
 0x345   :  { %v3300_v41 = vmax.f32 %v3283_v12, %v3299_v6  ;;  %v3502_v16 = vld [vmem:[#allocation4 + $0x11] ss:$64 sm:$0x2]  ;;  %v7151_v31 = vld [vmem:[%s11921_s5 + $0x4c8] sm:$0xff]  ;;  %v7153_v23 = vld [vmem:[%s11921_s5 + $0x4d8] sm:$0xff] }
 0x346   :  { %v3503_v20 = vor.u32 %v3502_v16, %v3501_v15  ;;  %v3504_v21 = vld [vmem:[#allocation4 + $0x11] ss:$64 sm:$0x4]  ;;  %v7155_v32 = vld [vmem:[%s11921_s5 + $0x4e8] sm:$0xff]  ;;  %v7157_v33 = vld [vmem:[%s11921_s5 + $0x4f8] sm:$0xff]  ;;  %v3493_v53 = vor.u32 %v3492_v19, %v3491_v18 }
 0x347   :  { %v3301_v13 = vmax.f32 %v3267_v35, %v3300_v41  ;;  %v7144_v22 = vld [vmem:[%s11921_s5 + $0x490] sm:$0xff]  ;;  %v3518_v26 = vld [vmem:[#allocation4 + $0x18] ss:$64 sm:$0x1]  ;;  %v7150_v34 = vld [vmem:[%s11921_s5 + $0x4c0] sm:$0xff]  ;;  %v8156_v39 = vpack.c.bf16 %v7155_v32, %v7151_v31  ;;  %v8172_v9 = vpack.c.bf16 %v7157_v33, %v7153_v23 }
 0x348   :  { %v7148_v28 = vld [vmem:[%s11921_s5 + $0x4b0] sm:$0xff]  ;;  %v3505_v11 = vor.u32 %v3504_v21, %v3503_v20  ;;  %v3519_v38 = vld [vmem:[#allocation4 + $0x18] ss:$64 sm:$0x2]  ;;  %v7154_v52 = vld [vmem:[%s11921_s5 + $0x4e0] sm:$0xff] }
 0x349   :  { %7124 = vmatmul.mubr.msk.f32.vlgmr.msra.gmra.mrb[0].mxu0 %vm2695_vm8, %v3301_v13  ;;  %7125 = vmatmul.mubr.msk.f32.vlgmr.msra.gmra.mrb[0].mxu1 %vm2695_vm8, %v3301_v13  ;;  %v3506_v43 = vld [vmem:[#allocation4 + $0x11] ss:$64 sm:$0x8]  ;;  %v3494_v56 = vld [vmem:[#allocation4 + $0x10] ss:$64 sm:$0x20]  ;;  %v3520_v37 = vor.u32 %v3519_v38, %v3518_v26  ;;  %v8170_v3 = vpack.c.bf16 %v7148_v28, %v7144_v22 }
 0x34a   :  { %8147 = vmatpush1.bf16.msra.mxu0 %v8146_v55  ;;  %8163 = vmatpush1.bf16.msra.mxu1 %v8162_v60  ;;  %v3508_v48 = vld [vmem:[#allocation4 + $0x11] ss:$64 sm:$0x10]  ;;  %v3507_v58 = vor.u32 %v3506_v43, %v3505_v11  ;;  %v3521_v63 = vld [vmem:[#allocation4 + $0x18] ss:$64 sm:$0x4]  ;;  %v3495_v46 = vor.u32 %v3494_v56, %v3493_v53  ;;  %v8158_v60 = vpack.c.bf16 %v7154_v52, %v7150_v34 }
 0x34b   :  { %8149 = vmatprep.subr.bf16.mxu0 %v8148_v61  ;;  %8165 = vmatprep.subr.bf16.mxu1 %v8164_v14  ;;  %v7152_v12 = vld [vmem:[%s11921_s5 + $0x4d0] sm:$0xff]  ;;  %v3523_v1 = vld [vmem:[#allocation4 + $0x18] ss:$64 sm:$0x8]  ;;  %v7161_v4 = vld [vmem:[%s11921_s5 + $0x508] sm:$0xff]  ;;  %v3522_v40 = vor.u32 %v3521_v63, %v3520_v37 }
 0x34c   :  { %3651 = vmatprep.mubr.f32.mxu0 %v8682_v2  ;;  %3722 = vmatprep.mubr.f32.mxu1 %v8682_v2  ;;  %v7156_v59 = vld [vmem:[%s11921_s5 + $0x4f0] sm:$0xff]  ;;  %v7165_v5 = vld [vmem:[%s11921_s5 + $0x528] sm:$0xff]  ;;  %v7163_v36 = vld [vmem:[%s11921_s5 + $0x518] sm:$0xff]  ;;  %v3509_v6 = vor.u32 %v3508_v48, %v3507_v58 }
 0x34d   :  { %v3510_v0 = vld [vmem:[#allocation4 + $0x11] ss:$64 sm:$0x20]  ;;  %v7167_v35 = vld [vmem:[%s11921_s5 + $0x538] sm:$0xff]  ;;  %v3524_v51 = vor.u32 %v3523_v1, %v3522_v40  ;;  %v8174_v10 = vpack.c.bf16 %v7156_v59, %v7152_v12  ;;  %v8176_v13 = vpack.c.bf16 %v7165_v5, %v7161_v4  ;;  %v7160_v48 = vld [vmem:[%s11921_s5 + $0x500] sm:$0xff] }
 0x34e   :  { %8151 = vmatpush1.bf16.msra.mxu0 %v8150_v27  ;;  %8167 = vmatpush1.bf16.msra.mxu1 %v8166_v30  ;;  %v3525_v42 = vld [vmem:[#allocation4 + $0x18] ss:$64 sm:$0x10]  ;;  %v3496_v44 = vld [vmem:[#allocation4 + $0x10] ss:$64 sm:$0x40]  ;;  %v3511_v47 = vor.u32 %v3510_v0, %v3509_v6  ;;  %v8192_v61 = vpack.c.bf16 %v7167_v35, %v7163_v36 }
 0x34f   :  { %8153 = vmatprep.subr.bf16.mxu0 %v8152_v25  ;;  %8169 = vmatprep.subr.bf16.mxu1 %v8168_v29  ;;  %v3534_v45 = vld [vmem:[#allocation4 + $0x19] ss:$64 sm:$0x1]  ;;  %v3512_v50 = vld [vmem:[#allocation4 + $0x11] ss:$64 sm:$0x40]  ;;  %v3526_v57 = vor.u32 %v3525_v42, %v3524_v51  ;;  %v3497_v16 = vor.u32 %v3496_v44, %v3495_v46 }
 0x350   :  { %v3535_v41 = vld [vmem:[#allocation4 + $0x19] ss:$64 sm:$0x2]  ;;  %v3527_v7 = vld [vmem:[#allocation4 + $0x18] ss:$64 sm:$0x20]  ;;  %v3513_v17 = vor.u32 %v3512_v50, %v3511_v47 }
 0x351   :  { %v3536_v54 = vor.u32 %v3535_v41, %v3534_v45  ;;  %v3537_v55 = vld [vmem:[#allocation4 + $0x19] ss:$64 sm:$0x4]  ;;  %v3529_v14 = vld [vmem:[#allocation4 + $0x18] ss:$64 sm:$0x40]  ;;  %v3528_v18 = vor.u32 %v3527_v7, %v3526_v57 }
 0x352   :  { %v3539_v8 = vld [vmem:[#allocation4 + $0x19] ss:$64 sm:$0x8]  ;;  %8155 = vmatpush1.bf16.msra.mxu0 %v8154_v24  ;;  %8171 = vmatpush1.bf16.msra.mxu1 %v8170_v3  ;;  %v3498_v62 = vld [vmem:[#allocation4 + $0x10] ss:$64 sm:$0x80] }
 0x353   :  { %v3538_v49 = vor.u32 %v3537_v55, %v3536_v54  ;;  %8157 = vmatprep.subr.bf16.mxu0 %v8156_v39  ;;  %8173 = vmatprep.subr.bf16.mxu1 %v8172_v9  ;;  %v3541_v15 = vld [vmem:[#allocation4 + $0x19] ss:$64 sm:$0x10]  ;;  %v3514_v21 = vld [vmem:[#allocation4 + $0x11] ss:$64 sm:$0x80]  ;;  %v3530_v28 = vor.u32 %v3529_v14, %v3528_v18  ;;  %v3499_v30 = vor.u32 %v3498_v62, %v3497_v16 }
 0x354   :  { %v3543_v22 = vld [vmem:[#allocation4 + $0x19] ss:$64 sm:$0x20]  ;;  %v3531_v43 = vld [vmem:[#allocation4 + $0x18] ss:$64 sm:$0x80]  ;;  %v3515_v31 = vor.u32 %v3514_v21, %v3513_v17 }
 0x355   :  { %v3540_v20 = vor.u32 %v3539_v8, %v3538_v49  ;;  %v3545_v27 = vld [vmem:[#allocation4 + $0x19] ss:$64 sm:$0x40]  ;;  %v3532_v33 = vor.u32 %v3531_v43, %v3530_v28  ;;  %v7164_v25 = vld [vmem:[%s11921_s5 + $0x520] sm:$0xff]  ;;  %v7162_v29 = vld [vmem:[%s11921_s5 + $0x510] sm:$0xff] }
 0x356   :  { %8159 = vmatpush1.bf16.msra.mxu0 %v8158_v60  ;;  %8175 = vmatpush1.bf16.msra.mxu1 %v8174_v10  ;;  %v3547_v23 = vld [vmem:[#allocation4 + $0x19] ss:$64 sm:$0x80]  ;;  %v3516_v26 = vmax.f32 %v3499_v30, %v3515_v31  ;;  %v7166_v34 = vld [vmem:[%s11921_s5 + $0x530] sm:$0xff]  ;;  %v7169_v52 = vld [vmem:[%s11921_s5 + $0x548] sm:$0xff]  ;;  %v8178_v1 = vpack.c.bf16 %v7164_v25, %v7160_v48 }
 0x357   :  { %v3542_v19 = vor.u32 %v3541_v15, %v3540_v20  ;;  %8177 = vmatprep.subr.bf16.mxu0 %v8176_v13  ;;  %8193 = vmatprep.subr.bf16.mxu1 %v8192_v61  ;;  %v7173_v53 = vld [vmem:[%s11921_s5 + $0x568] sm:$0xff]  ;;  %v7171_v56 = vld [vmem:[%s11921_s5 + $0x558] sm:$0xff]  ;;  %v3734_v37 = vld [vmem:[#allocation4 + $0x12] ss:$64 sm:$0x1]  ;;  %v8194_v3 = vpack.c.bf16 %v7166_v34, %v7162_v29 }
 0x358   :  { %v7175_v58 = vld [vmem:[%s11921_s5 + $0x578] sm:$0xff]  ;;  %v7168_v24 = vld [vmem:[%s11921_s5 + $0x540] sm:$0xff]  ;;  %v3735_v59 = vld [vmem:[#allocation4 + $0x12] ss:$64 sm:$0x2]  ;;  %v8180_v40 = vpack.c.bf16 %v7173_v53, %v7169_v52 }
 0x359   :  { %v3544_v32 = vor.u32 %v3543_v22, %v3542_v19  ;;  %v7172_v12 = vld [vmem:[%s11921_s5 + $0x560] sm:$0xff]  ;;  %v3737_v0 = vld [vmem:[#allocation4 + $0x12] ss:$64 sm:$0x4]  ;;  %v7177_v36 = vld [vmem:[%s11921_s5 + $0x588] sm:$0xff]  ;;  %v3736_v35 = vor.u32 %v3735_v59, %v3734_v37  ;;  %v8196_v42 = vpack.c.bf16 %v7175_v58, %v7171_v56 }
 0x35a   :  { %v7170_v4 = vld [vmem:[%s11921_s5 + $0x550] sm:$0xff]  ;;  %v7181_v39 = vld [vmem:[%s11921_s5 + $0x5a8] sm:$0xff]  ;;  %v7179_v9 = vld [vmem:[%s11921_s5 + $0x598] sm:$0xff]  ;;  %v8182_v7 = vpack.c.bf16 %v7172_v12, %v7168_v24 }
 0x35b   :  { %v3546_v11 = vor.u32 %v3545_v27, %v3544_v32  ;;  %v7174_v5 = vld [vmem:[%s11921_s5 + $0x570] sm:$0xff]  ;;  %v7183_v44 = vld [vmem:[%s11921_s5 + $0x5b8] sm:$0xff]  ;;  %v10631_v45 = vld [vmem:[%s11921_s5 + $0x580] sm:$0xff]  ;;  %v3738_v46 = vor.u32 %v3737_v0, %v3736_v35  ;;  %v8184_v14 = vpack.c.bf16 %v7181_v39, %v7177_v36 }
 0x35c   :  { %v7180_v41 = vld [vmem:[%s11921_s5 + $0x5a0] sm:$0xff]  ;;  %v3739_v47 = vld [vmem:[#allocation4 + $0x12] ss:$64 sm:$0x8]  ;;  %v8198_v8 = vpack.c.bf16 %v7174_v5, %v7170_v4  ;;  %v7185_v10 = vld [vmem:[%s11921_s5 + $0x5c8] sm:$0xff]  ;;  %v8200_v15 = vpack.c.bf16 %v7183_v44, %v7179_v9 }
 0x35d   :  { %v3548_v38 = vor.u32 %v3547_v23, %v3546_v11  ;;  %v3750_v50 = vld [vmem:[#allocation4 + $0x13] ss:$64 sm:$0x1]  ;;  %v7189_v57 = vld [vmem:[%s11921_s5 + $0x5e8] sm:$0xff]  ;;  %v7187_v49 = vld [vmem:[%s11921_s5 + $0x5d8] sm:$0xff]  ;;  %v3740_v16 = vor.u32 %v3739_v47, %v3738_v46  ;;  %v8186_v27 = vpack.c.bf16 %v7180_v41, %v10631_v45 }
 0x35e   :  { %v7178_v51 = vld [vmem:[%s11921_s5 + $0x590] sm:$0xff]  ;;  %v7191_v13 = vld [vmem:[%s11921_s5 + $0x5f8] sm:$0xff]  ;;  %v7184_v18 = vld [vmem:[%s11921_s5 + $0x5c0] sm:$0xff] }
 0x35f   :  { %v3549_v63 = vmax.f32 %v3532_v33, %v3548_v38  ;;  %v7182_v54 = vld [vmem:[%s11921_s5 + $0x5b0] sm:$0xff]  ;;  %v7188_v20 = vld [vmem:[%s11921_s5 + $0x5e0] sm:$0xff]  ;;  %v3767_v43 = vld [vmem:[#allocation4 + $0x1a] ss:$64 sm:$0x1]  ;;  %v8204_v38 = vpack.c.bf16 %v7191_v13, %v7187_v49 }
 0x360   :  { %v3751_v55 = vld [vmem:[#allocation4 + $0x13] ss:$64 sm:$0x2]  ;;  %v3741_v62 = vld [vmem:[#allocation4 + $0x12] ss:$64 sm:$0x10]  ;;  %v8202_v23 = vpack.c.bf16 %v7182_v54, %v7178_v51  ;;  %v8190_v24 = vpack.c.bf16 %v7188_v20, %v7184_v18 }
 0x361   :  { %v3550_v6 = vmax.f32 %v3516_v26, %v3549_v63  ;;  %v3753_v60 = vld [vmem:[#allocation4 + $0x13] ss:$64 sm:$0x4]  ;;  %v3752_v61 = vor.u32 %v3751_v55, %v3750_v50  ;;  %v7195_v30 = vld [vmem:[%s11921_s5 + $0x608] sm:$0xff]  ;;  %v7197_v11 = vld [vmem:[%s11921_s5 + $0x618] sm:$0xff]  ;;  %v8188_v26 = vpack.c.bf16 %v7189_v57, %v7185_v10  ;;  %v3742_v34 = vor.u32 %v3741_v62, %v3740_v16 }
 0x362   :  { %v3755_v17 = vld [vmem:[#allocation4 + $0x13] ss:$64 sm:$0x8]  ;;  %v3768_v31 = vld [vmem:[#allocation4 + $0x1a] ss:$64 sm:$0x2] }
 0x363   :  { %7158 = vmatmul.mubr.msk.f32.vlgmr.msra.gmra.mrb[0].mxu0 %vm2695_vm8, %v3550_v6  ;;  %7159 = vmatmul.mubr.msk.f32.vlgmr.msra.gmra.mrb[0].mxu1 %vm2695_vm8, %v3550_v6  ;;  %v7186_v21 = vld [vmem:[%s11921_s5 + $0x5d0] sm:$0xff]  ;;  %v3754_v28 = vor.u32 %v3753_v60, %v3752_v61  ;;  %v3770_v32 = vld [vmem:[#allocation4 + $0x1a] ss:$64 sm:$0x4]  ;;  %v7199_v33 = vld [vmem:[%s11921_s5 + $0x628] sm:$0xff]  ;;  %v3769_v29 = vor.u32 %v3768_v31, %v3767_v43 }
 0x364   :  { %8179 = vmatpush1.bf16.msra.mxu0 %v8178_v1  ;;  %8195 = vmatpush1.bf16.msra.mxu1 %v8194_v3  ;;  %v7190_v22 = vld [vmem:[%s11921_s5 + $0x5f0] sm:$0xff]  ;;  %v7201_v48 = vld [vmem:[%s11921_s5 + $0x638] sm:$0xff]  ;;  %v8208_v1 = vpack.c.bf16 %v7199_v33, %v7195_v30  ;;  %v7198_v18 = vld [vmem:[%s11921_s5 + $0x620] sm:$0xff] }
 0x365   :  { %8181 = vmatprep.subr.bf16.mxu0 %v8180_v40  ;;  %8197 = vmatprep.subr.bf16.mxu1 %v8196_v42  ;;  %v3757_v19 = vld [vmem:[#allocation4 + $0x13] ss:$64 sm:$0x10]  ;;  %v3756_v25 = vor.u32 %v3755_v17, %v3754_v28  ;;  %v3743_v52 = vld [vmem:[#allocation4 + $0x12] ss:$64 sm:$0x20]  ;;  %v3771_v37 = vor.u32 %v3770_v32, %v3769_v29  ;;  %v8206_v12 = vpack.c.bf16 %v7190_v22, %v7186_v21 }
 0x366   :  { %3900 = vmatprep.mubr.f32.mxu0 %v8682_v2  ;;  %3971 = vmatprep.mubr.f32.mxu1 %v8682_v2  ;;  %v3772_v53 = vld [vmem:[#allocation4 + $0x1a] ss:$64 sm:$0x8]  ;;  %v3759_v58 = vld [vmem:[#allocation4 + $0x13] ss:$64 sm:$0x20]  ;;  %v8224_v3 = vpack.c.bf16 %v7201_v48, %v7197_v11  ;;  %v3744_v36 = vor.u32 %v3743_v52, %v3742_v34 }
 0x367   :  { %v3758_v56 = vor.u32 %v3757_v19, %v3756_v25  ;;  %v3783_v63 = vld [vmem:[#allocation4 + $0x1b] ss:$64 sm:$0x1]  ;;  %v3774_v59 = vld [vmem:[#allocation4 + $0x1a] ss:$64 sm:$0x10]  ;;  %v3773_v4 = vor.u32 %v3772_v53, %v3771_v37 }
 0x368   :  { %8183 = vmatpush1.bf16.msra.mxu0 %v8182_v7  ;;  %8199 = vmatpush1.bf16.msra.mxu1 %v8198_v8  ;;  %v3784_v0 = vld [vmem:[#allocation4 + $0x1b] ss:$64 sm:$0x2]  ;;  %v3745_v35 = vld [vmem:[#allocation4 + $0x12] ss:$64 sm:$0x40] }
 0x369   :  { %8185 = vmatprep.subr.bf16.mxu0 %v8184_v14  ;;  %8201 = vmatprep.subr.bf16.mxu1 %v8200_v15  ;;  %v3786_v5 = vld [vmem:[#allocation4 + $0x1b] ss:$64 sm:$0x4]  ;;  %v3760_v6 = vor.u32 %v3759_v58, %v3758_v56  ;;  %v3776_v40 = vld [vmem:[#allocation4 + $0x1a] ss:$64 sm:$0x20]  ;;  %v3785_v42 = vor.u32 %v3784_v0, %v3783_v63  ;;  %v3775_v9 = vor.u32 %v3774_v59, %v3773_v4 }
 0x36a   :  { %v3761_v39 = vld [vmem:[#allocation4 + $0x13] ss:$64 sm:$0x40]  ;;  %v3788_v44 = vld [vmem:[#allocation4 + $0x1b] ss:$64 sm:$0x8]  ;;  %v3746_v50 = vor.u32 %v3745_v35, %v3744_v36 }
 0x36b   :  { %v3787_v45 = vor.u32 %v3786_v5, %v3785_v42  ;;  %v3777_v41 = vor.u32 %v3776_v40, %v3775_v9  ;;  %v3778_v46 = vld [vmem:[#allocation4 + $0x1a] ss:$64 sm:$0x40]  ;;  %v3790_v47 = vld [vmem:[#allocation4 + $0x1b] ss:$64 sm:$0x10]  ;;  %v3762_v54 = vor.u32 %v3761_v39, %v3760_v6 }
 0x36c   :  { %8187 = vmatpush1.bf16.msra.mxu0 %v8186_v27  ;;  %8203 = vmatpush1.bf16.msra.mxu1 %v8202_v23  ;;  %v3747_v51 = vld [vmem:[#allocation4 + $0x12] ss:$64 sm:$0x80]  ;;  %v3763_v60 = vld [vmem:[#allocation4 + $0x13] ss:$64 sm:$0x80] }
 0x36d   :  { %8189 = vmatprep.subr.bf16.mxu0 %v8188_v26  ;;  %8205 = vmatprep.subr.bf16.mxu1 %v8204_v38  ;;  %v3789_v55 = vor.u32 %v3788_v44, %v3787_v45  ;;  %v3792_v7 = vld [vmem:[#allocation4 + $0x1b] ss:$64 sm:$0x20]  ;;  %v3779_v8 = vor.u32 %v3778_v46, %v3777_v41  ;;  %v3780_v57 = vld [vmem:[#allocation4 + $0x1a] ss:$64 sm:$0x80]  ;;  %v3748_v13 = vor.u32 %v3747_v51, %v3746_v50 }
 0x36e   :  { %v3794_v49 = vld [vmem:[#allocation4 + $0x1b] ss:$64 sm:$0x40]  ;;  %v3764_v61 = vor.u32 %v3763_v60, %v3762_v54  ;;  %v7194_v17 = vld [vmem:[%s11921_s5 + $0x600] sm:$0xff]  ;;  %v7196_v20 = vld [vmem:[%s11921_s5 + $0x610] sm:$0xff] }
 0x36f   :  { %v3791_v10 = vor.u32 %v3790_v47, %v3789_v55  ;;  %v3796_v15 = vld [vmem:[#allocation4 + $0x1b] ss:$64 sm:$0x80]  ;;  %v3781_v16 = vor.u32 %v3780_v57, %v3779_v8  ;;  %v7200_v21 = vld [vmem:[%s11921_s5 + $0x630] sm:$0xff]  ;;  %v7203_v22 = vld [vmem:[%s11921_s5 + $0x648] sm:$0xff]  ;;  %v8210_v34 = vpack.c.bf16 %v7198_v18, %v7194_v17 }
 0x370   :  { %8191 = vmatpush1.bf16.msra.mxu0 %v8190_v24  ;;  %8207 = vmatpush1.bf16.msra.mxu1 %v8206_v12  ;;  %v7207_v28 = vld [vmem:[%s11921_s5 + $0x668] sm:$0xff]  ;;  %v3765_v19 = vmax.f32 %v3748_v13, %v3764_v61  ;;  %v3983_v27 = vld [vmem:[#allocation4 + $0x14] ss:$64 sm:$0x1]  ;;  %v7205_v31 = vld [vmem:[%s11921_s5 + $0x658] sm:$0xff]  ;;  %v8226_v52 = vpack.c.bf16 %v7200_v21, %v7196_v20 }
 0x371   :  { %8209 = vmatprep.subr.bf16.mxu0 %v8208_v1  ;;  %8225 = vmatprep.subr.bf16.mxu1 %v8224_v3  ;;  %v3793_v14 = vor.u32 %v3792_v7, %v3791_v10  ;;  %v3984_v30 = vld [vmem:[#allocation4 + $0x14] ss:$64 sm:$0x2]  ;;  %v7209_v32 = vld [vmem:[%s11921_s5 + $0x678] sm:$0xff]  ;;  %v7202_v48 = vld [vmem:[%s11921_s5 + $0x640] sm:$0xff]  ;;  %v8212_v12 = vpack.c.bf16 %v7207_v28, %v7203_v22 }
 0x372   :  { %v3985_v23 = vor.u32 %v3984_v30, %v3983_v27  ;;  %v3986_v33 = vld [vmem:[#allocation4 + $0x14] ss:$64 sm:$0x4]  ;;  %v7206_v25 = vld [vmem:[%s11921_s5 + $0x660] sm:$0xff]  ;;  %v7211_v53 = vld [vmem:[%s11921_s5 + $0x688] sm:$0xff]  ;;  %v8228_v59 = vpack.c.bf16 %v7209_v32, %v7205_v31 }
 0x373   :  { %v3795_v62 = vor.u32 %v3794_v49, %v3793_v14  ;;  %v7204_v29 = vld [vmem:[%s11921_s5 + $0x650] sm:$0xff]  ;;  %v7215_v56 = vld [vmem:[%s11921_s5 + $0x6a8] sm:$0xff]  ;;  %v7213_v58 = vld [vmem:[%s11921_s5 + $0x698] sm:$0xff]  ;;  %v8214_v9 = vpack.c.bf16 %v7206_v25, %v7202_v48 }
 0x374   :  { %v7208_v26 = vld [vmem:[%s11921_s5 + $0x670] sm:$0xff]  ;;  %v7217_v37 = vld [vmem:[%s11921_s5 + $0x6b8] sm:$0xff]  ;;  %v3987_v63 = vor.u32 %v3986_v33, %v3985_v23  ;;  %v10734_v3 = vld [vmem:[%s11921_s5 + $0x680] sm:$0xff]  ;;  %v8216_v54 = vpack.c.bf16 %v7215_v56, %v7211_v53 }
 0x375   :  { %v3797_v43 = vor.u32 %v3796_v15, %v3795_v62  ;;  %v3988_v38 = vld [vmem:[#allocation4 + $0x14] ss:$64 sm:$0x8]  ;;  %v3999_v0 = vld [vmem:[#allocation4 + $0x15] ss:$64 sm:$0x1]  ;;  %v8230_v44 = vpack.c.bf16 %v7208_v26, %v7204_v29  ;;  %v8232_v55 = vpack.c.bf16 %v7217_v37, %v7213_v58 }
 0x376   :  { %v4000_v1 = vld [vmem:[#allocation4 + $0x15] ss:$64 sm:$0x2]  ;;  %v10739_v4 = vld [vmem:[%s11921_s5 + $0x6a0] sm:$0xff]  ;;  %v3989_v5 = vor.u32 %v3988_v38, %v3987_v63  ;;  %v7219_v45 = vld [vmem:[%s11921_s5 + $0x6c8] sm:$0xff] }
 0x377   :  { %v3798_v11 = vmax.f32 %v3781_v16, %v3797_v43  ;;  %v4001_v36 = vor.u32 %v4000_v1, %v3999_v0  ;;  %v4002_v35 = vld [vmem:[#allocation4 + $0x15] ss:$64 sm:$0x4]  ;;  %v3990_v42 = vld [vmem:[#allocation4 + $0x14] ss:$64 sm:$0x10]  ;;  %v8218_v15 = vpack.c.bf16 %v10739_v4, %v10734_v3 }
 0x378   :  { %v7212_v6 = vld [vmem:[%s11921_s5 + $0x690] sm:$0xff]  ;;  %v7223_v41 = vld [vmem:[%s11921_s5 + $0x6e8] sm:$0xff]  ;;  %v7221_v46 = vld [vmem:[%s11921_s5 + $0x6d8] sm:$0xff]  ;;  %v3991_v57 = vor.u32 %v3990_v42, %v3989_v5 }
 0x379   :  { %v3799_v24 = vmax.f32 %v3765_v19, %v3798_v11  ;;  %v7216_v40 = vld [vmem:[%s11921_s5 + $0x6b0] sm:$0xff]  ;;  %v7225_v47 = vld [vmem:[%s11921_s5 + $0x6f8] sm:$0xff]  ;;  %v4003_v50 = vor.u32 %v4002_v35, %v4001_v36  ;;  %v7218_v8 = vld [vmem:[%s11921_s5 + $0x6c0] sm:$0xff]  ;;  %v8220_v31 = vpack.c.bf16 %v7223_v41, %v7219_v45 }
 0x37a   :  { %v4004_v39 = vld [vmem:[#allocation4 + $0x15] ss:$64 sm:$0x8]  ;;  %v4016_v60 = vld [vmem:[#allocation4 + $0x1c] ss:$64 sm:$0x1]  ;;  %v8234_v20 = vpack.c.bf16 %v7216_v40, %v7212_v6  ;;  %v8236_v32 = vpack.c.bf16 %v7225_v47, %v7221_v46 }
 0x37b   :  { %7192 = vmatmul.mubr.msk.f32.vlgmr.msra.gmra.mrb[0].mxu0 %vm2695_vm8, %v3799_v24  ;;  %7193 = vmatmul.mubr.msk.f32.vlgmr.msra.gmra.mrb[0].mxu1 %vm2695_vm8, %v3799_v24  ;;  %v4006_v51 = vld [vmem:[#allocation4 + $0x15] ss:$64 sm:$0x10]  ;;  %v4017_v7 = vld [vmem:[#allocation4 + $0x1c] ss:$64 sm:$0x2]  ;;  %v4005_v13 = vor.u32 %v4004_v39, %v4003_v50 }
 0x37c   :  { %8211 = vmatpush1.bf16.msra.mxu0 %v8210_v34  ;;  %8227 = vmatpush1.bf16.msra.mxu1 %v8226_v52  ;;  %v7222_v10 = vld [vmem:[%s11921_s5 + $0x6e0] sm:$0xff]  ;;  %v3992_v49 = vld [vmem:[#allocation4 + $0x14] ss:$64 sm:$0x20]  ;;  %v4018_v61 = vor.u32 %v4017_v7, %v4016_v60  ;;  %v7229_v21 = vld [vmem:[%s11921_s5 + $0x708] sm:$0xff] }
 0x37d   :  { %8213 = vmatprep.subr.bf16.mxu0 %v8212_v12  ;;  %8229 = vmatprep.subr.bf16.mxu1 %v8228_v59  ;;  %v4019_v14 = vld [vmem:[#allocation4 + $0x1c] ss:$64 sm:$0x4]  ;;  %v7220_v16 = vld [vmem:[%s11921_s5 + $0x6d0] sm:$0xff]  ;;  %v7233_v22 = vld [vmem:[%s11921_s5 + $0x728] sm:$0xff]  ;;  %v4007_v43 = vor.u32 %v4006_v51, %v4005_v13  ;;  %v3993_v48 = vor.u32 %v3992_v49, %v3991_v57  ;;  %v8222_v52 = vpack.c.bf16 %v7222_v10, %v7218_v8 }
 0x37e   :  { %4149 = vmatprep.mubr.f32.mxu0 %v8682_v2  ;;  %4220 = vmatprep.mubr.f32.mxu1 %v8682_v2  ;;  %v7224_v62 = vld [vmem:[%s11921_s5 + $0x6f0] sm:$0xff]  ;;  %v4021_v18 = vld [vmem:[#allocation4 + $0x1c] ss:$64 sm:$0x8]  ;;  %v4020_v27 = vor.u32 %v4019_v14, %v4018_v61  ;;  %v8240_v24 = vpack.c.bf16 %v7233_v22, %v7229_v21  ;;  %v7228_v51 = vld [vmem:[%s11921_s5 + $0x700] sm:$0xff] }
 0x37f   :  { %v4008_v17 = vld [vmem:[#allocation4 + $0x15] ss:$64 sm:$0x20]  ;;  %v7231_v28 = vld [vmem:[%s11921_s5 + $0x718] sm:$0xff]  ;;  %v8238_v58 = vpack.c.bf16 %v7224_v62, %v7220_v16  ;;  %v7237_v10 = vld [vmem:[%s11921_s5 + $0x748] sm:$0xff] }
 0x380   :  { %8215 = vmatpush1.bf16.msra.mxu0 %v8214_v9  ;;  %8231 = vmatpush1.bf16.msra.mxu1 %v8230_v44  ;;  %v7235_v19 = vld [vmem:[%s11921_s5 + $0x738] sm:$0xff]  ;;  %v3994_v23 = vld [vmem:[#allocation4 + $0x14] ss:$64 sm:$0x40]  ;;  %v4009_v25 = vor.u32 %v4008_v17, %v4007_v43  ;;  %v4022_v26 = vor.u32 %v4021_v18, %v4020_v27  ;;  %v7241_v57 = vld [vmem:[%s11921_s5 + $0x768] sm:$0xff] }
 0x381   :  { %v4023_v30 = vld [vmem:[#allocation4 + $0x1c] ss:$64 sm:$0x10]  ;;  %8217 = vmatprep.subr.bf16.mxu0 %v8216_v54  ;;  %8233 = vmatprep.subr.bf16.mxu1 %v8232_v55  ;;  %v4032_v33 = vld [vmem:[#allocation4 + $0x1d] ss:$64 sm:$0x1]  ;;  %v8256_v12 = vpack.c.bf16 %v7235_v19, %v7231_v28  ;;  %v3995_v1 = vor.u32 %v3994_v23, %v3993_v48  ;;  %v8244_v27 = vpack.c.bf16 %v7241_v57, %v7237_v10 }
 0x382   :  { %v4033_v11 = vld [vmem:[#allocation4 + $0x1d] ss:$64 sm:$0x2]  ;;  %v4010_v29 = vld [vmem:[#allocation4 + $0x15] ss:$64 sm:$0x40]  ;;  %v4024_v37 = vor.u32 %v4023_v30, %v4022_v26 }
 0x383   :  { %v4034_v38 = vor.u32 %v4033_v11, %v4032_v33  ;;  %v4035_v34 = vld [vmem:[#allocation4 + $0x1d] ss:$64 sm:$0x4]  ;;  %v4025_v53 = vld [vmem:[#allocation4 + $0x1c] ss:$64 sm:$0x20]  ;;  %v4011_v4 = vor.u32 %v4010_v29, %v4009_v25 }
 0x384   :  { %v4037_v56 = vld [vmem:[#allocation4 + $0x1d] ss:$64 sm:$0x8]  ;;  %8219 = vmatpush1.bf16.msra.mxu0 %v8218_v15  ;;  %8235 = vmatpush1.bf16.msra.mxu1 %v8234_v20  ;;  %v4027_v59 = vld [vmem:[#allocation4 + $0x1c] ss:$64 sm:$0x40]  ;;  %v4026_v5 = vor.u32 %v4025_v53, %v4024_v37 }
 0x385   :  { %v4036_v63 = vor.u32 %v4035_v34, %v4034_v38  ;;  %8221 = vmatprep.subr.bf16.mxu0 %v8220_v31  ;;  %8237 = vmatprep.subr.bf16.mxu1 %v8236_v32  ;;  %v4039_v0 = vld [vmem:[#allocation4 + $0x1d] ss:$64 sm:$0x10]  ;;  %v3996_v3 = vld [vmem:[#allocation4 + $0x14] ss:$64 sm:$0x80] }
 0x386   :  { %v4012_v35 = vld [vmem:[#allocation4 + $0x15] ss:$64 sm:$0x80]  ;;  %v4041_v6 = vld [vmem:[#allocation4 + $0x1d] ss:$64 sm:$0x20]  ;;  %v4028_v40 = vor.u32 %v4027_v59, %v4026_v5  ;;  %v3997_v44 = vor.u32 %v3996_v3, %v3995_v1 }
 0x387   :  { %v4038_v36 = vor.u32 %v4037_v56, %v4036_v63  ;;  %v4029_v39 = vld [vmem:[#allocation4 + $0x1c] ss:$64 sm:$0x80]  ;;  %v4043_v9 = vld [vmem:[#allocation4 + $0x1d] ss:$64 sm:$0x40]  ;;  %v4013_v45 = vor.u32 %v4012_v35, %v4011_v4 }
 0x388   :  { %8223 = vmatpush1.bf16.msra.mxu0 %v8222_v52  ;;  %8239 = vmatpush1.bf16.msra.mxu1 %v8238_v58  ;;  %v4045_v46 = vld [vmem:[#allocation4 + $0x1d] ss:$64 sm:$0x80]  ;;  %v4030_v47 = vor.u32 %v4029_v39, %v4028_v40  ;;  %v7232_v54 = vld [vmem:[%s11921_s5 + $0x720] sm:$0xff]  ;;  %v7230_v55 = vld [vmem:[%s11921_s5 + $0x710] sm:$0xff] }
 0x389   :  { %v4040_v42 = vor.u32 %v4039_v0, %v4038_v36  ;;  %8241 = vmatprep.subr.bf16.mxu0 %v8240_v24  ;;  %8257 = vmatprep.subr.bf16.mxu1 %v8256_v12  ;;  %v4014_v60 = vmax.f32 %v3997_v44, %v4013_v45  ;;  %v7234_v8 = vld [vmem:[%s11921_s5 + $0x730] sm:$0xff]  ;;  %v7239_v49 = vld [vmem:[%s11921_s5 + $0x758] sm:$0xff]  ;;  %v7236_v15 = vld [vmem:[%s11921_s5 + $0x740] sm:$0xff]  ;;  %v8242_v18 = vpack.c.bf16 %v7232_v54, %v7228_v51 }
 0x38a   :  { %v7243_v13 = vld [vmem:[%s11921_s5 + $0x778] sm:$0xff]  ;;  %v4232_v61 = vld [vmem:[#allocation4 + $0x16] ss:$64 sm:$0x1]  ;;  %v7240_v16 = vld [vmem:[%s11921_s5 + $0x760] sm:$0xff]  ;;  %v8258_v20 = vpack.c.bf16 %v7234_v8, %v7230_v55 }
 0x38b   :  { %v4042_v41 = vor.u32 %v4041_v6, %v4040_v42  ;;  %v4233_v62 = vld [vmem:[#allocation4 + $0x16] ss:$64 sm:$0x2]  ;;  %v7245_v28 = vld [vmem:[%s11921_s5 + $0x788] sm:$0xff]  ;;  %v8260_v30 = vpack.c.bf16 %v7243_v13, %v7239_v49  ;;  %v7247_v32 = vld [vmem:[%s11921_s5 + $0x798] sm:$0xff]  ;;  %v8246_v53 = vpack.c.bf16 %v7240_v16, %v7236_v15 }
 0x38c   :  { %v4235_v17 = vld [vmem:[#allocation4 + $0x16] ss:$64 sm:$0x4]  ;;  %v4234_v19 = vor.u32 %v4233_v62, %v4232_v61  ;;  %v7249_v31 = vld [vmem:[%s11921_s5 + $0x7a8] sm:$0xff]  ;;  %v7251_v23 = vld [vmem:[%s11921_s5 + $0x7b8] sm:$0xff] }
 0x38d   :  { %v4044_v50 = vor.u32 %v4043_v9, %v4042_v41  ;;  %v7238_v21 = vld [vmem:[%s11921_s5 + $0x750] sm:$0xff]  ;;  %v10840_v33 = vld [vmem:[%s11921_s5 + $0x780] sm:$0xff]  ;;  %v7253_v58 = vld [vmem:[%s11921_s5 + $0x7c8] sm:$0xff]  ;;  %v8248_v59 = vpack.c.bf16 %v7249_v31, %v7245_v28  ;;  %v8264_v0 = vpack.c.bf16 %v7251_v23, %v7247_v32 }
 0x38e   :  { %v7242_v22 = vld [vmem:[%s11921_s5 + $0x770] sm:$0xff]  ;;  %v7248_v11 = vld [vmem:[%s11921_s5 + $0x7a0] sm:$0xff]  ;;  %v4236_v48 = vor.u32 %v4235_v17, %v4234_v19  ;;  %v7257_v37 = vld [vmem:[%s11921_s5 + $0x7e8] sm:$0xff] }
 0x38f   :  { %v4046_v7 = vor.u32 %v4045_v46, %v4044_v50  ;;  %v4237_v25 = vld [vmem:[#allocation4 + $0x16] ss:$64 sm:$0x8]  ;;  %v4248_v29 = vld [vmem:[#allocation4 + $0x17] ss:$64 sm:$0x1]  ;;  %v8262_v56 = vpack.c.bf16 %v7242_v22, %v7238_v21  ;;  %v8250_v9 = vpack.c.bf16 %v7248_v11, %v10840_v33 }
 0x390   :  { %v7246_v26 = vld [vmem:[%s11921_s5 + $0x790] sm:$0xff]  ;;  %v7255_v63 = vld [vmem:[%s11921_s5 + $0x7d8] sm:$0xff]  ;;  %v4238_v1 = vor.u32 %v4237_v25, %v4236_v48  ;;  %v7252_v5 = vld [vmem:[%s11921_s5 + $0x7c0] sm:$0xff] }
 0x391   :  { %v4047_v14 = vmax.f32 %v4030_v47, %v4046_v7  ;;  %v7250_v38 = vld [vmem:[%s11921_s5 + $0x7b0] sm:$0xff]  ;;  %v7259_v24 = vld [vmem:[%s11921_s5 + $0x7f8] sm:$0xff]  ;;  %v7256_v36 = vld [vmem:[%s11921_s5 + $0x7e0] sm:$0xff] }
 0x392   :  { %v4249_v34 = vld [vmem:[#allocation4 + $0x17] ss:$64 sm:$0x2]  ;;  %v4239_v3 = vld [vmem:[#allocation4 + $0x16] ss:$64 sm:$0x10]  ;;  %v8266_v46 = vpack.c.bf16 %v7250_v38, %v7246_v26  ;;  %v8268_v7 = vpack.c.bf16 %v7259_v24, %v7255_v63  ;;  %v8254_v15 = vpack.c.bf16 %v7256_v36, %v7252_v5 }
 0x393   :  { %v4048_v43 = vmax.f32 %v4014_v60, %v4047_v14  ;;  %v4251_v52 = vld [vmem:[#allocation4 + $0x17] ss:$64 sm:$0x4]  ;;  %v4250_v12 = vor.u32 %v4249_v34, %v4248_v29  ;;  %v4265_v39 = vld [vmem:[#allocation4 + $0x1e] ss:$64 sm:$0x1]  ;;  %v8252_v60 = vpack.c.bf16 %v7257_v37, %v7253_v58  ;;  %v4240_v8 = vor.u32 %v4239_v3, %v4238_v1 }
 0x394   :  { %v4253_v4 = vld [vmem:[#allocation4 + $0x17] ss:$64 sm:$0x8]  ;;  %v7263_v44 = vld [vmem:[%s11921_s5 + $0x808] sm:$0xff]  ;;  %v7265_v50 = vld [vmem:[%s11921_s5 + $0x818] sm:$0xff] }
 0x395   :  { %7226 = vmatmul.mubr.msk.f32.vlgmr.msra.gmra.mrb[0].mxu0 %vm2695_vm8, %v4048_v43  ;;  %7227 = vmatmul.mubr.msk.f32.vlgmr.msra.gmra.mrb[0].mxu1 %vm2695_vm8, %v4048_v43  ;;  %v7254_v35 = vld [vmem:[%s11921_s5 + $0x7d0] sm:$0xff]  ;;  %v4252_v40 = vor.u32 %v4251_v52, %v4250_v12  ;;  %v4266_v45 = vld [vmem:[#allocation4 + $0x1e] ss:$64 sm:$0x2]  ;;  %v7267_v47 = vld [vmem:[%s11921_s5 + $0x828] sm:$0xff] }
 0x396   :  { %8243 = vmatpush1.bf16.msra.mxu0 %v8242_v18  ;;  %8259 = vmatpush1.bf16.msra.mxu1 %v8258_v20  ;;  %v7258_v6 = vld [vmem:[%s11921_s5 + $0x7f0] sm:$0xff]  ;;  %v4268_v41 = vld [vmem:[#allocation4 + $0x1e] ss:$64 sm:$0x4]  ;;  %v4267_v55 = vor.u32 %v4266_v45, %v4265_v39  ;;  %v8272_v18 = vpack.c.bf16 %v7267_v47, %v7263_v44  ;;  %v7266_v5 = vld [vmem:[%s11921_s5 + $0x820] sm:$0xff] }
 0x397   :  { %8245 = vmatprep.subr.bf16.mxu0 %v8244_v27  ;;  %8261 = vmatprep.subr.bf16.mxu1 %v8260_v30  ;;  %v4255_v42 = vld [vmem:[#allocation4 + $0x17] ss:$64 sm:$0x10]  ;;  %v7269_v51 = vld [vmem:[%s11921_s5 + $0x838] sm:$0xff]  ;;  %v4254_v54 = vor.u32 %v4253_v4, %v4252_v40  ;;  %v8270_v16 = vpack.c.bf16 %v7258_v6, %v7254_v35  ;;  %v7262_v4 = vld [vmem:[%s11921_s5 + $0x800] sm:$0xff] }
 0x398   :  { %4398 = vmatprep.mubr.f32.mxu0 %v8682_v2  ;;  %4469 = vmatprep.mubr.f32.mxu1 %v8682_v2  ;;  %v4241_v10 = vld [vmem:[#allocation4 + $0x16] ss:$64 sm:$0x20]  ;;  %v4270_v57 = vld [vmem:[#allocation4 + $0x1e] ss:$64 sm:$0x8]  ;;  %v4269_v61 = vor.u32 %v4268_v41, %v4267_v55  ;;  %v8288_v20 = vpack.c.bf16 %v7269_v51, %v7265_v50 }
 0x399   :  { %v4256_v49 = vor.u32 %v4255_v42, %v4254_v54  ;;  %v4257_v13 = vld [vmem:[#allocation4 + $0x17] ss:$64 sm:$0x20]  ;;  %v4281_v14 = vld [vmem:[#allocation4 + $0x1f] ss:$64 sm:$0x1]  ;;  %v4242_v28 = vor.u32 %v4241_v10, %v4240_v8  ;;  %v8274_v8 = vpack.c.bf16 %v7266_v5, %v7262_v4 }
 0x39a   :  { %8247 = vmatpush1.bf16.msra.mxu0 %v8246_v53  ;;  %8263 = vmatpush1.bf16.msra.mxu1 %v8262_v56  ;;  %v4272_v62 = vld [vmem:[#allocation4 + $0x1e] ss:$64 sm:$0x10]  ;;  %v4282_v17 = vld [vmem:[#allocation4 + $0x1f] ss:$64 sm:$0x2]  ;;  %v4271_v21 = vor.u32 %v4270_v57, %v4269_v61 }
 0x39b   :  { %8249 = vmatprep.subr.bf16.mxu0 %v8248_v59  ;;  %8265 = vmatprep.subr.bf16.mxu1 %v8264_v0  ;;  %v4284_v22 = vld [vmem:[#allocation4 + $0x1f] ss:$64 sm:$0x4]  ;;  %v4243_v19 = vld [vmem:[#allocation4 + $0x16] ss:$64 sm:$0x40]  ;;  %v4258_v43 = vor.u32 %v4257_v13, %v4256_v49  ;;  %v4283_v30 = vor.u32 %v4282_v17, %v4281_v14 }
 0x39c   :  { %v4274_v27 = vld [vmem:[#allocation4 + $0x1e] ss:$64 sm:$0x20]  ;;  %v4259_v31 = vld [vmem:[#allocation4 + $0x17] ss:$64 sm:$0x40]  ;;  %v4273_v32 = vor.u32 %v4272_v62, %v4271_v21  ;;  %v4244_v29 = vor.u32 %v4243_v19, %v4242_v28 }
 0x39d   :  { %v4286_v23 = vld [vmem:[#allocation4 + $0x1f] ss:$64 sm:$0x8]  ;;  %v4285_v33 = vor.u32 %v4284_v22, %v4283_v30  ;;  %v4276_v48 = vld [vmem:[#allocation4 + $0x1e] ss:$64 sm:$0x40]  ;;  %v4260_v38 = vor.u32 %v4259_v31, %v4258_v43 }
 0x39e   :  { %8251 = vmatpush1.bf16.msra.mxu0 %v8250_v9  ;;  %8267 = vmatpush1.bf16.msra.mxu1 %v8266_v46  ;;  %v4275_v11 = vor.u32 %v4274_v27, %v4273_v32  ;;  %v4288_v25 = vld [vmem:[#allocation4 + $0x1f] ss:$64 sm:$0x10]  ;;  %v4245_v26 = vld [vmem:[#allocation4 + $0x16] ss:$64 sm:$0x80] }
 0x39f   :  { %8253 = vmatprep.subr.bf16.mxu0 %v8252_v60  ;;  %8269 = vmatprep.subr.bf16.mxu1 %v8268_v7  ;;  %v4287_v34 = vor.u32 %v4286_v23, %v4285_v33  ;;  %v4261_v52 = vld [vmem:[#allocation4 + $0x17] ss:$64 sm:$0x80]  ;;  %v4290_v53 = vld [vmem:[#allocation4 + $0x1f] ss:$64 sm:$0x20]  ;;  %v4246_v24 = vor.u32 %v4245_v26, %v4244_v29 }
 0x3a0   :  { %v4277_v56 = vor.u32 %v4276_v48, %v4275_v11  ;;  %v4278_v37 = vld [vmem:[#allocation4 + $0x1e] ss:$64 sm:$0x80]  ;;  %v4292_v63 = vld [vmem:[#allocation4 + $0x1f] ss:$64 sm:$0x40]  ;;  %v4262_v12 = vor.u32 %v4261_v52, %v4260_v38 }
 0x3a1   :  { %v4289_v58 = vor.u32 %v4288_v25, %v4287_v34  ;;  %v4294_v0 = vld [vmem:[#allocation4 + $0x1f] ss:$64 sm:$0x80]  ;;  %v7264_v36 = vld [vmem:[%s11921_s5 + $0x810] sm:$0xff]  ;;  %v7271_v6 = vld [vmem:[%s11921_s5 + $0x848] sm:$0xff] }
 0x3a2   :  { %8255 = vmatpush1.bf16.msra.mxu0 %v8254_v15  ;;  %8271 = vmatpush1.bf16.msra.mxu1 %v8270_v16  ;;  %v4279_v1 = vor.u32 %v4278_v37, %v4277_v56  ;;  %v7268_v35 = vld [vmem:[%s11921_s5 + $0x830] sm:$0xff]  ;;  %v7275_v40 = vld [vmem:[%s11921_s5 + $0x868] sm:$0xff]  ;;  %v4263_v42 = vmax.f32 %v4246_v24, %v4262_v12  ;;  %v4481_v9 = vld [vmem:[#allocation4 + $0x20] ss:$64 sm:$0x1] }
 0x3a3   :  { %8273 = vmatprep.subr.bf16.mxu0 %v8272_v18  ;;  %8289 = vmatprep.subr.bf16.mxu1 %v8288_v20  ;;  %v4291_v59 = vor.u32 %v4290_v53, %v4289_v58  ;;  %v4482_v44 = vld [vmem:[#allocation4 + $0x20] ss:$64 sm:$0x2]  ;;  %v7273_v45 = vld [vmem:[%s11921_s5 + $0x858] sm:$0xff]  ;;  %v7272_v55 = vld [vmem:[%s11921_s5 + $0x850] sm:$0xff]  ;;  %v8290_v10 = vpack.c.bf16 %v7268_v35, %v7264_v36  ;;  %v8276_v16 = vpack.c.bf16 %v7275_v40, %v7271_v6 }
 0x3a4   :  { %v7277_v41 = vld [vmem:[%s11921_s5 + $0x878] sm:$0xff]  ;;  %v4483_v46 = vor.u32 %v4482_v44, %v4481_v9  ;;  %v4484_v47 = vld [vmem:[#allocation4 + $0x20] ss:$64 sm:$0x4]  ;;  %v7276_v60 = vld [vmem:[%s11921_s5 + $0x870] sm:$0xff] }
 0x3a5   :  { %v4293_v3 = vor.u32 %v4292_v63, %v4291_v59  ;;  %v7270_v51 = vld [vmem:[%s11921_s5 + $0x840] sm:$0xff]  ;;  %v7279_v57 = vld [vmem:[%s11921_s5 + $0x888] sm:$0xff]  ;;  %v7281_v13 = vld [vmem:[%s11921_s5 + $0x898] sm:$0xff]  ;;  %v8292_v62 = vpack.c.bf16 %v7277_v41, %v7273_v45  ;;  %v8294_v23 = vpack.c.bf16 %v7276_v60, %v7272_v55 }
 0x3a6   :  { %v7274_v54 = vld [vmem:[%s11921_s5 + $0x860] sm:$0xff]  ;;  %v7283_v49 = vld [vmem:[%s11921_s5 + $0x8a8] sm:$0xff]  ;;  %v7285_v61 = vld [vmem:[%s11921_s5 + $0x8b8] sm:$0xff]  ;;  %v4485_v14 = vor.u32 %v4484_v47, %v4483_v46 }
 0x3a7   :  { %v4295_v39 = vor.u32 %v4294_v0, %v4293_v3  ;;  %v4486_v7 = vld [vmem:[#allocation4 + $0x20] ss:$64 sm:$0x8]  ;;  %v4497_v17 = vld [vmem:[#allocation4 + $0x21] ss:$64 sm:$0x1]  ;;  %v8278_v32 = vpack.c.bf16 %v7274_v54, %v7270_v51  ;;  %v8280_v38 = vpack.c.bf16 %v7283_v49, %v7279_v57  ;;  %v8296_v34 = vpack.c.bf16 %v7285_v61, %v7281_v13 }
 0x3a8   :  { %v4498_v18 = vld [vmem:[#allocation4 + $0x21] ss:$64 sm:$0x2]  ;;  %v4487_v22 = vor.u32 %v4486_v7, %v4485_v14  ;;  %v7280_v43 = vld [vmem:[%s11921_s5 + $0x890] sm:$0xff]  ;;  %v7287_v33 = vld [vmem:[%s11921_s5 + $0x8c8] sm:$0xff] }
 0x3a9   :  { %v4296_v50 = vmax.f32 %v4279_v1, %v4295_v39  ;;  %v10943_v20 = vld [vmem:[%s11921_s5 + $0x880] sm:$0xff]  ;;  %v4499_v28 = vor.u32 %v4498_v18, %v4497_v17  ;;  %v7284_v27 = vld [vmem:[%s11921_s5 + $0x8b0] sm:$0xff]  ;;  %v7291_v11 = vld [vmem:[%s11921_s5 + $0x8e8] sm:$0xff] }
 0x3aa   :  { %v10948_v21 = vld [vmem:[%s11921_s5 + $0x8a0] sm:$0xff]  ;;  %v7289_v48 = vld [vmem:[%s11921_s5 + $0x8d8] sm:$0xff]  ;;  %v4514_v52 = vld [vmem:[#allocation4 + $0x28] ss:$64 sm:$0x1]  ;;  %v8298_v36 = vpack.c.bf16 %v7284_v27, %v7280_v43  ;;  %v8284_v45 = vpack.c.bf16 %v7291_v11, %v7287_v33 }
 0x3ab   :  { %v4297_v15 = vmax.f32 %v4263_v42, %v4296_v50  ;;  %v4500_v19 = vld [vmem:[#allocation4 + $0x21] ss:$64 sm:$0x4]  ;;  %v4488_v30 = vld [vmem:[#allocation4 + $0x20] ss:$64 sm:$0x10]  ;;  %v8282_v0 = vpack.c.bf16 %v10948_v21, %v10943_v20 }
 0x3ac   :  { %v4502_v31 = vld [vmem:[#allocation4 + $0x21] ss:$64 sm:$0x8]  ;;  %v7293_v25 = vld [vmem:[%s11921_s5 + $0x8f8] sm:$0xff]  ;;  %v4501_v29 = vor.u32 %v4500_v19, %v4499_v28  ;;  %v4489_v37 = vor.u32 %v4488_v30, %v4487_v22  ;;  %v7288_v1 = vld [vmem:[%s11921_s5 + $0x8d0] sm:$0xff] }
 0x3ad   :  { %7260 = vmatmul.mubr.msk.f32.vlgmr.msra.gmra.mrb[0].mxu0 %vm2695_vm8, %v4297_v15  ;;  %7261 = vmatmul.mubr.msk.f32.vlgmr.msra.gmra.mrb[0].mxu1 %vm2695_vm8, %v4297_v15  ;;  %v4504_v26 = vld [vmem:[#allocation4 + $0x21] ss:$64 sm:$0x10]  ;;  %v4515_v53 = vld [vmem:[#allocation4 + $0x28] ss:$64 sm:$0x2]  ;;  %v8300_v41 = vpack.c.bf16 %v7293_v25, %v7289_v48 }
 0x3ae   :  { %8275 = vmatpush1.bf16.msra.mxu0 %v8274_v8  ;;  %8291 = vmatpush1.bf16.msra.mxu1 %v8290_v10  ;;  %v7286_v56 = vld [vmem:[%s11921_s5 + $0x8c0] sm:$0xff]  ;;  %v4503_v24 = vor.u32 %v4502_v31, %v4501_v29  ;;  %v4516_v12 = vor.u32 %v4515_v53, %v4514_v52  ;;  %v4517_v59 = vld [vmem:[#allocation4 + $0x28] ss:$64 sm:$0x4]  ;;  %v7292_v3 = vld [vmem:[%s11921_s5 + $0x8f0] sm:$0xff] }
 0x3af   :  { %8277 = vmatprep.subr.bf16.mxu0 %v8276_v16  ;;  %8293 = vmatprep.subr.bf16.mxu1 %v8292_v62  ;;  %v7290_v58 = vld [vmem:[%s11921_s5 + $0x8e0] sm:$0xff]  ;;  %v4519_v5 = vld [vmem:[#allocation4 + $0x28] ss:$64 sm:$0x8]  ;;  %v7299_v40 = vld [vmem:[%s11921_s5 + $0x918] sm:$0xff]  ;;  %v8302_v13 = vpack.c.bf16 %v7292_v3, %v7288_v1 }
 0x3b0   :  { %4647 = vmatprep.mubr.f32.mxu0 %v8682_v2  ;;  %4718 = vmatprep.mubr.f32.mxu1 %v8682_v2  ;;  %v4490_v63 = vld [vmem:[#allocation4 + $0x20] ss:$64 sm:$0x20]  ;;  %v4506_v4 = vld [vmem:[#allocation4 + $0x21] ss:$64 sm:$0x20]  ;;  %v4505_v39 = vor.u32 %v4504_v26, %v4503_v24  ;;  %v4518_v9 = vor.u32 %v4517_v59, %v4516_v12  ;;  %v8286_v10 = vpack.c.bf16 %v7290_v58, %v7286_v56 }
 0x3b1   :  { %v7297_v35 = vld [vmem:[%s11921_s5 + $0x908] sm:$0xff]  ;;  %v7303_v42 = vld [vmem:[%s11921_s5 + $0x938] sm:$0xff]  ;;  %v4492_v46 = vld [vmem:[#allocation4 + $0x20] ss:$64 sm:$0x40]  ;;  %v4491_v51 = vor.u32 %v4490_v63, %v4489_v37 }
 0x3b2   :  { %8279 = vmatpush1.bf16.msra.mxu0 %v8278_v32  ;;  %8295 = vmatpush1.bf16.msra.mxu1 %v8294_v23  ;;  %v7301_v6 = vld [vmem:[%s11921_s5 + $0x928] sm:$0xff]  ;;  %v4507_v54 = vor.u32 %v4506_v4, %v4505_v39  ;;  %v4508_v55 = vld [vmem:[#allocation4 + $0x21] ss:$64 sm:$0x40]  ;;  %v4520_v60 = vor.u32 %v4519_v5, %v4518_v9  ;;  %v8320_v16 = vpack.c.bf16 %v7303_v42, %v7299_v40  ;;  %v7302_v56 = vld [vmem:[%s11921_s5 + $0x930] sm:$0xff] }
 0x3b3   :  { %v4521_v44 = vld [vmem:[#allocation4 + $0x28] ss:$64 sm:$0x10]  ;;  %8281 = vmatprep.subr.bf16.mxu0 %v8280_v38  ;;  %8297 = vmatprep.subr.bf16.mxu1 %v8296_v34  ;;  %v4530_v47 = vld [vmem:[#allocation4 + $0x29] ss:$64 sm:$0x1]  ;;  %v8304_v15 = vpack.c.bf16 %v7301_v6, %v7297_v35  ;;  %v4493_v18 = vor.u32 %v4492_v46, %v4491_v51 }
 0x3b4   :  { %v4531_v50 = vld [vmem:[#allocation4 + $0x29] ss:$64 sm:$0x2]  ;;  %v4523_v57 = vld [vmem:[#allocation4 + $0x28] ss:$64 sm:$0x20]  ;;  %v4522_v61 = vor.u32 %v4521_v44, %v4520_v60  ;;  %v4509_v21 = vor.u32 %v4508_v55, %v4507_v54 }
 0x3b5   :  { %v4532_v7 = vor.u32 %v4531_v50, %v4530_v47  ;;  %v4533_v8 = vld [vmem:[#allocation4 + $0x29] ss:$64 sm:$0x4]  ;;  %v4525_v62 = vld [vmem:[#allocation4 + $0x28] ss:$64 sm:$0x40] }
 0x3b6   :  { %v4535_v49 = vld [vmem:[#allocation4 + $0x29] ss:$64 sm:$0x8]  ;;  %8283 = vmatpush1.bf16.msra.mxu0 %v8282_v0  ;;  %8299 = vmatpush1.bf16.msra.mxu1 %v8298_v36  ;;  %v4494_v20 = vld [vmem:[#allocation4 + $0x20] ss:$64 sm:$0x80]  ;;  %v4524_v22 = vor.u32 %v4523_v57, %v4522_v61 }
 0x3b7   :  { %v4534_v14 = vor.u32 %v4533_v8, %v4532_v7  ;;  %8285 = vmatprep.subr.bf16.mxu0 %v8284_v45  ;;  %8301 = vmatprep.subr.bf16.mxu1 %v8300_v41  ;;  %v4537_v17 = vld [vmem:[#allocation4 + $0x29] ss:$64 sm:$0x10]  ;;  %v4510_v19 = vld [vmem:[#allocation4 + $0x21] ss:$64 sm:$0x80]  ;;  %v4495_v23 = vor.u32 %v4494_v20, %v4493_v18 }
 0x3b8   :  { %v4539_v43 = vld [vmem:[#allocation4 + $0x29] ss:$64 sm:$0x20]  ;;  %v4526_v27 = vor.u32 %v4525_v62, %v4524_v22  ;;  %v4527_v31 = vld [vmem:[#allocation4 + $0x28] ss:$64 sm:$0x80]  ;;  %v4511_v33 = vor.u32 %v4510_v19, %v4509_v21 }
 0x3b9   :  { %v4536_v28 = vor.u32 %v4535_v49, %v4534_v14  ;;  %v4541_v32 = vld [vmem:[#allocation4 + $0x29] ss:$64 sm:$0x40]  ;;  %v7296_v26 = vld [vmem:[%s11921_s5 + $0x900] sm:$0xff]  ;;  %v7298_v34 = vld [vmem:[%s11921_s5 + $0x910] sm:$0xff] }
 0x3ba   :  { %8287 = vmatpush1.bf16.msra.mxu0 %v8286_v10  ;;  %8303 = vmatpush1.bf16.msra.mxu1 %v8302_v13  ;;  %v4543_v48 = vld [vmem:[#allocation4 + $0x29] ss:$64 sm:$0x80]  ;;  %v4528_v25 = vor.u32 %v4527_v31, %v4526_v27  ;;  %v7300_v38 = vld [vmem:[%s11921_s5 + $0x920] sm:$0xff]  ;;  %v4512_v52 = vmax.f32 %v4495_v23, %v4511_v33  ;;  %v7307_v63 = vld [vmem:[%s11921_s5 + $0x958] sm:$0xff]  ;;  %v8322_v36 = vpack.c.bf16 %v7302_v56, %v7298_v34 }
 0x3bb   :  { %v4538_v30 = vor.u32 %v4537_v17, %v4536_v28  ;;  %8305 = vmatprep.subr.bf16.mxu0 %v8304_v15  ;;  %8321 = vmatprep.subr.bf16.mxu1 %v8320_v16  ;;  %v7305_v58 = vld [vmem:[%s11921_s5 + $0x948] sm:$0xff]  ;;  %v7311_v24 = vld [vmem:[%s11921_s5 + $0x978] sm:$0xff]  ;;  %v4730_v12 = vld [vmem:[#allocation4 + $0x22] ss:$64 sm:$0x1]  ;;  %v8306_v5 = vpack.c.bf16 %v7300_v38, %v7296_v26 }
 0x3bc   :  { %v7309_v37 = vld [vmem:[%s11921_s5 + $0x968] sm:$0xff]  ;;  %v7304_v0 = vld [vmem:[%s11921_s5 + $0x940] sm:$0xff]  ;;  %v7306_v35 = vld [vmem:[%s11921_s5 + $0x950] sm:$0xff]  ;;  %v8324_v44 = vpack.c.bf16 %v7311_v24, %v7307_v63 }
 0x3bd   :  { %v4540_v11 = vor.u32 %v4539_v43, %v4538_v30  ;;  %v7308_v1 = vld [vmem:[%s11921_s5 + $0x960] sm:$0xff]  ;;  %v7310_v6 = vld [vmem:[%s11921_s5 + $0x970] sm:$0xff]  ;;  %v7313_v40 = vld [vmem:[%s11921_s5 + $0x988] sm:$0xff]  ;;  %v8308_v9 = vpack.c.bf16 %v7309_v37, %v7305_v58 }
 0x3be   :  { %v4731_v3 = vld [vmem:[#allocation4 + $0x22] ss:$64 sm:$0x2]  ;;  %v7317_v45 = vld [vmem:[%s11921_s5 + $0x9a8] sm:$0xff]  ;;  %v7315_v41 = vld [vmem:[%s11921_s5 + $0x998] sm:$0xff]  ;;  %v8310_v57 = vpack.c.bf16 %v7308_v1, %v7304_v0  ;;  %v8326_v49 = vpack.c.bf16 %v7310_v6, %v7306_v35 }
 0x3bf   :  { %v4542_v29 = vor.u32 %v4541_v32, %v4540_v11  ;;  %v4733_v4 = vld [vmem:[#allocation4 + $0x22] ss:$64 sm:$0x4]  ;;  %v4732_v42 = vor.u32 %v4731_v3, %v4730_v12  ;;  %v7319_v46 = vld [vmem:[%s11921_s5 + $0x9b8] sm:$0xff]  ;;  %v7314_v60 = vld [vmem:[%s11921_s5 + $0x990] sm:$0xff]  ;;  %v8312_v62 = vpack.c.bf16 %v7317_v45, %v7313_v40 }
 0x3c0   :  { %v11049_v47 = vld [vmem:[%s11921_s5 + $0x980] sm:$0xff]  ;;  %v7318_v7 = vld [vmem:[%s11921_s5 + $0x9b0] sm:$0xff]  ;;  %v7321_v13 = vld [vmem:[%s11921_s5 + $0x9c8] sm:$0xff]  ;;  %v8328_v17 = vpack.c.bf16 %v7319_v46, %v7315_v41 }
 0x3c1   :  { %v4544_v53 = vor.u32 %v4543_v48, %v4542_v29  ;;  %v7316_v50 = vld [vmem:[%s11921_s5 + $0x9a0] sm:$0xff]  ;;  %v4734_v51 = vor.u32 %v4733_v4, %v4732_v42  ;;  %v7325_v61 = vld [vmem:[%s11921_s5 + $0x9e8] sm:$0xff]  ;;  %v7323_v14 = vld [vmem:[%s11921_s5 + $0x9d8] sm:$0xff]  ;;  %v8330_v48 = vpack.c.bf16 %v7318_v7, %v7314_v60 }
 0x3c2   :  { %v4735_v54 = vld [vmem:[#allocation4 + $0x22] ss:$64 sm:$0x8]  ;;  %v4746_v55 = vld [vmem:[#allocation4 + $0x23] ss:$64 sm:$0x1]  ;;  %v8314_v32 = vpack.c.bf16 %v7316_v50, %v11049_v47 }
 0x3c3   :  { %v4545_v59 = vmax.f32 %v4528_v25, %v4544_v53  ;;  %v4747_v8 = vld [vmem:[#allocation4 + $0x23] ss:$64 sm:$0x2]  ;;  %v7327_v15 = vld [vmem:[%s11921_s5 + $0x9f8] sm:$0xff]  ;;  %v4736_v18 = vor.u32 %v4735_v54, %v4734_v51  ;;  %v7322_v19 = vld [vmem:[%s11921_s5 + $0x9d0] sm:$0xff] }
 0x3c4   :  { %v4749_v10 = vld [vmem:[#allocation4 + $0x23] ss:$64 sm:$0x4]  ;;  %v4748_v16 = vor.u32 %v4747_v8, %v4746_v55  ;;  %v4737_v20 = vld [vmem:[#allocation4 + $0x22] ss:$64 sm:$0x10]  ;;  %v8332_v53 = vpack.c.bf16 %v7327_v15, %v7323_v14 }
 0x3c5   :  { %v4546_v39 = vmax.f32 %v4512_v52, %v4545_v59  ;;  %v4751_v21 = vld [vmem:[#allocation4 + $0x23] ss:$64 sm:$0x8]  ;;  %v7326_v43 = vld [vmem:[%s11921_s5 + $0x9f0] sm:$0xff]  ;;  %v7331_v23 = vld [vmem:[%s11921_s5 + $0xa08] sm:$0xff]  ;;  %v8316_v52 = vpack.c.bf16 %v7325_v61, %v7321_v13  ;;  %v4738_v56 = vor.u32 %v4737_v20, %v4736_v18 }
 0x3c6   :  { %v7320_v22 = vld [vmem:[%s11921_s5 + $0x9c0] sm:$0xff]  ;;  %v4750_v27 = vor.u32 %v4749_v10, %v4748_v16  ;;  %v4763_v31 = vld [vmem:[#allocation4 + $0x2a] ss:$64 sm:$0x1]  ;;  %v7333_v29 = vld [vmem:[%s11921_s5 + $0xa18] sm:$0xff]  ;;  %v8334_v1 = vpack.c.bf16 %v7326_v43, %v7322_v19 }
 0x3c7   :  { %7294 = vmatmul.mubr.msk.f32.vlgmr.msra.gmra.mrb[0].mxu0 %vm2695_vm8, %v4546_v39  ;;  %7295 = vmatmul.mubr.msk.f32.vlgmr.msra.gmra.mrb[0].mxu1 %vm2695_vm8, %v4546_v39  ;;  %v7324_v28 = vld [vmem:[%s11921_s5 + $0x9e0] sm:$0xff]  ;;  %v4764_v33 = vld [vmem:[#allocation4 + $0x2a] ss:$64 sm:$0x2]  ;;  %v7337_v26 = vld [vmem:[%s11921_s5 + $0xa38] sm:$0xff] }
 0x3c8   :  { %8307 = vmatpush1.bf16.msra.mxu0 %v8306_v5  ;;  %8323 = vmatpush1.bf16.msra.mxu1 %v8322_v36  ;;  %v4753_v30 = vld [vmem:[#allocation4 + $0x23] ss:$64 sm:$0x10]  ;;  %v4766_v11 = vld [vmem:[#allocation4 + $0x2a] ss:$64 sm:$0x4]  ;;  %v4752_v38 = vor.u32 %v4751_v21, %v4750_v27  ;;  %v4765_v34 = vor.u32 %v4764_v33, %v4763_v31  ;;  %v8318_v0 = vpack.c.bf16 %v7324_v28, %v7320_v22 }
 0x3c9   :  { %8309 = vmatprep.subr.bf16.mxu0 %v8308_v9  ;;  %8325 = vmatprep.subr.bf16.mxu1 %v8324_v44  ;;  %v7335_v25 = vld [vmem:[%s11921_s5 + $0xa28] sm:$0xff]  ;;  %v4739_v58 = vld [vmem:[#allocation4 + $0x22] ss:$64 sm:$0x20]  ;;  %v8352_v36 = vpack.c.bf16 %v7337_v26, %v7333_v29  ;;  %v7332_v28 = vld [vmem:[%s11921_s5 + $0xa10] sm:$0xff] }
 0x3ca   :  { %4896 = vmatprep.mubr.f32.mxu0 %v8682_v2  ;;  %4967 = vmatprep.mubr.f32.mxu1 %v8682_v2  ;;  %v4768_v37 = vld [vmem:[#allocation4 + $0x2a] ss:$64 sm:$0x8]  ;;  %v4754_v63 = vor.u32 %v4753_v30, %v4752_v38  ;;  %v4755_v24 = vld [vmem:[#allocation4 + $0x23] ss:$64 sm:$0x20]  ;;  %v4767_v12 = vor.u32 %v4766_v11, %v4765_v34  ;;  %v8336_v5 = vpack.c.bf16 %v7335_v25, %v7331_v23 }
 0x3cb   :  { %v4779_v59 = vld [vmem:[#allocation4 + $0x2b] ss:$64 sm:$0x1]  ;;  %v4770_v3 = vld [vmem:[#allocation4 + $0x2a] ss:$64 sm:$0x10]  ;;  %v4740_v40 = vor.u32 %v4739_v58, %v4738_v56 }
 0x3cc   :  { %8311 = vmatpush1.bf16.msra.mxu0 %v8310_v57  ;;  %8327 = vmatpush1.bf16.msra.mxu1 %v8326_v49  ;;  %v4780_v4 = vld [vmem:[#allocation4 + $0x2b] ss:$64 sm:$0x2]  ;;  %v4769_v35 = vor.u32 %v4768_v37, %v4767_v12  ;;  %v4741_v42 = vld [vmem:[#allocation4 + $0x22] ss:$64 sm:$0x40]  ;;  %v4756_v39 = vor.u32 %v4755_v24, %v4754_v63 }
 0x3cd   :  { %8313 = vmatprep.subr.bf16.mxu0 %v8312_v62  ;;  %8329 = vmatprep.subr.bf16.mxu1 %v8328_v17  ;;  %v4782_v6 = vld [vmem:[#allocation4 + $0x2b] ss:$64 sm:$0x4]  ;;  %v4772_v9 = vld [vmem:[#allocation4 + $0x2a] ss:$64 sm:$0x20]  ;;  %v4781_v44 = vor.u32 %v4780_v4, %v4779_v59  ;;  %v4742_v55 = vor.u32 %v4741_v42, %v4740_v40 }
 0x3ce   :  { %v4757_v45 = vld [vmem:[#allocation4 + $0x23] ss:$64 sm:$0x40]  ;;  %v4771_v41 = vor.u32 %v4770_v3, %v4769_v35  ;;  %v4784_v46 = vld [vmem:[#allocation4 + $0x2b] ss:$64 sm:$0x8] }
 0x3cf   :  { %v4783_v47 = vor.u32 %v4782_v6, %v4781_v44  ;;  %v4774_v51 = vld [vmem:[#allocation4 + $0x2a] ss:$64 sm:$0x40]  ;;  %v4786_v54 = vld [vmem:[#allocation4 + $0x2b] ss:$64 sm:$0x10]  ;;  %v4758_v7 = vor.u32 %v4757_v45, %v4756_v39 }
 0x3d0   :  { %8315 = vmatpush1.bf16.msra.mxu0 %v8314_v32  ;;  %8331 = vmatpush1.bf16.msra.mxu1 %v8330_v48  ;;  %v4773_v50 = vor.u32 %v4772_v9, %v4771_v41  ;;  %v4743_v60 = vld [vmem:[#allocation4 + $0x22] ss:$64 sm:$0x80]  ;;  %v4759_v10 = vld [vmem:[#allocation4 + $0x23] ss:$64 sm:$0x80] }
 0x3d1   :  { %8317 = vmatprep.subr.bf16.mxu0 %v8316_v52  ;;  %8333 = vmatprep.subr.bf16.mxu1 %v8332_v53  ;;  %v4785_v8 = vor.u32 %v4784_v46, %v4783_v47  ;;  %v4788_v57 = vld [vmem:[#allocation4 + $0x2b] ss:$64 sm:$0x20]  ;;  %v4776_v61 = vld [vmem:[#allocation4 + $0x2a] ss:$64 sm:$0x80]  ;;  %v4744_v15 = vor.u32 %v4743_v60, %v4742_v55  ;;  %v4760_v16 = vor.u32 %v4759_v10, %v4758_v7 }
 0x3d2   :  { %v4775_v49 = vor.u32 %v4774_v51, %v4773_v50  ;;  %v4790_v14 = vld [vmem:[#allocation4 + $0x2b] ss:$64 sm:$0x40]  ;;  %v7330_v21 = vld [vmem:[%s11921_s5 + $0xa00] sm:$0xff]  ;;  %v7336_v19 = vld [vmem:[%s11921_s5 + $0xa30] sm:$0xff] }
 0x3d3   :  { %v4787_v13 = vor.u32 %v4786_v54, %v4785_v8  ;;  %v4792_v17 = vld [vmem:[#allocation4 + $0x2b] ss:$64 sm:$0x80]  ;;  %v7334_v22 = vld [vmem:[%s11921_s5 + $0xa20] sm:$0xff]  ;;  %v4761_v30 = vmax.f32 %v4744_v15, %v4760_v16  ;;  %v7341_v33 = vld [vmem:[%s11921_s5 + $0xa58] sm:$0xff]  ;;  %v8354_v58 = vpack.c.bf16 %v7336_v19, %v7332_v28 }
 0x3d4   :  { %8319 = vmatpush1.bf16.msra.mxu0 %v8318_v0  ;;  %8335 = vmatpush1.bf16.msra.mxu1 %v8334_v1  ;;  %v4777_v18 = vor.u32 %v4776_v61, %v4775_v49  ;;  %v7339_v43 = vld [vmem:[%s11921_s5 + $0xa48] sm:$0xff]  ;;  %v4979_v32 = vld [vmem:[#allocation4 + $0x24] ss:$64 sm:$0x1]  ;;  %v7345_v11 = vld [vmem:[%s11921_s5 + $0xa78] sm:$0xff]  ;;  %v8338_v56 = vpack.c.bf16 %v7334_v22, %v7330_v21 }
 0x3d5   :  { %8337 = vmatprep.subr.bf16.mxu0 %v8336_v5  ;;  %8353 = vmatprep.subr.bf16.mxu1 %v8352_v36  ;;  %v4789_v62 = vor.u32 %v4788_v57, %v4787_v13  ;;  %v7343_v27 = vld [vmem:[%s11921_s5 + $0xa68] sm:$0xff]  ;;  %v4980_v23 = vld [vmem:[#allocation4 + $0x24] ss:$64 sm:$0x2]  ;;  %v7340_v34 = vld [vmem:[%s11921_s5 + $0xa50] sm:$0xff]  ;;  %v8356_v3 = vpack.c.bf16 %v7345_v11, %v7341_v33 }
 0x3d6   :  { %v4981_v48 = vor.u32 %v4980_v23, %v4979_v32  ;;  %v4982_v25 = vld [vmem:[#allocation4 + $0x24] ss:$64 sm:$0x4]  ;;  %v7344_v52 = vld [vmem:[%s11921_s5 + $0xa70] sm:$0xff]  ;;  %v7347_v37 = vld [vmem:[%s11921_s5 + $0xa88] sm:$0xff]  ;;  %v8340_v1 = vpack.c.bf16 %v7343_v27, %v7339_v43 }
 0x3d7   :  { %v4791_v20 = vor.u32 %v4790_v14, %v4789_v62  ;;  %v7338_v26 = vld [vmem:[%s11921_s5 + $0xa40] sm:$0xff]  ;;  %v7351_v63 = vld [vmem:[%s11921_s5 + $0xaa8] sm:$0xff]  ;;  %v7349_v24 = vld [vmem:[%s11921_s5 + $0xa98] sm:$0xff]  ;;  %v8358_v46 = vpack.c.bf16 %v7344_v52, %v7340_v34 }
 0x3d8   :  { %v7342_v38 = vld [vmem:[%s11921_s5 + $0xa60] sm:$0xff]  ;;  %v7353_v12 = vld [vmem:[%s11921_s5 + $0xab8] sm:$0xff]  ;;  %v4983_v59 = vor.u32 %v4982_v25, %v4981_v48  ;;  %v7348_v39 = vld [vmem:[%s11921_s5 + $0xa90] sm:$0xff]  ;;  %v8344_v7 = vpack.c.bf16 %v7351_v63, %v7347_v37 }
 0x3d9   :  { %v4793_v31 = vor.u32 %v4792_v17, %v4791_v20  ;;  %v4984_v53 = vld [vmem:[#allocation4 + $0x24] ss:$64 sm:$0x8]  ;;  %v4995_v4 = vld [vmem:[#allocation4 + $0x25] ss:$64 sm:$0x1]  ;;  %v8342_v41 = vpack.c.bf16 %v7342_v38, %v7338_v26  ;;  %v8360_v8 = vpack.c.bf16 %v7353_v12, %v7349_v24 }
 0x3da   :  { %v4996_v5 = vld [vmem:[#allocation4 + $0x25] ss:$64 sm:$0x2]  ;;  %v4985_v6 = vor.u32 %v4984_v53, %v4983_v59  ;;  %v7352_v9 = vld [vmem:[%s11921_s5 + $0xab0] sm:$0xff]  ;;  %v7355_v47 = vld [vmem:[%s11921_s5 + $0xac8] sm:$0xff] }
 0x3db   :  { %v4794_v29 = vmax.f32 %v4777_v18, %v4793_v31  ;;  %v11152_v36 = vld [vmem:[%s11921_s5 + $0xa80] sm:$0xff]  ;;  %v4997_v40 = vor.u32 %v4996_v5, %v4995_v4  ;;  %v7359_v50 = vld [vmem:[%s11921_s5 + $0xae8] sm:$0xff]  ;;  %v7357_v51 = vld [vmem:[%s11921_s5 + $0xad8] sm:$0xff]  ;;  %v8362_v28 = vpack.c.bf16 %v7352_v9, %v7348_v39 }
 0x3dc   :  { %v11157_v35 = vld [vmem:[%s11921_s5 + $0xaa0] sm:$0xff]  ;;  %v7361_v54 = vld [vmem:[%s11921_s5 + $0xaf8] sm:$0xff]  ;;  %v5012_v10 = vld [vmem:[#allocation4 + $0x2c] ss:$64 sm:$0x1]  ;;  %v8348_v33 = vpack.c.bf16 %v7359_v50, %v7355_v47 }
 0x3dd   :  { %v4795_v0 = vmax.f32 %v4761_v30, %v4794_v29  ;;  %v4998_v42 = vld [vmem:[#allocation4 + $0x25] ss:$64 sm:$0x4]  ;;  %v4986_v44 = vld [vmem:[#allocation4 + $0x24] ss:$64 sm:$0x10]  ;;  %v8346_v17 = vpack.c.bf16 %v11157_v35, %v11152_v36  ;;  %v8364_v11 = vpack.c.bf16 %v7361_v54, %v7357_v51 }
 0x3de   :  { %v5000_v45 = vld [vmem:[#allocation4 + $0x25] ss:$64 sm:$0x8]  ;;  %v4999_v55 = vor.u32 %v4998_v42, %v4997_v40  ;;  %v5013_v57 = vld [vmem:[#allocation4 + $0x2c] ss:$64 sm:$0x2]  ;;  %v4987_v61 = vor.u32 %v4986_v44, %v4985_v6 }
 0x3df   :  { %7328 = vmatmul.mubr.msk.f32.vlgmr.msra.gmra.mrb[0].mxu0 %vm2695_vm8, %v4795_v0  ;;  %7329 = vmatmul.mubr.msk.f32.vlgmr.msra.gmra.mrb[0].mxu1 %vm2695_vm8, %v4795_v0  ;;  %v5002_v60 = vld [vmem:[#allocation4 + $0x25] ss:$64 sm:$0x10]  ;;  %v4988_v14 = vld [vmem:[#allocation4 + $0x24] ss:$64 sm:$0x20]  ;;  %v5014_v16 = vor.u32 %v5013_v57, %v5012_v10 }
 0x3e0   :  { %8339 = vmatpush1.bf16.msra.mxu0 %v8338_v56  ;;  %8355 = vmatpush1.bf16.msra.mxu1 %v8354_v58  ;;  %v7354_v49 = vld [vmem:[%s11921_s5 + $0xac0] sm:$0xff]  ;;  %v5001_v15 = vor.u32 %v5000_v45, %v4999_v55  ;;  %v5015_v62 = vld [vmem:[#allocation4 + $0x2c] ss:$64 sm:$0x4]  ;;  %v7356_v18 = vld [vmem:[%s11921_s5 + $0xad0] sm:$0xff]  ;;  %v4989_v26 = vor.u32 %v4988_v14, %v4987_v61 }
 0x3e1   :  { %8341 = vmatprep.subr.bf16.mxu0 %v8340_v1  ;;  %8357 = vmatprep.subr.bf16.mxu1 %v8356_v3  ;;  %v7358_v13 = vld [vmem:[%s11921_s5 + $0xae0] sm:$0xff]  ;;  %v7360_v20 = vld [vmem:[%s11921_s5 + $0xaf0] sm:$0xff]  ;;  %v5017_v22 = vld [vmem:[#allocation4 + $0x2c] ss:$64 sm:$0x8]  ;;  %v5016_v32 = vor.u32 %v5015_v62, %v5014_v16 }
 0x3e2   :  { %5145 = vmatprep.mubr.f32.mxu0 %v8682_v2  ;;  %5216 = vmatprep.mubr.f32.mxu1 %v8682_v2  ;;  %v5004_v21 = vld [vmem:[#allocation4 + $0x25] ss:$64 sm:$0x20]  ;;  %v7365_v19 = vld [vmem:[%s11921_s5 + $0xb08] sm:$0xff]  ;;  %v7367_v27 = vld [vmem:[%s11921_s5 + $0xb18] sm:$0xff]  ;;  %v5003_v31 = vor.u32 %v5002_v60, %v5001_v15  ;;  %v8350_v58 = vpack.c.bf16 %v7358_v13, %v7354_v49  ;;  %v8366_v24 = vpack.c.bf16 %v7360_v20, %v7356_v18 }
 0x3e3   :  { %v7369_v43 = vld [vmem:[%s11921_s5 + $0xb28] sm:$0xff]  ;;  %v7371_v30 = vld [vmem:[%s11921_s5 + $0xb38] sm:$0xff]  ;;  %v4990_v48 = vld [vmem:[#allocation4 + $0x24] ss:$64 sm:$0x40]  ;;  %v5018_v52 = vor.u32 %v5017_v22, %v5016_v32 }
 0x3e4   :  { %8343 = vmatpush1.bf16.msra.mxu0 %v8342_v41  ;;  %8359 = vmatpush1.bf16.msra.mxu1 %v8358_v46  ;;  %v5019_v23 = vld [vmem:[#allocation4 + $0x2c] ss:$64 sm:$0x10]  ;;  %v5028_v25 = vld [vmem:[#allocation4 + $0x2d] ss:$64 sm:$0x1]  ;;  %v5005_v38 = vor.u32 %v5004_v21, %v5003_v31  ;;  %v8368_v0 = vpack.c.bf16 %v7369_v43, %v7365_v19  ;;  %v8384_v1 = vpack.c.bf16 %v7371_v30, %v7367_v27 }
 0x3e5   :  { %8345 = vmatprep.subr.bf16.mxu0 %v8344_v7  ;;  %8361 = vmatprep.subr.bf16.mxu1 %v8360_v8  ;;  %v5029_v29 = vld [vmem:[#allocation4 + $0x2d] ss:$64 sm:$0x2]  ;;  %v5006_v34 = vld [vmem:[#allocation4 + $0x25] ss:$64 sm:$0x40]  ;;  %v5020_v12 = vor.u32 %v5019_v23, %v5018_v52  ;;  %v4991_v5 = vor.u32 %v4990_v48, %v4989_v26 }
 0x3e6   :  { %v5030_v53 = vor.u32 %v5029_v29, %v5028_v25  ;;  %v5031_v56 = vld [vmem:[#allocation4 + $0x2d] ss:$64 sm:$0x4]  ;;  %v5021_v37 = vld [vmem:[#allocation4 + $0x2c] ss:$64 sm:$0x20]  ;;  %v5007_v35 = vor.u32 %v5006_v34, %v5005_v38 }
 0x3e7   :  { %v5033_v63 = vld [vmem:[#allocation4 + $0x2d] ss:$64 sm:$0x8]  ;;  %v5023_v3 = vld [vmem:[#allocation4 + $0x2c] ss:$64 sm:$0x40]  ;;  %v5022_v6 = vor.u32 %v5021_v37, %v5020_v12 }
 0x3e8   :  { %8347 = vmatpush1.bf16.msra.mxu0 %v8346_v17  ;;  %8363 = vmatpush1.bf16.msra.mxu1 %v8362_v28  ;;  %v5032_v59 = vor.u32 %v5031_v56, %v5030_v53  ;;  %v5035_v4 = vld [vmem:[#allocation4 + $0x2d] ss:$64 sm:$0x10]  ;;  %v4992_v36 = vld [vmem:[#allocation4 + $0x24] ss:$64 sm:$0x80] }
 0x3e9   :  { %8349 = vmatprep.subr.bf16.mxu0 %v8348_v33  ;;  %8365 = vmatprep.subr.bf16.mxu1 %v8364_v11  ;;  %v5008_v42 = vld [vmem:[#allocation4 + $0x25] ss:$64 sm:$0x80]  ;;  %v5037_v39 = vld [vmem:[#allocation4 + $0x2d] ss:$64 sm:$0x20]  ;;  %v5024_v9 = vor.u32 %v5023_v3, %v5022_v6  ;;  %v4993_v46 = vor.u32 %v4992_v36, %v4991_v5 }
 0x3ea   :  { %v5034_v40 = vor.u32 %v5033_v63, %v5032_v59  ;;  %v5025_v45 = vld [vmem:[#allocation4 + $0x2c] ss:$64 sm:$0x80]  ;;  %v5039_v41 = vld [vmem:[#allocation4 + $0x2d] ss:$64 sm:$0x40]  ;;  %v5009_v47 = vor.u32 %v5008_v42, %v5007_v35 }
 0x3eb   :  { %v5041_v51 = vld [vmem:[#allocation4 + $0x2d] ss:$64 sm:$0x80]  ;;  %v5026_v54 = vor.u32 %v5025_v45, %v5024_v9  ;;  %v7364_v60 = vld [vmem:[%s11921_s5 + $0xb00] sm:$0xff]  ;;  %v7366_v8 = vld [vmem:[%s11921_s5 + $0xb10] sm:$0xff] }
 0x3ec   :  { %8351 = vmatpush1.bf16.msra.mxu0 %v8350_v58  ;;  %8367 = vmatpush1.bf16.msra.mxu1 %v8366_v24  ;;  %v5036_v44 = vor.u32 %v5035_v4, %v5034_v40  ;;  %v7368_v7 = vld [vmem:[%s11921_s5 + $0xb20] sm:$0xff]  ;;  %v5010_v10 = vmax.f32 %v4993_v46, %v5009_v47  ;;  %v7370_v49 = vld [vmem:[%s11921_s5 + $0xb30] sm:$0xff]  ;;  %v7373_v13 = vld [vmem:[%s11921_s5 + $0xb48] sm:$0xff] }
 0x3ed   :  { %8369 = vmatprep.subr.bf16.mxu0 %v8368_v0  ;;  %8385 = vmatprep.subr.bf16.mxu1 %v8384_v1  ;;  %v7377_v61 = vld [vmem:[%s11921_s5 + $0xb68] sm:$0xff]  ;;  %v7375_v14 = vld [vmem:[%s11921_s5 + $0xb58] sm:$0xff]  ;;  %v5228_v16 = vld [vmem:[#allocation4 + $0x26] ss:$64 sm:$0x1]  ;;  %v8370_v22 = vpack.c.bf16 %v7368_v7, %v7364_v60  ;;  %v8386_v28 = vpack.c.bf16 %v7370_v49, %v7366_v8 }
 0x3ee   :  { %v5038_v50 = vor.u32 %v5037_v39, %v5036_v44  ;;  %v7379_v15 = vld [vmem:[%s11921_s5 + $0xb78] sm:$0xff]  ;;  %v7372_v17 = vld [vmem:[%s11921_s5 + $0xb40] sm:$0xff]  ;;  %v7374_v19 = vld [vmem:[%s11921_s5 + $0xb50] sm:$0xff]  ;;  %v8372_v32 = vpack.c.bf16 %v7377_v61, %v7373_v13 }
 0x3ef   :  { %v7376_v18 = vld [vmem:[%s11921_s5 + $0xb60] sm:$0xff]  ;;  %v7378_v43 = vld [vmem:[%s11921_s5 + $0xb70] sm:$0xff]  ;;  %v7381_v27 = vld [vmem:[%s11921_s5 + $0xb88] sm:$0xff]  ;;  %v8388_v23 = vpack.c.bf16 %v7379_v15, %v7375_v14 }
 0x3f0   :  { %v5040_v55 = vor.u32 %v5039_v41, %v5038_v50  ;;  %v5229_v20 = vld [vmem:[#allocation4 + $0x26] ss:$64 sm:$0x2]  ;;  %v7385_v33 = vld [vmem:[%s11921_s5 + $0xba8] sm:$0xff]  ;;  %v7383_v11 = vld [vmem:[%s11921_s5 + $0xb98] sm:$0xff]  ;;  %v8374_v37 = vpack.c.bf16 %v7376_v18, %v7372_v17  ;;  %v8390_v63 = vpack.c.bf16 %v7378_v43, %v7374_v19 }
 0x3f1   :  { %v5231_v21 = vld [vmem:[#allocation4 + $0x26] ss:$64 sm:$0x4]  ;;  %v5230_v30 = vor.u32 %v5229_v20, %v5228_v16  ;;  %v7387_v48 = vld [vmem:[%s11921_s5 + $0xbb8] sm:$0xff]  ;;  %v7382_v52 = vld [vmem:[%s11921_s5 + $0xb90] sm:$0xff]  ;;  %v8376_v3 = vpack.c.bf16 %v7385_v33, %v7381_v27 }
 0x3f2   :  { %v5042_v57 = vor.u32 %v5041_v51, %v5040_v55  ;;  %v11258_v25 = vld [vmem:[%s11921_s5 + $0xb80] sm:$0xff]  ;;  %v7386_v53 = vld [vmem:[%s11921_s5 + $0xbb0] sm:$0xff]  ;;  %v7389_v24 = vld [vmem:[%s11921_s5 + $0xbc8] sm:$0xff]  ;;  %v8392_v4 = vpack.c.bf16 %v7387_v48, %v7383_v11 }
 0x3f3   :  { %v7384_v29 = vld [vmem:[%s11921_s5 + $0xba0] sm:$0xff]  ;;  %v5232_v26 = vor.u32 %v5231_v21, %v5230_v30  ;;  %v7393_v12 = vld [vmem:[%s11921_s5 + $0xbe8] sm:$0xff]  ;;  %v7391_v59 = vld [vmem:[%s11921_s5 + $0xbd8] sm:$0xff]  ;;  %v8394_v51 = vpack.c.bf16 %v7386_v53, %v7382_v52 }
 0x3f4   :  { %v5043_v62 = vmax.f32 %v5026_v54, %v5042_v57  ;;  %v5233_v38 = vld [vmem:[#allocation4 + $0x26] ss:$64 sm:$0x8]  ;;  %v5244_v34 = vld [vmem:[#allocation4 + $0x27] ss:$64 sm:$0x1]  ;;  %v8378_v41 = vpack.c.bf16 %v7384_v29, %v11258_v25 }
 0x3f5   :  { %v5245_v56 = vld [vmem:[#allocation4 + $0x27] ss:$64 sm:$0x2]  ;;  %v7395_v0 = vld [vmem:[%s11921_s5 + $0xbf8] sm:$0xff]  ;;  %v5234_v5 = vor.u32 %v5233_v38, %v5232_v26  ;;  %v7390_v42 = vld [vmem:[%s11921_s5 + $0xbd0] sm:$0xff] }
 0x3f6   :  { %v5044_v31 = vmax.f32 %v5010_v10, %v5043_v62  ;;  %v5247_v58 = vld [vmem:[#allocation4 + $0x27] ss:$64 sm:$0x4]  ;;  %v5246_v1 = vor.u32 %v5245_v56, %v5244_v34  ;;  %v5235_v36 = vld [vmem:[#allocation4 + $0x26] ss:$64 sm:$0x10]  ;;  %v8380_v10 = vpack.c.bf16 %v7393_v12, %v7389_v24  ;;  %v8396_v57 = vpack.c.bf16 %v7395_v0, %v7391_v59 }
 0x3f7   :  { %v5249_v35 = vld [vmem:[#allocation4 + $0x27] ss:$64 sm:$0x8]  ;;  %v7394_v39 = vld [vmem:[%s11921_s5 + $0xbf0] sm:$0xff]  ;;  %v7399_v46 = vld [vmem:[%s11921_s5 + $0xc08] sm:$0xff]  ;;  %v5236_v49 = vor.u32 %v5235_v36, %v5234_v5 }
 0x3f8   :  { %7362 = vmatmul.mubr.msk.f32.vlgmr.msra.gmra.mrb[0].mxu0 %vm2695_vm8, %v5044_v31  ;;  %7363 = vmatmul.mubr.msk.f32.vlgmr.msra.gmra.mrb[0].mxu1 %vm2695_vm8, %v5044_v31  ;;  %v7388_v6 = vld [vmem:[%s11921_s5 + $0xbc0] sm:$0xff]  ;;  %v5248_v9 = vor.u32 %v5247_v58, %v5246_v1  ;;  %v5261_v45 = vld [vmem:[#allocation4 + $0x2e] ss:$64 sm:$0x1]  ;;  %v7401_v55 = vld [vmem:[%s11921_s5 + $0xc18] sm:$0xff]  ;;  %v8398_v18 = vpack.c.bf16 %v7394_v39, %v7390_v42 }
 0x3f9   :  { %8371 = vmatpush1.bf16.msra.mxu0 %v8370_v22  ;;  %8387 = vmatpush1.bf16.msra.mxu1 %v8386_v28  ;;  %v7392_v40 = vld [vmem:[%s11921_s5 + $0xbe0] sm:$0xff]  ;;  %v5262_v47 = vld [vmem:[#allocation4 + $0x2e] ss:$64 sm:$0x2]  ;;  %v7405_v60 = vld [vmem:[%s11921_s5 + $0xc38] sm:$0xff] }
 0x3fa   :  { %8373 = vmatprep.subr.bf16.mxu0 %v8372_v32  ;;  %8389 = vmatprep.subr.bf16.mxu1 %v8388_v23  ;;  %v5251_v44 = vld [vmem:[#allocation4 + $0x27] ss:$64 sm:$0x10]  ;;  %v5264_v50 = vld [vmem:[#allocation4 + $0x2e] ss:$64 sm:$0x4]  ;;  %v5250_v7 = vor.u32 %v5249_v35, %v5248_v9  ;;  %v5263_v8 = vor.u32 %v5262_v47, %v5261_v45  ;;  %v8382_v17 = vpack.c.bf16 %v7392_v40, %v7388_v6 }
 0x3fb   :  { %5394 = vmatprep.mubr.f32.mxu0 %v8682_v2  ;;  %5465 = vmatprep.mubr.f32.mxu1 %v8682_v2  ;;  %v7403_v54 = vld [vmem:[%s11921_s5 + $0xc28] sm:$0xff]  ;;  %v5237_v13 = vld [vmem:[#allocation4 + $0x26] ss:$64 sm:$0x20]  ;;  %v8416_v28 = vpack.c.bf16 %v7405_v60, %v7401_v55  ;;  %v7400_v40 = vld [vmem:[%s11921_s5 + $0xc10] sm:$0xff] }
 0x3fc   :  { %v5266_v61 = vld [vmem:[#allocation4 + $0x2e] ss:$64 sm:$0x8]  ;;  %v5252_v14 = vor.u32 %v5251_v44, %v5250_v7  ;;  %v5253_v15 = vld [vmem:[#allocation4 + $0x27] ss:$64 sm:$0x20]  ;;  %v5265_v16 = vor.u32 %v5264_v50, %v5263_v8  ;;  %v8400_v22 = vpack.c.bf16 %v7403_v54, %v7399_v46  ;;  %v5238_v27 = vor.u32 %v5237_v13, %v5236_v49 }
 0x3fd   :  { %8375 = vmatpush1.bf16.msra.mxu0 %v8374_v37  ;;  %8391 = vmatpush1.bf16.msra.mxu1 %v8390_v63  ;;  %v5277_v62 = vld [vmem:[#allocation4 + $0x2f] ss:$64 sm:$0x1]  ;;  %v5268_v20 = vld [vmem:[#allocation4 + $0x2e] ss:$64 sm:$0x10] }
 0x3fe   :  { %8377 = vmatprep.subr.bf16.mxu0 %v8376_v3  ;;  %8393 = vmatprep.subr.bf16.mxu1 %v8392_v4  ;;  %v5278_v21 = vld [vmem:[#allocation4 + $0x2f] ss:$64 sm:$0x2]  ;;  %v5267_v19 = vor.u32 %v5266_v61, %v5265_v16  ;;  %v5239_v30 = vld [vmem:[#allocation4 + $0x26] ss:$64 sm:$0x40]  ;;  %v5254_v31 = vor.u32 %v5253_v15, %v5252_v14 }
 0x3ff   :  { %v5280_v43 = vld [vmem:[#allocation4 + $0x2f] ss:$64 sm:$0x4]  ;;  %v5270_v32 = vld [vmem:[#allocation4 + $0x2e] ss:$64 sm:$0x20]  ;;  %v5279_v23 = vor.u32 %v5278_v21, %v5277_v62  ;;  %v5240_v34 = vor.u32 %v5239_v30, %v5238_v27 }
 0x400   :  { %v5255_v33 = vld [vmem:[#allocation4 + $0x27] ss:$64 sm:$0x40]  ;;  %v5269_v11 = vor.u32 %v5268_v20, %v5267_v19  ;;  %v5282_v48 = vld [vmem:[#allocation4 + $0x2f] ss:$64 sm:$0x8] }
 0x401   :  { %8379 = vmatpush1.bf16.msra.mxu0 %v8378_v41  ;;  %8395 = vmatpush1.bf16.msra.mxu1 %v8394_v51  ;;  %v5281_v25 = vor.u32 %v5280_v43, %v5279_v23  ;;  %v5272_v26 = vld [vmem:[#allocation4 + $0x2e] ss:$64 sm:$0x40]  ;;  %v5284_v38 = vld [vmem:[#allocation4 + $0x2f] ss:$64 sm:$0x10]  ;;  %v5256_v53 = vor.u32 %v5255_v33, %v5254_v31 }
 0x402   :  { %8381 = vmatprep.subr.bf16.mxu0 %v8380_v10  ;;  %8397 = vmatprep.subr.bf16.mxu1 %v8396_v57  ;;  %v5271_v29 = vor.u32 %v5270_v32, %v5269_v11  ;;  %v5241_v52 = vld [vmem:[#allocation4 + $0x26] ss:$64 sm:$0x80]  ;;  %v5257_v58 = vld [vmem:[#allocation4 + $0x27] ss:$64 sm:$0x80] }
 0x403   :  { %v5283_v56 = vor.u32 %v5282_v48, %v5281_v25  ;;  %v5286_v37 = vld [vmem:[#allocation4 + $0x2f] ss:$64 sm:$0x20]  ;;  %v5274_v12 = vld [vmem:[#allocation4 + $0x2e] ss:$64 sm:$0x80]  ;;  %v5242_v0 = vor.u32 %v5241_v52, %v5240_v34  ;;  %v5258_v1 = vor.u32 %v5257_v58, %v5256_v53 }
 0x404   :  { %v5273_v63 = vor.u32 %v5272_v26, %v5271_v29  ;;  %v5288_v59 = vld [vmem:[#allocation4 + $0x2f] ss:$64 sm:$0x40]  ;;  %v7398_v35 = vld [vmem:[%s11921_s5 + $0xc00] sm:$0xff]  ;;  %v7404_v42 = vld [vmem:[%s11921_s5 + $0xc30] sm:$0xff] }
 0x405   :  { %8383 = vmatpush1.bf16.msra.mxu0 %v8382_v17  ;;  %8399 = vmatpush1.bf16.msra.mxu1 %v8398_v18  ;;  %v5285_v24 = vor.u32 %v5284_v38, %v5283_v56  ;;  %v5290_v4 = vld [vmem:[#allocation4 + $0x2f] ss:$64 sm:$0x80]  ;;  %v7402_v6 = vld [vmem:[%s11921_s5 + $0xc20] sm:$0xff]  ;;  %v5259_v44 = vmax.f32 %v5242_v0, %v5258_v1  ;;  %v7409_v47 = vld [vmem:[%s11921_s5 + $0xc58] sm:$0xff]  ;;  %v8418_v13 = vpack.c.bf16 %v7404_v42, %v7400_v40 }
 0x406   :  { %8401 = vmatprep.subr.bf16.mxu0 %v8400_v22  ;;  %8417 = vmatprep.subr.bf16.mxu1 %v8416_v28  ;;  %v5275_v5 = vor.u32 %v5274_v12, %v5273_v63  ;;  %v7407_v39 = vld [vmem:[%s11921_s5 + $0xc48] sm:$0xff]  ;;  %v5477_v41 = vld [vmem:[#allocation4 + $0x30] ss:$64 sm:$0x1]  ;;  %v7413_v50 = vld [vmem:[%s11921_s5 + $0xc78] sm:$0xff]  ;;  %v8402_v49 = vpack.c.bf16 %v7402_v6, %v7398_v35 }
 0x407   :  { %v5287_v3 = vor.u32 %v5286_v37, %v5285_v24  ;;  %v7411_v9 = vld [vmem:[%s11921_s5 + $0xc68] sm:$0xff]  ;;  %v5478_v46 = vld [vmem:[#allocation4 + $0x30] ss:$64 sm:$0x2]  ;;  %v7406_v60 = vld [vmem:[%s11921_s5 + $0xc40] sm:$0xff]  ;;  %v8420_v20 = vpack.c.bf16 %v7413_v50, %v7409_v47 }
 0x408   :  { %v5479_v51 = vor.u32 %v5478_v46, %v5477_v41  ;;  %v5480_v54 = vld [vmem:[#allocation4 + $0x30] ss:$64 sm:$0x4]  ;;  %v7410_v7 = vld [vmem:[%s11921_s5 + $0xc60] sm:$0xff]  ;;  %v7415_v61 = vld [vmem:[%s11921_s5 + $0xc88] sm:$0xff]  ;;  %v8404_v18 = vpack.c.bf16 %v7411_v9, %v7407_v39 }
 0x409   :  { %v5289_v36 = vor.u32 %v5288_v59, %v5287_v3  ;;  %v7408_v8 = vld [vmem:[%s11921_s5 + $0xc50] sm:$0xff]  ;;  %v7419_v14 = vld [vmem:[%s11921_s5 + $0xca8] sm:$0xff]  ;;  %v7417_v15 = vld [vmem:[%s11921_s5 + $0xc98] sm:$0xff]  ;;  %v8406_v11 = vpack.c.bf16 %v7410_v7, %v7406_v60 }
 0x40a   :  { %v7412_v10 = vld [vmem:[%s11921_s5 + $0xc70] sm:$0xff]  ;;  %v7421_v16 = vld [vmem:[%s11921_s5 + $0xcb8] sm:$0xff]  ;;  %v5481_v62 = vor.u32 %v5480_v54, %v5479_v51  ;;  %v11361_v28 = vld [vmem:[%s11921_s5 + $0xc80] sm:$0xff]  ;;  %v8408_v53 = vpack.c.bf16 %v7419_v14, %v7415_v61 }
 0x40b   :  { %v5291_v45 = vor.u32 %v5290_v4, %v5289_v36  ;;  %v5482_v57 = vld [vmem:[#allocation4 + $0x30] ss:$64 sm:$0x8]  ;;  %v5493_v21 = vld [vmem:[#allocation4 + $0x31] ss:$64 sm:$0x1]  ;;  %v8422_v48 = vpack.c.bf16 %v7412_v10, %v7408_v8  ;;  %v8424_v56 = vpack.c.bf16 %v7421_v16, %v7417_v15 }
 0x40c   :  { %v5494_v22 = vld [vmem:[#allocation4 + $0x31] ss:$64 sm:$0x2]  ;;  %v11366_v19 = vld [vmem:[%s11921_s5 + $0xca0] sm:$0xff]  ;;  %v5483_v43 = vor.u32 %v5482_v57, %v5481_v62  ;;  %v7423_v25 = vld [vmem:[%s11921_s5 + $0xcc8] sm:$0xff] }
 0x40d   :  { %v5292_v55 = vmax.f32 %v5275_v5, %v5291_v45  ;;  %v5495_v27 = vor.u32 %v5494_v22, %v5493_v21  ;;  %v5496_v30 = vld [vmem:[#allocation4 + $0x31] ss:$64 sm:$0x4]  ;;  %v5484_v23 = vld [vmem:[#allocation4 + $0x30] ss:$64 sm:$0x10]  ;;  %v8410_v4 = vpack.c.bf16 %v11366_v19, %v11361_v28 }
 0x40e   :  { %v7416_v31 = vld [vmem:[%s11921_s5 + $0xc90] sm:$0xff]  ;;  %v7427_v29 = vld [vmem:[%s11921_s5 + $0xce8] sm:$0xff]  ;;  %v7425_v26 = vld [vmem:[%s11921_s5 + $0xcd8] sm:$0xff]  ;;  %v5485_v12 = vor.u32 %v5484_v23, %v5483_v43 }
 0x40f   :  { %v5293_v17 = vmax.f32 %v5259_v44, %v5292_v55  ;;  %v7420_v32 = vld [vmem:[%s11921_s5 + $0xcb0] sm:$0xff]  ;;  %v7429_v38 = vld [vmem:[%s11921_s5 + $0xcf8] sm:$0xff]  ;;  %v5497_v34 = vor.u32 %v5496_v30, %v5495_v27  ;;  %v7422_v63 = vld [vmem:[%s11921_s5 + $0xcc0] sm:$0xff]  ;;  %v8412_v47 = vpack.c.bf16 %v7427_v29, %v7423_v25 }
 0x410   :  { %v5498_v33 = vld [vmem:[#allocation4 + $0x31] ss:$64 sm:$0x8]  ;;  %v5510_v58 = vld [vmem:[#allocation4 + $0x38] ss:$64 sm:$0x1]  ;;  %v8426_v40 = vpack.c.bf16 %v7420_v32, %v7416_v31  ;;  %v8428_v50 = vpack.c.bf16 %v7429_v38, %v7425_v26 }
 0x411   :  { %7396 = vmatmul.mubr.msk.f32.vlgmr.msra.gmra.mrb[0].mxu0 %vm2695_vm8, %v5293_v17  ;;  %7397 = vmatmul.mubr.msk.f32.vlgmr.msra.gmra.mrb[0].mxu1 %vm2695_vm8, %v5293_v17  ;;  %v5500_v52 = vld [vmem:[#allocation4 + $0x31] ss:$64 sm:$0x10]  ;;  %v5511_v37 = vld [vmem:[#allocation4 + $0x38] ss:$64 sm:$0x2]  ;;  %v5499_v0 = vor.u32 %v5498_v33, %v5497_v34 }
 0x412   :  { %8403 = vmatpush1.bf16.msra.mxu0 %v8402_v49  ;;  %8419 = vmatpush1.bf16.msra.mxu1 %v8418_v13  ;;  %v7426_v24 = vld [vmem:[%s11921_s5 + $0xce0] sm:$0xff]  ;;  %v5486_v59 = vld [vmem:[#allocation4 + $0x30] ss:$64 sm:$0x20]  ;;  %v5512_v1 = vor.u32 %v5511_v37, %v5510_v58  ;;  %v7433_v42 = vld [vmem:[%s11921_s5 + $0xd08] sm:$0xff] }
 0x413   :  { %8405 = vmatprep.subr.bf16.mxu0 %v8404_v18  ;;  %8421 = vmatprep.subr.bf16.mxu1 %v8420_v20  ;;  %v5513_v3 = vld [vmem:[#allocation4 + $0x38] ss:$64 sm:$0x4]  ;;  %v7424_v5 = vld [vmem:[%s11921_s5 + $0xcd0] sm:$0xff]  ;;  %v7437_v39 = vld [vmem:[%s11921_s5 + $0xd28] sm:$0xff]  ;;  %v5501_v45 = vor.u32 %v5500_v52, %v5499_v0  ;;  %v5487_v60 = vor.u32 %v5486_v59, %v5485_v12  ;;  %v8414_v13 = vpack.c.bf16 %v7426_v24, %v7422_v63 }
 0x414   :  { %5643 = vmatprep.mubr.f32.mxu0 %v8682_v2  ;;  %5714 = vmatprep.mubr.f32.mxu1 %v8682_v2  ;;  %v7428_v36 = vld [vmem:[%s11921_s5 + $0xcf0] sm:$0xff]  ;;  %v5515_v6 = vld [vmem:[#allocation4 + $0x38] ss:$64 sm:$0x8]  ;;  %v5514_v41 = vor.u32 %v5513_v3, %v5512_v1  ;;  %v8432_v17 = vpack.c.bf16 %v7437_v39, %v7433_v42  ;;  %v7432_v52 = vld [vmem:[%s11921_s5 + $0xd00] sm:$0xff] }
 0x415   :  { %v5502_v35 = vld [vmem:[#allocation4 + $0x31] ss:$64 sm:$0x20]  ;;  %v7435_v9 = vld [vmem:[%s11921_s5 + $0xd18] sm:$0xff]  ;;  %v8430_v15 = vpack.c.bf16 %v7428_v36, %v7424_v5  ;;  %v7441_v24 = vld [vmem:[%s11921_s5 + $0xd48] sm:$0xff] }
 0x416   :  { %8407 = vmatpush1.bf16.msra.mxu0 %v8406_v11  ;;  %8423 = vmatpush1.bf16.msra.mxu1 %v8422_v48  ;;  %v7439_v44 = vld [vmem:[%s11921_s5 + $0xd38] sm:$0xff]  ;;  %v5488_v51 = vld [vmem:[#allocation4 + $0x30] ss:$64 sm:$0x40]  ;;  %v5503_v7 = vor.u32 %v5502_v35, %v5501_v45  ;;  %v5516_v10 = vor.u32 %v5515_v6, %v5514_v41  ;;  %v7445_v12 = vld [vmem:[%s11921_s5 + $0xd68] sm:$0xff] }
 0x417   :  { %v5517_v46 = vld [vmem:[#allocation4 + $0x38] ss:$64 sm:$0x10]  ;;  %8409 = vmatprep.subr.bf16.mxu0 %v8408_v53  ;;  %8425 = vmatprep.subr.bf16.mxu1 %v8424_v56  ;;  %v5526_v54 = vld [vmem:[#allocation4 + $0x39] ss:$64 sm:$0x1]  ;;  %v8448_v18 = vpack.c.bf16 %v7439_v44, %v7435_v9  ;;  %v5489_v22 = vor.u32 %v5488_v51, %v5487_v60  ;;  %v8436_v41 = vpack.c.bf16 %v7445_v12, %v7441_v24 }
 0x418   :  { %v5527_v55 = vld [vmem:[#allocation4 + $0x39] ss:$64 sm:$0x2]  ;;  %v5504_v8 = vld [vmem:[#allocation4 + $0x31] ss:$64 sm:$0x40]  ;;  %v5518_v16 = vor.u32 %v5517_v46, %v5516_v10 }
 0x419   :  { %v5528_v57 = vor.u32 %v5527_v55, %v5526_v54  ;;  %v5529_v49 = vld [vmem:[#allocation4 + $0x39] ss:$64 sm:$0x4]  ;;  %v5519_v61 = vld [vmem:[#allocation4 + $0x38] ss:$64 sm:$0x20]  ;;  %v5505_v19 = vor.u32 %v5504_v8, %v5503_v7 }
 0x41a   :  { %v5531_v14 = vld [vmem:[#allocation4 + $0x39] ss:$64 sm:$0x8]  ;;  %8411 = vmatpush1.bf16.msra.mxu0 %v8410_v4  ;;  %8427 = vmatpush1.bf16.msra.mxu1 %v8426_v40  ;;  %v5521_v20 = vld [vmem:[#allocation4 + $0x38] ss:$64 sm:$0x40]  ;;  %v5520_v43 = vor.u32 %v5519_v61, %v5518_v16 }
 0x41b   :  { %v5530_v62 = vor.u32 %v5529_v49, %v5528_v57  ;;  %8413 = vmatprep.subr.bf16.mxu0 %v8412_v47  ;;  %8429 = vmatprep.subr.bf16.mxu1 %v8428_v50  ;;  %v5533_v21 = vld [vmem:[#allocation4 + $0x39] ss:$64 sm:$0x10]  ;;  %v5490_v28 = vld [vmem:[#allocation4 + $0x30] ss:$64 sm:$0x80] }
 0x41c   :  { %v5506_v30 = vld [vmem:[#allocation4 + $0x31] ss:$64 sm:$0x80]  ;;  %v5535_v31 = vld [vmem:[#allocation4 + $0x39] ss:$64 sm:$0x20]  ;;  %v5522_v32 = vor.u32 %v5521_v20, %v5520_v43  ;;  %v5491_v48 = vor.u32 %v5490_v28, %v5489_v22 }
 0x41d   :  { %v5532_v27 = vor.u32 %v5531_v14, %v5530_v62  ;;  %v5523_v33 = vld [vmem:[#allocation4 + $0x38] ss:$64 sm:$0x80]  ;;  %v5537_v11 = vld [vmem:[#allocation4 + $0x39] ss:$64 sm:$0x40]  ;;  %v5507_v25 = vor.u32 %v5506_v30, %v5505_v19 }
 0x41e   :  { %8415 = vmatpush1.bf16.msra.mxu0 %v8414_v13  ;;  %8431 = vmatpush1.bf16.msra.mxu1 %v8430_v15  ;;  %v5539_v26 = vld [vmem:[#allocation4 + $0x39] ss:$64 sm:$0x80]  ;;  %v5524_v38 = vor.u32 %v5523_v33, %v5522_v32  ;;  %v7436_v53 = vld [vmem:[%s11921_s5 + $0xd20] sm:$0xff]  ;;  %v7434_v56 = vld [vmem:[%s11921_s5 + $0xd10] sm:$0xff] }
 0x41f   :  { %v5534_v23 = vor.u32 %v5533_v21, %v5532_v27  ;;  %8433 = vmatprep.subr.bf16.mxu0 %v8432_v17  ;;  %8449 = vmatprep.subr.bf16.mxu1 %v8448_v18  ;;  %v5508_v58 = vmax.f32 %v5491_v48, %v5507_v25  ;;  %v7438_v63 = vld [vmem:[%s11921_s5 + $0xd30] sm:$0xff]  ;;  %v7443_v59 = vld [vmem:[%s11921_s5 + $0xd58] sm:$0xff]  ;;  %v7440_v4 = vld [vmem:[%s11921_s5 + $0xd40] sm:$0xff]  ;;  %v8434_v6 = vpack.c.bf16 %v7436_v53, %v7432_v52 }
 0x420   :  { %v7447_v0 = vld [vmem:[%s11921_s5 + $0xd78] sm:$0xff]  ;;  %v5726_v1 = vld [vmem:[#allocation4 + $0x32] ss:$64 sm:$0x1]  ;;  %v7444_v5 = vld [vmem:[%s11921_s5 + $0xd60] sm:$0xff]  ;;  %v8450_v40 = vpack.c.bf16 %v7438_v63, %v7434_v56 }
 0x421   :  { %v5536_v29 = vor.u32 %v5535_v31, %v5534_v23  ;;  %v5727_v36 = vld [vmem:[#allocation4 + $0x32] ss:$64 sm:$0x2]  ;;  %v7449_v9 = vld [vmem:[%s11921_s5 + $0xd88] sm:$0xff]  ;;  %v8452_v46 = vpack.c.bf16 %v7447_v0, %v7443_v59  ;;  %v7451_v50 = vld [vmem:[%s11921_s5 + $0xd98] sm:$0xff]  ;;  %v8438_v61 = vpack.c.bf16 %v7444_v5, %v7440_v4 }
 0x422   :  { %v5729_v35 = vld [vmem:[#allocation4 + $0x32] ss:$64 sm:$0x4]  ;;  %v5728_v44 = vor.u32 %v5727_v36, %v5726_v1  ;;  %v7453_v47 = vld [vmem:[%s11921_s5 + $0xda8] sm:$0xff]  ;;  %v7455_v51 = vld [vmem:[%s11921_s5 + $0xdb8] sm:$0xff] }
 0x423   :  { %v5538_v34 = vor.u32 %v5537_v11, %v5536_v29  ;;  %v7442_v42 = vld [vmem:[%s11921_s5 + $0xd50] sm:$0xff]  ;;  %v11467_v54 = vld [vmem:[%s11921_s5 + $0xd80] sm:$0xff]  ;;  %v7457_v15 = vld [vmem:[%s11921_s5 + $0xdc8] sm:$0xff]  ;;  %v8440_v20 = vpack.c.bf16 %v7453_v47, %v7449_v9  ;;  %v8456_v21 = vpack.c.bf16 %v7455_v51, %v7451_v50 }
 0x424   :  { %v7446_v39 = vld [vmem:[%s11921_s5 + $0xd70] sm:$0xff]  ;;  %v7452_v55 = vld [vmem:[%s11921_s5 + $0xda0] sm:$0xff]  ;;  %v5730_v60 = vor.u32 %v5729_v35, %v5728_v44  ;;  %v7461_v16 = vld [vmem:[%s11921_s5 + $0xde8] sm:$0xff] }
 0x425   :  { %v5540_v37 = vor.u32 %v5539_v26, %v5538_v34  ;;  %v5731_v7 = vld [vmem:[#allocation4 + $0x32] ss:$64 sm:$0x8]  ;;  %v5742_v8 = vld [vmem:[#allocation4 + $0x33] ss:$64 sm:$0x1]  ;;  %v8454_v14 = vpack.c.bf16 %v7446_v39, %v7442_v42  ;;  %v8442_v11 = vpack.c.bf16 %v7452_v55, %v11467_v54 }
 0x426   :  { %v7450_v10 = vld [vmem:[%s11921_s5 + $0xd90] sm:$0xff]  ;;  %v7459_v62 = vld [vmem:[%s11921_s5 + $0xdd8] sm:$0xff]  ;;  %v5732_v22 = vor.u32 %v5731_v7, %v5730_v60  ;;  %v7456_v43 = vld [vmem:[%s11921_s5 + $0xdc0] sm:$0xff] }
 0x427   :  { %v5541_v3 = vmax.f32 %v5524_v38, %v5540_v37  ;;  %v7454_v57 = vld [vmem:[%s11921_s5 + $0xdb0] sm:$0xff]  ;;  %v7463_v17 = vld [vmem:[%s11921_s5 + $0xdf8] sm:$0xff]  ;;  %v7460_v27 = vld [vmem:[%s11921_s5 + $0xde0] sm:$0xff] }
 0x428   :  { %v5743_v49 = vld [vmem:[#allocation4 + $0x33] ss:$64 sm:$0x2]  ;;  %v5733_v28 = vld [vmem:[#allocation4 + $0x32] ss:$64 sm:$0x10]  ;;  %v8458_v26 = vpack.c.bf16 %v7454_v57, %v7450_v10  ;;  %v8460_v37 = vpack.c.bf16 %v7463_v17, %v7459_v62  ;;  %v8446_v4 = vpack.c.bf16 %v7460_v27, %v7456_v43 }
 0x429   :  { %v5542_v45 = vmax.f32 %v5508_v58, %v5541_v3  ;;  %v5745_v13 = vld [vmem:[#allocation4 + $0x33] ss:$64 sm:$0x4]  ;;  %v5744_v18 = vor.u32 %v5743_v49, %v5742_v8  ;;  %v5759_v33 = vld [vmem:[#allocation4 + $0x3a] ss:$64 sm:$0x1]  ;;  %v8444_v58 = vpack.c.bf16 %v7461_v16, %v7457_v15  ;;  %v5734_v63 = vor.u32 %v5733_v28, %v5732_v22 }
 0x42a   :  { %v5747_v19 = vld [vmem:[#allocation4 + $0x33] ss:$64 sm:$0x8]  ;;  %v7467_v48 = vld [vmem:[%s11921_s5 + $0xe08] sm:$0xff]  ;;  %v7469_v34 = vld [vmem:[%s11921_s5 + $0xe18] sm:$0xff] }
 0x42b   :  { %7430 = vmatmul.mubr.msk.f32.vlgmr.msra.gmra.mrb[0].mxu0 %vm2695_vm8, %v5542_v45  ;;  %7431 = vmatmul.mubr.msk.f32.vlgmr.msra.gmra.mrb[0].mxu1 %vm2695_vm8, %v5542_v45  ;;  %v7458_v30 = vld [vmem:[%s11921_s5 + $0xdd0] sm:$0xff]  ;;  %v5746_v32 = vor.u32 %v5745_v13, %v5744_v18  ;;  %v5760_v25 = vld [vmem:[#allocation4 + $0x3a] ss:$64 sm:$0x2]  ;;  %v7471_v38 = vld [vmem:[%s11921_s5 + $0xe28] sm:$0xff] }
 0x42c   :  { %8435 = vmatpush1.bf16.msra.mxu0 %v8434_v6  ;;  %8451 = vmatpush1.bf16.msra.mxu1 %v8450_v40  ;;  %v7462_v31 = vld [vmem:[%s11921_s5 + $0xdf0] sm:$0xff]  ;;  %v5762_v29 = vld [vmem:[#allocation4 + $0x3a] ss:$64 sm:$0x4]  ;;  %v5761_v56 = vor.u32 %v5760_v25, %v5759_v33  ;;  %v8464_v6 = vpack.c.bf16 %v7471_v38, %v7467_v48  ;;  %v7470_v43 = vld [vmem:[%s11921_s5 + $0xe20] sm:$0xff] }
 0x42d   :  { %8437 = vmatprep.subr.bf16.mxu0 %v8436_v41  ;;  %8453 = vmatprep.subr.bf16.mxu1 %v8452_v46  ;;  %v5749_v23 = vld [vmem:[#allocation4 + $0x33] ss:$64 sm:$0x10]  ;;  %v7473_v52 = vld [vmem:[%s11921_s5 + $0xe38] sm:$0xff]  ;;  %v5748_v53 = vor.u32 %v5747_v19, %v5746_v32  ;;  %v8462_v5 = vpack.c.bf16 %v7462_v31, %v7458_v30  ;;  %v7466_v19 = vld [vmem:[%s11921_s5 + $0xe00] sm:$0xff] }
 0x42e   :  { %5892 = vmatprep.mubr.f32.mxu0 %v8682_v2  ;;  %5963 = vmatprep.mubr.f32.mxu1 %v8682_v2  ;;  %v5735_v24 = vld [vmem:[#allocation4 + $0x32] ss:$64 sm:$0x20]  ;;  %v5764_v12 = vld [vmem:[#allocation4 + $0x3a] ss:$64 sm:$0x8]  ;;  %v5763_v1 = vor.u32 %v5762_v29, %v5761_v56  ;;  %v8480_v40 = vpack.c.bf16 %v7473_v52, %v7469_v34 }
 0x42f   :  { %v5750_v59 = vor.u32 %v5749_v23, %v5748_v53  ;;  %v5751_v0 = vld [vmem:[#allocation4 + $0x33] ss:$64 sm:$0x20]  ;;  %v5775_v3 = vld [vmem:[#allocation4 + $0x3b] ss:$64 sm:$0x1]  ;;  %v5736_v9 = vor.u32 %v5735_v24, %v5734_v63  ;;  %v8466_v63 = vpack.c.bf16 %v7470_v43, %v7466_v19 }
 0x430   :  { %8439 = vmatpush1.bf16.msra.mxu0 %v8438_v61  ;;  %8455 = vmatpush1.bf16.msra.mxu1 %v8454_v14  ;;  %v5766_v36 = vld [vmem:[#allocation4 + $0x3a] ss:$64 sm:$0x10]  ;;  %v5776_v35 = vld [vmem:[#allocation4 + $0x3b] ss:$64 sm:$0x2]  ;;  %v5765_v42 = vor.u32 %v5764_v12, %v5763_v1 }
 0x431   :  { %8441 = vmatprep.subr.bf16.mxu0 %v8440_v20  ;;  %8457 = vmatprep.subr.bf16.mxu1 %v8456_v21  ;;  %v5778_v39 = vld [vmem:[#allocation4 + $0x3b] ss:$64 sm:$0x4]  ;;  %v5737_v44 = vld [vmem:[#allocation4 + $0x32] ss:$64 sm:$0x40]  ;;  %v5752_v45 = vor.u32 %v5751_v0, %v5750_v59  ;;  %v5777_v46 = vor.u32 %v5776_v35, %v5775_v3 }
 0x432   :  { %v5768_v41 = vld [vmem:[#allocation4 + $0x3a] ss:$64 sm:$0x20]  ;;  %v5753_v47 = vld [vmem:[#allocation4 + $0x33] ss:$64 sm:$0x40]  ;;  %v5767_v50 = vor.u32 %v5766_v36, %v5765_v42  ;;  %v5738_v8 = vor.u32 %v5737_v44, %v5736_v9 }
 0x433   :  { %v5780_v51 = vld [vmem:[#allocation4 + $0x3b] ss:$64 sm:$0x8]  ;;  %v5779_v54 = vor.u32 %v5778_v39, %v5777_v46  ;;  %v5770_v60 = vld [vmem:[#allocation4 + $0x3a] ss:$64 sm:$0x40]  ;;  %v5754_v57 = vor.u32 %v5753_v47, %v5752_v45 }
 0x434   :  { %8443 = vmatpush1.bf16.msra.mxu0 %v8442_v11  ;;  %8459 = vmatpush1.bf16.msra.mxu1 %v8458_v26  ;;  %v5769_v55 = vor.u32 %v5768_v41, %v5767_v50  ;;  %v5782_v7 = vld [vmem:[#allocation4 + $0x3b] ss:$64 sm:$0x10]  ;;  %v5739_v10 = vld [vmem:[#allocation4 + $0x32] ss:$64 sm:$0x80] }
 0x435   :  { %8445 = vmatprep.subr.bf16.mxu0 %v8444_v58  ;;  %8461 = vmatprep.subr.bf16.mxu1 %v8460_v37  ;;  %v5781_v49 = vor.u32 %v5780_v51, %v5779_v54  ;;  %v5755_v13 = vld [vmem:[#allocation4 + $0x33] ss:$64 sm:$0x80]  ;;  %v5784_v61 = vld [vmem:[#allocation4 + $0x3b] ss:$64 sm:$0x20]  ;;  %v5740_v17 = vor.u32 %v5739_v10, %v5738_v8 }
 0x436   :  { %v5771_v14 = vor.u32 %v5770_v60, %v5769_v55  ;;  %v5772_v16 = vld [vmem:[#allocation4 + $0x3a] ss:$64 sm:$0x80]  ;;  %v5786_v62 = vld [vmem:[#allocation4 + $0x3b] ss:$64 sm:$0x40]  ;;  %v5756_v18 = vor.u32 %v5755_v13, %v5754_v57 }
 0x437   :  { %v5783_v15 = vor.u32 %v5782_v7, %v5781_v49  ;;  %v5788_v21 = vld [vmem:[#allocation4 + $0x3b] ss:$64 sm:$0x80]  ;;  %v7468_v27 = vld [vmem:[%s11921_s5 + $0xe10] sm:$0xff]  ;;  %v7475_v31 = vld [vmem:[%s11921_s5 + $0xe48] sm:$0xff] }
 0x438   :  { %8447 = vmatpush1.bf16.msra.mxu0 %v8446_v4  ;;  %8463 = vmatpush1.bf16.msra.mxu1 %v8462_v5  ;;  %v5773_v22 = vor.u32 %v5772_v16, %v5771_v14  ;;  %v7472_v30 = vld [vmem:[%s11921_s5 + $0xe30] sm:$0xff]  ;;  %v7479_v32 = vld [vmem:[%s11921_s5 + $0xe68] sm:$0xff]  ;;  %v5757_v23 = vmax.f32 %v5740_v17, %v5756_v18  ;;  %v7477_v25 = vld [vmem:[%s11921_s5 + $0xe58] sm:$0xff] }
 0x439   :  { %8465 = vmatprep.subr.bf16.mxu0 %v8464_v6  ;;  %8481 = vmatprep.subr.bf16.mxu1 %v8480_v40  ;;  %v5785_v20 = vor.u32 %v5784_v61, %v5783_v15  ;;  %v5975_v11 = vld [vmem:[#allocation4 + $0x34] ss:$64 sm:$0x1]  ;;  %v7481_v29 = vld [vmem:[%s11921_s5 + $0xe78] sm:$0xff]  ;;  %v7474_v52 = vld [vmem:[%s11921_s5 + $0xe40] sm:$0xff]  ;;  %v8482_v24 = vpack.c.bf16 %v7472_v30, %v7468_v27  ;;  %v8468_v5 = vpack.c.bf16 %v7479_v32, %v7475_v31 }
 0x43a   :  { %v5976_v48 = vld [vmem:[#allocation4 + $0x34] ss:$64 sm:$0x2]  ;;  %v7478_v53 = vld [vmem:[%s11921_s5 + $0xe60] sm:$0xff]  ;;  %v7483_v12 = vld [vmem:[%s11921_s5 + $0xe88] sm:$0xff]  ;;  %v8484_v36 = vpack.c.bf16 %v7481_v29, %v7477_v25 }
 0x43b   :  { %v5787_v28 = vor.u32 %v5786_v62, %v5785_v20  ;;  %v5977_v26 = vor.u32 %v5976_v48, %v5975_v11  ;;  %v5978_v38 = vld [vmem:[#allocation4 + $0x34] ss:$64 sm:$0x4]  ;;  %v7487_v59 = vld [vmem:[%s11921_s5 + $0xea8] sm:$0xff]  ;;  %v7485_v0 = vld [vmem:[%s11921_s5 + $0xe98] sm:$0xff]  ;;  %v8470_v50 = vpack.c.bf16 %v7478_v53, %v7474_v52 }
 0x43c   :  { %v7476_v56 = vld [vmem:[%s11921_s5 + $0xe50] sm:$0xff]  ;;  %v7489_v1 = vld [vmem:[%s11921_s5 + $0xeb8] sm:$0xff]  ;;  %v11570_v40 = vld [vmem:[%s11921_s5 + $0xe80] sm:$0xff]  ;;  %v8472_v57 = vpack.c.bf16 %v7487_v59, %v7483_v12 }
 0x43d   :  { %v5789_v33 = vor.u32 %v5788_v21, %v5787_v28  ;;  %v7480_v58 = vld [vmem:[%s11921_s5 + $0xe70] sm:$0xff]  ;;  %v5979_v3 = vor.u32 %v5978_v38, %v5977_v26  ;;  %v11575_v42 = vld [vmem:[%s11921_s5 + $0xea0] sm:$0xff]  ;;  %v7491_v54 = vld [vmem:[%s11921_s5 + $0xec8] sm:$0xff]  ;;  %v8488_v49 = vpack.c.bf16 %v7489_v1, %v7485_v0 }
 0x43e   :  { %v5980_v37 = vld [vmem:[#allocation4 + $0x34] ss:$64 sm:$0x8]  ;;  %v5991_v35 = vld [vmem:[#allocation4 + $0x35] ss:$64 sm:$0x1]  ;;  %v8486_v51 = vpack.c.bf16 %v7480_v58, %v7476_v56  ;;  %v8474_v21 = vpack.c.bf16 %v11575_v42, %v11570_v40 }
 0x43f   :  { %v5790_v34 = vmax.f32 %v5773_v22, %v5789_v33  ;;  %v5992_v6 = vld [vmem:[#allocation4 + $0x35] ss:$64 sm:$0x2]  ;;  %v5981_v39 = vor.u32 %v5980_v37, %v5979_v3  ;;  %v5982_v46 = vld [vmem:[#allocation4 + $0x34] ss:$64 sm:$0x10] }
 0x440   :  { %v5993_v9 = vor.u32 %v5992_v6, %v5991_v35  ;;  %v5994_v44 = vld [vmem:[#allocation4 + $0x35] ss:$64 sm:$0x4]  ;;  %v7495_v55 = vld [vmem:[%s11921_s5 + $0xee8] sm:$0xff]  ;;  %v7493_v60 = vld [vmem:[%s11921_s5 + $0xed8] sm:$0xff] }
 0x441   :  { %v5791_v4 = vmax.f32 %v5757_v23, %v5790_v34  ;;  %v7484_v45 = vld [vmem:[%s11921_s5 + $0xe90] sm:$0xff]  ;;  %v7497_v7 = vld [vmem:[%s11921_s5 + $0xef8] sm:$0xff]  ;;  %v7490_v14 = vld [vmem:[%s11921_s5 + $0xec0] sm:$0xff]  ;;  %v5983_v16 = vor.u32 %v5982_v46, %v5981_v39  ;;  %v8476_v25 = vpack.c.bf16 %v7495_v55, %v7491_v54 }
 0x442   :  { %v7488_v41 = vld [vmem:[%s11921_s5 + $0xeb0] sm:$0xff]  ;;  %v5995_v8 = vor.u32 %v5994_v44, %v5993_v9  ;;  %v6008_v13 = vld [vmem:[#allocation4 + $0x3c] ss:$64 sm:$0x1]  ;;  %v7494_v15 = vld [vmem:[%s11921_s5 + $0xee0] sm:$0xff]  ;;  %v8492_v29 = vpack.c.bf16 %v7497_v7, %v7493_v60 }
 0x443   :  { %7464 = vmatmul.mubr.msk.f32.vlgmr.msra.gmra.mrb[0].mxu0 %vm2695_vm8, %v5791_v4  ;;  %7465 = vmatmul.mubr.msk.f32.vlgmr.msra.gmra.mrb[0].mxu1 %vm2695_vm8, %v5791_v4  ;;  %v5996_v47 = vld [vmem:[#allocation4 + $0x35] ss:$64 sm:$0x8]  ;;  %v6009_v61 = vld [vmem:[#allocation4 + $0x3c] ss:$64 sm:$0x2]  ;;  %v8490_v27 = vpack.c.bf16 %v7488_v41, %v7484_v45 }
 0x444   :  { %8467 = vmatpush1.bf16.msra.mxu0 %v8466_v63  ;;  %8483 = vmatpush1.bf16.msra.mxu1 %v8482_v24  ;;  %v5998_v10 = vld [vmem:[#allocation4 + $0x35] ss:$64 sm:$0x10]  ;;  %v5984_v62 = vld [vmem:[#allocation4 + $0x34] ss:$64 sm:$0x20]  ;;  %v5997_v17 = vor.u32 %v5996_v47, %v5995_v8  ;;  %v6010_v18 = vor.u32 %v6009_v61, %v6008_v13  ;;  %v8478_v24 = vpack.c.bf16 %v7494_v15, %v7490_v14 }
 0x445   :  { %8469 = vmatprep.subr.bf16.mxu0 %v8468_v5  ;;  %8485 = vmatprep.subr.bf16.mxu1 %v8484_v36  ;;  %v6011_v20 = vld [vmem:[#allocation4 + $0x3c] ss:$64 sm:$0x4]  ;;  %v7492_v22 = vld [vmem:[%s11921_s5 + $0xed0] sm:$0xff]  ;;  %v7501_v30 = vld [vmem:[%s11921_s5 + $0xf08] sm:$0xff]  ;;  %v5985_v52 = vor.u32 %v5984_v62, %v5983_v16 }
 0x446   :  { %6141 = vmatprep.mubr.f32.mxu0 %v8682_v2  ;;  %6212 = vmatprep.mubr.f32.mxu1 %v8682_v2  ;;  %v7496_v28 = vld [vmem:[%s11921_s5 + $0xef0] sm:$0xff]  ;;  %v6013_v43 = vld [vmem:[#allocation4 + $0x3c] ss:$64 sm:$0x8]  ;;  %v7505_v31 = vld [vmem:[%s11921_s5 + $0xf28] sm:$0xff]  ;;  %v5999_v33 = vor.u32 %v5998_v10, %v5997_v17  ;;  %v6012_v11 = vor.u32 %v6011_v20, %v6010_v18 }
 0x447   :  { %v6000_v19 = vld [vmem:[#allocation4 + $0x35] ss:$64 sm:$0x20]  ;;  %v7503_v32 = vld [vmem:[%s11921_s5 + $0xf18] sm:$0xff]  ;;  %v8494_v0 = vpack.c.bf16 %v7496_v28, %v7492_v22  ;;  %v8496_v4 = vpack.c.bf16 %v7505_v31, %v7501_v30  ;;  %v7500_v10 = vld [vmem:[%s11921_s5 + $0xf00] sm:$0xff] }
 0x448   :  { %8471 = vmatpush1.bf16.msra.mxu0 %v8470_v50  ;;  %8487 = vmatpush1.bf16.msra.mxu1 %v8486_v51  ;;  %v7507_v23 = vld [vmem:[%s11921_s5 + $0xf38] sm:$0xff]  ;;  %v5986_v26 = vld [vmem:[#allocation4 + $0x34] ss:$64 sm:$0x40]  ;;  %v6001_v53 = vor.u32 %v6000_v19, %v5999_v33  ;;  %v6014_v58 = vor.u32 %v6013_v43, %v6012_v11  ;;  %v7509_v61 = vld [vmem:[%s11921_s5 + $0xf48] sm:$0xff] }
 0x449   :  { %v6015_v48 = vld [vmem:[#allocation4 + $0x3c] ss:$64 sm:$0x10]  ;;  %8473 = vmatprep.subr.bf16.mxu0 %v8472_v57  ;;  %8489 = vmatprep.subr.bf16.mxu1 %v8488_v49  ;;  %v6024_v38 = vld [vmem:[#allocation4 + $0x3d] ss:$64 sm:$0x1]  ;;  %v8512_v5 = vpack.c.bf16 %v7507_v23, %v7503_v32  ;;  %v5987_v6 = vor.u32 %v5986_v26, %v5985_v52 }
 0x44a   :  { %v6025_v34 = vld [vmem:[#allocation4 + $0x3d] ss:$64 sm:$0x2]  ;;  %v6002_v56 = vld [vmem:[#allocation4 + $0x35] ss:$64 sm:$0x40]  ;;  %v6016_v1 = vor.u32 %v6015_v48, %v6014_v58 }
 0x44b   :  { %v6026_v37 = vor.u32 %v6025_v34, %v6024_v38  ;;  %v6027_v63 = vld [vmem:[#allocation4 + $0x3d] ss:$64 sm:$0x4]  ;;  %v6017_v12 = vld [vmem:[#allocation4 + $0x3c] ss:$64 sm:$0x20]  ;;  %v6003_v42 = vor.u32 %v6002_v56, %v6001_v53 }
 0x44c   :  { %v6029_v59 = vld [vmem:[#allocation4 + $0x3d] ss:$64 sm:$0x8]  ;;  %8475 = vmatpush1.bf16.msra.mxu0 %v8474_v21  ;;  %8491 = vmatpush1.bf16.msra.mxu1 %v8490_v27  ;;  %v6019_v36 = vld [vmem:[#allocation4 + $0x3c] ss:$64 sm:$0x40]  ;;  %v6018_v39 = vor.u32 %v6017_v12, %v6016_v1 }
 0x44d   :  { %v6028_v3 = vor.u32 %v6027_v63, %v6026_v37  ;;  %8477 = vmatprep.subr.bf16.mxu0 %v8476_v25  ;;  %8493 = vmatprep.subr.bf16.mxu1 %v8492_v29  ;;  %v6031_v35 = vld [vmem:[#allocation4 + $0x3d] ss:$64 sm:$0x10]  ;;  %v5988_v40 = vld [vmem:[#allocation4 + $0x34] ss:$64 sm:$0x80] }
 0x44e   :  { %v6004_v44 = vld [vmem:[#allocation4 + $0x35] ss:$64 sm:$0x80]  ;;  %v6033_v45 = vld [vmem:[#allocation4 + $0x3d] ss:$64 sm:$0x20]  ;;  %v6020_v41 = vor.u32 %v6019_v36, %v6018_v39  ;;  %v5989_v51 = vor.u32 %v5988_v40, %v5987_v6 }
 0x44f   :  { %v6030_v9 = vor.u32 %v6029_v59, %v6028_v3  ;;  %v6021_v47 = vld [vmem:[#allocation4 + $0x3c] ss:$64 sm:$0x80]  ;;  %v6035_v50 = vld [vmem:[#allocation4 + $0x3d] ss:$64 sm:$0x40]  ;;  %v6005_v54 = vor.u32 %v6004_v44, %v6003_v42 }
 0x450   :  { %8479 = vmatpush1.bf16.msra.mxu0 %v8478_v24  ;;  %8495 = vmatpush1.bf16.msra.mxu1 %v8494_v0  ;;  %v6037_v60 = vld [vmem:[#allocation4 + $0x3d] ss:$64 sm:$0x80]  ;;  %v6022_v7 = vor.u32 %v6021_v47, %v6020_v41  ;;  %v7504_v57 = vld [vmem:[%s11921_s5 + $0xf20] sm:$0xff]  ;;  %v7502_v49 = vld [vmem:[%s11921_s5 + $0xf10] sm:$0xff] }
 0x451   :  { %v6032_v46 = vor.u32 %v6031_v35, %v6030_v9  ;;  %8497 = vmatprep.subr.bf16.mxu0 %v8496_v4  ;;  %8513 = vmatprep.subr.bf16.mxu1 %v8512_v5  ;;  %v7506_v13 = vld [vmem:[%s11921_s5 + $0xf30] sm:$0xff]  ;;  %v7513_v14 = vld [vmem:[%s11921_s5 + $0xf68] sm:$0xff]  ;;  %v6006_v15 = vmax.f32 %v5989_v51, %v6005_v54  ;;  %v7511_v62 = vld [vmem:[%s11921_s5 + $0xf58] sm:$0xff]  ;;  %v8498_v31 = vpack.c.bf16 %v7504_v57, %v7500_v10 }
 0x452   :  { %v7515_v17 = vld [vmem:[%s11921_s5 + $0xf78] sm:$0xff]  ;;  %v6224_v18 = vld [vmem:[#allocation4 + $0x36] ss:$64 sm:$0x1]  ;;  %v7508_v28 = vld [vmem:[%s11921_s5 + $0xf40] sm:$0xff]  ;;  %v8514_v32 = vpack.c.bf16 %v7506_v13, %v7502_v49  ;;  %v8500_v25 = vpack.c.bf16 %v7513_v14, %v7509_v61 }
 0x453   :  { %v6034_v55 = vor.u32 %v6033_v45, %v6032_v46  ;;  %v6225_v20 = vld [vmem:[#allocation4 + $0x36] ss:$64 sm:$0x2]  ;;  %v7512_v19 = vld [vmem:[%s11921_s5 + $0xf60] sm:$0xff]  ;;  %v7517_v23 = vld [vmem:[%s11921_s5 + $0xf88] sm:$0xff]  ;;  %v8516_v29 = vpack.c.bf16 %v7515_v17, %v7511_v62 }
 0x454   :  { %v6227_v21 = vld [vmem:[#allocation4 + $0x36] ss:$64 sm:$0x4]  ;;  %v6226_v30 = vor.u32 %v6225_v20, %v6224_v18  ;;  %v7521_v33 = vld [vmem:[%s11921_s5 + $0xfa8] sm:$0xff]  ;;  %v7519_v26 = vld [vmem:[%s11921_s5 + $0xf98] sm:$0xff]  ;;  %v8502_v4 = vpack.c.bf16 %v7512_v19, %v7508_v28 }
 0x455   :  { %v6036_v8 = vor.u32 %v6035_v50, %v6034_v55  ;;  %v7510_v43 = vld [vmem:[%s11921_s5 + $0xf50] sm:$0xff]  ;;  %v7523_v38 = vld [vmem:[%s11921_s5 + $0xfb8] sm:$0xff]  ;;  %v7516_v58 = vld [vmem:[%s11921_s5 + $0xf80] sm:$0xff]  ;;  %v8504_v40 = vpack.c.bf16 %v7521_v33, %v7517_v23 }
 0x456   :  { %v7514_v27 = vld [vmem:[%s11921_s5 + $0xf70] sm:$0xff]  ;;  %v6228_v34 = vor.u32 %v6227_v21, %v6226_v30  ;;  %v7520_v37 = vld [vmem:[%s11921_s5 + $0xfa0] sm:$0xff]  ;;  %v7525_v12 = vld [vmem:[%s11921_s5 + $0xfc8] sm:$0xff]  ;;  %v8520_v42 = vpack.c.bf16 %v7523_v38, %v7519_v26 }
 0x457   :  { %v6038_v16 = vor.u32 %v6037_v60, %v6036_v8  ;;  %v6229_v11 = vld [vmem:[#allocation4 + $0x36] ss:$64 sm:$0x8]  ;;  %v6240_v52 = vld [vmem:[#allocation4 + $0x37] ss:$64 sm:$0x1]  ;;  %v8518_v5 = vpack.c.bf16 %v7514_v27, %v7510_v43 }
 0x458   :  { %v6241_v53 = vld [vmem:[#allocation4 + $0x37] ss:$64 sm:$0x2]  ;;  %v7529_v59 = vld [vmem:[%s11921_s5 + $0xfe8] sm:$0xff]  ;;  %v6230_v0 = vor.u32 %v6229_v11, %v6228_v34  ;;  %v7527_v36 = vld [vmem:[%s11921_s5 + $0xfd8] sm:$0xff] }
 0x459   :  { %v6039_v22 = vmax.f32 %v6022_v7, %v6038_v16  ;;  %v6243_v56 = vld [vmem:[#allocation4 + $0x37] ss:$64 sm:$0x4]  ;;  %v6231_v1 = vld [vmem:[#allocation4 + $0x36] ss:$64 sm:$0x10]  ;;  %v6242_v3 = vor.u32 %v6241_v53, %v6240_v52  ;;  %v8506_v7 = vpack.c.bf16 %v7520_v37, %v7516_v58  ;;  %v8508_v10 = vpack.c.bf16 %v7529_v59, %v7525_v12 }
 0x45a   :  { %v7518_v63 = vld [vmem:[%s11921_s5 + $0xf90] sm:$0xff]  ;;  %v7531_v35 = vld [vmem:[%s11921_s5 + $0xff8] sm:$0xff]  ;;  %v6232_v45 = vor.u32 %v6231_v1, %v6230_v0  ;;  %v7524_v47 = vld [vmem:[%s11921_s5 + $0xfc0] sm:$0xff] }
 0x45b   :  { %v6040_v48 = vmax.f32 %v6006_v15, %v6039_v22  ;;  %v7522_v24 = vld [vmem:[%s11921_s5 + $0xfb0] sm:$0xff]  ;;  %v6244_v39 = vor.u32 %v6243_v56, %v6242_v3  ;;  %v6257_v44 = vld [vmem:[#allocation4 + $0x3e] ss:$64 sm:$0x1]  ;;  %v7528_v50 = vld [vmem:[%s11921_s5 + $0xfe0] sm:$0xff]  ;;  %v8524_v13 = vpack.c.bf16 %v7531_v35, %v7527_v36 }
 0x45c   :  { %v6245_v6 = vld [vmem:[#allocation4 + $0x37] ss:$64 sm:$0x8]  ;;  %v6258_v41 = vld [vmem:[#allocation4 + $0x3e] ss:$64 sm:$0x2]  ;;  %v8522_v8 = vpack.c.bf16 %v7522_v24, %v7518_v63  ;;  %v8510_v27 = vpack.c.bf16 %v7528_v50, %v7524_v47 }
 0x45d   :  { %7498 = vmatmul.mubr.msk.f32.vlgmr.msra.gmra.mrb[0].mxu0 %vm2695_vm8, %v6040_v48  ;;  %7499 = vmatmul.mubr.msk.f32.vlgmr.msra.gmra.mrb[0].mxu1 %vm2695_vm8, %v6040_v48  ;;  %v6247_v9 = vld [vmem:[#allocation4 + $0x37] ss:$64 sm:$0x10]  ;;  %v6260_v46 = vld [vmem:[#allocation4 + $0x3e] ss:$64 sm:$0x4]  ;;  %v6246_v55 = vor.u32 %v6245_v6, %v6244_v39  ;;  %v6259_v60 = vor.u32 %v6258_v41, %v6257_v44 }
 0x45e   :  { %8499 = vmatpush1.bf16.msra.mxu0 %v8498_v31  ;;  %8515 = vmatpush1.bf16.msra.mxu1 %v8514_v32  ;;  %v7526_v51 = vld [vmem:[%s11921_s5 + $0xfd0] sm:$0xff]  ;;  %v6262_v49 = vld [vmem:[#allocation4 + $0x3e] ss:$64 sm:$0x8]  ;;  %v6518_v62 = vld [vmem:[%s11923_s7 + $0x80] sm:$0xff] }
 0x45f   :  { %8501 = vmatprep.subr.bf16.mxu0 %v8500_v25  ;;  %8517 = vmatprep.subr.bf16.mxu1 %v8516_v29  ;;  %v7530_v54 = vld [vmem:[%s11921_s5 + $0xff0] sm:$0xff]  ;;  %v6248_v61 = vor.u32 %v6247_v9, %v6246_v55  ;;  %v6261_v14 = vor.u32 %v6260_v46, %v6259_v60  ;;  %v6264_v15 = vld [vmem:[#allocation4 + $0x3e] ss:$64 sm:$0x10]  ;;  %v6519_v48 = vld [vmem:[%s11923_s7 + $0x88] sm:$0xff] }
 0x460   :  { %6390 = vmatprep.mubr.f32.mxu0 %v8682_v2  ;;  %6461 = vmatprep.mubr.f32.mxu1 %v8682_v2  ;;  %v6233_v2 = vld [vmem:[#allocation4 + $0x36] ss:$64 sm:$0x20]  ;;  %v6249_v57 = vld [vmem:[#allocation4 + $0x37] ss:$64 sm:$0x20]  ;;  %v8526_v30 = vpack.c.bf16 %v7530_v54, %v7526_v51  ;;  %v8528_v38 = vpack.c.bf16 %v6519_v48, %v6518_v62 }
 0x461   :  { %v6273_v16 = vld [vmem:[#allocation4 + $0x3f] ss:$64 sm:$0x1]  ;;  %v6234_v17 = vor.u32 %v6233_v2, %v6232_v45  ;;  %v6235_v21 = vld [vmem:[#allocation4 + $0x36] ss:$64 sm:$0x40]  ;;  %v6250_v22 = vor.u32 %v6249_v57, %v6248_v61  ;;  %v6263_v19 = vor.u32 %v6262_v49, %v6261_v14 }
 0x462   :  { %8503 = vmatpush1.bf16.msra.mxu0 %v8502_v4  ;;  %8519 = vmatpush1.bf16.msra.mxu1 %v8518_v5  ;;  %v6274_v18 = vld [vmem:[#allocation4 + $0x3f] ss:$64 sm:$0x2]  ;;  %v6251_v28 = vld [vmem:[#allocation4 + $0x37] ss:$64 sm:$0x40] }
 0x463   :  { %8505 = vmatprep.subr.bf16.mxu0 %v8504_v40  ;;  %8521 = vmatprep.subr.bf16.mxu1 %v8520_v42  ;;  %v6276_v20 = vld [vmem:[#allocation4 + $0x3f] ss:$64 sm:$0x4]  ;;  %v6275_v43 = vor.u32 %v6274_v18, %v6273_v16  ;;  %v6266_v31 = vld [vmem:[#allocation4 + $0x3e] ss:$64 sm:$0x20]  ;;  %v6265_v23 = vor.u32 %v6264_v15, %v6263_v19  ;;  %v6236_v29 = vor.u32 %v6235_v21, %v6234_v17 }
 0x464   :  { %v6278_v32 = vld [vmem:[#allocation4 + $0x3f] ss:$64 sm:$0x8]  ;;  %v6268_v33 = vld [vmem:[#allocation4 + $0x3e] ss:$64 sm:$0x40]  ;;  %v6252_v53 = vor.u32 %v6251_v28, %v6250_v22 }
 0x465   :  { %v6277_v11 = vor.u32 %v6276_v20, %v6275_v43  ;;  %v6550_v25 = vld [vmem:[%s11923_s7 + $0x180] sm:$0xff]  ;;  %v6280_v26 = vld [vmem:[#allocation4 + $0x3f] ss:$64 sm:$0x10]  ;;  %v6551_v34 = vld [vmem:[%s11923_s7 + $0x188] sm:$0xff]  ;;  %v6267_v56 = vor.u32 %v6266_v31, %v6265_v23 }
 0x466   :  { %8507 = vmatpush1.bf16.msra.mxu0 %v8506_v7  ;;  %8523 = vmatpush1.bf16.msra.mxu1 %v8522_v8  ;;  %v6237_v52 = vld [vmem:[#allocation4 + $0x36] ss:$64 sm:$0x80]  ;;  %v8560_v37 = vpack.c.bf16 %v6551_v34, %v6550_v25  ;;  %v6253_v63 = vld [vmem:[#allocation4 + $0x37] ss:$64 sm:$0x80] }
 0x467   :  { %8509 = vmatprep.subr.bf16.mxu0 %v8508_v10  ;;  %8525 = vmatprep.subr.bf16.mxu1 %v8524_v13  ;;  %v6279_v58 = vor.u32 %v6278_v32, %v6277_v11  ;;  %v6282_v24 = vld [vmem:[#allocation4 + $0x3f] ss:$64 sm:$0x20]  ;;  %v6269_v12 = vor.u32 %v6268_v33, %v6267_v56  ;;  %v6270_v0 = vld [vmem:[#allocation4 + $0x3e] ss:$64 sm:$0x80]  ;;  %v6238_v3 = vor.u32 %v6237_v52, %v6236_v29 }
 0x468   :  { %v6284_v1 = vld [vmem:[#allocation4 + $0x3f] ss:$64 sm:$0x40]  ;;  %v6254_v4 = vor.u32 %v6253_v63, %v6252_v53  ;;  %v6502_v40 = vld [vmem:[%s11923_s7] sm:$0xff]  ;;  %v6503_v42 = vld [vmem:[%s11923_s7 + $0x8] sm:$0xff] }
 0x469   :  { %v6281_v59 = vor.u32 %v6280_v26, %v6279_v58  ;;  %v6286_v36 = vld [vmem:[#allocation4 + $0x3f] ss:$64 sm:$0x80]  ;;  %v6271_v35 = vor.u32 %v6270_v0, %v6269_v12  ;;  %v6534_v44 = vld [vmem:[%s11923_s7 + $0x100] sm:$0xff]  ;;  %v6535_v45 = vld [vmem:[%s11923_s7 + $0x108] sm:$0xff]  ;;  %v8530_v54 = vpack.c.bf16 %v6503_v42, %v6502_v40 }
 0x46a   :  { %8511 = vmatpush1.bf16.msra.mxu0 %v8510_v27  ;;  %8527 = vmatpush1.bf16.msra.mxu1 %v8526_v30  ;;  %v6255_v39 = vmax.f32 %v6238_v3, %v6254_v4  ;;  %v6520_v41 = vld [vmem:[%s11923_s7 + $0x90] sm:$0xff]  ;;  %v6521_v46 = vld [vmem:[%s11923_s7 + $0x98] sm:$0xff]  ;;  %v8562_v2 = vpack.c.bf16 %v6535_v45, %v6534_v44  ;;  %v6522_v13 = vld [vmem:[%s11923_s7 + $0xa0] sm:$0xff] }
 0x46b   :  { %8529 = vmatprep.subr.bf16.mxu0 %v8528_v38  ;;  %8561 = vmatprep.subr.bf16.mxu1 %v8560_v37  ;;  %v6283_v5 = vor.u32 %v6282_v24, %v6281_v59  ;;  %v6552_v47 = vld [vmem:[%s11923_s7 + $0x190] sm:$0xff]  ;;  %v6553_v50 = vld [vmem:[%s11923_s7 + $0x198] sm:$0xff]  ;;  %v8532_v8 = vpack.c.bf16 %v6521_v46, %v6520_v41  ;;  %v6523_v61 = vld [vmem:[%s11923_s7 + $0xa8] sm:$0xff] }
 0x46c   :  { %v6504_v55 = vld [vmem:[%s11923_s7 + $0x10] sm:$0xff]  ;;  %v6505_v60 = vld [vmem:[%s11923_s7 + $0x18] sm:$0xff]  ;;  %v8564_v10 = vpack.c.bf16 %v6553_v50, %v6552_v47  ;;  %v6554_v14 = vld [vmem:[%s11923_s7 + $0x1a0] sm:$0xff]  ;;  %v8536_v20 = vpack.c.bf16 %v6523_v61, %v6522_v13 }
 0x46d   :  { %v6285_v6 = vor.u32 %v6284_v1, %v6283_v5  ;;  %v6536_v57 = vld [vmem:[%s11923_s7 + $0x110] sm:$0xff]  ;;  %v6537_v49 = vld [vmem:[%s11923_s7 + $0x118] sm:$0xff]  ;;  %v6555_v15 = vld [vmem:[%s11923_s7 + $0x1a8] sm:$0xff]  ;;  %v8534_v16 = vpack.c.bf16 %v6505_v60, %v6504_v55 }
 0x46e   :  { %v8566_v62 = vpack.c.bf16 %v6537_v49, %v6536_v57  ;;  %v6506_v17 = vld [vmem:[%s11923_s7 + $0x20] sm:$0xff]  ;;  %v6507_v18 = vld [vmem:[%s11923_s7 + $0x28] sm:$0xff]  ;;  %v8568_v21 = vpack.c.bf16 %v6555_v15, %v6554_v14  ;;  %v6524_v19 = vld [vmem:[%s11923_s7 + $0xb0] sm:$0xff] }
 0x46f   :  { %v6287_v9 = vor.u32 %v6286_v36, %v6285_v6  ;;  %v6538_v22 = vld [vmem:[%s11923_s7 + $0x120] sm:$0xff]  ;;  %v6539_v28 = vld [vmem:[%s11923_s7 + $0x128] sm:$0xff]  ;;  %v6525_v43 = vld [vmem:[%s11923_s7 + $0xb8] sm:$0xff]  ;;  %v8538_v31 = vpack.c.bf16 %v6507_v18, %v6506_v17 }
 0x470   :  { %v6556_v27 = vld [vmem:[%s11923_s7 + $0x1b0] sm:$0xff]  ;;  %v6557_v30 = vld [vmem:[%s11923_s7 + $0x1b8] sm:$0xff]  ;;  %v8570_v32 = vpack.c.bf16 %v6539_v28, %v6538_v22  ;;  %v8540_v11 = vpack.c.bf16 %v6525_v43, %v6524_v19  ;;  %v6526_v26 = vld [vmem:[%s11923_s7 + $0xc0] sm:$0xff]  ;;  %v6474_v22 = vlaneseq }
 0x471   :  { %v6288_v51 = vmax.f32 %v6271_v35, %v6287_v9  ;;  %v6508_v23 = vld [vmem:[%s11923_s7 + $0x30] sm:$0xff]  ;;  %v6509_v33 = vld [vmem:[%s11923_s7 + $0x38] sm:$0xff]  ;;  %v8572_v48 = vpack.c.bf16 %v6557_v30, %v6556_v27  ;;  %v6527_v38 = vld [vmem:[%s11923_s7 + $0xc8] sm:$0xff] }
 0x472   :  { %v6540_v25 = vld [vmem:[%s11923_s7 + $0x130] sm:$0xff]  ;;  %v6541_v29 = vld [vmem:[%s11923_s7 + $0x138] sm:$0xff]  ;;  %v6558_v34 = vld [vmem:[%s11923_s7 + $0x1c0] sm:$0xff]  ;;  %v8542_v53 = vpack.c.bf16 %v6509_v33, %v6508_v23  ;;  %v8544_v63 = vpack.c.bf16 %v6527_v38, %v6526_v26  ;;  %v6475_v28 = vshrl.u32 %v6474_v22, 7 }
 0x473   :  { %v6289_v7 = vmax.f32 %v6255_v39, %v6288_v51  ;;  %v6559_v52 = vld [vmem:[%s11923_s7 + $0x1c8] sm:$0xff]  ;;  %v8574_v56 = vpack.c.bf16 %v6541_v29, %v6540_v25  ;;  %v6510_v58 = vld [vmem:[%s11923_s7 + $0x40] sm:$0xff]  ;;  %v6528_v0 = vld [vmem:[%s11923_s7 + $0xd0] sm:$0xff] }
 0x474   :  { %v6511_v37 = vld [vmem:[%s11923_s7 + $0x48] sm:$0xff]  ;;  %v8576_v24 = vpack.c.bf16 %v6559_v52, %v6558_v34  ;;  %v6542_v12 = vld [vmem:[%s11923_s7 + $0x140] sm:$0xff]  ;;  %v6529_v1 = vld [vmem:[%s11923_s7 + $0xd8] sm:$0xff]  ;;  %v6476_v19 = vsub.s32 0, %v6475_v28  ;;  %v6484_v43 = vsub.s32 2, %v6475_v28  ;;  %v6480_v30 = vsub.s32 1, %v6475_v28 }
 0x475   :  { %7532 = vmatmul.mubr.msk.f32.vlgmr.msra.gmra.mrb[0].mxu0 %vm2695_vm8, %v6289_v7  ;;  %7533 = vmatmul.mubr.msk.f32.vlgmr.msra.gmra.mrb[0].mxu1 %vm2695_vm8, %v6289_v7  ;;  %v6543_v59 = vld [vmem:[%s11923_s7 + $0x148] sm:$0xff]  ;;  %v6560_v3 = vld [vmem:[%s11923_s7 + $0x1d0] sm:$0xff]  ;;  %v6561_v4 = vld [vmem:[%s11923_s7 + $0x1d8] sm:$0xff]  ;;  %v8546_v5 = vpack.c.bf16 %v6511_v37, %v6510_v58  ;;  %v8548_v40 = vpack.c.bf16 %v6529_v1, %v6528_v0 }
 0x476   :  { %8531 = vmatpush3.bf16.msra.mxu0 %v8530_v54  ;;  %8563 = vmatpush3.bf16.msra.mxu1 %v8562_v2  ;;  %v8578_v36 = vpack.c.bf16 %v6543_v59, %v6542_v12  ;;  %v6512_v35 = vld [vmem:[%s11923_s7 + $0x50] sm:$0xff]  ;;  %v6513_v6 = vld [vmem:[%s11923_s7 + $0x58] sm:$0xff]  ;;  %v8580_v42 = vpack.c.bf16 %v6561_v4, %v6560_v3  ;;  %v6530_v44 = vld [vmem:[%s11923_s7 + $0xe0] sm:$0xff] }
 0x477   :  { %8533 = vmatprep.subr.bf16.mxu0 %v8532_v8  ;;  %8565 = vmatprep.subr.bf16.mxu1 %v8564_v10  ;;  %v6544_v39 = vld [vmem:[%s11923_s7 + $0x150] sm:$0xff]  ;;  %v6545_v9 = vld [vmem:[%s11923_s7 + $0x158] sm:$0xff]  ;;  %v6531_v45 = vld [vmem:[%s11923_s7 + $0xe8] sm:$0xff]  ;;  %v8550_v47 = vpack.c.bf16 %v6513_v6, %v6512_v35 }
 0x478   :  { %v6562_v41 = vld [vmem:[%s11923_s7 + $0x1e0] sm:$0xff]  ;;  %v6563_v46 = vld [vmem:[%s11923_s7 + $0x1e8] sm:$0xff]  ;;  %v8582_v50 = vpack.c.bf16 %v6545_v9, %v6544_v39  ;;  %v8552_v51 = vpack.c.bf16 %v6531_v45, %v6530_v44  ;;  %v6532_v57 = vld [vmem:[%s11923_s7 + $0xf0] sm:$0xff] }
 0x479   :  { %v8584_v54 = vpack.c.bf16 %v6563_v46, %v6562_v41  ;;  %v6514_v2 = vld [vmem:[%s11923_s7 + $0x60] sm:$0xff]  ;;  %v6515_v55 = vld [vmem:[%s11923_s7 + $0x68] sm:$0xff]  ;;  %v6533_v49 = vld [vmem:[%s11923_s7 + $0xf8] sm:$0xff] }
 0x47a   :  { %8535 = vmatpush3.bf16.msra.mxu0 %v8534_v16  ;;  %8567 = vmatpush3.bf16.msra.mxu1 %v8566_v62  ;;  %v6546_v60 = vld [vmem:[%s11923_s7 + $0x160] sm:$0xff]  ;;  %v8554_v7 = vpack.c.bf16 %v6515_v55, %v6514_v2  ;;  %v6547_v8 = vld [vmem:[%s11923_s7 + $0x168] sm:$0xff]  ;;  %v6564_v13 = vld [vmem:[%s11923_s7 + $0x1f0] sm:$0xff]  ;;  %v8556_v61 = vpack.c.bf16 %v6533_v49, %v6532_v57 }
 0x47b   :  { %8537 = vmatprep.subr.bf16.mxu0 %v8536_v20  ;;  %8569 = vmatprep.subr.bf16.mxu1 %v8568_v21  ;;  %v8586_v10 = vpack.c.bf16 %v6547_v8, %v6546_v60  ;;  %v6565_v14 = vld [vmem:[%s11923_s7 + $0x1f8] sm:$0xff]  ;;  %v6516_v15 = vld [vmem:[%s11923_s7 + $0x70] sm:$0xff]  ;;  %v6472_v27 = vld [vmem:[%s11922_s6] sm:$0xf] }
 0x47c   :  { %v6517_v16 = vld [vmem:[%s11923_s7 + $0x78] sm:$0xff]  ;;  %v8588_v62 = vpack.c.bf16 %v6565_v14, %v6564_v13  ;;  %v6548_v18 = vld [vmem:[%s11923_s7 + $0x170] sm:$0xff]  ;;  %v6485_v23 = vrot.slane %v6472_v27, %v6484_v43  ;;  %v6481_v33 = vrot.slane %v6472_v27, %v6480_v30  ;;  %v7534_v59 = vld [vmem:[%s11924_s8] ss:$0 sm:$0xff] }
 0x47d   :  { %v8558_v17 = vpack.c.bf16 %v6517_v16, %v6516_v15  ;;  %v6549_v20 = vld [vmem:[%s11923_s7 + $0x178] sm:$0xff] }
 0x47e   :  { %8539 = vmatpush3.bf16.msra.mxu0 %v8538_v31  ;;  %8571 = vmatpush3.bf16.msra.mxu1 %v8570_v32  ;;  %v8590_v21 = vpack.c.bf16 %v6549_v20, %v6548_v18  ;;  %v6488_v31 = vsub.s32 3, %v6475_v28  ;;  %v6477_v32 = vrot.slane %v6472_v27, %v6476_v19 }
 0x47f   :  { %8541 = vmatprep.subr.bf16.mxu0 %v8540_v11  ;;  %8573 = vmatprep.subr.bf16.mxu1 %v8572_v48 }
 0x480   :  { %v6489_v11 = vrot.slane %v6472_v27, %v6488_v31 }
 0x482   :  { %8543 = vmatpush3.bf16.msra.mxu0 %v8542_v53  ;;  %8575 = vmatpush3.bf16.msra.mxu1 %v8574_v56 }
 0x483   :  { %8545 = vmatprep.subr.bf16.mxu0 %v8544_v63  ;;  %8577 = vmatprep.subr.bf16.mxu1 %v8576_v24 }
 0x486   :  { %8547 = vmatpush3.bf16.msra.mxu0 %v8546_v5  ;;  %8579 = vmatpush3.bf16.msra.mxu1 %v8578_v36 }
 0x487   :  { %8549 = vmatprep.subr.bf16.mxu0 %v8548_v40  ;;  %8581 = vmatprep.subr.bf16.mxu1 %v8580_v42 }
 0x48a   :  { %8551 = vmatpush3.bf16.msra.mxu0 %v8550_v47  ;;  %8583 = vmatpush3.bf16.msra.mxu1 %v8582_v50 }
 0x48b   :  { %8553 = vmatprep.subr.bf16.mxu0 %v8552_v51  ;;  %8585 = vmatprep.subr.bf16.mxu1 %v8584_v54 }
 0x48e   :  { %8555 = vmatpush3.bf16.msra.mxu0 %v8554_v7  ;;  %8587 = vmatpush3.bf16.msra.mxu1 %v8586_v10 }
 0x48f   :  { %8557 = vmatprep.subr.bf16.mxu0 %v8556_v61  ;;  %8589 = vmatprep.subr.bf16.mxu1 %v8588_v62 }
 0x492   :  { %8559 = vmatpush3.bf16.msra.mxu0 %v8558_v17  ;;  %8591 = vmatpush3.bf16.msra.mxu1 %v8590_v21 }
 0x548   :  { %v6392_v48 = vpop.f32.mrb[0].mxu0  ;;  %v6463_v25 = vpop.f32.mrb[0].mxu1 }
 0x549   :  { %v6494_v29 = vadd.f32 %v6477_v32, %v6392_v48  ;;  %v6496_v26 = vadd.f32 %v6485_v23, %v6463_v25  ;;  %v6394_v38 = vpop.f32.mrb[1].mxu0  ;;  %v6465_v34 = vpop.f32.mrb[1].mxu1 }
 0x54a   :  { %v6495_v52 = vadd.f32 %v6481_v33, %v6394_v38  ;;  %v6497_v53 = vadd.f32 %v6489_v11, %v6465_v34 }
 0x54b   :  { %v6498_v37 = vmax.f32 %v6494_v29, 0.0  ;;  %v6500_v63 = vmax.f32 %v6496_v26, 0.0 }
 0x54c   :  { %v6499_v56 = vmax.f32 %v6495_v52, 0.0  ;;  %v6501_v58 = vmax.f32 %v6497_v53, 0.0 }
 0x54e   :  { %6637 = vmatprep.mubr.f32.mxu0 %v6499_v56  ;;  %6707 = vmatprep.mubr.f32.mxu1 %v6501_v58 }
 0x54f   :  { %6638 = vmatmul.mubr.f32.vlgmr.msra.gmra.mrb[2].mxu0 %v6498_v37  ;;  %6708 = vmatmul.mubr.f32.vlgmr.msra.gmra.mrb[2].mxu1 %v6500_v63 }
 0x622   :  { %v7656_v24 = vpop.f32.mrb[2].mxu0  ;;  %v7691_v12 = vpop.f32.mrb[2].mxu1 }
 0x623   :  { %v7657_v0 = vpop.f32.mrb[3].mxu0  ;;  %v7692_v1 = vpop.f32.mrb[3].mxu1 }
 0x624   :  { %v7658_v3 = vadd.f32 %v7657_v0, %v7656_v24  ;;  %v7693_v4 = vadd.f32 %v7692_v1, %v7691_v12 }
 0x626   :  { %v6640_v5 = vadd.f32 %v7658_v3, %v7534_v59 }
 0x628   :  { %v6710_v36 = vadd.f32 %v7693_v4, %v6640_v5 }
 0x62a   :  { %6713 = vst [vmem:[%s11925_s9] sm:$0xff] %v6710_v36 }

</bundles_post_ra>
